<compile_context>
chip_gen: v7x
topology: tpu7x:2x2x1
jax: 0.10.0
libtpu: 0.0.40
codegen_flags: <defaults>
</compile_context>

<pallas_src>
import math

import jax
import jax.numpy as jnp
from jax import lax
from jax.experimental import pallas as pl
from jax.experimental.pallas import tpu as pltpu  # noqa: F401  (TPU backend)


# --------------------------------------------------------------------------
# Config (constructor arguments of the module, small demo-sized values)
# --------------------------------------------------------------------------
B = 2
IN_DIM = 1            # forced to 1 by the global branch's unsqueeze(1).unsqueeze(1)
OUT_DIM = 128         # d_model
T = 9                 # temporal length  -> conv (2,1) gives 8 conv tokens
F = 48                # global feature dim -> conv (1,48)/48 gives 1 conv token
TEMPORAL_PREFIX = 24
GLOBAL_PREFIX = 7
NUM_HEADS = 4
NUM_LAYERS = 2
DFF = 4 * OUT_DIM


# --------------------------------------------------------------------------
# Fused per-branch kernel: conv + PE + prefix + N transformer layers
# --------------------------------------------------------------------------
def _layer_norm(x, gamma, beta, eps=1e-5):
    mu = jnp.mean(x, axis=-1, keepdims=True)
    var = jnp.mean(jnp.square(x - mu), axis=-1, keepdims=True)
    return (x - mu) * lax.rsqrt(var + eps) * gamma + beta


def _make_branch_kernel(*, is_temporal, Bn, L, P, D, H, n_layers):
    """Whole-branch kernel.  Sequence layout per batch: [P prefix rows, L conv rows]."""
    S = P + L
    dh = D // H
    scale = 1.0 / math.sqrt(dh)

    def kernel(*refs):
        front = refs[:5]
        layer_refs = refs[5:5 + 5 * n_layers]
        o_ref = refs[5 + 5 * n_layers]

        # ---- conv front-end (fused) --------------------------------------
        if is_temporal:
            # (2,1) conv over time as two VPU multiply-adds (no im2col matmul).
            x0_ref, x1_ref, mask_ref, cslab_ref, xinit_ref = front
            cs = cslab_ref[...]                      # [3, D]: w_t0, w_t1, bias
            conv = (x0_ref[...] * cs[0:1, :] +
                    x1_ref[...] * cs[1:2, :] + cs[2:3, :])          # [B*S, D]
        else:
            # (1,48)/48 conv == a single [.,48]@[48,D] matmul.
            xg_ref, mask_ref, cw_ref, cb_ref, xinit_ref = front
            conv = jnp.dot(xg_ref[...], cw_ref[...],
                           preferred_element_type=jnp.float32) + cb_ref[...]
        conv = jnp.maximum(conv, 0.0)                               # ReLU

        # Sequence assembly without any in-kernel concat:
        #   x_init holds prefix rows + (PE for conv rows | zeros),
        #   mask keeps conv output only on conv rows.
        x = xinit_ref[...] + mask_ref[...] * conv                   # [B*S, D]

        # ---- transformer encoder layers (post-LN, ReLU FFN) --------------
        for li in range(n_layers):
            wqkv_ref, wo_ref, w1_ref, w2_ref, slab_ref = layer_refs[5 * li:5 * li + 5]
            slab = slab_ref[...]                     # [8, DFF] f32 packed vectors
            bqkv = slab[0:1, :3 * D]
            bo = slab[1:2, :D]
            g1 = slab[2:3, :D]
            be1 = slab[3:4, :D]
            b1 = slab[4:5, :]                        # [1, DFF]
            b2 = slab[5:6, :D]
            g2 = slab[6:7, :D]
            be2 = slab[7:8, :D]

            # fused QKV projection, batch folded into M, bf16 on the MXU
            qkv = jnp.dot(x.astype(jnp.bfloat16), wqkv_ref[...],
                          preferred_element_type=jnp.float32) + bqkv
            q = qkv[:, :D] * scale                   # fold 1/sqrt(dh) into q once
            k = qkv[:, D:2 * D]
            v = qkv[:, 2 * D:3 * D]

            wo = wo_ref[...]                         # [D, D] f32
            blocks = []
            for b in range(Bn):                      # static, tiny B
                r0 = b * S
                qb = q[r0:r0 + S, :]
                kb = k[r0:r0 + S, :]
                vb = v[r0:r0 + S, :]
                acc = None
                for h in range(H):                   # static head unroll
                    c0 = h * dh
                    qh = qb[:, c0:c0 + dh]
                    kh = kb[:, c0:c0 + dh]
                    vh = vb[:, c0:c0 + dh]
                    # q . k^T via dot_general contracting on dh (no transpose)
                    scores = lax.dot_general(
                        qh, kh, (((1,), (1,)), ((), ())),
                        preferred_element_type=jnp.float32)          # [S, S]
                    scores = scores - jnp.max(scores, axis=-1, keepdims=True)
                    probs = jnp.exp(scores)
                    probs = probs * pl.reciprocal(
                        jnp.sum(probs, axis=-1, keepdims=True), approx=True)
                    oh = jnp.dot(probs, vh,
                                 preferred_element_type=jnp.float32)  # [S, dh]
                    # accumulate through the matching W_O rows: no head concat
                    contrib = jnp.dot(oh, wo[c0:c0 + dh, :],
                                      preferred_element_type=jnp.float32)
                    acc = contrib if acc is None else acc + contrib
                blocks.append(acc)
            attn = jnp.concatenate(blocks, axis=0) + bo              # [B*S, D]

            y = _layer_norm(x + attn, g1, be1)
            f = jnp.dot(y.astype(jnp.bfloat16), w1_ref[...],
                        preferred_element_type=jnp.float32) + b1
            f = jnp.maximum(f, 0.0)
            f = jnp.dot(f.astype(jnp.bfloat16), w2_ref[...],
                        preferred_element_type=jnp.float32) + b2
            x = _layer_norm(y + f, g2, be2)

        # ---- emit only the prefix-token rows: [B, P, D] -------------------
        for b in range(Bn):
            o_ref[b] = x[b * S:b * S + P, :]

    return kernel


def _branch_call(branch_params, front_args, *, is_temporal, Bn, L, P):
    D = OUT_DIM
    kernel = _make_branch_kernel(is_temporal=is_temporal, Bn=Bn, L=L, P=P,
                                 D=D, H=NUM_HEADS, n_layers=NUM_LAYERS)
    layer_args = []
    for lp in branch_params["layers"]:
        layer_args += [lp["wqkv"], lp["wo"], lp["w1"], lp["w2"], lp["slab"]]
    # No grid: single invocation, all operands resident in VMEM (~1 MB weights).
    return pl.pallas_call(
        kernel,
        out_shape=jax.ShapeDtypeStruct((Bn, P, D), jnp.float32),
    )(*front_args, *layer_args)


# --------------------------------------------------------------------------
# Plain-JAX glue: positional encoding table + tiny input-prep (scatter/pad)
# --------------------------------------------------------------------------
def positional_encoding(seq_len, d_model):
    position = jnp.arange(seq_len, dtype=jnp.float32)[:, None]
    div_term = jnp.exp(jnp.arange(0, d_model, 2, dtype=jnp.float32)
                       * (-math.log(10000.0) / d_model))
    ang = position * div_term
    pe = jnp.zeros((seq_len, d_model), jnp.float32)
    pe = pe.at[:, 0::2].set(jnp.sin(ang))
    pe = pe.at[:, 1::2].set(jnp.cos(ang))
    return pe          # nn.Dropout(p=0.1) of PositionalEncoding: identity (eval)


def _row_mask(P, L, Bn):
    return jnp.tile(jnp.concatenate(
        [jnp.zeros((P, 1), jnp.float32), jnp.ones((L, 1), jnp.float32)], axis=0),
        (Bn, 1))


def _temporal_branch(params_t, temporal_embeds):
    # temporal_embeds: [B, 1, 1, T]  (NCHW, time on W; permuted to (2,1) conv)
    Bn = temporal_embeds.shape[0]
    Tn = temporal_embeds.shape[-1]
    L = Tn - 1                                  # (2,1) conv, stride 1
    P = TEMPORAL_PREFIX
    S = P + L
    D = OUT_DIM
    xt = temporal_embeds[:, 0, 0, :]                                 # [B, T]
    x0 = jnp.pad(xt[:, :L], ((0, 0), (P, 0))).reshape(Bn * S, 1)     # conv tap 0
    x1 = jnp.pad(xt[:, 1:L + 1], ((0, 0), (P, 0))).reshape(Bn * S, 1)
    mask = _row_mask(P, L, Bn)
    x_init = jnp.tile(jnp.concatenate(
        [params_t["prefix_const"], positional_encoding(L, D)], axis=0), (Bn, 1))
    conv_slab = jnp.concatenate([params_t["conv_w"], params_t["conv_b"]], axis=0)
    return _branch_call(params_t, (x0, x1, mask, conv_slab, x_init),
                        is_temporal=True, Bn=Bn, L=L, P=P)           # [B, 24, D]


def _global_branch(params_g, global_embeds):
    # global_embeds: [B, F];  F // 48 must be 1 (squeeze(3) in the reference)
    Bn, Fn = global_embeds.shape
    kw = 48
    L = (Fn - kw) // kw + 1
    assert L == 1, "squeeze(3) in the reference requires a single conv window"
    P = GLOBAL_PREFIX
    S = P + L
    D = OUT_DIM
    xg = jnp.pad(global_embeds[:, None, :kw],
                 ((0, 0), (P, 0), (0, 0))).reshape(Bn * S, kw)       # [B*S, 48]
    mask = _row_mask(P, L, Bn)
    x_init = jnp.tile(jnp.concatenate(
        [params_g["prefix_const"], jnp.zeros((L, D), jnp.float32)], axis=0),
        (Bn, 1))
    return _branch_call(params_g, (xg, mask, params_g["conv_w"],
                                   params_g["conv_b"], x_init),
                        is_temporal=False, Bn=Bn, L=L, P=P)          # [B, 7, D]


def local_global_forward(params, temporal_embeds, global_embeds):
    t = _temporal_branch(params["temporal"], temporal_embeds)
    g = _global_branch(params["global"], global_embeds)
    return jnp.concatenate([t, g], axis=1)       # [B, temporal+global prefix, D]


# --------------------------------------------------------------------------
# Deterministic parameter init (synthetic), pre-packed for the fused kernel
# --------------------------------------------------------------------------
def _torch_default(key, fan_in, shape):
    bound = 1.0 / math.sqrt(fan_in)
    return jax.random.uniform(key, shape, jnp.float32, -bound, bound)


def _kaiming_uniform(key, fan_in, shape):
    bound = math.sqrt(6.0 / fan_in)
    return jax.random.uniform(key, shape, jnp.float32, -bound, bound)


def init_transformer_layer(key, d, dff):
    assert 3 * d <= dff
    ks = jax.random.split(key, 12)
    wq = _torch_default(ks[0], d, (d, d)); bq = _torch_default(ks[1], d, (1, d))
    wk = _torch_default(ks[2], d, (d, d)); bk = _torch_default(ks[3], d, (1, d))
    wv = _torch_default(ks[4], d, (d, d)); bv = _torch_default(ks[5], d, (1, d))
    wo = _torch_default(ks[6], d, (d, d)); bo = _torch_default(ks[7], d, (1, d))
    w1 = _torch_default(ks[8], d, (d, dff)); b1 = _torch_default(ks[9], d, (1, dff))
    w2 = _torch_default(ks[10], dff, (dff, d)); b2 = _torch_default(ks[11], dff, (1, d))
    g1 = jnp.ones((1, d), jnp.float32); be1 = jnp.zeros((1, d), jnp.float32)
    g2 = jnp.ones((1, d), jnp.float32); be2 = jnp.zeros((1, d), jnp.float32)

    def pad_row(v):                     # pad a [1, <=dff] vector to [1, dff]
        return jnp.pad(v, ((0, 0), (0, dff - v.shape[1])))

    slab = jnp.concatenate(
        [pad_row(jnp.concatenate([bq, bk, bv], axis=1)),   # row 0: b_qkv
         pad_row(bo),                                      # row 1: b_o
         pad_row(g1), pad_row(be1),                        # rows 2,3: LN1
         b1,                                               # row 4: b_ffn1
         pad_row(b2),                                      # row 5: b_ffn2
         pad_row(g2), pad_row(be2)], axis=0)               # rows 6,7: LN2
    return {
        "wqkv": jnp.concatenate([wq, wk, wv], axis=1).astype(jnp.bfloat16),
        "wo": wo,                                          # f32 (per-head accum path)
        "w1": w1.astype(jnp.bfloat16),
        "w2": w2.astype(jnp.bfloat16),
        "slab": slab,                                      # [8, dff] f32
    }


def init_mapping_net(key, in_dim, out_dim, kernel_hw, prefix_len, num_layers, dff):
    kc = kernel_hw[0] * kernel_hw[1] * in_dim
    ks = jax.random.split(key, 3 + num_layers)
    return {
        "conv_w": _torch_default(ks[0], kc, (kc, out_dim)),   # [k*C, D]
        "conv_b": _torch_default(ks[1], kc, (1, out_dim)),
        "prefix_const": _kaiming_uniform(ks[2], out_dim, (prefix_len, out_dim)),
        "layers": [init_transformer_layer(ks[3 + i], out_dim, dff)
                   for i in range(num_layers)],
    }


def init_local_global(key):
    k_t, k_g = jax.random.split(key, 2)
    return {
        "temporal": init_mapping_net(k_t, IN_DIM, OUT_DIM, (2, 1),
                                     TEMPORAL_PREFIX, NUM_LAYERS, DFF),
        "global": init_mapping_net(k_g, IN_DIM, OUT_DIM, (1, 48),
                                   GLOBAL_PREFIX, NUM_LAYERS, DFF),
    }


# --------------------------------------------------------------------------
if __name__ == "__main__":
    key = jax.random.PRNGKey(0)
    k_params, k_t, k_g = jax.random.split(key, 3)

    params = init_local_global(k_params)
    temporal_embeds = jax.random.normal(k_t, (B, IN_DIM, 1, T), jnp.float32)
    global_embeds = jax.random.normal(k_g, (B, F), jnp.float32)

    fwd = jax.jit(local_global_forward)
    out = fwd(params, temporal_embeds, global_embeds)
    out = jax.block_until_ready(out)

    assert out.shape == (B, TEMPORAL_PREFIX + GLOBAL_PREFIX, OUT_DIM), out.shape
    assert bool(jnp.all(jnp.isfinite(out)))
    print("KERNEL_OK")
</pallas_src>

<mosaic_0001>
module attributes {stable_mosaic.version = 11 : i64} {
  func.func @kernel(%arg0: memref<64x1xf32, #tpu.memory_space<vmem>>, %arg1: memref<64x1xf32, #tpu.memory_space<vmem>>, %arg2: memref<64x1xf32, #tpu.memory_space<vmem>>, %arg3: memref<3x128xf32, #tpu.memory_space<vmem>>, %arg4: memref<64x128xf32, #tpu.memory_space<vmem>>, %arg5: memref<128x384xbf16, #tpu.memory_space<vmem>>, %arg6: memref<128x128xf32, #tpu.memory_space<vmem>>, %arg7: memref<128x512xbf16, #tpu.memory_space<vmem>>, %arg8: memref<512x128xbf16, #tpu.memory_space<vmem>>, %arg9: memref<8x512xf32, #tpu.memory_space<vmem>>, %arg10: memref<128x384xbf16, #tpu.memory_space<vmem>>, %arg11: memref<128x128xf32, #tpu.memory_space<vmem>>, %arg12: memref<128x512xbf16, #tpu.memory_space<vmem>>, %arg13: memref<512x128xbf16, #tpu.memory_space<vmem>>, %arg14: memref<8x512xf32, #tpu.memory_space<vmem>>, %arg15: memref<2x24x128xf32, #tpu.memory_space<vmem>>) attributes {dimension_semantics = [], scalar_prefetch = 0 : i64, scratch_operands = 0 : i64, tpu.core_type = #tpu.core_type<tc>} {
    %c0 = arith.constant 0 : index
    %c0_0 = arith.constant 0 : index
    %0 = vector.load %arg3[%c0, %c0_0] : memref<3x128xf32, #tpu.memory_space<vmem>>, vector<3x128xf32>
    %c0_1 = arith.constant 0 : index
    %c0_2 = arith.constant 0 : index
    %1 = vector.load %arg0[%c0_1, %c0_2] : memref<64x1xf32, #tpu.memory_space<vmem>>, vector<64x1xf32>
    %2 = vector.extract_strided_slice %0 {offsets = [0, 0], sizes = [1, 128], strides = [1, 1]} : vector<3x128xf32> to vector<1x128xf32>
    %3 = vector.broadcast %1 : vector<64x1xf32> to vector<64x128xf32>
    %4 = vector.broadcast %2 : vector<1x128xf32> to vector<64x128xf32>
    %5 = arith.mulf %3, %4 : vector<64x128xf32>
    %c0_3 = arith.constant 0 : index
    %c0_4 = arith.constant 0 : index
    %6 = vector.load %arg1[%c0_3, %c0_4] : memref<64x1xf32, #tpu.memory_space<vmem>>, vector<64x1xf32>
    %7 = vector.extract_strided_slice %0 {offsets = [1, 0], sizes = [1, 128], strides = [1, 1]} : vector<3x128xf32> to vector<1x128xf32>
    %8 = vector.broadcast %6 : vector<64x1xf32> to vector<64x128xf32>
    %9 = vector.broadcast %7 : vector<1x128xf32> to vector<64x128xf32>
    %10 = arith.mulf %8, %9 : vector<64x128xf32>
    %11 = arith.addf %5, %10 : vector<64x128xf32>
    %12 = vector.extract_strided_slice %0 {offsets = [2, 0], sizes = [1, 128], strides = [1, 1]} : vector<3x128xf32> to vector<1x128xf32>
    %13 = vector.broadcast %12 : vector<1x128xf32> to vector<64x128xf32>
    %14 = arith.addf %11, %13 : vector<64x128xf32>
    %cst = arith.constant 0.000000e+00 : f32
    %15 = vector.broadcast %cst : f32 to vector<64x128xf32>
    %16 = arith.maximumf %14, %15 : vector<64x128xf32>
    %c0_5 = arith.constant 0 : index
    %c0_6 = arith.constant 0 : index
    %17 = vector.load %arg4[%c0_5, %c0_6] : memref<64x128xf32, #tpu.memory_space<vmem>>, vector<64x128xf32>
    %c0_7 = arith.constant 0 : index
    %c0_8 = arith.constant 0 : index
    %18 = vector.load %arg2[%c0_7, %c0_8] : memref<64x1xf32, #tpu.memory_space<vmem>>, vector<64x1xf32>
    %19 = vector.broadcast %18 : vector<64x1xf32> to vector<64x128xf32>
    %20 = arith.mulf %19, %16 : vector<64x128xf32>
    %21 = arith.addf %17, %20 : vector<64x128xf32>
    %c0_9 = arith.constant 0 : index
    %c0_10 = arith.constant 0 : index
    %22 = vector.load %arg9[%c0_9, %c0_10] : memref<8x512xf32, #tpu.memory_space<vmem>>, vector<8x512xf32>
    %23 = vector.extract_strided_slice %22 {offsets = [0, 0], sizes = [1, 384], strides = [1, 1]} : vector<8x512xf32> to vector<1x384xf32>
    %24 = vector.extract_strided_slice %22 {offsets = [1, 0], sizes = [1, 128], strides = [1, 1]} : vector<8x512xf32> to vector<1x128xf32>
    %25 = vector.extract_strided_slice %22 {offsets = [2, 0], sizes = [1, 128], strides = [1, 1]} : vector<8x512xf32> to vector<1x128xf32>
    %26 = vector.extract_strided_slice %22 {offsets = [3, 0], sizes = [1, 128], strides = [1, 1]} : vector<8x512xf32> to vector<1x128xf32>
    %27 = vector.extract_strided_slice %22 {offsets = [4, 0], sizes = [1, 512], strides = [1, 1]} : vector<8x512xf32> to vector<1x512xf32>
    %28 = vector.extract_strided_slice %22 {offsets = [5, 0], sizes = [1, 128], strides = [1, 1]} : vector<8x512xf32> to vector<1x128xf32>
    %29 = vector.extract_strided_slice %22 {offsets = [6, 0], sizes = [1, 128], strides = [1, 1]} : vector<8x512xf32> to vector<1x128xf32>
    %30 = vector.extract_strided_slice %22 {offsets = [7, 0], sizes = [1, 128], strides = [1, 1]} : vector<8x512xf32> to vector<1x128xf32>
    %31 = arith.truncf %21 : vector<64x128xf32> to vector<64x128xbf16>
    %c0_11 = arith.constant 0 : index
    %c0_12 = arith.constant 0 : index
    %32 = vector.load %arg5[%c0_11, %c0_12] : memref<128x384xbf16, #tpu.memory_space<vmem>>, vector<128x384xbf16>
    %cst_13 = arith.constant dense<0.000000e+00> : vector<64x384xf32>
    %33 = tpu.matmul %31, %32, %cst_13 {dimension_numbers = #tpu.dot_dimension_numbers<[1], [0], [0], [1], [0, 0, 1, 1], [], []>} : vector<64x128xbf16>, vector<128x384xbf16>, vector<64x384xf32> -> vector<64x384xf32>
    %34 = vector.broadcast %23 : vector<1x384xf32> to vector<64x384xf32>
    %35 = arith.addf %33, %34 : vector<64x384xf32>
    %36 = vector.extract_strided_slice %35 {offsets = [0, 0], sizes = [64, 128], strides = [1, 1]} : vector<64x384xf32> to vector<64x128xf32>
    %cst_14 = arith.constant 0.176776692 : f32
    %37 = vector.broadcast %cst_14 : f32 to vector<64x128xf32>
    %38 = arith.mulf %36, %37 : vector<64x128xf32>
    %39 = vector.extract_strided_slice %35 {offsets = [0, 128], sizes = [64, 128], strides = [1, 1]} : vector<64x384xf32> to vector<64x128xf32>
    %40 = vector.extract_strided_slice %35 {offsets = [0, 256], sizes = [64, 128], strides = [1, 1]} : vector<64x384xf32> to vector<64x128xf32>
    %c0_15 = arith.constant 0 : index
    %c0_16 = arith.constant 0 : index
    %41 = vector.load %arg6[%c0_15, %c0_16] : memref<128x128xf32, #tpu.memory_space<vmem>>, vector<128x128xf32>
    %42 = vector.extract_strided_slice %38 {offsets = [0, 0], sizes = [32, 128], strides = [1, 1]} : vector<64x128xf32> to vector<32x128xf32>
    %43 = vector.extract_strided_slice %39 {offsets = [0, 0], sizes = [32, 128], strides = [1, 1]} : vector<64x128xf32> to vector<32x128xf32>
    %44 = vector.extract_strided_slice %40 {offsets = [0, 0], sizes = [32, 128], strides = [1, 1]} : vector<64x128xf32> to vector<32x128xf32>
    %45 = vector.extract_strided_slice %42 {offsets = [0, 0], sizes = [32, 32], strides = [1, 1]} : vector<32x128xf32> to vector<32x32xf32>
    %46 = vector.extract_strided_slice %43 {offsets = [0, 0], sizes = [32, 32], strides = [1, 1]} : vector<32x128xf32> to vector<32x32xf32>
    %47 = vector.extract_strided_slice %44 {offsets = [0, 0], sizes = [32, 32], strides = [1, 1]} : vector<32x128xf32> to vector<32x32xf32>
    %cst_17 = arith.constant dense<0.000000e+00> : vector<32x32xf32>
    %48 = tpu.matmul %45, %46, %cst_17 {dimension_numbers = #tpu.dot_dimension_numbers<[1], [1], [0], [0], [0, 0, 1, 0], [], []>} : vector<32x32xf32>, vector<32x32xf32>, vector<32x32xf32> -> vector<32x32xf32>
    %cst_18 = arith.constant dense<0xFF800000> : vector<32xf32>
    %49 = vector.multi_reduction <maximumf>, %48, %cst_18 [1] : vector<32x32xf32> to vector<32xf32>
    %50 = vector.shape_cast %49 : vector<32xf32> to vector<32x1xf32>
    %51 = vector.broadcast %50 : vector<32x1xf32> to vector<32x32xf32>
    %52 = arith.subf %48, %51 : vector<32x32xf32>
    %53 = math.exp %52 : vector<32x32xf32>
    %cst_19 = arith.constant dense<0.000000e+00> : vector<32xf32>
    %54 = vector.multi_reduction <add>, %53, %cst_19 [1] : vector<32x32xf32> to vector<32xf32>
    %55 = vector.shape_cast %54 : vector<32xf32> to vector<32x1xf32>
    %56 = tpu.reciprocal %55 {approx = true} : vector<32x1xf32> -> vector<32x1xf32>
    %57 = vector.broadcast %56 : vector<32x1xf32> to vector<32x32xf32>
    %58 = arith.mulf %53, %57 : vector<32x32xf32>
    %cst_20 = arith.constant dense<0.000000e+00> : vector<32x32xf32>
    %59 = tpu.matmul %58, %47, %cst_20 {dimension_numbers = #tpu.dot_dimension_numbers<[1], [0], [0], [1], [0, 0, 1, 1], [], []>} : vector<32x32xf32>, vector<32x32xf32>, vector<32x32xf32> -> vector<32x32xf32>
    %60 = vector.extract_strided_slice %41 {offsets = [0, 0], sizes = [32, 128], strides = [1, 1]} : vector<128x128xf32> to vector<32x128xf32>
    %cst_21 = arith.constant dense<0.000000e+00> : vector<32x128xf32>
    %61 = tpu.matmul %59, %60, %cst_21 {dimension_numbers = #tpu.dot_dimension_numbers<[1], [0], [0], [1], [0, 0, 1, 1], [], []>} : vector<32x32xf32>, vector<32x128xf32>, vector<32x128xf32> -> vector<32x128xf32>
    %62 = vector.extract_strided_slice %42 {offsets = [0, 32], sizes = [32, 32], strides = [1, 1]} : vector<32x128xf32> to vector<32x32xf32>
    %63 = vector.extract_strided_slice %43 {offsets = [0, 32], sizes = [32, 32], strides = [1, 1]} : vector<32x128xf32> to vector<32x32xf32>
    %64 = vector.extract_strided_slice %44 {offsets = [0, 32], sizes = [32, 32], strides = [1, 1]} : vector<32x128xf32> to vector<32x32xf32>
    %cst_22 = arith.constant dense<0.000000e+00> : vector<32x32xf32>
    %65 = tpu.matmul %62, %63, %cst_22 {dimension_numbers = #tpu.dot_dimension_numbers<[1], [1], [0], [0], [0, 0, 1, 0], [], []>} : vector<32x32xf32>, vector<32x32xf32>, vector<32x32xf32> -> vector<32x32xf32>
    %cst_23 = arith.constant dense<0xFF800000> : vector<32xf32>
    %66 = vector.multi_reduction <maximumf>, %65, %cst_23 [1] : vector<32x32xf32> to vector<32xf32>
    %67 = vector.shape_cast %66 : vector<32xf32> to vector<32x1xf32>
    %68 = vector.broadcast %67 : vector<32x1xf32> to vector<32x32xf32>
    %69 = arith.subf %65, %68 : vector<32x32xf32>
    %70 = math.exp %69 : vector<32x32xf32>
    %cst_24 = arith.constant dense<0.000000e+00> : vector<32xf32>
    %71 = vector.multi_reduction <add>, %70, %cst_24 [1] : vector<32x32xf32> to vector<32xf32>
    %72 = vector.shape_cast %71 : vector<32xf32> to vector<32x1xf32>
    %73 = tpu.reciprocal %72 {approx = true} : vector<32x1xf32> -> vector<32x1xf32>
    %74 = vector.broadcast %73 : vector<32x1xf32> to vector<32x32xf32>
    %75 = arith.mulf %70, %74 : vector<32x32xf32>
    %cst_25 = arith.constant dense<0.000000e+00> : vector<32x32xf32>
    %76 = tpu.matmul %75, %64, %cst_25 {dimension_numbers = #tpu.dot_dimension_numbers<[1], [0], [0], [1], [0, 0, 1, 1], [], []>} : vector<32x32xf32>, vector<32x32xf32>, vector<32x32xf32> -> vector<32x32xf32>
    %77 = vector.extract_strided_slice %41 {offsets = [32, 0], sizes = [32, 128], strides = [1, 1]} : vector<128x128xf32> to vector<32x128xf32>
    %cst_26 = arith.constant dense<0.000000e+00> : vector<32x128xf32>
    %78 = tpu.matmul %76, %77, %cst_26 {dimension_numbers = #tpu.dot_dimension_numbers<[1], [0], [0], [1], [0, 0, 1, 1], [], []>} : vector<32x32xf32>, vector<32x128xf32>, vector<32x128xf32> -> vector<32x128xf32>
    %79 = arith.addf %61, %78 : vector<32x128xf32>
    %80 = vector.extract_strided_slice %42 {offsets = [0, 64], sizes = [32, 32], strides = [1, 1]} : vector<32x128xf32> to vector<32x32xf32>
    %81 = vector.extract_strided_slice %43 {offsets = [0, 64], sizes = [32, 32], strides = [1, 1]} : vector<32x128xf32> to vector<32x32xf32>
    %82 = vector.extract_strided_slice %44 {offsets = [0, 64], sizes = [32, 32], strides = [1, 1]} : vector<32x128xf32> to vector<32x32xf32>
    %cst_27 = arith.constant dense<0.000000e+00> : vector<32x32xf32>
    %83 = tpu.matmul %80, %81, %cst_27 {dimension_numbers = #tpu.dot_dimension_numbers<[1], [1], [0], [0], [0, 0, 1, 0], [], []>} : vector<32x32xf32>, vector<32x32xf32>, vector<32x32xf32> -> vector<32x32xf32>
    %cst_28 = arith.constant dense<0xFF800000> : vector<32xf32>
    %84 = vector.multi_reduction <maximumf>, %83, %cst_28 [1] : vector<32x32xf32> to vector<32xf32>
    %85 = vector.shape_cast %84 : vector<32xf32> to vector<32x1xf32>
    %86 = vector.broadcast %85 : vector<32x1xf32> to vector<32x32xf32>
    %87 = arith.subf %83, %86 : vector<32x32xf32>
    %88 = math.exp %87 : vector<32x32xf32>
    %cst_29 = arith.constant dense<0.000000e+00> : vector<32xf32>
    %89 = vector.multi_reduction <add>, %88, %cst_29 [1] : vector<32x32xf32> to vector<32xf32>
    %90 = vector.shape_cast %89 : vector<32xf32> to vector<32x1xf32>
    %91 = tpu.reciprocal %90 {approx = true} : vector<32x1xf32> -> vector<32x1xf32>
    %92 = vector.broadcast %91 : vector<32x1xf32> to vector<32x32xf32>
    %93 = arith.mulf %88, %92 : vector<32x32xf32>
    %cst_30 = arith.constant dense<0.000000e+00> : vector<32x32xf32>
    %94 = tpu.matmul %93, %82, %cst_30 {dimension_numbers = #tpu.dot_dimension_numbers<[1], [0], [0], [1], [0, 0, 1, 1], [], []>} : vector<32x32xf32>, vector<32x32xf32>, vector<32x32xf32> -> vector<32x32xf32>
    %95 = vector.extract_strided_slice %41 {offsets = [64, 0], sizes = [32, 128], strides = [1, 1]} : vector<128x128xf32> to vector<32x128xf32>
    %cst_31 = arith.constant dense<0.000000e+00> : vector<32x128xf32>
    %96 = tpu.matmul %94, %95, %cst_31 {dimension_numbers = #tpu.dot_dimension_numbers<[1], [0], [0], [1], [0, 0, 1, 1], [], []>} : vector<32x32xf32>, vector<32x128xf32>, vector<32x128xf32> -> vector<32x128xf32>
    %97 = arith.addf %79, %96 : vector<32x128xf32>
    %98 = vector.extract_strided_slice %42 {offsets = [0, 96], sizes = [32, 32], strides = [1, 1]} : vector<32x128xf32> to vector<32x32xf32>
    %99 = vector.extract_strided_slice %43 {offsets = [0, 96], sizes = [32, 32], strides = [1, 1]} : vector<32x128xf32> to vector<32x32xf32>
    %100 = vector.extract_strided_slice %44 {offsets = [0, 96], sizes = [32, 32], strides = [1, 1]} : vector<32x128xf32> to vector<32x32xf32>
    %cst_32 = arith.constant dense<0.000000e+00> : vector<32x32xf32>
    %101 = tpu.matmul %98, %99, %cst_32 {dimension_numbers = #tpu.dot_dimension_numbers<[1], [1], [0], [0], [0, 0, 1, 0], [], []>} : vector<32x32xf32>, vector<32x32xf32>, vector<32x32xf32> -> vector<32x32xf32>
    %cst_33 = arith.constant dense<0xFF800000> : vector<32xf32>
    %102 = vector.multi_reduction <maximumf>, %101, %cst_33 [1] : vector<32x32xf32> to vector<32xf32>
    %103 = vector.shape_cast %102 : vector<32xf32> to vector<32x1xf32>
    %104 = vector.broadcast %103 : vector<32x1xf32> to vector<32x32xf32>
    %105 = arith.subf %101, %104 : vector<32x32xf32>
    %106 = math.exp %105 : vector<32x32xf32>
    %cst_34 = arith.constant dense<0.000000e+00> : vector<32xf32>
    %107 = vector.multi_reduction <add>, %106, %cst_34 [1] : vector<32x32xf32> to vector<32xf32>
    %108 = vector.shape_cast %107 : vector<32xf32> to vector<32x1xf32>
    %109 = tpu.reciprocal %108 {approx = true} : vector<32x1xf32> -> vector<32x1xf32>
    %110 = vector.broadcast %109 : vector<32x1xf32> to vector<32x32xf32>
    %111 = arith.mulf %106, %110 : vector<32x32xf32>
    %cst_35 = arith.constant dense<0.000000e+00> : vector<32x32xf32>
    %112 = tpu.matmul %111, %100, %cst_35 {dimension_numbers = #tpu.dot_dimension_numbers<[1], [0], [0], [1], [0, 0, 1, 1], [], []>} : vector<32x32xf32>, vector<32x32xf32>, vector<32x32xf32> -> vector<32x32xf32>
    %113 = vector.extract_strided_slice %41 {offsets = [96, 0], sizes = [32, 128], strides = [1, 1]} : vector<128x128xf32> to vector<32x128xf32>
    %cst_36 = arith.constant dense<0.000000e+00> : vector<32x128xf32>
    %114 = tpu.matmul %112, %113, %cst_36 {dimension_numbers = #tpu.dot_dimension_numbers<[1], [0], [0], [1], [0, 0, 1, 1], [], []>} : vector<32x32xf32>, vector<32x128xf32>, vector<32x128xf32> -> vector<32x128xf32>
    %115 = arith.addf %97, %114 : vector<32x128xf32>
    %116 = vector.extract_strided_slice %38 {offsets = [32, 0], sizes = [32, 128], strides = [1, 1]} : vector<64x128xf32> to vector<32x128xf32>
    %117 = vector.extract_strided_slice %39 {offsets = [32, 0], sizes = [32, 128], strides = [1, 1]} : vector<64x128xf32> to vector<32x128xf32>
    %118 = vector.extract_strided_slice %40 {offsets = [32, 0], sizes = [32, 128], strides = [1, 1]} : vector<64x128xf32> to vector<32x128xf32>
    %119 = vector.extract_strided_slice %116 {offsets = [0, 0], sizes = [32, 32], strides = [1, 1]} : vector<32x128xf32> to vector<32x32xf32>
    %120 = vector.extract_strided_slice %117 {offsets = [0, 0], sizes = [32, 32], strides = [1, 1]} : vector<32x128xf32> to vector<32x32xf32>
    %121 = vector.extract_strided_slice %118 {offsets = [0, 0], sizes = [32, 32], strides = [1, 1]} : vector<32x128xf32> to vector<32x32xf32>
    %cst_37 = arith.constant dense<0.000000e+00> : vector<32x32xf32>
    %122 = tpu.matmul %119, %120, %cst_37 {dimension_numbers = #tpu.dot_dimension_numbers<[1], [1], [0], [0], [0, 0, 1, 0], [], []>} : vector<32x32xf32>, vector<32x32xf32>, vector<32x32xf32> -> vector<32x32xf32>
    %cst_38 = arith.constant dense<0xFF800000> : vector<32xf32>
    %123 = vector.multi_reduction <maximumf>, %122, %cst_38 [1] : vector<32x32xf32> to vector<32xf32>
    %124 = vector.shape_cast %123 : vector<32xf32> to vector<32x1xf32>
    %125 = vector.broadcast %124 : vector<32x1xf32> to vector<32x32xf32>
    %126 = arith.subf %122, %125 : vector<32x32xf32>
    %127 = math.exp %126 : vector<32x32xf32>
    %cst_39 = arith.constant dense<0.000000e+00> : vector<32xf32>
    %128 = vector.multi_reduction <add>, %127, %cst_39 [1] : vector<32x32xf32> to vector<32xf32>
    %129 = vector.shape_cast %128 : vector<32xf32> to vector<32x1xf32>
    %130 = tpu.reciprocal %129 {approx = true} : vector<32x1xf32> -> vector<32x1xf32>
    %131 = vector.broadcast %130 : vector<32x1xf32> to vector<32x32xf32>
    %132 = arith.mulf %127, %131 : vector<32x32xf32>
    %cst_40 = arith.constant dense<0.000000e+00> : vector<32x32xf32>
    %133 = tpu.matmul %132, %121, %cst_40 {dimension_numbers = #tpu.dot_dimension_numbers<[1], [0], [0], [1], [0, 0, 1, 1], [], []>} : vector<32x32xf32>, vector<32x32xf32>, vector<32x32xf32> -> vector<32x32xf32>
    %134 = vector.extract_strided_slice %41 {offsets = [0, 0], sizes = [32, 128], strides = [1, 1]} : vector<128x128xf32> to vector<32x128xf32>
    %cst_41 = arith.constant dense<0.000000e+00> : vector<32x128xf32>
    %135 = tpu.matmul %133, %134, %cst_41 {dimension_numbers = #tpu.dot_dimension_numbers<[1], [0], [0], [1], [0, 0, 1, 1], [], []>} : vector<32x32xf32>, vector<32x128xf32>, vector<32x128xf32> -> vector<32x128xf32>
    %136 = vector.extract_strided_slice %116 {offsets = [0, 32], sizes = [32, 32], strides = [1, 1]} : vector<32x128xf32> to vector<32x32xf32>
    %137 = vector.extract_strided_slice %117 {offsets = [0, 32], sizes = [32, 32], strides = [1, 1]} : vector<32x128xf32> to vector<32x32xf32>
    %138 = vector.extract_strided_slice %118 {offsets = [0, 32], sizes = [32, 32], strides = [1, 1]} : vector<32x128xf32> to vector<32x32xf32>
    %cst_42 = arith.constant dense<0.000000e+00> : vector<32x32xf32>
    %139 = tpu.matmul %136, %137, %cst_42 {dimension_numbers = #tpu.dot_dimension_numbers<[1], [1], [0], [0], [0, 0, 1, 0], [], []>} : vector<32x32xf32>, vector<32x32xf32>, vector<32x32xf32> -> vector<32x32xf32>
    %cst_43 = arith.constant dense<0xFF800000> : vector<32xf32>
    %140 = vector.multi_reduction <maximumf>, %139, %cst_43 [1] : vector<32x32xf32> to vector<32xf32>
    %141 = vector.shape_cast %140 : vector<32xf32> to vector<32x1xf32>
    %142 = vector.broadcast %141 : vector<32x1xf32> to vector<32x32xf32>
    %143 = arith.subf %139, %142 : vector<32x32xf32>
    %144 = math.exp %143 : vector<32x32xf32>
    %cst_44 = arith.constant dense<0.000000e+00> : vector<32xf32>
    %145 = vector.multi_reduction <add>, %144, %cst_44 [1] : vector<32x32xf32> to vector<32xf32>
    %146 = vector.shape_cast %145 : vector<32xf32> to vector<32x1xf32>
    %147 = tpu.reciprocal %146 {approx = true} : vector<32x1xf32> -> vector<32x1xf32>
    %148 = vector.broadcast %147 : vector<32x1xf32> to vector<32x32xf32>
    %149 = arith.mulf %144, %148 : vector<32x32xf32>
    %cst_45 = arith.constant dense<0.000000e+00> : vector<32x32xf32>
    %150 = tpu.matmul %149, %138, %cst_45 {dimension_numbers = #tpu.dot_dimension_numbers<[1], [0], [0], [1], [0, 0, 1, 1], [], []>} : vector<32x32xf32>, vector<32x32xf32>, vector<32x32xf32> -> vector<32x32xf32>
    %151 = vector.extract_strided_slice %41 {offsets = [32, 0], sizes = [32, 128], strides = [1, 1]} : vector<128x128xf32> to vector<32x128xf32>
    %cst_46 = arith.constant dense<0.000000e+00> : vector<32x128xf32>
    %152 = tpu.matmul %150, %151, %cst_46 {dimension_numbers = #tpu.dot_dimension_numbers<[1], [0], [0], [1], [0, 0, 1, 1], [], []>} : vector<32x32xf32>, vector<32x128xf32>, vector<32x128xf32> -> vector<32x128xf32>
    %153 = arith.addf %135, %152 : vector<32x128xf32>
    %154 = vector.extract_strided_slice %116 {offsets = [0, 64], sizes = [32, 32], strides = [1, 1]} : vector<32x128xf32> to vector<32x32xf32>
    %155 = vector.extract_strided_slice %117 {offsets = [0, 64], sizes = [32, 32], strides = [1, 1]} : vector<32x128xf32> to vector<32x32xf32>
    %156 = vector.extract_strided_slice %118 {offsets = [0, 64], sizes = [32, 32], strides = [1, 1]} : vector<32x128xf32> to vector<32x32xf32>
    %cst_47 = arith.constant dense<0.000000e+00> : vector<32x32xf32>
    %157 = tpu.matmul %154, %155, %cst_47 {dimension_numbers = #tpu.dot_dimension_numbers<[1], [1], [0], [0], [0, 0, 1, 0], [], []>} : vector<32x32xf32>, vector<32x32xf32>, vector<32x32xf32> -> vector<32x32xf32>
    %cst_48 = arith.constant dense<0xFF800000> : vector<32xf32>
    %158 = vector.multi_reduction <maximumf>, %157, %cst_48 [1] : vector<32x32xf32> to vector<32xf32>
    %159 = vector.shape_cast %158 : vector<32xf32> to vector<32x1xf32>
    %160 = vector.broadcast %159 : vector<32x1xf32> to vector<32x32xf32>
    %161 = arith.subf %157, %160 : vector<32x32xf32>
    %162 = math.exp %161 : vector<32x32xf32>
    %cst_49 = arith.constant dense<0.000000e+00> : vector<32xf32>
    %163 = vector.multi_reduction <add>, %162, %cst_49 [1] : vector<32x32xf32> to vector<32xf32>
    %164 = vector.shape_cast %163 : vector<32xf32> to vector<32x1xf32>
    %165 = tpu.reciprocal %164 {approx = true} : vector<32x1xf32> -> vector<32x1xf32>
    %166 = vector.broadcast %165 : vector<32x1xf32> to vector<32x32xf32>
    %167 = arith.mulf %162, %166 : vector<32x32xf32>
    %cst_50 = arith.constant dense<0.000000e+00> : vector<32x32xf32>
    %168 = tpu.matmul %167, %156, %cst_50 {dimension_numbers = #tpu.dot_dimension_numbers<[1], [0], [0], [1], [0, 0, 1, 1], [], []>} : vector<32x32xf32>, vector<32x32xf32>, vector<32x32xf32> -> vector<32x32xf32>
    %169 = vector.extract_strided_slice %41 {offsets = [64, 0], sizes = [32, 128], strides = [1, 1]} : vector<128x128xf32> to vector<32x128xf32>
    %cst_51 = arith.constant dense<0.000000e+00> : vector<32x128xf32>
    %170 = tpu.matmul %168, %169, %cst_51 {dimension_numbers = #tpu.dot_dimension_numbers<[1], [0], [0], [1], [0, 0, 1, 1], [], []>} : vector<32x32xf32>, vector<32x128xf32>, vector<32x128xf32> -> vector<32x128xf32>
    %171 = arith.addf %153, %170 : vector<32x128xf32>
    %172 = vector.extract_strided_slice %116 {offsets = [0, 96], sizes = [32, 32], strides = [1, 1]} : vector<32x128xf32> to vector<32x32xf32>
    %173 = vector.extract_strided_slice %117 {offsets = [0, 96], sizes = [32, 32], strides = [1, 1]} : vector<32x128xf32> to vector<32x32xf32>
    %174 = vector.extract_strided_slice %118 {offsets = [0, 96], sizes = [32, 32], strides = [1, 1]} : vector<32x128xf32> to vector<32x32xf32>
    %cst_52 = arith.constant dense<0.000000e+00> : vector<32x32xf32>
    %175 = tpu.matmul %172, %173, %cst_52 {dimension_numbers = #tpu.dot_dimension_numbers<[1], [1], [0], [0], [0, 0, 1, 0], [], []>} : vector<32x32xf32>, vector<32x32xf32>, vector<32x32xf32> -> vector<32x32xf32>
    %cst_53 = arith.constant dense<0xFF800000> : vector<32xf32>
    %176 = vector.multi_reduction <maximumf>, %175, %cst_53 [1] : vector<32x32xf32> to vector<32xf32>
    %177 = vector.shape_cast %176 : vector<32xf32> to vector<32x1xf32>
    %178 = vector.broadcast %177 : vector<32x1xf32> to vector<32x32xf32>
    %179 = arith.subf %175, %178 : vector<32x32xf32>
    %180 = math.exp %179 : vector<32x32xf32>
    %cst_54 = arith.constant dense<0.000000e+00> : vector<32xf32>
    %181 = vector.multi_reduction <add>, %180, %cst_54 [1] : vector<32x32xf32> to vector<32xf32>
    %182 = vector.shape_cast %181 : vector<32xf32> to vector<32x1xf32>
    %183 = tpu.reciprocal %182 {approx = true} : vector<32x1xf32> -> vector<32x1xf32>
    %184 = vector.broadcast %183 : vector<32x1xf32> to vector<32x32xf32>
    %185 = arith.mulf %180, %184 : vector<32x32xf32>
    %cst_55 = arith.constant dense<0.000000e+00> : vector<32x32xf32>
    %186 = tpu.matmul %185, %174, %cst_55 {dimension_numbers = #tpu.dot_dimension_numbers<[1], [0], [0], [1], [0, 0, 1, 1], [], []>} : vector<32x32xf32>, vector<32x32xf32>, vector<32x32xf32> -> vector<32x32xf32>
    %187 = vector.extract_strided_slice %41 {offsets = [96, 0], sizes = [32, 128], strides = [1, 1]} : vector<128x128xf32> to vector<32x128xf32>
    %cst_56 = arith.constant dense<0.000000e+00> : vector<32x128xf32>
    %188 = tpu.matmul %186, %187, %cst_56 {dimension_numbers = #tpu.dot_dimension_numbers<[1], [0], [0], [1], [0, 0, 1, 1], [], []>} : vector<32x32xf32>, vector<32x128xf32>, vector<32x128xf32> -> vector<32x128xf32>
    %189 = arith.addf %171, %188 : vector<32x128xf32>
    %190 = tpu.concatenate %115, %189 in 0 : vector<32x128xf32>, vector<32x128xf32> -> vector<64x128xf32>
    %191 = vector.broadcast %24 : vector<1x128xf32> to vector<64x128xf32>
    %192 = arith.addf %190, %191 : vector<64x128xf32>
    %193 = arith.addf %21, %192 : vector<64x128xf32>
    %cst_57 = arith.constant dense<0.000000e+00> : vector<64xf32>
    %194 = vector.multi_reduction <add>, %193, %cst_57 [1] : vector<64x128xf32> to vector<64xf32>
    %195 = vector.shape_cast %194 : vector<64xf32> to vector<64x1xf32>
    %cst_58 = arith.constant 1.280000e+02 : f32
    %196 = vector.broadcast %cst_58 : f32 to vector<64x1xf32>
    %197 = arith.divf %195, %196 : vector<64x1xf32>
    %198 = vector.broadcast %197 : vector<64x1xf32> to vector<64x128xf32>
    %199 = arith.subf %193, %198 : vector<64x128xf32>
    %200 = arith.mulf %199, %199 : vector<64x128xf32>
    %cst_59 = arith.constant dense<0.000000e+00> : vector<64xf32>
    %201 = vector.multi_reduction <add>, %200, %cst_59 [1] : vector<64x128xf32> to vector<64xf32>
    %202 = vector.shape_cast %201 : vector<64xf32> to vector<64x1xf32>
    %cst_60 = arith.constant 1.280000e+02 : f32
    %203 = vector.broadcast %cst_60 : f32 to vector<64x1xf32>
    %204 = arith.divf %202, %203 : vector<64x1xf32>
    %205 = vector.broadcast %197 : vector<64x1xf32> to vector<64x128xf32>
    %206 = arith.subf %193, %205 : vector<64x128xf32>
    %cst_61 = arith.constant 9.99999974E-6 : f32
    %207 = vector.broadcast %cst_61 : f32 to vector<64x1xf32>
    %208 = arith.addf %204, %207 : vector<64x1xf32>
    %209 = math.rsqrt %208 : vector<64x1xf32>
    %210 = vector.broadcast %209 : vector<64x1xf32> to vector<64x128xf32>
    %211 = arith.mulf %206, %210 : vector<64x128xf32>
    %212 = vector.broadcast %25 : vector<1x128xf32> to vector<64x128xf32>
    %213 = arith.mulf %211, %212 : vector<64x128xf32>
    %214 = vector.broadcast %26 : vector<1x128xf32> to vector<64x128xf32>
    %215 = arith.addf %213, %214 : vector<64x128xf32>
    %216 = arith.truncf %215 : vector<64x128xf32> to vector<64x128xbf16>
    %c0_62 = arith.constant 0 : index
    %c0_63 = arith.constant 0 : index
    %217 = vector.load %arg7[%c0_62, %c0_63] : memref<128x512xbf16, #tpu.memory_space<vmem>>, vector<128x512xbf16>
    %cst_64 = arith.constant dense<0.000000e+00> : vector<64x512xf32>
    %218 = tpu.matmul %216, %217, %cst_64 {dimension_numbers = #tpu.dot_dimension_numbers<[1], [0], [0], [1], [0, 0, 1, 1], [], []>} : vector<64x128xbf16>, vector<128x512xbf16>, vector<64x512xf32> -> vector<64x512xf32>
    %219 = vector.broadcast %27 : vector<1x512xf32> to vector<64x512xf32>
    %220 = arith.addf %218, %219 : vector<64x512xf32>
    %cst_65 = arith.constant 0.000000e+00 : f32
    %221 = vector.broadcast %cst_65 : f32 to vector<64x512xf32>
    %222 = arith.maximumf %220, %221 : vector<64x512xf32>
    %223 = arith.truncf %222 : vector<64x512xf32> to vector<64x512xbf16>
    %c0_66 = arith.constant 0 : index
    %c0_67 = arith.constant 0 : index
    %224 = vector.load %arg8[%c0_66, %c0_67] : memref<512x128xbf16, #tpu.memory_space<vmem>>, vector<512x128xbf16>
    %cst_68 = arith.constant dense<0.000000e+00> : vector<64x128xf32>
    %225 = tpu.matmul %223, %224, %cst_68 {dimension_numbers = #tpu.dot_dimension_numbers<[1], [0], [0], [1], [0, 0, 1, 1], [], []>} : vector<64x512xbf16>, vector<512x128xbf16>, vector<64x128xf32> -> vector<64x128xf32>
    %226 = vector.broadcast %28 : vector<1x128xf32> to vector<64x128xf32>
    %227 = arith.addf %225, %226 : vector<64x128xf32>
    %228 = arith.addf %215, %227 : vector<64x128xf32>
    %cst_69 = arith.constant dense<0.000000e+00> : vector<64xf32>
    %229 = vector.multi_reduction <add>, %228, %cst_69 [1] : vector<64x128xf32> to vector<64xf32>
    %230 = vector.shape_cast %229 : vector<64xf32> to vector<64x1xf32>
    %cst_70 = arith.constant 1.280000e+02 : f32
    %231 = vector.broadcast %cst_70 : f32 to vector<64x1xf32>
    %232 = arith.divf %230, %231 : vector<64x1xf32>
    %233 = vector.broadcast %232 : vector<64x1xf32> to vector<64x128xf32>
    %234 = arith.subf %228, %233 : vector<64x128xf32>
    %235 = arith.mulf %234, %234 : vector<64x128xf32>
    %cst_71 = arith.constant dense<0.000000e+00> : vector<64xf32>
    %236 = vector.multi_reduction <add>, %235, %cst_71 [1] : vector<64x128xf32> to vector<64xf32>
    %237 = vector.shape_cast %236 : vector<64xf32> to vector<64x1xf32>
    %cst_72 = arith.constant 1.280000e+02 : f32
    %238 = vector.broadcast %cst_72 : f32 to vector<64x1xf32>
    %239 = arith.divf %237, %238 : vector<64x1xf32>
    %240 = vector.broadcast %232 : vector<64x1xf32> to vector<64x128xf32>
    %241 = arith.subf %228, %240 : vector<64x128xf32>
    %cst_73 = arith.constant 9.99999974E-6 : f32
    %242 = vector.broadcast %cst_73 : f32 to vector<64x1xf32>
    %243 = arith.addf %239, %242 : vector<64x1xf32>
    %244 = math.rsqrt %243 : vector<64x1xf32>
    %245 = vector.broadcast %244 : vector<64x1xf32> to vector<64x128xf32>
    %246 = arith.mulf %241, %245 : vector<64x128xf32>
    %247 = vector.broadcast %29 : vector<1x128xf32> to vector<64x128xf32>
    %248 = arith.mulf %246, %247 : vector<64x128xf32>
    %249 = vector.broadcast %30 : vector<1x128xf32> to vector<64x128xf32>
    %250 = arith.addf %248, %249 : vector<64x128xf32>
    %c0_74 = arith.constant 0 : index
    %c0_75 = arith.constant 0 : index
    %251 = vector.load %arg14[%c0_74, %c0_75] : memref<8x512xf32, #tpu.memory_space<vmem>>, vector<8x512xf32>
    %252 = vector.extract_strided_slice %251 {offsets = [0, 0], sizes = [1, 384], strides = [1, 1]} : vector<8x512xf32> to vector<1x384xf32>
    %253 = vector.extract_strided_slice %251 {offsets = [1, 0], sizes = [1, 128], strides = [1, 1]} : vector<8x512xf32> to vector<1x128xf32>
    %254 = vector.extract_strided_slice %251 {offsets = [2, 0], sizes = [1, 128], strides = [1, 1]} : vector<8x512xf32> to vector<1x128xf32>
    %255 = vector.extract_strided_slice %251 {offsets = [3, 0], sizes = [1, 128], strides = [1, 1]} : vector<8x512xf32> to vector<1x128xf32>
    %256 = vector.extract_strided_slice %251 {offsets = [4, 0], sizes = [1, 512], strides = [1, 1]} : vector<8x512xf32> to vector<1x512xf32>
    %257 = vector.extract_strided_slice %251 {offsets = [5, 0], sizes = [1, 128], strides = [1, 1]} : vector<8x512xf32> to vector<1x128xf32>
    %258 = vector.extract_strided_slice %251 {offsets = [6, 0], sizes = [1, 128], strides = [1, 1]} : vector<8x512xf32> to vector<1x128xf32>
    %259 = vector.extract_strided_slice %251 {offsets = [7, 0], sizes = [1, 128], strides = [1, 1]} : vector<8x512xf32> to vector<1x128xf32>
    %260 = arith.truncf %250 : vector<64x128xf32> to vector<64x128xbf16>
    %c0_76 = arith.constant 0 : index
    %c0_77 = arith.constant 0 : index
    %261 = vector.load %arg10[%c0_76, %c0_77] : memref<128x384xbf16, #tpu.memory_space<vmem>>, vector<128x384xbf16>
    %cst_78 = arith.constant dense<0.000000e+00> : vector<64x384xf32>
    %262 = tpu.matmul %260, %261, %cst_78 {dimension_numbers = #tpu.dot_dimension_numbers<[1], [0], [0], [1], [0, 0, 1, 1], [], []>} : vector<64x128xbf16>, vector<128x384xbf16>, vector<64x384xf32> -> vector<64x384xf32>
    %263 = vector.broadcast %252 : vector<1x384xf32> to vector<64x384xf32>
    %264 = arith.addf %262, %263 : vector<64x384xf32>
    %265 = vector.extract_strided_slice %264 {offsets = [0, 0], sizes = [64, 128], strides = [1, 1]} : vector<64x384xf32> to vector<64x128xf32>
    %cst_79 = arith.constant 0.176776692 : f32
    %266 = vector.broadcast %cst_79 : f32 to vector<64x128xf32>
    %267 = arith.mulf %265, %266 : vector<64x128xf32>
    %268 = vector.extract_strided_slice %264 {offsets = [0, 128], sizes = [64, 128], strides = [1, 1]} : vector<64x384xf32> to vector<64x128xf32>
    %269 = vector.extract_strided_slice %264 {offsets = [0, 256], sizes = [64, 128], strides = [1, 1]} : vector<64x384xf32> to vector<64x128xf32>
    %c0_80 = arith.constant 0 : index
    %c0_81 = arith.constant 0 : index
    %270 = vector.load %arg11[%c0_80, %c0_81] : memref<128x128xf32, #tpu.memory_space<vmem>>, vector<128x128xf32>
    %271 = vector.extract_strided_slice %267 {offsets = [0, 0], sizes = [32, 128], strides = [1, 1]} : vector<64x128xf32> to vector<32x128xf32>
    %272 = vector.extract_strided_slice %268 {offsets = [0, 0], sizes = [32, 128], strides = [1, 1]} : vector<64x128xf32> to vector<32x128xf32>
    %273 = vector.extract_strided_slice %269 {offsets = [0, 0], sizes = [32, 128], strides = [1, 1]} : vector<64x128xf32> to vector<32x128xf32>
    %274 = vector.extract_strided_slice %271 {offsets = [0, 0], sizes = [32, 32], strides = [1, 1]} : vector<32x128xf32> to vector<32x32xf32>
    %275 = vector.extract_strided_slice %272 {offsets = [0, 0], sizes = [32, 32], strides = [1, 1]} : vector<32x128xf32> to vector<32x32xf32>
    %276 = vector.extract_strided_slice %273 {offsets = [0, 0], sizes = [32, 32], strides = [1, 1]} : vector<32x128xf32> to vector<32x32xf32>
    %cst_82 = arith.constant dense<0.000000e+00> : vector<32x32xf32>
    %277 = tpu.matmul %274, %275, %cst_82 {dimension_numbers = #tpu.dot_dimension_numbers<[1], [1], [0], [0], [0, 0, 1, 0], [], []>} : vector<32x32xf32>, vector<32x32xf32>, vector<32x32xf32> -> vector<32x32xf32>
    %cst_83 = arith.constant dense<0xFF800000> : vector<32xf32>
    %278 = vector.multi_reduction <maximumf>, %277, %cst_83 [1] : vector<32x32xf32> to vector<32xf32>
    %279 = vector.shape_cast %278 : vector<32xf32> to vector<32x1xf32>
    %280 = vector.broadcast %279 : vector<32x1xf32> to vector<32x32xf32>
    %281 = arith.subf %277, %280 : vector<32x32xf32>
    %282 = math.exp %281 : vector<32x32xf32>
    %cst_84 = arith.constant dense<0.000000e+00> : vector<32xf32>
    %283 = vector.multi_reduction <add>, %282, %cst_84 [1] : vector<32x32xf32> to vector<32xf32>
    %284 = vector.shape_cast %283 : vector<32xf32> to vector<32x1xf32>
    %285 = tpu.reciprocal %284 {approx = true} : vector<32x1xf32> -> vector<32x1xf32>
    %286 = vector.broadcast %285 : vector<32x1xf32> to vector<32x32xf32>
    %287 = arith.mulf %282, %286 : vector<32x32xf32>
    %cst_85 = arith.constant dense<0.000000e+00> : vector<32x32xf32>
    %288 = tpu.matmul %287, %276, %cst_85 {dimension_numbers = #tpu.dot_dimension_numbers<[1], [0], [0], [1], [0, 0, 1, 1], [], []>} : vector<32x32xf32>, vector<32x32xf32>, vector<32x32xf32> -> vector<32x32xf32>
    %289 = vector.extract_strided_slice %270 {offsets = [0, 0], sizes = [32, 128], strides = [1, 1]} : vector<128x128xf32> to vector<32x128xf32>
    %cst_86 = arith.constant dense<0.000000e+00> : vector<32x128xf32>
    %290 = tpu.matmul %288, %289, %cst_86 {dimension_numbers = #tpu.dot_dimension_numbers<[1], [0], [0], [1], [0, 0, 1, 1], [], []>} : vector<32x32xf32>, vector<32x128xf32>, vector<32x128xf32> -> vector<32x128xf32>
    %291 = vector.extract_strided_slice %271 {offsets = [0, 32], sizes = [32, 32], strides = [1, 1]} : vector<32x128xf32> to vector<32x32xf32>
    %292 = vector.extract_strided_slice %272 {offsets = [0, 32], sizes = [32, 32], strides = [1, 1]} : vector<32x128xf32> to vector<32x32xf32>
    %293 = vector.extract_strided_slice %273 {offsets = [0, 32], sizes = [32, 32], strides = [1, 1]} : vector<32x128xf32> to vector<32x32xf32>
    %cst_87 = arith.constant dense<0.000000e+00> : vector<32x32xf32>
    %294 = tpu.matmul %291, %292, %cst_87 {dimension_numbers = #tpu.dot_dimension_numbers<[1], [1], [0], [0], [0, 0, 1, 0], [], []>} : vector<32x32xf32>, vector<32x32xf32>, vector<32x32xf32> -> vector<32x32xf32>
    %cst_88 = arith.constant dense<0xFF800000> : vector<32xf32>
    %295 = vector.multi_reduction <maximumf>, %294, %cst_88 [1] : vector<32x32xf32> to vector<32xf32>
    %296 = vector.shape_cast %295 : vector<32xf32> to vector<32x1xf32>
    %297 = vector.broadcast %296 : vector<32x1xf32> to vector<32x32xf32>
    %298 = arith.subf %294, %297 : vector<32x32xf32>
    %299 = math.exp %298 : vector<32x32xf32>
    %cst_89 = arith.constant dense<0.000000e+00> : vector<32xf32>
    %300 = vector.multi_reduction <add>, %299, %cst_89 [1] : vector<32x32xf32> to vector<32xf32>
    %301 = vector.shape_cast %300 : vector<32xf32> to vector<32x1xf32>
    %302 = tpu.reciprocal %301 {approx = true} : vector<32x1xf32> -> vector<32x1xf32>
    %303 = vector.broadcast %302 : vector<32x1xf32> to vector<32x32xf32>
    %304 = arith.mulf %299, %303 : vector<32x32xf32>
    %cst_90 = arith.constant dense<0.000000e+00> : vector<32x32xf32>
    %305 = tpu.matmul %304, %293, %cst_90 {dimension_numbers = #tpu.dot_dimension_numbers<[1], [0], [0], [1], [0, 0, 1, 1], [], []>} : vector<32x32xf32>, vector<32x32xf32>, vector<32x32xf32> -> vector<32x32xf32>
    %306 = vector.extract_strided_slice %270 {offsets = [32, 0], sizes = [32, 128], strides = [1, 1]} : vector<128x128xf32> to vector<32x128xf32>
    %cst_91 = arith.constant dense<0.000000e+00> : vector<32x128xf32>
    %307 = tpu.matmul %305, %306, %cst_91 {dimension_numbers = #tpu.dot_dimension_numbers<[1], [0], [0], [1], [0, 0, 1, 1], [], []>} : vector<32x32xf32>, vector<32x128xf32>, vector<32x128xf32> -> vector<32x128xf32>
    %308 = arith.addf %290, %307 : vector<32x128xf32>
    %309 = vector.extract_strided_slice %271 {offsets = [0, 64], sizes = [32, 32], strides = [1, 1]} : vector<32x128xf32> to vector<32x32xf32>
    %310 = vector.extract_strided_slice %272 {offsets = [0, 64], sizes = [32, 32], strides = [1, 1]} : vector<32x128xf32> to vector<32x32xf32>
    %311 = vector.extract_strided_slice %273 {offsets = [0, 64], sizes = [32, 32], strides = [1, 1]} : vector<32x128xf32> to vector<32x32xf32>
    %cst_92 = arith.constant dense<0.000000e+00> : vector<32x32xf32>
    %312 = tpu.matmul %309, %310, %cst_92 {dimension_numbers = #tpu.dot_dimension_numbers<[1], [1], [0], [0], [0, 0, 1, 0], [], []>} : vector<32x32xf32>, vector<32x32xf32>, vector<32x32xf32> -> vector<32x32xf32>
    %cst_93 = arith.constant dense<0xFF800000> : vector<32xf32>
    %313 = vector.multi_reduction <maximumf>, %312, %cst_93 [1] : vector<32x32xf32> to vector<32xf32>
    %314 = vector.shape_cast %313 : vector<32xf32> to vector<32x1xf32>
    %315 = vector.broadcast %314 : vector<32x1xf32> to vector<32x32xf32>
    %316 = arith.subf %312, %315 : vector<32x32xf32>
    %317 = math.exp %316 : vector<32x32xf32>
    %cst_94 = arith.constant dense<0.000000e+00> : vector<32xf32>
    %318 = vector.multi_reduction <add>, %317, %cst_94 [1] : vector<32x32xf32> to vector<32xf32>
    %319 = vector.shape_cast %318 : vector<32xf32> to vector<32x1xf32>
    %320 = tpu.reciprocal %319 {approx = true} : vector<32x1xf32> -> vector<32x1xf32>
    %321 = vector.broadcast %320 : vector<32x1xf32> to vector<32x32xf32>
    %322 = arith.mulf %317, %321 : vector<32x32xf32>
    %cst_95 = arith.constant dense<0.000000e+00> : vector<32x32xf32>
    %323 = tpu.matmul %322, %311, %cst_95 {dimension_numbers = #tpu.dot_dimension_numbers<[1], [0], [0], [1], [0, 0, 1, 1], [], []>} : vector<32x32xf32>, vector<32x32xf32>, vector<32x32xf32> -> vector<32x32xf32>
    %324 = vector.extract_strided_slice %270 {offsets = [64, 0], sizes = [32, 128], strides = [1, 1]} : vector<128x128xf32> to vector<32x128xf32>
    %cst_96 = arith.constant dense<0.000000e+00> : vector<32x128xf32>
    %325 = tpu.matmul %323, %324, %cst_96 {dimension_numbers = #tpu.dot_dimension_numbers<[1], [0], [0], [1], [0, 0, 1, 1], [], []>} : vector<32x32xf32>, vector<32x128xf32>, vector<32x128xf32> -> vector<32x128xf32>
    %326 = arith.addf %308, %325 : vector<32x128xf32>
    %327 = vector.extract_strided_slice %271 {offsets = [0, 96], sizes = [32, 32], strides = [1, 1]} : vector<32x128xf32> to vector<32x32xf32>
    %328 = vector.extract_strided_slice %272 {offsets = [0, 96], sizes = [32, 32], strides = [1, 1]} : vector<32x128xf32> to vector<32x32xf32>
    %329 = vector.extract_strided_slice %273 {offsets = [0, 96], sizes = [32, 32], strides = [1, 1]} : vector<32x128xf32> to vector<32x32xf32>
    %cst_97 = arith.constant dense<0.000000e+00> : vector<32x32xf32>
    %330 = tpu.matmul %327, %328, %cst_97 {dimension_numbers = #tpu.dot_dimension_numbers<[1], [1], [0], [0], [0, 0, 1, 0], [], []>} : vector<32x32xf32>, vector<32x32xf32>, vector<32x32xf32> -> vector<32x32xf32>
    %cst_98 = arith.constant dense<0xFF800000> : vector<32xf32>
    %331 = vector.multi_reduction <maximumf>, %330, %cst_98 [1] : vector<32x32xf32> to vector<32xf32>
    %332 = vector.shape_cast %331 : vector<32xf32> to vector<32x1xf32>
    %333 = vector.broadcast %332 : vector<32x1xf32> to vector<32x32xf32>
    %334 = arith.subf %330, %333 : vector<32x32xf32>
    %335 = math.exp %334 : vector<32x32xf32>
    %cst_99 = arith.constant dense<0.000000e+00> : vector<32xf32>
    %336 = vector.multi_reduction <add>, %335, %cst_99 [1] : vector<32x32xf32> to vector<32xf32>
    %337 = vector.shape_cast %336 : vector<32xf32> to vector<32x1xf32>
    %338 = tpu.reciprocal %337 {approx = true} : vector<32x1xf32> -> vector<32x1xf32>
    %339 = vector.broadcast %338 : vector<32x1xf32> to vector<32x32xf32>
    %340 = arith.mulf %335, %339 : vector<32x32xf32>
    %cst_100 = arith.constant dense<0.000000e+00> : vector<32x32xf32>
    %341 = tpu.matmul %340, %329, %cst_100 {dimension_numbers = #tpu.dot_dimension_numbers<[1], [0], [0], [1], [0, 0, 1, 1], [], []>} : vector<32x32xf32>, vector<32x32xf32>, vector<32x32xf32> -> vector<32x32xf32>
    %342 = vector.extract_strided_slice %270 {offsets = [96, 0], sizes = [32, 128], strides = [1, 1]} : vector<128x128xf32> to vector<32x128xf32>
    %cst_101 = arith.constant dense<0.000000e+00> : vector<32x128xf32>
    %343 = tpu.matmul %341, %342, %cst_101 {dimension_numbers = #tpu.dot_dimension_numbers<[1], [0], [0], [1], [0, 0, 1, 1], [], []>} : vector<32x32xf32>, vector<32x128xf32>, vector<32x128xf32> -> vector<32x128xf32>
    %344 = arith.addf %326, %343 : vector<32x128xf32>
    %345 = vector.extract_strided_slice %267 {offsets = [32, 0], sizes = [32, 128], strides = [1, 1]} : vector<64x128xf32> to vector<32x128xf32>
    %346 = vector.extract_strided_slice %268 {offsets = [32, 0], sizes = [32, 128], strides = [1, 1]} : vector<64x128xf32> to vector<32x128xf32>
    %347 = vector.extract_strided_slice %269 {offsets = [32, 0], sizes = [32, 128], strides = [1, 1]} : vector<64x128xf32> to vector<32x128xf32>
    %348 = vector.extract_strided_slice %345 {offsets = [0, 0], sizes = [32, 32], strides = [1, 1]} : vector<32x128xf32> to vector<32x32xf32>
    %349 = vector.extract_strided_slice %346 {offsets = [0, 0], sizes = [32, 32], strides = [1, 1]} : vector<32x128xf32> to vector<32x32xf32>
    %350 = vector.extract_strided_slice %347 {offsets = [0, 0], sizes = [32, 32], strides = [1, 1]} : vector<32x128xf32> to vector<32x32xf32>
    %cst_102 = arith.constant dense<0.000000e+00> : vector<32x32xf32>
    %351 = tpu.matmul %348, %349, %cst_102 {dimension_numbers = #tpu.dot_dimension_numbers<[1], [1], [0], [0], [0, 0, 1, 0], [], []>} : vector<32x32xf32>, vector<32x32xf32>, vector<32x32xf32> -> vector<32x32xf32>
    %cst_103 = arith.constant dense<0xFF800000> : vector<32xf32>
    %352 = vector.multi_reduction <maximumf>, %351, %cst_103 [1] : vector<32x32xf32> to vector<32xf32>
    %353 = vector.shape_cast %352 : vector<32xf32> to vector<32x1xf32>
    %354 = vector.broadcast %353 : vector<32x1xf32> to vector<32x32xf32>
    %355 = arith.subf %351, %354 : vector<32x32xf32>
    %356 = math.exp %355 : vector<32x32xf32>
    %cst_104 = arith.constant dense<0.000000e+00> : vector<32xf32>
    %357 = vector.multi_reduction <add>, %356, %cst_104 [1] : vector<32x32xf32> to vector<32xf32>
    %358 = vector.shape_cast %357 : vector<32xf32> to vector<32x1xf32>
    %359 = tpu.reciprocal %358 {approx = true} : vector<32x1xf32> -> vector<32x1xf32>
    %360 = vector.broadcast %359 : vector<32x1xf32> to vector<32x32xf32>
    %361 = arith.mulf %356, %360 : vector<32x32xf32>
    %cst_105 = arith.constant dense<0.000000e+00> : vector<32x32xf32>
    %362 = tpu.matmul %361, %350, %cst_105 {dimension_numbers = #tpu.dot_dimension_numbers<[1], [0], [0], [1], [0, 0, 1, 1], [], []>} : vector<32x32xf32>, vector<32x32xf32>, vector<32x32xf32> -> vector<32x32xf32>
    %363 = vector.extract_strided_slice %270 {offsets = [0, 0], sizes = [32, 128], strides = [1, 1]} : vector<128x128xf32> to vector<32x128xf32>
    %cst_106 = arith.constant dense<0.000000e+00> : vector<32x128xf32>
    %364 = tpu.matmul %362, %363, %cst_106 {dimension_numbers = #tpu.dot_dimension_numbers<[1], [0], [0], [1], [0, 0, 1, 1], [], []>} : vector<32x32xf32>, vector<32x128xf32>, vector<32x128xf32> -> vector<32x128xf32>
    %365 = vector.extract_strided_slice %345 {offsets = [0, 32], sizes = [32, 32], strides = [1, 1]} : vector<32x128xf32> to vector<32x32xf32>
    %366 = vector.extract_strided_slice %346 {offsets = [0, 32], sizes = [32, 32], strides = [1, 1]} : vector<32x128xf32> to vector<32x32xf32>
    %367 = vector.extract_strided_slice %347 {offsets = [0, 32], sizes = [32, 32], strides = [1, 1]} : vector<32x128xf32> to vector<32x32xf32>
    %cst_107 = arith.constant dense<0.000000e+00> : vector<32x32xf32>
    %368 = tpu.matmul %365, %366, %cst_107 {dimension_numbers = #tpu.dot_dimension_numbers<[1], [1], [0], [0], [0, 0, 1, 0], [], []>} : vector<32x32xf32>, vector<32x32xf32>, vector<32x32xf32> -> vector<32x32xf32>
    %cst_108 = arith.constant dense<0xFF800000> : vector<32xf32>
    %369 = vector.multi_reduction <maximumf>, %368, %cst_108 [1] : vector<32x32xf32> to vector<32xf32>
    %370 = vector.shape_cast %369 : vector<32xf32> to vector<32x1xf32>
    %371 = vector.broadcast %370 : vector<32x1xf32> to vector<32x32xf32>
    %372 = arith.subf %368, %371 : vector<32x32xf32>
    %373 = math.exp %372 : vector<32x32xf32>
    %cst_109 = arith.constant dense<0.000000e+00> : vector<32xf32>
    %374 = vector.multi_reduction <add>, %373, %cst_109 [1] : vector<32x32xf32> to vector<32xf32>
    %375 = vector.shape_cast %374 : vector<32xf32> to vector<32x1xf32>
    %376 = tpu.reciprocal %375 {approx = true} : vector<32x1xf32> -> vector<32x1xf32>
    %377 = vector.broadcast %376 : vector<32x1xf32> to vector<32x32xf32>
    %378 = arith.mulf %373, %377 : vector<32x32xf32>
    %cst_110 = arith.constant dense<0.000000e+00> : vector<32x32xf32>
    %379 = tpu.matmul %378, %367, %cst_110 {dimension_numbers = #tpu.dot_dimension_numbers<[1], [0], [0], [1], [0, 0, 1, 1], [], []>} : vector<32x32xf32>, vector<32x32xf32>, vector<32x32xf32> -> vector<32x32xf32>
    %380 = vector.extract_strided_slice %270 {offsets = [32, 0], sizes = [32, 128], strides = [1, 1]} : vector<128x128xf32> to vector<32x128xf32>
    %cst_111 = arith.constant dense<0.000000e+00> : vector<32x128xf32>
    %381 = tpu.matmul %379, %380, %cst_111 {dimension_numbers = #tpu.dot_dimension_numbers<[1], [0], [0], [1], [0, 0, 1, 1], [], []>} : vector<32x32xf32>, vector<32x128xf32>, vector<32x128xf32> -> vector<32x128xf32>
    %382 = arith.addf %364, %381 : vector<32x128xf32>
    %383 = vector.extract_strided_slice %345 {offsets = [0, 64], sizes = [32, 32], strides = [1, 1]} : vector<32x128xf32> to vector<32x32xf32>
    %384 = vector.extract_strided_slice %346 {offsets = [0, 64], sizes = [32, 32], strides = [1, 1]} : vector<32x128xf32> to vector<32x32xf32>
    %385 = vector.extract_strided_slice %347 {offsets = [0, 64], sizes = [32, 32], strides = [1, 1]} : vector<32x128xf32> to vector<32x32xf32>
    %cst_112 = arith.constant dense<0.000000e+00> : vector<32x32xf32>
    %386 = tpu.matmul %383, %384, %cst_112 {dimension_numbers = #tpu.dot_dimension_numbers<[1], [1], [0], [0], [0, 0, 1, 0], [], []>} : vector<32x32xf32>, vector<32x32xf32>, vector<32x32xf32> -> vector<32x32xf32>
    %cst_113 = arith.constant dense<0xFF800000> : vector<32xf32>
    %387 = vector.multi_reduction <maximumf>, %386, %cst_113 [1] : vector<32x32xf32> to vector<32xf32>
    %388 = vector.shape_cast %387 : vector<32xf32> to vector<32x1xf32>
    %389 = vector.broadcast %388 : vector<32x1xf32> to vector<32x32xf32>
    %390 = arith.subf %386, %389 : vector<32x32xf32>
    %391 = math.exp %390 : vector<32x32xf32>
    %cst_114 = arith.constant dense<0.000000e+00> : vector<32xf32>
    %392 = vector.multi_reduction <add>, %391, %cst_114 [1] : vector<32x32xf32> to vector<32xf32>
    %393 = vector.shape_cast %392 : vector<32xf32> to vector<32x1xf32>
    %394 = tpu.reciprocal %393 {approx = true} : vector<32x1xf32> -> vector<32x1xf32>
    %395 = vector.broadcast %394 : vector<32x1xf32> to vector<32x32xf32>
    %396 = arith.mulf %391, %395 : vector<32x32xf32>
    %cst_115 = arith.constant dense<0.000000e+00> : vector<32x32xf32>
    %397 = tpu.matmul %396, %385, %cst_115 {dimension_numbers = #tpu.dot_dimension_numbers<[1], [0], [0], [1], [0, 0, 1, 1], [], []>} : vector<32x32xf32>, vector<32x32xf32>, vector<32x32xf32> -> vector<32x32xf32>
    %398 = vector.extract_strided_slice %270 {offsets = [64, 0], sizes = [32, 128], strides = [1, 1]} : vector<128x128xf32> to vector<32x128xf32>
    %cst_116 = arith.constant dense<0.000000e+00> : vector<32x128xf32>
    %399 = tpu.matmul %397, %398, %cst_116 {dimension_numbers = #tpu.dot_dimension_numbers<[1], [0], [0], [1], [0, 0, 1, 1], [], []>} : vector<32x32xf32>, vector<32x128xf32>, vector<32x128xf32> -> vector<32x128xf32>
    %400 = arith.addf %382, %399 : vector<32x128xf32>
    %401 = vector.extract_strided_slice %345 {offsets = [0, 96], sizes = [32, 32], strides = [1, 1]} : vector<32x128xf32> to vector<32x32xf32>
    %402 = vector.extract_strided_slice %346 {offsets = [0, 96], sizes = [32, 32], strides = [1, 1]} : vector<32x128xf32> to vector<32x32xf32>
    %403 = vector.extract_strided_slice %347 {offsets = [0, 96], sizes = [32, 32], strides = [1, 1]} : vector<32x128xf32> to vector<32x32xf32>
    %cst_117 = arith.constant dense<0.000000e+00> : vector<32x32xf32>
    %404 = tpu.matmul %401, %402, %cst_117 {dimension_numbers = #tpu.dot_dimension_numbers<[1], [1], [0], [0], [0, 0, 1, 0], [], []>} : vector<32x32xf32>, vector<32x32xf32>, vector<32x32xf32> -> vector<32x32xf32>
    %cst_118 = arith.constant dense<0xFF800000> : vector<32xf32>
    %405 = vector.multi_reduction <maximumf>, %404, %cst_118 [1] : vector<32x32xf32> to vector<32xf32>
    %406 = vector.shape_cast %405 : vector<32xf32> to vector<32x1xf32>
    %407 = vector.broadcast %406 : vector<32x1xf32> to vector<32x32xf32>
    %408 = arith.subf %404, %407 : vector<32x32xf32>
    %409 = math.exp %408 : vector<32x32xf32>
    %cst_119 = arith.constant dense<0.000000e+00> : vector<32xf32>
    %410 = vector.multi_reduction <add>, %409, %cst_119 [1] : vector<32x32xf32> to vector<32xf32>
    %411 = vector.shape_cast %410 : vector<32xf32> to vector<32x1xf32>
    %412 = tpu.reciprocal %411 {approx = true} : vector<32x1xf32> -> vector<32x1xf32>
    %413 = vector.broadcast %412 : vector<32x1xf32> to vector<32x32xf32>
    %414 = arith.mulf %409, %413 : vector<32x32xf32>
    %cst_120 = arith.constant dense<0.000000e+00> : vector<32x32xf32>
    %415 = tpu.matmul %414, %403, %cst_120 {dimension_numbers = #tpu.dot_dimension_numbers<[1], [0], [0], [1], [0, 0, 1, 1], [], []>} : vector<32x32xf32>, vector<32x32xf32>, vector<32x32xf32> -> vector<32x32xf32>
    %416 = vector.extract_strided_slice %270 {offsets = [96, 0], sizes = [32, 128], strides = [1, 1]} : vector<128x128xf32> to vector<32x128xf32>
    %cst_121 = arith.constant dense<0.000000e+00> : vector<32x128xf32>
    %417 = tpu.matmul %415, %416, %cst_121 {dimension_numbers = #tpu.dot_dimension_numbers<[1], [0], [0], [1], [0, 0, 1, 1], [], []>} : vector<32x32xf32>, vector<32x128xf32>, vector<32x128xf32> -> vector<32x128xf32>
    %418 = arith.addf %400, %417 : vector<32x128xf32>
    %419 = tpu.concatenate %344, %418 in 0 : vector<32x128xf32>, vector<32x128xf32> -> vector<64x128xf32>
    %420 = vector.broadcast %253 : vector<1x128xf32> to vector<64x128xf32>
    %421 = arith.addf %419, %420 : vector<64x128xf32>
    %422 = arith.addf %250, %421 : vector<64x128xf32>
    %cst_122 = arith.constant dense<0.000000e+00> : vector<64xf32>
    %423 = vector.multi_reduction <add>, %422, %cst_122 [1] : vector<64x128xf32> to vector<64xf32>
    %424 = vector.shape_cast %423 : vector<64xf32> to vector<64x1xf32>
    %cst_123 = arith.constant 1.280000e+02 : f32
    %425 = vector.broadcast %cst_123 : f32 to vector<64x1xf32>
    %426 = arith.divf %424, %425 : vector<64x1xf32>
    %427 = vector.broadcast %426 : vector<64x1xf32> to vector<64x128xf32>
    %428 = arith.subf %422, %427 : vector<64x128xf32>
    %429 = arith.mulf %428, %428 : vector<64x128xf32>
    %cst_124 = arith.constant dense<0.000000e+00> : vector<64xf32>
    %430 = vector.multi_reduction <add>, %429, %cst_124 [1] : vector<64x128xf32> to vector<64xf32>
    %431 = vector.shape_cast %430 : vector<64xf32> to vector<64x1xf32>
    %cst_125 = arith.constant 1.280000e+02 : f32
    %432 = vector.broadcast %cst_125 : f32 to vector<64x1xf32>
    %433 = arith.divf %431, %432 : vector<64x1xf32>
    %434 = vector.broadcast %426 : vector<64x1xf32> to vector<64x128xf32>
    %435 = arith.subf %422, %434 : vector<64x128xf32>
    %cst_126 = arith.constant 9.99999974E-6 : f32
    %436 = vector.broadcast %cst_126 : f32 to vector<64x1xf32>
    %437 = arith.addf %433, %436 : vector<64x1xf32>
    %438 = math.rsqrt %437 : vector<64x1xf32>
    %439 = vector.broadcast %438 : vector<64x1xf32> to vector<64x128xf32>
    %440 = arith.mulf %435, %439 : vector<64x128xf32>
    %441 = vector.broadcast %254 : vector<1x128xf32> to vector<64x128xf32>
    %442 = arith.mulf %440, %441 : vector<64x128xf32>
    %443 = vector.broadcast %255 : vector<1x128xf32> to vector<64x128xf32>
    %444 = arith.addf %442, %443 : vector<64x128xf32>
    %445 = arith.truncf %444 : vector<64x128xf32> to vector<64x128xbf16>
    %c0_127 = arith.constant 0 : index
    %c0_128 = arith.constant 0 : index
    %446 = vector.load %arg12[%c0_127, %c0_128] : memref<128x512xbf16, #tpu.memory_space<vmem>>, vector<128x512xbf16>
    %cst_129 = arith.constant dense<0.000000e+00> : vector<64x512xf32>
    %447 = tpu.matmul %445, %446, %cst_129 {dimension_numbers = #tpu.dot_dimension_numbers<[1], [0], [0], [1], [0, 0, 1, 1], [], []>} : vector<64x128xbf16>, vector<128x512xbf16>, vector<64x512xf32> -> vector<64x512xf32>
    %448 = vector.broadcast %256 : vector<1x512xf32> to vector<64x512xf32>
    %449 = arith.addf %447, %448 : vector<64x512xf32>
    %cst_130 = arith.constant 0.000000e+00 : f32
    %450 = vector.broadcast %cst_130 : f32 to vector<64x512xf32>
    %451 = arith.maximumf %449, %450 : vector<64x512xf32>
    %452 = arith.truncf %451 : vector<64x512xf32> to vector<64x512xbf16>
    %c0_131 = arith.constant 0 : index
    %c0_132 = arith.constant 0 : index
    %453 = vector.load %arg13[%c0_131, %c0_132] : memref<512x128xbf16, #tpu.memory_space<vmem>>, vector<512x128xbf16>
    %cst_133 = arith.constant dense<0.000000e+00> : vector<64x128xf32>
    %454 = tpu.matmul %452, %453, %cst_133 {dimension_numbers = #tpu.dot_dimension_numbers<[1], [0], [0], [1], [0, 0, 1, 1], [], []>} : vector<64x512xbf16>, vector<512x128xbf16>, vector<64x128xf32> -> vector<64x128xf32>
    %455 = vector.broadcast %257 : vector<1x128xf32> to vector<64x128xf32>
    %456 = arith.addf %454, %455 : vector<64x128xf32>
    %457 = arith.addf %444, %456 : vector<64x128xf32>
    %cst_134 = arith.constant dense<0.000000e+00> : vector<64xf32>
    %458 = vector.multi_reduction <add>, %457, %cst_134 [1] : vector<64x128xf32> to vector<64xf32>
    %459 = vector.shape_cast %458 : vector<64xf32> to vector<64x1xf32>
    %cst_135 = arith.constant 1.280000e+02 : f32
    %460 = vector.broadcast %cst_135 : f32 to vector<64x1xf32>
    %461 = arith.divf %459, %460 : vector<64x1xf32>
    %462 = vector.broadcast %461 : vector<64x1xf32> to vector<64x128xf32>
    %463 = arith.subf %457, %462 : vector<64x128xf32>
    %464 = arith.mulf %463, %463 : vector<64x128xf32>
    %cst_136 = arith.constant dense<0.000000e+00> : vector<64xf32>
    %465 = vector.multi_reduction <add>, %464, %cst_136 [1] : vector<64x128xf32> to vector<64xf32>
    %466 = vector.shape_cast %465 : vector<64xf32> to vector<64x1xf32>
    %cst_137 = arith.constant 1.280000e+02 : f32
    %467 = vector.broadcast %cst_137 : f32 to vector<64x1xf32>
    %468 = arith.divf %466, %467 : vector<64x1xf32>
    %469 = vector.broadcast %461 : vector<64x1xf32> to vector<64x128xf32>
    %470 = arith.subf %457, %469 : vector<64x128xf32>
    %cst_138 = arith.constant 9.99999974E-6 : f32
    %471 = vector.broadcast %cst_138 : f32 to vector<64x1xf32>
    %472 = arith.addf %468, %471 : vector<64x1xf32>
    %473 = math.rsqrt %472 : vector<64x1xf32>
    %474 = vector.broadcast %473 : vector<64x1xf32> to vector<64x128xf32>
    %475 = arith.mulf %470, %474 : vector<64x128xf32>
    %476 = vector.broadcast %258 : vector<1x128xf32> to vector<64x128xf32>
    %477 = arith.mulf %475, %476 : vector<64x128xf32>
    %478 = vector.broadcast %259 : vector<1x128xf32> to vector<64x128xf32>
    %479 = arith.addf %477, %478 : vector<64x128xf32>
    %480 = vector.extract_strided_slice %479 {offsets = [0, 0], sizes = [24, 128], strides = [1, 1]} : vector<64x128xf32> to vector<24x128xf32>
    %c0_139 = arith.constant 0 : index
    %c0_140 = arith.constant 0 : index
    %c0_141 = arith.constant 0 : index
    %481 = vector.load %arg15[%c0_139, %c0_140, %c0_141] : memref<2x24x128xf32, #tpu.memory_space<vmem>>, vector<1x24x128xf32>
    %482 = vector.shape_cast %481 : vector<1x24x128xf32> to vector<24x128xf32>
    %483 = vector.shape_cast %480 : vector<24x128xf32> to vector<1x24x128xf32>
    tpu.vector_store %arg15[%c0_139, %c0_140, %c0_141], %483 {strides = array<i32>} : memref<2x24x128xf32, #tpu.memory_space<vmem>>, vector<1x24x128xf32>,
    %484 = vector.extract_strided_slice %479 {offsets = [32, 0], sizes = [24, 128], strides = [1, 1]} : vector<64x128xf32> to vector<24x128xf32>
    %c1 = arith.constant 1 : index
    %c0_142 = arith.constant 0 : index
    %c0_143 = arith.constant 0 : index
    %485 = vector.load %arg15[%c1, %c0_142, %c0_143] : memref<2x24x128xf32, #tpu.memory_space<vmem>>, vector<1x24x128xf32>
    %486 = vector.shape_cast %485 : vector<1x24x128xf32> to vector<24x128xf32>
    %487 = vector.shape_cast %484 : vector<24x128xf32> to vector<1x24x128xf32>
    tpu.vector_store %arg15[%c1, %c0_142, %c0_143], %487 {strides = array<i32>} : memref<2x24x128xf32, #tpu.memory_space<vmem>>, vector<1x24x128xf32>,
    return
  }
}

module attributes {stable_mosaic.version = 11 : i64} {
  func.func @kernel(%arg0: memref<16x48xf32, #tpu.memory_space<vmem>>, %arg1: memref<16x1xf32, #tpu.memory_space<vmem>>, %arg2: memref<48x128xf32, #tpu.memory_space<vmem>>, %arg3: memref<1x128xf32, #tpu.memory_space<vmem>>, %arg4: memref<16x128xf32, #tpu.memory_space<vmem>>, %arg5: memref<128x384xbf16, #tpu.memory_space<vmem>>, %arg6: memref<128x128xf32, #tpu.memory_space<vmem>>, %arg7: memref<128x512xbf16, #tpu.memory_space<vmem>>, %arg8: memref<512x128xbf16, #tpu.memory_space<vmem>>, %arg9: memref<8x512xf32, #tpu.memory_space<vmem>>, %arg10: memref<128x384xbf16, #tpu.memory_space<vmem>>, %arg11: memref<128x128xf32, #tpu.memory_space<vmem>>, %arg12: memref<128x512xbf16, #tpu.memory_space<vmem>>, %arg13: memref<512x128xbf16, #tpu.memory_space<vmem>>, %arg14: memref<8x512xf32, #tpu.memory_space<vmem>>, %arg15: memref<2x7x128xf32, #tpu.memory_space<vmem>>) attributes {dimension_semantics = [], scalar_prefetch = 0 : i64, scratch_operands = 0 : i64, tpu.core_type = #tpu.core_type<tc>} {
    %c0 = arith.constant 0 : index
    %c0_0 = arith.constant 0 : index
    %0 = vector.load %arg0[%c0, %c0_0] : memref<16x48xf32, #tpu.memory_space<vmem>>, vector<16x48xf32>
    %c0_1 = arith.constant 0 : index
    %c0_2 = arith.constant 0 : index
    %1 = vector.load %arg2[%c0_1, %c0_2] : memref<48x128xf32, #tpu.memory_space<vmem>>, vector<48x128xf32>
    %cst = arith.constant dense<0.000000e+00> : vector<16x128xf32>
    %2 = tpu.matmul %0, %1, %cst {dimension_numbers = #tpu.dot_dimension_numbers<[1], [0], [0], [1], [0, 0, 1, 1], [], []>} : vector<16x48xf32>, vector<48x128xf32>, vector<16x128xf32> -> vector<16x128xf32>
    %c0_3 = arith.constant 0 : index
    %c0_4 = arith.constant 0 : index
    %3 = vector.load %arg3[%c0_3, %c0_4] : memref<1x128xf32, #tpu.memory_space<vmem>>, vector<1x128xf32>
    %4 = vector.broadcast %3 : vector<1x128xf32> to vector<16x128xf32>
    %5 = arith.addf %2, %4 : vector<16x128xf32>
    %cst_5 = arith.constant 0.000000e+00 : f32
    %6 = vector.broadcast %cst_5 : f32 to vector<16x128xf32>
    %7 = arith.maximumf %5, %6 : vector<16x128xf32>
    %c0_6 = arith.constant 0 : index
    %c0_7 = arith.constant 0 : index
    %8 = vector.load %arg4[%c0_6, %c0_7] : memref<16x128xf32, #tpu.memory_space<vmem>>, vector<16x128xf32>
    %c0_8 = arith.constant 0 : index
    %c0_9 = arith.constant 0 : index
    %9 = vector.load %arg1[%c0_8, %c0_9] : memref<16x1xf32, #tpu.memory_space<vmem>>, vector<16x1xf32>
    %10 = vector.broadcast %9 : vector<16x1xf32> to vector<16x128xf32>
    %11 = arith.mulf %10, %7 : vector<16x128xf32>
    %12 = arith.addf %8, %11 : vector<16x128xf32>
    %c0_10 = arith.constant 0 : index
    %c0_11 = arith.constant 0 : index
    %13 = vector.load %arg9[%c0_10, %c0_11] : memref<8x512xf32, #tpu.memory_space<vmem>>, vector<8x512xf32>
    %14 = vector.extract_strided_slice %13 {offsets = [0, 0], sizes = [1, 384], strides = [1, 1]} : vector<8x512xf32> to vector<1x384xf32>
    %15 = vector.extract_strided_slice %13 {offsets = [1, 0], sizes = [1, 128], strides = [1, 1]} : vector<8x512xf32> to vector<1x128xf32>
    %16 = vector.extract_strided_slice %13 {offsets = [2, 0], sizes = [1, 128], strides = [1, 1]} : vector<8x512xf32> to vector<1x128xf32>
    %17 = vector.extract_strided_slice %13 {offsets = [3, 0], sizes = [1, 128], strides = [1, 1]} : vector<8x512xf32> to vector<1x128xf32>
    %18 = vector.extract_strided_slice %13 {offsets = [4, 0], sizes = [1, 512], strides = [1, 1]} : vector<8x512xf32> to vector<1x512xf32>
    %19 = vector.extract_strided_slice %13 {offsets = [5, 0], sizes = [1, 128], strides = [1, 1]} : vector<8x512xf32> to vector<1x128xf32>
    %20 = vector.extract_strided_slice %13 {offsets = [6, 0], sizes = [1, 128], strides = [1, 1]} : vector<8x512xf32> to vector<1x128xf32>
    %21 = vector.extract_strided_slice %13 {offsets = [7, 0], sizes = [1, 128], strides = [1, 1]} : vector<8x512xf32> to vector<1x128xf32>
    %22 = arith.truncf %12 : vector<16x128xf32> to vector<16x128xbf16>
    %c0_12 = arith.constant 0 : index
    %c0_13 = arith.constant 0 : index
    %23 = vector.load %arg5[%c0_12, %c0_13] : memref<128x384xbf16, #tpu.memory_space<vmem>>, vector<128x384xbf16>
    %cst_14 = arith.constant dense<0.000000e+00> : vector<16x384xf32>
    %24 = tpu.matmul %22, %23, %cst_14 {dimension_numbers = #tpu.dot_dimension_numbers<[1], [0], [0], [1], [0, 0, 1, 1], [], []>} : vector<16x128xbf16>, vector<128x384xbf16>, vector<16x384xf32> -> vector<16x384xf32>
    %25 = vector.broadcast %14 : vector<1x384xf32> to vector<16x384xf32>
    %26 = arith.addf %24, %25 : vector<16x384xf32>
    %27 = vector.extract_strided_slice %26 {offsets = [0, 0], sizes = [16, 128], strides = [1, 1]} : vector<16x384xf32> to vector<16x128xf32>
    %cst_15 = arith.constant 0.176776692 : f32
    %28 = vector.broadcast %cst_15 : f32 to vector<16x128xf32>
    %29 = arith.mulf %27, %28 : vector<16x128xf32>
    %30 = vector.extract_strided_slice %26 {offsets = [0, 128], sizes = [16, 128], strides = [1, 1]} : vector<16x384xf32> to vector<16x128xf32>
    %31 = vector.extract_strided_slice %26 {offsets = [0, 256], sizes = [16, 128], strides = [1, 1]} : vector<16x384xf32> to vector<16x128xf32>
    %c0_16 = arith.constant 0 : index
    %c0_17 = arith.constant 0 : index
    %32 = vector.load %arg6[%c0_16, %c0_17] : memref<128x128xf32, #tpu.memory_space<vmem>>, vector<128x128xf32>
    %33 = vector.extract_strided_slice %29 {offsets = [0, 0], sizes = [8, 128], strides = [1, 1]} : vector<16x128xf32> to vector<8x128xf32>
    %34 = vector.extract_strided_slice %30 {offsets = [0, 0], sizes = [8, 128], strides = [1, 1]} : vector<16x128xf32> to vector<8x128xf32>
    %35 = vector.extract_strided_slice %31 {offsets = [0, 0], sizes = [8, 128], strides = [1, 1]} : vector<16x128xf32> to vector<8x128xf32>
    %36 = vector.extract_strided_slice %33 {offsets = [0, 0], sizes = [8, 32], strides = [1, 1]} : vector<8x128xf32> to vector<8x32xf32>
    %37 = vector.extract_strided_slice %34 {offsets = [0, 0], sizes = [8, 32], strides = [1, 1]} : vector<8x128xf32> to vector<8x32xf32>
    %38 = vector.extract_strided_slice %35 {offsets = [0, 0], sizes = [8, 32], strides = [1, 1]} : vector<8x128xf32> to vector<8x32xf32>
    %cst_18 = arith.constant dense<0.000000e+00> : vector<8x8xf32>
    %39 = tpu.matmul %36, %37, %cst_18 {dimension_numbers = #tpu.dot_dimension_numbers<[1], [1], [0], [0], [0, 0, 1, 0], [], []>} : vector<8x32xf32>, vector<8x32xf32>, vector<8x8xf32> -> vector<8x8xf32>
    %cst_19 = arith.constant dense<0xFF800000> : vector<8xf32>
    %40 = vector.multi_reduction <maximumf>, %39, %cst_19 [1] : vector<8x8xf32> to vector<8xf32>
    %41 = vector.shape_cast %40 : vector<8xf32> to vector<8x1xf32>
    %42 = vector.broadcast %41 : vector<8x1xf32> to vector<8x8xf32>
    %43 = arith.subf %39, %42 : vector<8x8xf32>
    %44 = math.exp %43 : vector<8x8xf32>
    %cst_20 = arith.constant dense<0.000000e+00> : vector<8xf32>
    %45 = vector.multi_reduction <add>, %44, %cst_20 [1] : vector<8x8xf32> to vector<8xf32>
    %46 = vector.shape_cast %45 : vector<8xf32> to vector<8x1xf32>
    %47 = tpu.reciprocal %46 {approx = true} : vector<8x1xf32> -> vector<8x1xf32>
    %48 = vector.broadcast %47 : vector<8x1xf32> to vector<8x8xf32>
    %49 = arith.mulf %44, %48 : vector<8x8xf32>
    %cst_21 = arith.constant dense<0.000000e+00> : vector<8x32xf32>
    %50 = tpu.matmul %49, %38, %cst_21 {dimension_numbers = #tpu.dot_dimension_numbers<[1], [0], [0], [1], [0, 0, 1, 1], [], []>} : vector<8x8xf32>, vector<8x32xf32>, vector<8x32xf32> -> vector<8x32xf32>
    %51 = vector.extract_strided_slice %32 {offsets = [0, 0], sizes = [32, 128], strides = [1, 1]} : vector<128x128xf32> to vector<32x128xf32>
    %cst_22 = arith.constant dense<0.000000e+00> : vector<8x128xf32>
    %52 = tpu.matmul %50, %51, %cst_22 {dimension_numbers = #tpu.dot_dimension_numbers<[1], [0], [0], [1], [0, 0, 1, 1], [], []>} : vector<8x32xf32>, vector<32x128xf32>, vector<8x128xf32> -> vector<8x128xf32>
    %53 = vector.extract_strided_slice %33 {offsets = [0, 32], sizes = [8, 32], strides = [1, 1]} : vector<8x128xf32> to vector<8x32xf32>
    %54 = vector.extract_strided_slice %34 {offsets = [0, 32], sizes = [8, 32], strides = [1, 1]} : vector<8x128xf32> to vector<8x32xf32>
    %55 = vector.extract_strided_slice %35 {offsets = [0, 32], sizes = [8, 32], strides = [1, 1]} : vector<8x128xf32> to vector<8x32xf32>
    %cst_23 = arith.constant dense<0.000000e+00> : vector<8x8xf32>
    %56 = tpu.matmul %53, %54, %cst_23 {dimension_numbers = #tpu.dot_dimension_numbers<[1], [1], [0], [0], [0, 0, 1, 0], [], []>} : vector<8x32xf32>, vector<8x32xf32>, vector<8x8xf32> -> vector<8x8xf32>
    %cst_24 = arith.constant dense<0xFF800000> : vector<8xf32>
    %57 = vector.multi_reduction <maximumf>, %56, %cst_24 [1] : vector<8x8xf32> to vector<8xf32>
    %58 = vector.shape_cast %57 : vector<8xf32> to vector<8x1xf32>
    %59 = vector.broadcast %58 : vector<8x1xf32> to vector<8x8xf32>
    %60 = arith.subf %56, %59 : vector<8x8xf32>
    %61 = math.exp %60 : vector<8x8xf32>
    %cst_25 = arith.constant dense<0.000000e+00> : vector<8xf32>
    %62 = vector.multi_reduction <add>, %61, %cst_25 [1] : vector<8x8xf32> to vector<8xf32>
    %63 = vector.shape_cast %62 : vector<8xf32> to vector<8x1xf32>
    %64 = tpu.reciprocal %63 {approx = true} : vector<8x1xf32> -> vector<8x1xf32>
    %65 = vector.broadcast %64 : vector<8x1xf32> to vector<8x8xf32>
    %66 = arith.mulf %61, %65 : vector<8x8xf32>
    %cst_26 = arith.constant dense<0.000000e+00> : vector<8x32xf32>
    %67 = tpu.matmul %66, %55, %cst_26 {dimension_numbers = #tpu.dot_dimension_numbers<[1], [0], [0], [1], [0, 0, 1, 1], [], []>} : vector<8x8xf32>, vector<8x32xf32>, vector<8x32xf32> -> vector<8x32xf32>
    %68 = vector.extract_strided_slice %32 {offsets = [32, 0], sizes = [32, 128], strides = [1, 1]} : vector<128x128xf32> to vector<32x128xf32>
    %cst_27 = arith.constant dense<0.000000e+00> : vector<8x128xf32>
    %69 = tpu.matmul %67, %68, %cst_27 {dimension_numbers = #tpu.dot_dimension_numbers<[1], [0], [0], [1], [0, 0, 1, 1], [], []>} : vector<8x32xf32>, vector<32x128xf32>, vector<8x128xf32> -> vector<8x128xf32>
    %70 = arith.addf %52, %69 : vector<8x128xf32>
    %71 = vector.extract_strided_slice %33 {offsets = [0, 64], sizes = [8, 32], strides = [1, 1]} : vector<8x128xf32> to vector<8x32xf32>
    %72 = vector.extract_strided_slice %34 {offsets = [0, 64], sizes = [8, 32], strides = [1, 1]} : vector<8x128xf32> to vector<8x32xf32>
    %73 = vector.extract_strided_slice %35 {offsets = [0, 64], sizes = [8, 32], strides = [1, 1]} : vector<8x128xf32> to vector<8x32xf32>
    %cst_28 = arith.constant dense<0.000000e+00> : vector<8x8xf32>
    %74 = tpu.matmul %71, %72, %cst_28 {dimension_numbers = #tpu.dot_dimension_numbers<[1], [1], [0], [0], [0, 0, 1, 0], [], []>} : vector<8x32xf32>, vector<8x32xf32>, vector<8x8xf32> -> vector<8x8xf32>
    %cst_29 = arith.constant dense<0xFF800000> : vector<8xf32>
    %75 = vector.multi_reduction <maximumf>, %74, %cst_29 [1] : vector<8x8xf32> to vector<8xf32>
    %76 = vector.shape_cast %75 : vector<8xf32> to vector<8x1xf32>
    %77 = vector.broadcast %76 : vector<8x1xf32> to vector<8x8xf32>
    %78 = arith.subf %74, %77 : vector<8x8xf32>
    %79 = math.exp %78 : vector<8x8xf32>
    %cst_30 = arith.constant dense<0.000000e+00> : vector<8xf32>
    %80 = vector.multi_reduction <add>, %79, %cst_30 [1] : vector<8x8xf32> to vector<8xf32>
    %81 = vector.shape_cast %80 : vector<8xf32> to vector<8x1xf32>
    %82 = tpu.reciprocal %81 {approx = true} : vector<8x1xf32> -> vector<8x1xf32>
    %83 = vector.broadcast %82 : vector<8x1xf32> to vector<8x8xf32>
    %84 = arith.mulf %79, %83 : vector<8x8xf32>
    %cst_31 = arith.constant dense<0.000000e+00> : vector<8x32xf32>
    %85 = tpu.matmul %84, %73, %cst_31 {dimension_numbers = #tpu.dot_dimension_numbers<[1], [0], [0], [1], [0, 0, 1, 1], [], []>} : vector<8x8xf32>, vector<8x32xf32>, vector<8x32xf32> -> vector<8x32xf32>
    %86 = vector.extract_strided_slice %32 {offsets = [64, 0], sizes = [32, 128], strides = [1, 1]} : vector<128x128xf32> to vector<32x128xf32>
    %cst_32 = arith.constant dense<0.000000e+00> : vector<8x128xf32>
    %87 = tpu.matmul %85, %86, %cst_32 {dimension_numbers = #tpu.dot_dimension_numbers<[1], [0], [0], [1], [0, 0, 1, 1], [], []>} : vector<8x32xf32>, vector<32x128xf32>, vector<8x128xf32> -> vector<8x128xf32>
    %88 = arith.addf %70, %87 : vector<8x128xf32>
    %89 = vector.extract_strided_slice %33 {offsets = [0, 96], sizes = [8, 32], strides = [1, 1]} : vector<8x128xf32> to vector<8x32xf32>
    %90 = vector.extract_strided_slice %34 {offsets = [0, 96], sizes = [8, 32], strides = [1, 1]} : vector<8x128xf32> to vector<8x32xf32>
    %91 = vector.extract_strided_slice %35 {offsets = [0, 96], sizes = [8, 32], strides = [1, 1]} : vector<8x128xf32> to vector<8x32xf32>
    %cst_33 = arith.constant dense<0.000000e+00> : vector<8x8xf32>
    %92 = tpu.matmul %89, %90, %cst_33 {dimension_numbers = #tpu.dot_dimension_numbers<[1], [1], [0], [0], [0, 0, 1, 0], [], []>} : vector<8x32xf32>, vector<8x32xf32>, vector<8x8xf32> -> vector<8x8xf32>
    %cst_34 = arith.constant dense<0xFF800000> : vector<8xf32>
    %93 = vector.multi_reduction <maximumf>, %92, %cst_34 [1] : vector<8x8xf32> to vector<8xf32>
    %94 = vector.shape_cast %93 : vector<8xf32> to vector<8x1xf32>
    %95 = vector.broadcast %94 : vector<8x1xf32> to vector<8x8xf32>
    %96 = arith.subf %92, %95 : vector<8x8xf32>
    %97 = math.exp %96 : vector<8x8xf32>
    %cst_35 = arith.constant dense<0.000000e+00> : vector<8xf32>
    %98 = vector.multi_reduction <add>, %97, %cst_35 [1] : vector<8x8xf32> to vector<8xf32>
    %99 = vector.shape_cast %98 : vector<8xf32> to vector<8x1xf32>
    %100 = tpu.reciprocal %99 {approx = true} : vector<8x1xf32> -> vector<8x1xf32>
    %101 = vector.broadcast %100 : vector<8x1xf32> to vector<8x8xf32>
    %102 = arith.mulf %97, %101 : vector<8x8xf32>
    %cst_36 = arith.constant dense<0.000000e+00> : vector<8x32xf32>
    %103 = tpu.matmul %102, %91, %cst_36 {dimension_numbers = #tpu.dot_dimension_numbers<[1], [0], [0], [1], [0, 0, 1, 1], [], []>} : vector<8x8xf32>, vector<8x32xf32>, vector<8x32xf32> -> vector<8x32xf32>
    %104 = vector.extract_strided_slice %32 {offsets = [96, 0], sizes = [32, 128], strides = [1, 1]} : vector<128x128xf32> to vector<32x128xf32>
    %cst_37 = arith.constant dense<0.000000e+00> : vector<8x128xf32>
    %105 = tpu.matmul %103, %104, %cst_37 {dimension_numbers = #tpu.dot_dimension_numbers<[1], [0], [0], [1], [0, 0, 1, 1], [], []>} : vector<8x32xf32>, vector<32x128xf32>, vector<8x128xf32> -> vector<8x128xf32>
    %106 = arith.addf %88, %105 : vector<8x128xf32>
    %107 = vector.extract_strided_slice %29 {offsets = [8, 0], sizes = [8, 128], strides = [1, 1]} : vector<16x128xf32> to vector<8x128xf32>
    %108 = vector.extract_strided_slice %30 {offsets = [8, 0], sizes = [8, 128], strides = [1, 1]} : vector<16x128xf32> to vector<8x128xf32>
    %109 = vector.extract_strided_slice %31 {offsets = [8, 0], sizes = [8, 128], strides = [1, 1]} : vector<16x128xf32> to vector<8x128xf32>
    %110 = vector.extract_strided_slice %107 {offsets = [0, 0], sizes = [8, 32], strides = [1, 1]} : vector<8x128xf32> to vector<8x32xf32>
    %111 = vector.extract_strided_slice %108 {offsets = [0, 0], sizes = [8, 32], strides = [1, 1]} : vector<8x128xf32> to vector<8x32xf32>
    %112 = vector.extract_strided_slice %109 {offsets = [0, 0], sizes = [8, 32], strides = [1, 1]} : vector<8x128xf32> to vector<8x32xf32>
    %cst_38 = arith.constant dense<0.000000e+00> : vector<8x8xf32>
    %113 = tpu.matmul %110, %111, %cst_38 {dimension_numbers = #tpu.dot_dimension_numbers<[1], [1], [0], [0], [0, 0, 1, 0], [], []>} : vector<8x32xf32>, vector<8x32xf32>, vector<8x8xf32> -> vector<8x8xf32>
    %cst_39 = arith.constant dense<0xFF800000> : vector<8xf32>
    %114 = vector.multi_reduction <maximumf>, %113, %cst_39 [1] : vector<8x8xf32> to vector<8xf32>
    %115 = vector.shape_cast %114 : vector<8xf32> to vector<8x1xf32>
    %116 = vector.broadcast %115 : vector<8x1xf32> to vector<8x8xf32>
    %117 = arith.subf %113, %116 : vector<8x8xf32>
    %118 = math.exp %117 : vector<8x8xf32>
    %cst_40 = arith.constant dense<0.000000e+00> : vector<8xf32>
    %119 = vector.multi_reduction <add>, %118, %cst_40 [1] : vector<8x8xf32> to vector<8xf32>
    %120 = vector.shape_cast %119 : vector<8xf32> to vector<8x1xf32>
    %121 = tpu.reciprocal %120 {approx = true} : vector<8x1xf32> -> vector<8x1xf32>
    %122 = vector.broadcast %121 : vector<8x1xf32> to vector<8x8xf32>
    %123 = arith.mulf %118, %122 : vector<8x8xf32>
    %cst_41 = arith.constant dense<0.000000e+00> : vector<8x32xf32>
    %124 = tpu.matmul %123, %112, %cst_41 {dimension_numbers = #tpu.dot_dimension_numbers<[1], [0], [0], [1], [0, 0, 1, 1], [], []>} : vector<8x8xf32>, vector<8x32xf32>, vector<8x32xf32> -> vector<8x32xf32>
    %125 = vector.extract_strided_slice %32 {offsets = [0, 0], sizes = [32, 128], strides = [1, 1]} : vector<128x128xf32> to vector<32x128xf32>
    %cst_42 = arith.constant dense<0.000000e+00> : vector<8x128xf32>
    %126 = tpu.matmul %124, %125, %cst_42 {dimension_numbers = #tpu.dot_dimension_numbers<[1], [0], [0], [1], [0, 0, 1, 1], [], []>} : vector<8x32xf32>, vector<32x128xf32>, vector<8x128xf32> -> vector<8x128xf32>
    %127 = vector.extract_strided_slice %107 {offsets = [0, 32], sizes = [8, 32], strides = [1, 1]} : vector<8x128xf32> to vector<8x32xf32>
    %128 = vector.extract_strided_slice %108 {offsets = [0, 32], sizes = [8, 32], strides = [1, 1]} : vector<8x128xf32> to vector<8x32xf32>
    %129 = vector.extract_strided_slice %109 {offsets = [0, 32], sizes = [8, 32], strides = [1, 1]} : vector<8x128xf32> to vector<8x32xf32>
    %cst_43 = arith.constant dense<0.000000e+00> : vector<8x8xf32>
    %130 = tpu.matmul %127, %128, %cst_43 {dimension_numbers = #tpu.dot_dimension_numbers<[1], [1], [0], [0], [0, 0, 1, 0], [], []>} : vector<8x32xf32>, vector<8x32xf32>, vector<8x8xf32> -> vector<8x8xf32>
    %cst_44 = arith.constant dense<0xFF800000> : vector<8xf32>
    %131 = vector.multi_reduction <maximumf>, %130, %cst_44 [1] : vector<8x8xf32> to vector<8xf32>
    %132 = vector.shape_cast %131 : vector<8xf32> to vector<8x1xf32>
    %133 = vector.broadcast %132 : vector<8x1xf32> to vector<8x8xf32>
    %134 = arith.subf %130, %133 : vector<8x8xf32>
    %135 = math.exp %134 : vector<8x8xf32>
    %cst_45 = arith.constant dense<0.000000e+00> : vector<8xf32>
    %136 = vector.multi_reduction <add>, %135, %cst_45 [1] : vector<8x8xf32> to vector<8xf32>
    %137 = vector.shape_cast %136 : vector<8xf32> to vector<8x1xf32>
    %138 = tpu.reciprocal %137 {approx = true} : vector<8x1xf32> -> vector<8x1xf32>
    %139 = vector.broadcast %138 : vector<8x1xf32> to vector<8x8xf32>
    %140 = arith.mulf %135, %139 : vector<8x8xf32>
    %cst_46 = arith.constant dense<0.000000e+00> : vector<8x32xf32>
    %141 = tpu.matmul %140, %129, %cst_46 {dimension_numbers = #tpu.dot_dimension_numbers<[1], [0], [0], [1], [0, 0, 1, 1], [], []>} : vector<8x8xf32>, vector<8x32xf32>, vector<8x32xf32> -> vector<8x32xf32>
    %142 = vector.extract_strided_slice %32 {offsets = [32, 0], sizes = [32, 128], strides = [1, 1]} : vector<128x128xf32> to vector<32x128xf32>
    %cst_47 = arith.constant dense<0.000000e+00> : vector<8x128xf32>
    %143 = tpu.matmul %141, %142, %cst_47 {dimension_numbers = #tpu.dot_dimension_numbers<[1], [0], [0], [1], [0, 0, 1, 1], [], []>} : vector<8x32xf32>, vector<32x128xf32>, vector<8x128xf32> -> vector<8x128xf32>
    %144 = arith.addf %126, %143 : vector<8x128xf32>
    %145 = vector.extract_strided_slice %107 {offsets = [0, 64], sizes = [8, 32], strides = [1, 1]} : vector<8x128xf32> to vector<8x32xf32>
    %146 = vector.extract_strided_slice %108 {offsets = [0, 64], sizes = [8, 32], strides = [1, 1]} : vector<8x128xf32> to vector<8x32xf32>
    %147 = vector.extract_strided_slice %109 {offsets = [0, 64], sizes = [8, 32], strides = [1, 1]} : vector<8x128xf32> to vector<8x32xf32>
    %cst_48 = arith.constant dense<0.000000e+00> : vector<8x8xf32>
    %148 = tpu.matmul %145, %146, %cst_48 {dimension_numbers = #tpu.dot_dimension_numbers<[1], [1], [0], [0], [0, 0, 1, 0], [], []>} : vector<8x32xf32>, vector<8x32xf32>, vector<8x8xf32> -> vector<8x8xf32>
    %cst_49 = arith.constant dense<0xFF800000> : vector<8xf32>
    %149 = vector.multi_reduction <maximumf>, %148, %cst_49 [1] : vector<8x8xf32> to vector<8xf32>
    %150 = vector.shape_cast %149 : vector<8xf32> to vector<8x1xf32>
    %151 = vector.broadcast %150 : vector<8x1xf32> to vector<8x8xf32>
    %152 = arith.subf %148, %151 : vector<8x8xf32>
    %153 = math.exp %152 : vector<8x8xf32>
    %cst_50 = arith.constant dense<0.000000e+00> : vector<8xf32>
    %154 = vector.multi_reduction <add>, %153, %cst_50 [1] : vector<8x8xf32> to vector<8xf32>
    %155 = vector.shape_cast %154 : vector<8xf32> to vector<8x1xf32>
    %156 = tpu.reciprocal %155 {approx = true} : vector<8x1xf32> -> vector<8x1xf32>
    %157 = vector.broadcast %156 : vector<8x1xf32> to vector<8x8xf32>
    %158 = arith.mulf %153, %157 : vector<8x8xf32>
    %cst_51 = arith.constant dense<0.000000e+00> : vector<8x32xf32>
    %159 = tpu.matmul %158, %147, %cst_51 {dimension_numbers = #tpu.dot_dimension_numbers<[1], [0], [0], [1], [0, 0, 1, 1], [], []>} : vector<8x8xf32>, vector<8x32xf32>, vector<8x32xf32> -> vector<8x32xf32>
    %160 = vector.extract_strided_slice %32 {offsets = [64, 0], sizes = [32, 128], strides = [1, 1]} : vector<128x128xf32> to vector<32x128xf32>
    %cst_52 = arith.constant dense<0.000000e+00> : vector<8x128xf32>
    %161 = tpu.matmul %159, %160, %cst_52 {dimension_numbers = #tpu.dot_dimension_numbers<[1], [0], [0], [1], [0, 0, 1, 1], [], []>} : vector<8x32xf32>, vector<32x128xf32>, vector<8x128xf32> -> vector<8x128xf32>
    %162 = arith.addf %144, %161 : vector<8x128xf32>
    %163 = vector.extract_strided_slice %107 {offsets = [0, 96], sizes = [8, 32], strides = [1, 1]} : vector<8x128xf32> to vector<8x32xf32>
    %164 = vector.extract_strided_slice %108 {offsets = [0, 96], sizes = [8, 32], strides = [1, 1]} : vector<8x128xf32> to vector<8x32xf32>
    %165 = vector.extract_strided_slice %109 {offsets = [0, 96], sizes = [8, 32], strides = [1, 1]} : vector<8x128xf32> to vector<8x32xf32>
    %cst_53 = arith.constant dense<0.000000e+00> : vector<8x8xf32>
    %166 = tpu.matmul %163, %164, %cst_53 {dimension_numbers = #tpu.dot_dimension_numbers<[1], [1], [0], [0], [0, 0, 1, 0], [], []>} : vector<8x32xf32>, vector<8x32xf32>, vector<8x8xf32> -> vector<8x8xf32>
    %cst_54 = arith.constant dense<0xFF800000> : vector<8xf32>
    %167 = vector.multi_reduction <maximumf>, %166, %cst_54 [1] : vector<8x8xf32> to vector<8xf32>
    %168 = vector.shape_cast %167 : vector<8xf32> to vector<8x1xf32>
    %169 = vector.broadcast %168 : vector<8x1xf32> to vector<8x8xf32>
    %170 = arith.subf %166, %169 : vector<8x8xf32>
    %171 = math.exp %170 : vector<8x8xf32>
    %cst_55 = arith.constant dense<0.000000e+00> : vector<8xf32>
    %172 = vector.multi_reduction <add>, %171, %cst_55 [1] : vector<8x8xf32> to vector<8xf32>
    %173 = vector.shape_cast %172 : vector<8xf32> to vector<8x1xf32>
    %174 = tpu.reciprocal %173 {approx = true} : vector<8x1xf32> -> vector<8x1xf32>
    %175 = vector.broadcast %174 : vector<8x1xf32> to vector<8x8xf32>
    %176 = arith.mulf %171, %175 : vector<8x8xf32>
    %cst_56 = arith.constant dense<0.000000e+00> : vector<8x32xf32>
    %177 = tpu.matmul %176, %165, %cst_56 {dimension_numbers = #tpu.dot_dimension_numbers<[1], [0], [0], [1], [0, 0, 1, 1], [], []>} : vector<8x8xf32>, vector<8x32xf32>, vector<8x32xf32> -> vector<8x32xf32>
    %178 = vector.extract_strided_slice %32 {offsets = [96, 0], sizes = [32, 128], strides = [1, 1]} : vector<128x128xf32> to vector<32x128xf32>
    %cst_57 = arith.constant dense<0.000000e+00> : vector<8x128xf32>
    %179 = tpu.matmul %177, %178, %cst_57 {dimension_numbers = #tpu.dot_dimension_numbers<[1], [0], [0], [1], [0, 0, 1, 1], [], []>} : vector<8x32xf32>, vector<32x128xf32>, vector<8x128xf32> -> vector<8x128xf32>
    %180 = arith.addf %162, %179 : vector<8x128xf32>
    %181 = tpu.concatenate %106, %180 in 0 : vector<8x128xf32>, vector<8x128xf32> -> vector<16x128xf32>
    %182 = vector.broadcast %15 : vector<1x128xf32> to vector<16x128xf32>
    %183 = arith.addf %181, %182 : vector<16x128xf32>
    %184 = arith.addf %12, %183 : vector<16x128xf32>
    %cst_58 = arith.constant dense<0.000000e+00> : vector<16xf32>
    %185 = vector.multi_reduction <add>, %184, %cst_58 [1] : vector<16x128xf32> to vector<16xf32>
    %186 = vector.shape_cast %185 : vector<16xf32> to vector<16x1xf32>
    %cst_59 = arith.constant 1.280000e+02 : f32
    %187 = vector.broadcast %cst_59 : f32 to vector<16x1xf32>
    %188 = arith.divf %186, %187 : vector<16x1xf32>
    %189 = vector.broadcast %188 : vector<16x1xf32> to vector<16x128xf32>
    %190 = arith.subf %184, %189 : vector<16x128xf32>
    %191 = arith.mulf %190, %190 : vector<16x128xf32>
    %cst_60 = arith.constant dense<0.000000e+00> : vector<16xf32>
    %192 = vector.multi_reduction <add>, %191, %cst_60 [1] : vector<16x128xf32> to vector<16xf32>
    %193 = vector.shape_cast %192 : vector<16xf32> to vector<16x1xf32>
    %cst_61 = arith.constant 1.280000e+02 : f32
    %194 = vector.broadcast %cst_61 : f32 to vector<16x1xf32>
    %195 = arith.divf %193, %194 : vector<16x1xf32>
    %196 = vector.broadcast %188 : vector<16x1xf32> to vector<16x128xf32>
    %197 = arith.subf %184, %196 : vector<16x128xf32>
    %cst_62 = arith.constant 9.99999974E-6 : f32
    %198 = vector.broadcast %cst_62 : f32 to vector<16x1xf32>
    %199 = arith.addf %195, %198 : vector<16x1xf32>
    %200 = math.rsqrt %199 : vector<16x1xf32>
    %201 = vector.broadcast %200 : vector<16x1xf32> to vector<16x128xf32>
    %202 = arith.mulf %197, %201 : vector<16x128xf32>
    %203 = vector.broadcast %16 : vector<1x128xf32> to vector<16x128xf32>
    %204 = arith.mulf %202, %203 : vector<16x128xf32>
    %205 = vector.broadcast %17 : vector<1x128xf32> to vector<16x128xf32>
    %206 = arith.addf %204, %205 : vector<16x128xf32>
    %207 = arith.truncf %206 : vector<16x128xf32> to vector<16x128xbf16>
    %c0_63 = arith.constant 0 : index
    %c0_64 = arith.constant 0 : index
    %208 = vector.load %arg7[%c0_63, %c0_64] : memref<128x512xbf16, #tpu.memory_space<vmem>>, vector<128x512xbf16>
    %cst_65 = arith.constant dense<0.000000e+00> : vector<16x512xf32>
    %209 = tpu.matmul %207, %208, %cst_65 {dimension_numbers = #tpu.dot_dimension_numbers<[1], [0], [0], [1], [0, 0, 1, 1], [], []>} : vector<16x128xbf16>, vector<128x512xbf16>, vector<16x512xf32> -> vector<16x512xf32>
    %210 = vector.broadcast %18 : vector<1x512xf32> to vector<16x512xf32>
    %211 = arith.addf %209, %210 : vector<16x512xf32>
    %cst_66 = arith.constant 0.000000e+00 : f32
    %212 = vector.broadcast %cst_66 : f32 to vector<16x512xf32>
    %213 = arith.maximumf %211, %212 : vector<16x512xf32>
    %214 = arith.truncf %213 : vector<16x512xf32> to vector<16x512xbf16>
    %c0_67 = arith.constant 0 : index
    %c0_68 = arith.constant 0 : index
    %215 = vector.load %arg8[%c0_67, %c0_68] : memref<512x128xbf16, #tpu.memory_space<vmem>>, vector<512x128xbf16>
    %cst_69 = arith.constant dense<0.000000e+00> : vector<16x128xf32>
    %216 = tpu.matmul %214, %215, %cst_69 {dimension_numbers = #tpu.dot_dimension_numbers<[1], [0], [0], [1], [0, 0, 1, 1], [], []>} : vector<16x512xbf16>, vector<512x128xbf16>, vector<16x128xf32> -> vector<16x128xf32>
    %217 = vector.broadcast %19 : vector<1x128xf32> to vector<16x128xf32>
    %218 = arith.addf %216, %217 : vector<16x128xf32>
    %219 = arith.addf %206, %218 : vector<16x128xf32>
    %cst_70 = arith.constant dense<0.000000e+00> : vector<16xf32>
    %220 = vector.multi_reduction <add>, %219, %cst_70 [1] : vector<16x128xf32> to vector<16xf32>
    %221 = vector.shape_cast %220 : vector<16xf32> to vector<16x1xf32>
    %cst_71 = arith.constant 1.280000e+02 : f32
    %222 = vector.broadcast %cst_71 : f32 to vector<16x1xf32>
    %223 = arith.divf %221, %222 : vector<16x1xf32>
    %224 = vector.broadcast %223 : vector<16x1xf32> to vector<16x128xf32>
    %225 = arith.subf %219, %224 : vector<16x128xf32>
    %226 = arith.mulf %225, %225 : vector<16x128xf32>
    %cst_72 = arith.constant dense<0.000000e+00> : vector<16xf32>
    %227 = vector.multi_reduction <add>, %226, %cst_72 [1] : vector<16x128xf32> to vector<16xf32>
    %228 = vector.shape_cast %227 : vector<16xf32> to vector<16x1xf32>
    %cst_73 = arith.constant 1.280000e+02 : f32
    %229 = vector.broadcast %cst_73 : f32 to vector<16x1xf32>
    %230 = arith.divf %228, %229 : vector<16x1xf32>
    %231 = vector.broadcast %223 : vector<16x1xf32> to vector<16x128xf32>
    %232 = arith.subf %219, %231 : vector<16x128xf32>
    %cst_74 = arith.constant 9.99999974E-6 : f32
    %233 = vector.broadcast %cst_74 : f32 to vector<16x1xf32>
    %234 = arith.addf %230, %233 : vector<16x1xf32>
    %235 = math.rsqrt %234 : vector<16x1xf32>
    %236 = vector.broadcast %235 : vector<16x1xf32> to vector<16x128xf32>
    %237 = arith.mulf %232, %236 : vector<16x128xf32>
    %238 = vector.broadcast %20 : vector<1x128xf32> to vector<16x128xf32>
    %239 = arith.mulf %237, %238 : vector<16x128xf32>
    %240 = vector.broadcast %21 : vector<1x128xf32> to vector<16x128xf32>
    %241 = arith.addf %239, %240 : vector<16x128xf32>
    %c0_75 = arith.constant 0 : index
    %c0_76 = arith.constant 0 : index
    %242 = vector.load %arg14[%c0_75, %c0_76] : memref<8x512xf32, #tpu.memory_space<vmem>>, vector<8x512xf32>
    %243 = vector.extract_strided_slice %242 {offsets = [0, 0], sizes = [1, 384], strides = [1, 1]} : vector<8x512xf32> to vector<1x384xf32>
    %244 = vector.extract_strided_slice %242 {offsets = [1, 0], sizes = [1, 128], strides = [1, 1]} : vector<8x512xf32> to vector<1x128xf32>
    %245 = vector.extract_strided_slice %242 {offsets = [2, 0], sizes = [1, 128], strides = [1, 1]} : vector<8x512xf32> to vector<1x128xf32>
    %246 = vector.extract_strided_slice %242 {offsets = [3, 0], sizes = [1, 128], strides = [1, 1]} : vector<8x512xf32> to vector<1x128xf32>
    %247 = vector.extract_strided_slice %242 {offsets = [4, 0], sizes = [1, 512], strides = [1, 1]} : vector<8x512xf32> to vector<1x512xf32>
    %248 = vector.extract_strided_slice %242 {offsets = [5, 0], sizes = [1, 128], strides = [1, 1]} : vector<8x512xf32> to vector<1x128xf32>
    %249 = vector.extract_strided_slice %242 {offsets = [6, 0], sizes = [1, 128], strides = [1, 1]} : vector<8x512xf32> to vector<1x128xf32>
    %250 = vector.extract_strided_slice %242 {offsets = [7, 0], sizes = [1, 128], strides = [1, 1]} : vector<8x512xf32> to vector<1x128xf32>
    %251 = arith.truncf %241 : vector<16x128xf32> to vector<16x128xbf16>
    %c0_77 = arith.constant 0 : index
    %c0_78 = arith.constant 0 : index
    %252 = vector.load %arg10[%c0_77, %c0_78] : memref<128x384xbf16, #tpu.memory_space<vmem>>, vector<128x384xbf16>
    %cst_79 = arith.constant dense<0.000000e+00> : vector<16x384xf32>
    %253 = tpu.matmul %251, %252, %cst_79 {dimension_numbers = #tpu.dot_dimension_numbers<[1], [0], [0], [1], [0, 0, 1, 1], [], []>} : vector<16x128xbf16>, vector<128x384xbf16>, vector<16x384xf32> -> vector<16x384xf32>
    %254 = vector.broadcast %243 : vector<1x384xf32> to vector<16x384xf32>
    %255 = arith.addf %253, %254 : vector<16x384xf32>
    %256 = vector.extract_strided_slice %255 {offsets = [0, 0], sizes = [16, 128], strides = [1, 1]} : vector<16x384xf32> to vector<16x128xf32>
    %cst_80 = arith.constant 0.176776692 : f32
    %257 = vector.broadcast %cst_80 : f32 to vector<16x128xf32>
    %258 = arith.mulf %256, %257 : vector<16x128xf32>
    %259 = vector.extract_strided_slice %255 {offsets = [0, 128], sizes = [16, 128], strides = [1, 1]} : vector<16x384xf32> to vector<16x128xf32>
    %260 = vector.extract_strided_slice %255 {offsets = [0, 256], sizes = [16, 128], strides = [1, 1]} : vector<16x384xf32> to vector<16x128xf32>
    %c0_81 = arith.constant 0 : index
    %c0_82 = arith.constant 0 : index
    %261 = vector.load %arg11[%c0_81, %c0_82] : memref<128x128xf32, #tpu.memory_space<vmem>>, vector<128x128xf32>
    %262 = vector.extract_strided_slice %258 {offsets = [0, 0], sizes = [8, 128], strides = [1, 1]} : vector<16x128xf32> to vector<8x128xf32>
    %263 = vector.extract_strided_slice %259 {offsets = [0, 0], sizes = [8, 128], strides = [1, 1]} : vector<16x128xf32> to vector<8x128xf32>
    %264 = vector.extract_strided_slice %260 {offsets = [0, 0], sizes = [8, 128], strides = [1, 1]} : vector<16x128xf32> to vector<8x128xf32>
    %265 = vector.extract_strided_slice %262 {offsets = [0, 0], sizes = [8, 32], strides = [1, 1]} : vector<8x128xf32> to vector<8x32xf32>
    %266 = vector.extract_strided_slice %263 {offsets = [0, 0], sizes = [8, 32], strides = [1, 1]} : vector<8x128xf32> to vector<8x32xf32>
    %267 = vector.extract_strided_slice %264 {offsets = [0, 0], sizes = [8, 32], strides = [1, 1]} : vector<8x128xf32> to vector<8x32xf32>
    %cst_83 = arith.constant dense<0.000000e+00> : vector<8x8xf32>
    %268 = tpu.matmul %265, %266, %cst_83 {dimension_numbers = #tpu.dot_dimension_numbers<[1], [1], [0], [0], [0, 0, 1, 0], [], []>} : vector<8x32xf32>, vector<8x32xf32>, vector<8x8xf32> -> vector<8x8xf32>
    %cst_84 = arith.constant dense<0xFF800000> : vector<8xf32>
    %269 = vector.multi_reduction <maximumf>, %268, %cst_84 [1] : vector<8x8xf32> to vector<8xf32>
    %270 = vector.shape_cast %269 : vector<8xf32> to vector<8x1xf32>
    %271 = vector.broadcast %270 : vector<8x1xf32> to vector<8x8xf32>
    %272 = arith.subf %268, %271 : vector<8x8xf32>
    %273 = math.exp %272 : vector<8x8xf32>
    %cst_85 = arith.constant dense<0.000000e+00> : vector<8xf32>
    %274 = vector.multi_reduction <add>, %273, %cst_85 [1] : vector<8x8xf32> to vector<8xf32>
    %275 = vector.shape_cast %274 : vector<8xf32> to vector<8x1xf32>
    %276 = tpu.reciprocal %275 {approx = true} : vector<8x1xf32> -> vector<8x1xf32>
    %277 = vector.broadcast %276 : vector<8x1xf32> to vector<8x8xf32>
    %278 = arith.mulf %273, %277 : vector<8x8xf32>
    %cst_86 = arith.constant dense<0.000000e+00> : vector<8x32xf32>
    %279 = tpu.matmul %278, %267, %cst_86 {dimension_numbers = #tpu.dot_dimension_numbers<[1], [0], [0], [1], [0, 0, 1, 1], [], []>} : vector<8x8xf32>, vector<8x32xf32>, vector<8x32xf32> -> vector<8x32xf32>
    %280 = vector.extract_strided_slice %261 {offsets = [0, 0], sizes = [32, 128], strides = [1, 1]} : vector<128x128xf32> to vector<32x128xf32>
    %cst_87 = arith.constant dense<0.000000e+00> : vector<8x128xf32>
    %281 = tpu.matmul %279, %280, %cst_87 {dimension_numbers = #tpu.dot_dimension_numbers<[1], [0], [0], [1], [0, 0, 1, 1], [], []>} : vector<8x32xf32>, vector<32x128xf32>, vector<8x128xf32> -> vector<8x128xf32>
    %282 = vector.extract_strided_slice %262 {offsets = [0, 32], sizes = [8, 32], strides = [1, 1]} : vector<8x128xf32> to vector<8x32xf32>
    %283 = vector.extract_strided_slice %263 {offsets = [0, 32], sizes = [8, 32], strides = [1, 1]} : vector<8x128xf32> to vector<8x32xf32>
    %284 = vector.extract_strided_slice %264 {offsets = [0, 32], sizes = [8, 32], strides = [1, 1]} : vector<8x128xf32> to vector<8x32xf32>
    %cst_88 = arith.constant dense<0.000000e+00> : vector<8x8xf32>
    %285 = tpu.matmul %282, %283, %cst_88 {dimension_numbers = #tpu.dot_dimension_numbers<[1], [1], [0], [0], [0, 0, 1, 0], [], []>} : vector<8x32xf32>, vector<8x32xf32>, vector<8x8xf32> -> vector<8x8xf32>
    %cst_89 = arith.constant dense<0xFF800000> : vector<8xf32>
    %286 = vector.multi_reduction <maximumf>, %285, %cst_89 [1] : vector<8x8xf32> to vector<8xf32>
    %287 = vector.shape_cast %286 : vector<8xf32> to vector<8x1xf32>
    %288 = vector.broadcast %287 : vector<8x1xf32> to vector<8x8xf32>
    %289 = arith.subf %285, %288 : vector<8x8xf32>
    %290 = math.exp %289 : vector<8x8xf32>
    %cst_90 = arith.constant dense<0.000000e+00> : vector<8xf32>
    %291 = vector.multi_reduction <add>, %290, %cst_90 [1] : vector<8x8xf32> to vector<8xf32>
    %292 = vector.shape_cast %291 : vector<8xf32> to vector<8x1xf32>
    %293 = tpu.reciprocal %292 {approx = true} : vector<8x1xf32> -> vector<8x1xf32>
    %294 = vector.broadcast %293 : vector<8x1xf32> to vector<8x8xf32>
    %295 = arith.mulf %290, %294 : vector<8x8xf32>
    %cst_91 = arith.constant dense<0.000000e+00> : vector<8x32xf32>
    %296 = tpu.matmul %295, %284, %cst_91 {dimension_numbers = #tpu.dot_dimension_numbers<[1], [0], [0], [1], [0, 0, 1, 1], [], []>} : vector<8x8xf32>, vector<8x32xf32>, vector<8x32xf32> -> vector<8x32xf32>
    %297 = vector.extract_strided_slice %261 {offsets = [32, 0], sizes = [32, 128], strides = [1, 1]} : vector<128x128xf32> to vector<32x128xf32>
    %cst_92 = arith.constant dense<0.000000e+00> : vector<8x128xf32>
    %298 = tpu.matmul %296, %297, %cst_92 {dimension_numbers = #tpu.dot_dimension_numbers<[1], [0], [0], [1], [0, 0, 1, 1], [], []>} : vector<8x32xf32>, vector<32x128xf32>, vector<8x128xf32> -> vector<8x128xf32>
    %299 = arith.addf %281, %298 : vector<8x128xf32>
    %300 = vector.extract_strided_slice %262 {offsets = [0, 64], sizes = [8, 32], strides = [1, 1]} : vector<8x128xf32> to vector<8x32xf32>
    %301 = vector.extract_strided_slice %263 {offsets = [0, 64], sizes = [8, 32], strides = [1, 1]} : vector<8x128xf32> to vector<8x32xf32>
    %302 = vector.extract_strided_slice %264 {offsets = [0, 64], sizes = [8, 32], strides = [1, 1]} : vector<8x128xf32> to vector<8x32xf32>
    %cst_93 = arith.constant dense<0.000000e+00> : vector<8x8xf32>
    %303 = tpu.matmul %300, %301, %cst_93 {dimension_numbers = #tpu.dot_dimension_numbers<[1], [1], [0], [0], [0, 0, 1, 0], [], []>} : vector<8x32xf32>, vector<8x32xf32>, vector<8x8xf32> -> vector<8x8xf32>
    %cst_94 = arith.constant dense<0xFF800000> : vector<8xf32>
    %304 = vector.multi_reduction <maximumf>, %303, %cst_94 [1] : vector<8x8xf32> to vector<8xf32>
    %305 = vector.shape_cast %304 : vector<8xf32> to vector<8x1xf32>
    %306 = vector.broadcast %305 : vector<8x1xf32> to vector<8x8xf32>
    %307 = arith.subf %303, %306 : vector<8x8xf32>
    %308 = math.exp %307 : vector<8x8xf32>
    %cst_95 = arith.constant dense<0.000000e+00> : vector<8xf32>
    %309 = vector.multi_reduction <add>, %308, %cst_95 [1] : vector<8x8xf32> to vector<8xf32>
    %310 = vector.shape_cast %309 : vector<8xf32> to vector<8x1xf32>
    %311 = tpu.reciprocal %310 {approx = true} : vector<8x1xf32> -> vector<8x1xf32>
    %312 = vector.broadcast %311 : vector<8x1xf32> to vector<8x8xf32>
    %313 = arith.mulf %308, %312 : vector<8x8xf32>
    %cst_96 = arith.constant dense<0.000000e+00> : vector<8x32xf32>
    %314 = tpu.matmul %313, %302, %cst_96 {dimension_numbers = #tpu.dot_dimension_numbers<[1], [0], [0], [1], [0, 0, 1, 1], [], []>} : vector<8x8xf32>, vector<8x32xf32>, vector<8x32xf32> -> vector<8x32xf32>
    %315 = vector.extract_strided_slice %261 {offsets = [64, 0], sizes = [32, 128], strides = [1, 1]} : vector<128x128xf32> to vector<32x128xf32>
    %cst_97 = arith.constant dense<0.000000e+00> : vector<8x128xf32>
    %316 = tpu.matmul %314, %315, %cst_97 {dimension_numbers = #tpu.dot_dimension_numbers<[1], [0], [0], [1], [0, 0, 1, 1], [], []>} : vector<8x32xf32>, vector<32x128xf32>, vector<8x128xf32> -> vector<8x128xf32>
    %317 = arith.addf %299, %316 : vector<8x128xf32>
    %318 = vector.extract_strided_slice %262 {offsets = [0, 96], sizes = [8, 32], strides = [1, 1]} : vector<8x128xf32> to vector<8x32xf32>
    %319 = vector.extract_strided_slice %263 {offsets = [0, 96], sizes = [8, 32], strides = [1, 1]} : vector<8x128xf32> to vector<8x32xf32>
    %320 = vector.extract_strided_slice %264 {offsets = [0, 96], sizes = [8, 32], strides = [1, 1]} : vector<8x128xf32> to vector<8x32xf32>
    %cst_98 = arith.constant dense<0.000000e+00> : vector<8x8xf32>
    %321 = tpu.matmul %318, %319, %cst_98 {dimension_numbers = #tpu.dot_dimension_numbers<[1], [1], [0], [0], [0, 0, 1, 0], [], []>} : vector<8x32xf32>, vector<8x32xf32>, vector<8x8xf32> -> vector<8x8xf32>
    %cst_99 = arith.constant dense<0xFF800000> : vector<8xf32>
    %322 = vector.multi_reduction <maximumf>, %321, %cst_99 [1] : vector<8x8xf32> to vector<8xf32>
    %323 = vector.shape_cast %322 : vector<8xf32> to vector<8x1xf32>
    %324 = vector.broadcast %323 : vector<8x1xf32> to vector<8x8xf32>
    %325 = arith.subf %321, %324 : vector<8x8xf32>
    %326 = math.exp %325 : vector<8x8xf32>
    %cst_100 = arith.constant dense<0.000000e+00> : vector<8xf32>
    %327 = vector.multi_reduction <add>, %326, %cst_100 [1] : vector<8x8xf32> to vector<8xf32>
    %328 = vector.shape_cast %327 : vector<8xf32> to vector<8x1xf32>
    %329 = tpu.reciprocal %328 {approx = true} : vector<8x1xf32> -> vector<8x1xf32>
    %330 = vector.broadcast %329 : vector<8x1xf32> to vector<8x8xf32>
    %331 = arith.mulf %326, %330 : vector<8x8xf32>
    %cst_101 = arith.constant dense<0.000000e+00> : vector<8x32xf32>
    %332 = tpu.matmul %331, %320, %cst_101 {dimension_numbers = #tpu.dot_dimension_numbers<[1], [0], [0], [1], [0, 0, 1, 1], [], []>} : vector<8x8xf32>, vector<8x32xf32>, vector<8x32xf32> -> vector<8x32xf32>
    %333 = vector.extract_strided_slice %261 {offsets = [96, 0], sizes = [32, 128], strides = [1, 1]} : vector<128x128xf32> to vector<32x128xf32>
    %cst_102 = arith.constant dense<0.000000e+00> : vector<8x128xf32>
    %334 = tpu.matmul %332, %333, %cst_102 {dimension_numbers = #tpu.dot_dimension_numbers<[1], [0], [0], [1], [0, 0, 1, 1], [], []>} : vector<8x32xf32>, vector<32x128xf32>, vector<8x128xf32> -> vector<8x128xf32>
    %335 = arith.addf %317, %334 : vector<8x128xf32>
    %336 = vector.extract_strided_slice %258 {offsets = [8, 0], sizes = [8, 128], strides = [1, 1]} : vector<16x128xf32> to vector<8x128xf32>
    %337 = vector.extract_strided_slice %259 {offsets = [8, 0], sizes = [8, 128], strides = [1, 1]} : vector<16x128xf32> to vector<8x128xf32>
    %338 = vector.extract_strided_slice %260 {offsets = [8, 0], sizes = [8, 128], strides = [1, 1]} : vector<16x128xf32> to vector<8x128xf32>
    %339 = vector.extract_strided_slice %336 {offsets = [0, 0], sizes = [8, 32], strides = [1, 1]} : vector<8x128xf32> to vector<8x32xf32>
    %340 = vector.extract_strided_slice %337 {offsets = [0, 0], sizes = [8, 32], strides = [1, 1]} : vector<8x128xf32> to vector<8x32xf32>
    %341 = vector.extract_strided_slice %338 {offsets = [0, 0], sizes = [8, 32], strides = [1, 1]} : vector<8x128xf32> to vector<8x32xf32>
    %cst_103 = arith.constant dense<0.000000e+00> : vector<8x8xf32>
    %342 = tpu.matmul %339, %340, %cst_103 {dimension_numbers = #tpu.dot_dimension_numbers<[1], [1], [0], [0], [0, 0, 1, 0], [], []>} : vector<8x32xf32>, vector<8x32xf32>, vector<8x8xf32> -> vector<8x8xf32>
    %cst_104 = arith.constant dense<0xFF800000> : vector<8xf32>
    %343 = vector.multi_reduction <maximumf>, %342, %cst_104 [1] : vector<8x8xf32> to vector<8xf32>
    %344 = vector.shape_cast %343 : vector<8xf32> to vector<8x1xf32>
    %345 = vector.broadcast %344 : vector<8x1xf32> to vector<8x8xf32>
    %346 = arith.subf %342, %345 : vector<8x8xf32>
    %347 = math.exp %346 : vector<8x8xf32>
    %cst_105 = arith.constant dense<0.000000e+00> : vector<8xf32>
    %348 = vector.multi_reduction <add>, %347, %cst_105 [1] : vector<8x8xf32> to vector<8xf32>
    %349 = vector.shape_cast %348 : vector<8xf32> to vector<8x1xf32>
    %350 = tpu.reciprocal %349 {approx = true} : vector<8x1xf32> -> vector<8x1xf32>
    %351 = vector.broadcast %350 : vector<8x1xf32> to vector<8x8xf32>
    %352 = arith.mulf %347, %351 : vector<8x8xf32>
    %cst_106 = arith.constant dense<0.000000e+00> : vector<8x32xf32>
    %353 = tpu.matmul %352, %341, %cst_106 {dimension_numbers = #tpu.dot_dimension_numbers<[1], [0], [0], [1], [0, 0, 1, 1], [], []>} : vector<8x8xf32>, vector<8x32xf32>, vector<8x32xf32> -> vector<8x32xf32>
    %354 = vector.extract_strided_slice %261 {offsets = [0, 0], sizes = [32, 128], strides = [1, 1]} : vector<128x128xf32> to vector<32x128xf32>
    %cst_107 = arith.constant dense<0.000000e+00> : vector<8x128xf32>
    %355 = tpu.matmul %353, %354, %cst_107 {dimension_numbers = #tpu.dot_dimension_numbers<[1], [0], [0], [1], [0, 0, 1, 1], [], []>} : vector<8x32xf32>, vector<32x128xf32>, vector<8x128xf32> -> vector<8x128xf32>
    %356 = vector.extract_strided_slice %336 {offsets = [0, 32], sizes = [8, 32], strides = [1, 1]} : vector<8x128xf32> to vector<8x32xf32>
    %357 = vector.extract_strided_slice %337 {offsets = [0, 32], sizes = [8, 32], strides = [1, 1]} : vector<8x128xf32> to vector<8x32xf32>
    %358 = vector.extract_strided_slice %338 {offsets = [0, 32], sizes = [8, 32], strides = [1, 1]} : vector<8x128xf32> to vector<8x32xf32>
    %cst_108 = arith.constant dense<0.000000e+00> : vector<8x8xf32>
    %359 = tpu.matmul %356, %357, %cst_108 {dimension_numbers = #tpu.dot_dimension_numbers<[1], [1], [0], [0], [0, 0, 1, 0], [], []>} : vector<8x32xf32>, vector<8x32xf32>, vector<8x8xf32> -> vector<8x8xf32>
    %cst_109 = arith.constant dense<0xFF800000> : vector<8xf32>
    %360 = vector.multi_reduction <maximumf>, %359, %cst_109 [1] : vector<8x8xf32> to vector<8xf32>
    %361 = vector.shape_cast %360 : vector<8xf32> to vector<8x1xf32>
    %362 = vector.broadcast %361 : vector<8x1xf32> to vector<8x8xf32>
    %363 = arith.subf %359, %362 : vector<8x8xf32>
    %364 = math.exp %363 : vector<8x8xf32>
    %cst_110 = arith.constant dense<0.000000e+00> : vector<8xf32>
    %365 = vector.multi_reduction <add>, %364, %cst_110 [1] : vector<8x8xf32> to vector<8xf32>
    %366 = vector.shape_cast %365 : vector<8xf32> to vector<8x1xf32>
    %367 = tpu.reciprocal %366 {approx = true} : vector<8x1xf32> -> vector<8x1xf32>
    %368 = vector.broadcast %367 : vector<8x1xf32> to vector<8x8xf32>
    %369 = arith.mulf %364, %368 : vector<8x8xf32>
    %cst_111 = arith.constant dense<0.000000e+00> : vector<8x32xf32>
    %370 = tpu.matmul %369, %358, %cst_111 {dimension_numbers = #tpu.dot_dimension_numbers<[1], [0], [0], [1], [0, 0, 1, 1], [], []>} : vector<8x8xf32>, vector<8x32xf32>, vector<8x32xf32> -> vector<8x32xf32>
    %371 = vector.extract_strided_slice %261 {offsets = [32, 0], sizes = [32, 128], strides = [1, 1]} : vector<128x128xf32> to vector<32x128xf32>
    %cst_112 = arith.constant dense<0.000000e+00> : vector<8x128xf32>
    %372 = tpu.matmul %370, %371, %cst_112 {dimension_numbers = #tpu.dot_dimension_numbers<[1], [0], [0], [1], [0, 0, 1, 1], [], []>} : vector<8x32xf32>, vector<32x128xf32>, vector<8x128xf32> -> vector<8x128xf32>
    %373 = arith.addf %355, %372 : vector<8x128xf32>
    %374 = vector.extract_strided_slice %336 {offsets = [0, 64], sizes = [8, 32], strides = [1, 1]} : vector<8x128xf32> to vector<8x32xf32>
    %375 = vector.extract_strided_slice %337 {offsets = [0, 64], sizes = [8, 32], strides = [1, 1]} : vector<8x128xf32> to vector<8x32xf32>
    %376 = vector.extract_strided_slice %338 {offsets = [0, 64], sizes = [8, 32], strides = [1, 1]} : vector<8x128xf32> to vector<8x32xf32>
    %cst_113 = arith.constant dense<0.000000e+00> : vector<8x8xf32>
    %377 = tpu.matmul %374, %375, %cst_113 {dimension_numbers = #tpu.dot_dimension_numbers<[1], [1], [0], [0], [0, 0, 1, 0], [], []>} : vector<8x32xf32>, vector<8x32xf32>, vector<8x8xf32> -> vector<8x8xf32>
    %cst_114 = arith.constant dense<0xFF800000> : vector<8xf32>
    %378 = vector.multi_reduction <maximumf>, %377, %cst_114 [1] : vector<8x8xf32> to vector<8xf32>
    %379 = vector.shape_cast %378 : vector<8xf32> to vector<8x1xf32>
    %380 = vector.broadcast %379 : vector<8x1xf32> to vector<8x8xf32>
    %381 = arith.subf %377, %380 : vector<8x8xf32>
    %382 = math.exp %381 : vector<8x8xf32>
    %cst_115 = arith.constant dense<0.000000e+00> : vector<8xf32>
    %383 = vector.multi_reduction <add>, %382, %cst_115 [1] : vector<8x8xf32> to vector<8xf32>
    %384 = vector.shape_cast %383 : vector<8xf32> to vector<8x1xf32>
    %385 = tpu.reciprocal %384 {approx = true} : vector<8x1xf32> -> vector<8x1xf32>
    %386 = vector.broadcast %385 : vector<8x1xf32> to vector<8x8xf32>
    %387 = arith.mulf %382, %386 : vector<8x8xf32>
    %cst_116 = arith.constant dense<0.000000e+00> : vector<8x32xf32>
    %388 = tpu.matmul %387, %376, %cst_116 {dimension_numbers = #tpu.dot_dimension_numbers<[1], [0], [0], [1], [0, 0, 1, 1], [], []>} : vector<8x8xf32>, vector<8x32xf32>, vector<8x32xf32> -> vector<8x32xf32>
    %389 = vector.extract_strided_slice %261 {offsets = [64, 0], sizes = [32, 128], strides = [1, 1]} : vector<128x128xf32> to vector<32x128xf32>
    %cst_117 = arith.constant dense<0.000000e+00> : vector<8x128xf32>
    %390 = tpu.matmul %388, %389, %cst_117 {dimension_numbers = #tpu.dot_dimension_numbers<[1], [0], [0], [1], [0, 0, 1, 1], [], []>} : vector<8x32xf32>, vector<32x128xf32>, vector<8x128xf32> -> vector<8x128xf32>
    %391 = arith.addf %373, %390 : vector<8x128xf32>
    %392 = vector.extract_strided_slice %336 {offsets = [0, 96], sizes = [8, 32], strides = [1, 1]} : vector<8x128xf32> to vector<8x32xf32>
    %393 = vector.extract_strided_slice %337 {offsets = [0, 96], sizes = [8, 32], strides = [1, 1]} : vector<8x128xf32> to vector<8x32xf32>
    %394 = vector.extract_strided_slice %338 {offsets = [0, 96], sizes = [8, 32], strides = [1, 1]} : vector<8x128xf32> to vector<8x32xf32>
    %cst_118 = arith.constant dense<0.000000e+00> : vector<8x8xf32>
    %395 = tpu.matmul %392, %393, %cst_118 {dimension_numbers = #tpu.dot_dimension_numbers<[1], [1], [0], [0], [0, 0, 1, 0], [], []>} : vector<8x32xf32>, vector<8x32xf32>, vector<8x8xf32> -> vector<8x8xf32>
    %cst_119 = arith.constant dense<0xFF800000> : vector<8xf32>
    %396 = vector.multi_reduction <maximumf>, %395, %cst_119 [1] : vector<8x8xf32> to vector<8xf32>
    %397 = vector.shape_cast %396 : vector<8xf32> to vector<8x1xf32>
    %398 = vector.broadcast %397 : vector<8x1xf32> to vector<8x8xf32>
    %399 = arith.subf %395, %398 : vector<8x8xf32>
    %400 = math.exp %399 : vector<8x8xf32>
    %cst_120 = arith.constant dense<0.000000e+00> : vector<8xf32>
    %401 = vector.multi_reduction <add>, %400, %cst_120 [1] : vector<8x8xf32> to vector<8xf32>
    %402 = vector.shape_cast %401 : vector<8xf32> to vector<8x1xf32>
    %403 = tpu.reciprocal %402 {approx = true} : vector<8x1xf32> -> vector<8x1xf32>
    %404 = vector.broadcast %403 : vector<8x1xf32> to vector<8x8xf32>
    %405 = arith.mulf %400, %404 : vector<8x8xf32>
    %cst_121 = arith.constant dense<0.000000e+00> : vector<8x32xf32>
    %406 = tpu.matmul %405, %394, %cst_121 {dimension_numbers = #tpu.dot_dimension_numbers<[1], [0], [0], [1], [0, 0, 1, 1], [], []>} : vector<8x8xf32>, vector<8x32xf32>, vector<8x32xf32> -> vector<8x32xf32>
    %407 = vector.extract_strided_slice %261 {offsets = [96, 0], sizes = [32, 128], strides = [1, 1]} : vector<128x128xf32> to vector<32x128xf32>
    %cst_122 = arith.constant dense<0.000000e+00> : vector<8x128xf32>
    %408 = tpu.matmul %406, %407, %cst_122 {dimension_numbers = #tpu.dot_dimension_numbers<[1], [0], [0], [1], [0, 0, 1, 1], [], []>} : vector<8x32xf32>, vector<32x128xf32>, vector<8x128xf32> -> vector<8x128xf32>
    %409 = arith.addf %391, %408 : vector<8x128xf32>
    %410 = tpu.concatenate %335, %409 in 0 : vector<8x128xf32>, vector<8x128xf32> -> vector<16x128xf32>
    %411 = vector.broadcast %244 : vector<1x128xf32> to vector<16x128xf32>
    %412 = arith.addf %410, %411 : vector<16x128xf32>
    %413 = arith.addf %241, %412 : vector<16x128xf32>
    %cst_123 = arith.constant dense<0.000000e+00> : vector<16xf32>
    %414 = vector.multi_reduction <add>, %413, %cst_123 [1] : vector<16x128xf32> to vector<16xf32>
    %415 = vector.shape_cast %414 : vector<16xf32> to vector<16x1xf32>
    %cst_124 = arith.constant 1.280000e+02 : f32
    %416 = vector.broadcast %cst_124 : f32 to vector<16x1xf32>
    %417 = arith.divf %415, %416 : vector<16x1xf32>
    %418 = vector.broadcast %417 : vector<16x1xf32> to vector<16x128xf32>
    %419 = arith.subf %413, %418 : vector<16x128xf32>
    %420 = arith.mulf %419, %419 : vector<16x128xf32>
    %cst_125 = arith.constant dense<0.000000e+00> : vector<16xf32>
    %421 = vector.multi_reduction <add>, %420, %cst_125 [1] : vector<16x128xf32> to vector<16xf32>
    %422 = vector.shape_cast %421 : vector<16xf32> to vector<16x1xf32>
    %cst_126 = arith.constant 1.280000e+02 : f32
    %423 = vector.broadcast %cst_126 : f32 to vector<16x1xf32>
    %424 = arith.divf %422, %423 : vector<16x1xf32>
    %425 = vector.broadcast %417 : vector<16x1xf32> to vector<16x128xf32>
    %426 = arith.subf %413, %425 : vector<16x128xf32>
    %cst_127 = arith.constant 9.99999974E-6 : f32
    %427 = vector.broadcast %cst_127 : f32 to vector<16x1xf32>
    %428 = arith.addf %424, %427 : vector<16x1xf32>
    %429 = math.rsqrt %428 : vector<16x1xf32>
    %430 = vector.broadcast %429 : vector<16x1xf32> to vector<16x128xf32>
    %431 = arith.mulf %426, %430 : vector<16x128xf32>
    %432 = vector.broadcast %245 : vector<1x128xf32> to vector<16x128xf32>
    %433 = arith.mulf %431, %432 : vector<16x128xf32>
    %434 = vector.broadcast %246 : vector<1x128xf32> to vector<16x128xf32>
    %435 = arith.addf %433, %434 : vector<16x128xf32>
    %436 = arith.truncf %435 : vector<16x128xf32> to vector<16x128xbf16>
    %c0_128 = arith.constant 0 : index
    %c0_129 = arith.constant 0 : index
    %437 = vector.load %arg12[%c0_128, %c0_129] : memref<128x512xbf16, #tpu.memory_space<vmem>>, vector<128x512xbf16>
    %cst_130 = arith.constant dense<0.000000e+00> : vector<16x512xf32>
    %438 = tpu.matmul %436, %437, %cst_130 {dimension_numbers = #tpu.dot_dimension_numbers<[1], [0], [0], [1], [0, 0, 1, 1], [], []>} : vector<16x128xbf16>, vector<128x512xbf16>, vector<16x512xf32> -> vector<16x512xf32>
    %439 = vector.broadcast %247 : vector<1x512xf32> to vector<16x512xf32>
    %440 = arith.addf %438, %439 : vector<16x512xf32>
    %cst_131 = arith.constant 0.000000e+00 : f32
    %441 = vector.broadcast %cst_131 : f32 to vector<16x512xf32>
    %442 = arith.maximumf %440, %441 : vector<16x512xf32>
    %443 = arith.truncf %442 : vector<16x512xf32> to vector<16x512xbf16>
    %c0_132 = arith.constant 0 : index
    %c0_133 = arith.constant 0 : index
    %444 = vector.load %arg13[%c0_132, %c0_133] : memref<512x128xbf16, #tpu.memory_space<vmem>>, vector<512x128xbf16>
    %cst_134 = arith.constant dense<0.000000e+00> : vector<16x128xf32>
    %445 = tpu.matmul %443, %444, %cst_134 {dimension_numbers = #tpu.dot_dimension_numbers<[1], [0], [0], [1], [0, 0, 1, 1], [], []>} : vector<16x512xbf16>, vector<512x128xbf16>, vector<16x128xf32> -> vector<16x128xf32>
    %446 = vector.broadcast %248 : vector<1x128xf32> to vector<16x128xf32>
    %447 = arith.addf %445, %446 : vector<16x128xf32>
    %448 = arith.addf %435, %447 : vector<16x128xf32>
    %cst_135 = arith.constant dense<0.000000e+00> : vector<16xf32>
    %449 = vector.multi_reduction <add>, %448, %cst_135 [1] : vector<16x128xf32> to vector<16xf32>
    %450 = vector.shape_cast %449 : vector<16xf32> to vector<16x1xf32>
    %cst_136 = arith.constant 1.280000e+02 : f32
    %451 = vector.broadcast %cst_136 : f32 to vector<16x1xf32>
    %452 = arith.divf %450, %451 : vector<16x1xf32>
    %453 = vector.broadcast %452 : vector<16x1xf32> to vector<16x128xf32>
    %454 = arith.subf %448, %453 : vector<16x128xf32>
    %455 = arith.mulf %454, %454 : vector<16x128xf32>
    %cst_137 = arith.constant dense<0.000000e+00> : vector<16xf32>
    %456 = vector.multi_reduction <add>, %455, %cst_137 [1] : vector<16x128xf32> to vector<16xf32>
    %457 = vector.shape_cast %456 : vector<16xf32> to vector<16x1xf32>
    %cst_138 = arith.constant 1.280000e+02 : f32
    %458 = vector.broadcast %cst_138 : f32 to vector<16x1xf32>
    %459 = arith.divf %457, %458 : vector<16x1xf32>
    %460 = vector.broadcast %452 : vector<16x1xf32> to vector<16x128xf32>
    %461 = arith.subf %448, %460 : vector<16x128xf32>
    %cst_139 = arith.constant 9.99999974E-6 : f32
    %462 = vector.broadcast %cst_139 : f32 to vector<16x1xf32>
    %463 = arith.addf %459, %462 : vector<16x1xf32>
    %464 = math.rsqrt %463 : vector<16x1xf32>
    %465 = vector.broadcast %464 : vector<16x1xf32> to vector<16x128xf32>
    %466 = arith.mulf %461, %465 : vector<16x128xf32>
    %467 = vector.broadcast %249 : vector<1x128xf32> to vector<16x128xf32>
    %468 = arith.mulf %466, %467 : vector<16x128xf32>
    %469 = vector.broadcast %250 : vector<1x128xf32> to vector<16x128xf32>
    %470 = arith.addf %468, %469 : vector<16x128xf32>
    %471 = vector.extract_strided_slice %470 {offsets = [0, 0], sizes = [7, 128], strides = [1, 1]} : vector<16x128xf32> to vector<7x128xf32>
    %c0_140 = arith.constant 0 : index
    %c0_141 = arith.constant 0 : index
    %c0_142 = arith.constant 0 : index
    %472 = vector.load %arg15[%c0_140, %c0_141, %c0_142] : memref<2x7x128xf32, #tpu.memory_space<vmem>>, vector<1x7x128xf32>
    %473 = vector.shape_cast %472 : vector<1x7x128xf32> to vector<7x128xf32>
    %474 = vector.shape_cast %471 : vector<7x128xf32> to vector<1x7x128xf32>
    tpu.vector_store %arg15[%c0_140, %c0_141, %c0_142], %474 {strides = array<i32>} : memref<2x7x128xf32, #tpu.memory_space<vmem>>, vector<1x7x128xf32>,
    %475 = vector.extract_strided_slice %470 {offsets = [8, 0], sizes = [7, 128], strides = [1, 1]} : vector<16x128xf32> to vector<7x128xf32>
    %c1 = arith.constant 1 : index
    %c0_143 = arith.constant 0 : index
    %c0_144 = arith.constant 0 : index
    %476 = vector.load %arg15[%c1, %c0_143, %c0_144] : memref<2x7x128xf32, #tpu.memory_space<vmem>>, vector<1x7x128xf32>
    %477 = vector.shape_cast %476 : vector<1x7x128xf32> to vector<7x128xf32>
    %478 = vector.shape_cast %475 : vector<7x128xf32> to vector<1x7x128xf32>
    tpu.vector_store %arg15[%c1, %c0_143, %c0_144], %478 {strides = array<i32>} : memref<2x7x128xf32, #tpu.memory_space<vmem>>, vector<1x7x128xf32>,
    return
  }
}

</mosaic_0001>

<bundles_post_ra>
// kernel: local_global_forward.3
= control target key start
LH: loop header
LB: loop body
LE: loop exit
PB: predicated region body
PF: predicated region fallthrough
CT: control target
= control target key end

     0   :  { %vm66_vm0 = vcmask 392192   ;;  %v7309_v3 = vmov 0   ;;  %v7310_v22 = vmov 0.0   ;;  %vm7311_vm1 = vmmov 0   ;;  %s7312_s25 = smov 96   ;;  %s7313_s26 = smov 64   ;;  %s8715_s2 = inlined_call_operand.vmem [shape: f32[48,128], index: 2, kind: input, shape index: {}]   ;;  %s8716_s0 = inlined_call_operand.vmem [shape: f32[16,48], index: 0, kind: input, shape index: {}]   ;;  %s8717_s1 = inlined_call_operand.vmem [shape: f32[16,1], index: 1, kind: input, shape index: {}]   ;;  %s8718_s5 = inlined_call_operand.vmem [shape: bf16[128,384], index: 5, kind: input, shape index: {}]   ;;  %s8719_s3 = inlined_call_operand.vmem [shape: f32[1,128], index: 3, kind: input, shape index: {}]   ;;  %s8720_s4 = inlined_call_operand.vmem [shape: f32[16,128], index: 4, kind: input, shape index: {}]   ;;  %s8721_s9 = inlined_call_operand.vmem [shape: f32[8,512], index: 9, kind: input, shape index: {}]   ;;  %s8722_s6 = inlined_call_operand.vmem [shape: f32[128,128], index: 6, kind: input, shape index: {}]   ;;  %s8723_s7 = inlined_call_operand.vmem [shape: bf16[128,512], index: 7, kind: input, shape index: {}]   ;;  %s8724_s8 = inlined_call_operand.vmem [shape: bf16[512,128], index: 8, kind: input, shape index: {}]   ;;  %s8725_s10 = inlined_call_operand.vmem [shape: bf16[128,384], index: 10, kind: input, shape index: {}]   ;;  %s8726_s14 = inlined_call_operand.vmem [shape: f32[8,512], index: 14, kind: input, shape index: {}]   ;;  %s8727_s11 = inlined_call_operand.vmem [shape: f32[128,128], index: 11, kind: input, shape index: {}]   ;;  %s8728_s12 = inlined_call_operand.vmem [shape: bf16[128,512], index: 12, kind: input, shape index: {}]   ;;  %s8729_s13 = inlined_call_operand.vmem [shape: bf16[512,128], index: 13, kind: input, shape index: {}]   ;;  %s8730_s15 = inlined_call_operand.vmem [shape: f32[2,7,128], index: 15, kind: output, shape index: {}]  }
   0x1   :  { %v53_v0 = vld [vmem:[%s8715_s2] sm:$0xff]  ;;  %v54_v1 = vld [vmem:[%s8715_s2 + $0x8] sm:$0xff]  ;;  %v55_v2 = vld [vmem:[%s8715_s2 + $0x10] sm:$0xff]  ;;  %6998 = vset.pattern.permute.xlu0 %v7309_v3  ;;  %377 = vmatprep.mubr.bf16.mxu1 %v7309_v3  ;;  %v205_v55 = vlaneseq  ;;  %vm447_vm2 = vcmask 261120   ;;  %vm524_vm3 = vcmask 64512  }
   0x2   :  { %v6883_v4 = vpack.c.bf16 %v54_v1, %v53_v0  ;;  %v56_v5 = vld [vmem:[%s8715_s2 + $0x18] sm:$0xff]  ;;  %v57_v6 = vld [vmem:[%s8715_s2 + $0x20] sm:$0xff]  ;;  %v58_v8 = vld [vmem:[%s8715_s2 + $0x28] sm:$0xff]  ;;  %s7315_s2 = smov 32  }
   0x3   :  { %v6887_v7 = vpack.c.bf16 %v56_v5, %v55_v2  ;;  %v51_v9 = vld [vmem:[%s8716_s0] sm:$0xff]  ;;  %v6891_v13 = vpack.c.bf16 %v58_v8, %v57_v6  ;;  %v153_v14 = vld [vmem:[%s8717_s1 + $0x8] sm:$0xff]  ;;  %v7009_v20 = vld [vmem:[%s8718_s5 + $0x30] ss:$12 sps:$4 sm:$0xff]   ;;  %v7533_v56 = vshrl.u32 %v205_v55, 7 }
   0x4   :  { %v152_v10 = vld [vmem:[%s8717_s1] sm:$0xff]  ;;  %6884 = vmatprep.subr.bf16.mxu0 %v6883_v4  ;;  %6504 = vmatprep.mubr.msk.f32.mxu0 %vm66_vm0, %v51_v9  ;;  %v7003_v15 = vld [vmem:[%s8718_s5 + $0x1c] ss:$12 sps:$4 sm:$0xff]   ;;  %v7011_v21 = vld [vmem:[%s8718_s5 + $0x4c] ss:$12 sps:$4 sm:$0xff]  }
   0x5   :  { %6886 = vmatpush3.bf16.msra.mxu0 %v6883_v4  ;;  %156 = vperm.xlu0 %6998, %v152_v10   ;;  %v6999_v11 = vld [vmem:[%s8718_s5 + $0x4] ss:$12 sps:$4 sm:$0xff]   ;;  %v7001_v12 = vld [vmem:[%s8718_s5] ss:$12 sps:$4 sm:$0xff]   ;;  %v7002_v19 = vld [vmem:[%s8718_s5 + $0x8] ss:$12 sps:$4 sm:$0xff]  }
   0x6   :  { %6888 = vmatprep.subr.bf16.mxu0 %v6887_v7  ;;  %345 = vmatprep.subr.bf16.mxu1 %v6999_v11  ;;  %v7005_v16 = vld [vmem:[%s8718_s5 + $0x18] ss:$12 sps:$4 sm:$0xff]   ;;  %v7007_v17 = vld [vmem:[%s8718_s5 + $0x34] ss:$12 sps:$4 sm:$0xff]   ;;  %v52_v18 = vld [vmem:[%s8716_s0 + $0x8] sm:$0xff]  ;;  %v7536_v57 = vsub.s32 0, %v7533_v56 }
   0x7   :  { %346 = vmatpush1.bf16.msra.mxu1 %v7001_v12  ;;  %v7013_v23 = vld [vmem:[%s8718_s5 + $0x48] ss:$12 sps:$4 sm:$0xff]   ;;  %v7006_v24 = vld [vmem:[%s8718_s5 + $0x20] ss:$12 sps:$4 sm:$0xff]   ;;  %v7015_v25 = vld [vmem:[%s8718_s5 + $0x64] ss:$12 sps:$4 sm:$0xff]  }
   0x8   :  { %347 = vmatprep.subr.bf16.mxu1 %v7003_v15  ;;  %v7017_v26 = vld [vmem:[%s8718_s5 + $0x60] ss:$12 sps:$4 sm:$0xff]   ;;  %v7010_v27 = vld [vmem:[%s8718_s5 + $0x38] ss:$12 sps:$4 sm:$0xff]   ;;  %v7014_v28 = vld [vmem:[%s8718_s5 + $0x50] ss:$12 sps:$4 sm:$0xff]  }
   0x9   :  { %6890 = vmatpush3.bf16.msra.mxu0 %v6887_v7  ;;  %161 = vperm.xlu0 %6998, %v153_v14   ;;  %v7018_v29 = vld [vmem:[%s8718_s5 + $0x68] ss:$12 sps:$4 sm:$0xff]   ;;  %v7021_v31 = vld [vmem:[%s8718_s5 + $0x78] ss:$12 sps:$4 sm:$0xff]   ;;  %v7022_v32 = vld [vmem:[%s8718_s5 + $0x80] ss:$12 sps:$4 sm:$0xff]  }
   0xa   :  { %6892 = vmatprep.subr.bf16.mxu0 %v6891_v13  ;;  %v7019_v30 = vld [vmem:[%s8718_s5 + $0x7c] ss:$12 sps:$4 sm:$0xff]   ;;  %v7023_v33 = vld [vmem:[%s8718_s5 + $0x94] ss:$12 sps:$4 sm:$0xff]   ;;  %v7026_v35 = vld [vmem:[%s8718_s5 + $0x98] ss:$12 sps:$4 sm:$0xff]  }
   0xb   :  { %348 = vmatpush1.bf16.msra.mxu1 %v7005_v16  ;;  %v7025_v34 = vld [vmem:[%s8718_s5 + $0x90] ss:$12 sps:$4 sm:$0xff]   ;;  %v7027_v36 = vld [vmem:[%s8718_s5 + $0xac] ss:$12 sps:$4 sm:$0xff]   ;;  %v7029_v37 = vld [vmem:[%s8718_s5 + $0xa8] ss:$12 sps:$4 sm:$0xff]  }
   0xc   :  { %349 = vmatprep.subr.bf16.mxu1 %v7007_v17  ;;  %v7030_v38 = vld [vmem:[%s8718_s5 + $0xb0] ss:$12 sps:$4 sm:$0xff]   ;;  %v5990_v40 = vld [vmem:[%s8719_s3] ss:$0 sm:$0xff]  ;;  %v151_v46 = vld [vmem:[%s8720_s4 + $0x8] sm:$0xff] }
   0xd   :  { %6894 = vmatpush3.bf16.msra.mxu0 %v6891_v13  ;;  %v150_v49 = vld [vmem:[%s8720_s4] sm:$0xff]  ;;  %v169_v59 = vld [vmem:[%s8721_s9 + $0x8] sm:$0xff]  ;;  %v170_v61 = vld [vmem:[%s8721_s9 + $0x10] sm:$0xff] }
   0xe   :  { %6507 = vmatprep.subr.bf16.mxu0 %v7310_v22  ;;  %v7541_v58 = vld [vmem:[%s8721_s9] sm:$0xff]  ;;  %v212_v62 = vrot.slane %v169_v59, %v7536_v57  ;;  %v216_v2 = vrot.slane %v170_v61, %v7536_v57  ;;  %v433_v59 = vld [vmem:[%s8722_s6 + $0x10] sm:$0xff] }
   0xf   :  { %350 = vmatpush1.bf16.msra.mxu1 %v7009_v20  ;;  %v208_v60 = vrot.slane %v7541_v58, %v7536_v57 }
  0x10   :  { %6505 = vmatmul.mubr.msk.f32.vlgmr.msra.gmra.mrb[0].mxu0 %vm66_vm0, %v52_v18  ;;  %351 = vmatprep.subr.bf16.mxu1 %v7011_v21 }
  0x11   :  { %6508 = vmatpush3.bf16.msra.mxu0 %v7002_v19  ;;  %6523 = vmatprep.mubr.msk.bf16.mxu0 %vm7311_vm1, %v7310_v22 }
  0x12   :  { %6509 = vmatprep.subr.bf16.mxu0 %v7310_v22 }
  0x13   :  { %352 = vmatpush1.bf16.msra.mxu1 %v7013_v23 }
  0x14   :  { %353 = vmatprep.subr.bf16.mxu1 %v7015_v25 }
  0x15   :  { %6510 = vmatpush3.bf16.msra.mxu0 %v7006_v24 }
  0x16   :  { %6511 = vmatprep.subr.bf16.mxu0 %v7310_v22 }
  0x17   :  { %354 = vmatpush1.bf16.msra.mxu1 %v7017_v26 }
  0x18   :  { %355 = vmatprep.subr.bf16.mxu1 %v7019_v30 }
  0x19   :  { %6512 = vmatpush3.bf16.msra.mxu0 %v7010_v27 }
  0x1a   :  { %6513 = vmatprep.subr.bf16.mxu0 %v7310_v22 }
  0x1b   :  { %356 = vmatpush1.bf16.msra.mxu1 %v7021_v31 }
  0x1c   :  { %357 = vmatprep.subr.bf16.mxu1 %v7023_v33 }
  0x1d   :  { %6514 = vmatpush3.bf16.msra.mxu0 %v7014_v28 }
  0x1e   :  { %6515 = vmatprep.subr.bf16.mxu0 %v7310_v22 }
  0x1f   :  { %358 = vmatpush1.bf16.msra.mxu1 %v7025_v34 }
  0x20   :  { %359 = vmatprep.subr.bf16.mxu1 %v7027_v36 }
  0x21   :  { %6516 = vmatpush3.bf16.msra.mxu0 %v7018_v29 }
  0x22   :  { %6517 = vmatprep.subr.bf16.mxu0 %v7310_v22 }
  0x23   :  { %360 = vmatpush1.bf16.msra.mxu1 %v7029_v37 }
  0x24   :  { %6527 = vmatprep.subr.mxu1 %v7310_v22 }
  0x25   :  { %6518 = vmatpush3.bf16.msra.mxu0 %v7022_v32 }
  0x26   :  { %6519 = vmatprep.subr.bf16.mxu0 %v7310_v22 }
  0x29   :  { %6520 = vmatpush3.bf16.msra.mxu0 %v7026_v35 }
  0x2a   :  { %6521 = vmatprep.subr.bf16.mxu0 %v7310_v22 }
  0x2d   :  { %6522 = vmatpush3.bf16.msra.mxu0 %v7030_v38 }
  0x2e   :  { %6542 = vmatprep.subr.mxu0 %v7310_v22 }
  0x84   :  { %v157_v39 = vpop.permute.xlu0 %156 }
  0x88   :  { %v162_v47 = vpop.permute.xlu0 %161 }
  0xe3   :  { %v6506_v41 = vpop.f32.mrb[0].mxu0 }
  0xe4   :  { %v145_v42 = vadd.f32 %v6506_v41, %v5990_v40  ;;  %v139_v43 = vpop.f32.mrb[1].mxu0  ;;  %v7314_v41 = vmov 0.0|0.0  }
  0xe5   :  { %v140_v44 = vadd.f32 %v5990_v40, %v139_v43  ;;  %v436_v43 = vld [vmem:[%s8722_s6 + $0x28] sm:$0xff] }
  0xe6   :  { %v149_v45 = vmax.f32 %v145_v42, 0.0  ;;  %v435_v42 = vld [vmem:[%s8722_s6 + $0x20] sm:$0xff] }
  0xe7   :  { %v148_v48 = vmax.f32 %v140_v44, 0.0  ;;  %v437_v44 = vld [vmem:[%s8722_s6 + $0x30] sm:$0xff] }
  0xe8   :  { %v165_v50 = vmul.f32 %v162_v47, %v149_v45  ;;  %v7606_v45 = vpack.c.bf16 %v436_v43, %v435_v42 }
  0xe9   :  { %v164_v51 = vmul.f32 %v157_v39, %v148_v48 }
  0xea   :  { %v7523_v52 = vadd.f32 %v165_v50, %v151_v46  ;;  %v438_v46 = vld [vmem:[%s8722_s6 + $0x38] sm:$0xff]  ;;  %v432_v50 = vld [vmem:[%s8722_s6 + $0x8] sm:$0xff] }
  0xeb   :  { %v7525_v53 = vadd.f32 %v164_v51, %v150_v49  ;;  %v7612_v47 = vpack.c.bf16 %v438_v46, %v437_v44  ;;  %v431_v49 = vld [vmem:[%s8722_s6] sm:$0xff] }
  0xed   :  { %v172_v54 = vpack.c.bf16 %v7523_v52, %v7525_v53 }
  0xef   :  { %378 = vmatmul.mubr.bf16.vlgmr.msra.gmra.mrb[0].mxu1 %v172_v54  ;;  %6524 = vmatmul.mubr.bf16.vlgmr.msra.gmra.mrb[4].mxu0 %v172_v54  ;;  %v7623_v54 = vpack.c.bf16 %v432_v50, %v431_v49  ;;  %v446_v50 = vld [vmem:[%s8722_s6 + $0x78] sm:$0xff] }
  0xf0   :  { %6529 = vmatprep.mubr.msk.f32.mxu1 %vm7311_vm1, %v7310_v22  ;;  %6544 = vmatprep.mubr.msk.f32.mxu0 %vm7311_vm1, %v7310_v22 }
 0x1c2   :  { %v379_v63 = vpop.f32.mrb[0].mxu1  ;;  %v422_v0 = vpop.f32.mrb[4].mxu0 }
 0x1c3   :  { %v380_v1 = vadd.f32 %v379_v63, %v208_v60  ;;  %v381_v4 = vpop.f32.mrb[1].mxu1  ;;  %v6525_v5 = vpop.f32.mrb[5].mxu0  ;;  %v7568_v15 = vadd.f32 %v422_v0, %v216_v2 }
 0x1c4   :  { %v7553_v6 = vadd.f32 %v381_v4, %v212_v62  ;;  %v383_v7 = vpop.f32.mrb[2].mxu1  ;;  %v425_v8 = vpop.f32.mrb[6].mxu0 }
 0x1c5   :  { %v7555_v9 = vadd.f32 %v383_v7, %v208_v60  ;;  %v7557_v10 = vadd.f32 %v425_v8, %v216_v2  ;;  %v385_v11 = vpop.f32.mrb[3].mxu1  ;;  %v6526_v12 = vpop.f32.mrb[7].mxu0  ;;  %v7565_v14 = vmul.f32 0.17677669, %v380_v1  ;;  %v434_v60 = vld [vmem:[%s8722_s6 + $0x18] sm:$0xff] }
 0x1c6   :  { %v7559_v13 = vadd.f32 %v385_v11, %v212_v62  ;;  %611 = vrot.lane.b32.xlu0 %v7553_v6, %s7312_s25  ;;  %6528 = vmatpush3.xpose.msk.msra.mxu1 %vm447_vm2, %v7553_v6  ;;  %v7633_v61 = vpack.c.bf16 %v434_v60, %v433_v59 }
 0x1c7   :  { %6532 = vmatprep.subr.mxu1 %v7310_v22 }
 0x1c9   :  { %6530 = vmatmul.mubr.msk.f32.vlgmr.msra.gmra.mrb[4].mxu1 %vm447_vm2, %v7565_v14 }
 0x1ca   :  { %6533 = vmatpush3.msra.mxu1 %v7568_v15  ;;  %6534 = vmatprep.mubr.msk.f32.mxu1 %vm7311_vm1, %v7310_v22 }
 0x1cb   :  { %6537 = vmatprep.subr.mxu1 %v7310_v22 }
 0x238   :  { %v612_v28 = vpop.permute.xlu0 %611 }
 0x29c   :  { %v520_v16 = vpop.f32.mrb[4].mxu1 }
 0x29d   :  { %v6531_v17 = vpop.f32.mrb[5].mxu1  ;;  %v525_v18 = vsel %vm524_vm3, %v520_v16, -inf }
 0x29e   :  { %526 = vmax.xlane.f32.xlu1 %v525_v18 }
 0x32b   :  { %v527_v19 = vpop.xlane.xlu1 %526 }
 0x32c   :  { %v528_v20 = vsub.f32 %v520_v16, %v527_v19 }
 0x32e   :  { %v529_v21 = vmul.f32 1.442695, %v528_v20 }
 0x330   :  { %7223 = vpow2.f32 %v529_v21 }
 0x33a   :  { %v7224_v23 = vpop.eup %7223 }
 0x33b   :  { %v531_v24 = vsel %vm524_vm3, %v7224_v23, 0.0 }
 0x33c   :  { %532 = vadd.xlane.f32.xlu1 %v531_v24  ;;  %v439_v24 = vld [vmem:[%s8722_s6 + $0x40] sm:$0xff] }
 0x34d   :  { %609 = vrot.lane.b32.xlu1 %v7565_v14, %s7312_s25 }
 0x3c9   :  { %v533_v25 = vpop.xlane.xlu1 %532 }
 0x3ca   :  { %7225 = vrcp.f32 %v533_v25  ;;  %v441_v25 = vld [vmem:[%s8722_s6 + $0x50] sm:$0xff] }
 0x3cd   :  { %v610_v29 = vpop.permute.xlu1 %609 }
 0x3d4   :  { %v7226_v26 = vpop.eup %7225 }
 0x3d5   :  { %v535_v27 = vmul.f32 %v7226_v26, %v7224_v23 }
 0x3d7   :  { %6535 = vmatmul.mubr.msk.f32.vlgmr.msra.gmra.mrb[6].mxu1 %vm524_vm3, %v535_v27  ;;  %v442_v27 = vld [vmem:[%s8722_s6 + $0x58] sm:$0xff] }
 0x3d8   :  { %6538 = vmatpush3.xpose.msk.msra.mxu1 %vm447_vm2, %v612_v28  ;;  %6539 = vmatprep.mubr.msk.f32.mxu1 %vm7311_vm1, %v7310_v22 }
 0x3d9   :  { %6895 = vmatprep.subr.bf16.mxu1 %v7314_v41 }
 0x3db   :  { %6540 = vmatmul.mubr.msk.f32.vlgmr.msra.gmra.mrb[8].mxu1 %vm447_vm2, %v610_v29 }
 0x3dc   :  { %6555 = vmatprep.mubr.msk.f32.mxu1 %vm7311_vm1, %v7310_v22  ;;  %6897 = vmatpush3.bf16.msra.mxu1 %v7606_v45 }
 0x3dd   :  { %6898 = vmatprep.subr.bf16.mxu1 %v7314_v41 }
 0x3e0   :  { %6900 = vmatpush3.bf16.msra.mxu1 %v7612_v47 }
 0x3e1   :  { %6569 = vmatprep.subr.mxu1 %v7310_v22 }
 0x4aa   :  { %v605_v30 = vpop.f32.mrb[6].mxu1 }
 0x4ab   :  { %v6536_v31 = vpop.f32.mrb[7].mxu1 }
 0x4ae   :  { %v683_v32 = vpop.f32.mrb[8].mxu1 }
 0x4af   :  { %v6541_v33 = vpop.f32.mrb[9].mxu1  ;;  %v687_v34 = vsel %vm524_vm3, %v683_v32, -inf }
 0x4b0   :  { %688 = vmax.xlane.f32.xlu0 %v687_v34 }
 0x4c6   :  { %699 = vrot.lane.b32.xlu0 %v7568_v15, %s7312_s25 }
 0x4ca   :  { %921 = vrot.lane.b32.xlu0 %v7565_v14, %s7313_s26 }
 0x53d   :  { %v689_v35 = vpop.xlane.xlu0 %688 }
 0x53e   :  { %v690_v36 = vsub.f32 %v683_v32, %v689_v35 }
 0x540   :  { %v691_v37 = vmul.f32 1.442695, %v690_v36 }
 0x541   :  { %v700_v38 = vpop.permute.xlu0 %699 }
 0x542   :  { %7227 = vpow2.f32 %v691_v37  ;;  %6543 = vmatpush3.msra.mxu0 %v700_v38  ;;  %v7697_v38 = vmul.f32 0.17677669, %v7555_v9  ;;  %v443_v9 = vld [vmem:[%s8722_s6 + $0x60] sm:$0xff] }
 0x543   :  { %6901 = vmatprep.subr.bf16.mxu0 %v7314_v41 }
 0x545   :  { %v922_v1 = vpop.permute.xlu0 %921 }
 0x54c   :  { %v7228_v39 = vpop.eup %7227 }
 0x54d   :  { %v693_v40 = vsel %vm524_vm3, %v7228_v39, 0.0 }
 0x54e   :  { %694 = vadd.xlane.f32.xlu1 %v693_v40 }
 0x55f   :  { %923 = vrot.lane.b32.xlu1 %v7553_v6, %s7313_s26 }
 0x5db   :  { %v695_v48 = vpop.xlane.xlu1 %694 }
 0x5dc   :  { %7229 = vrcp.f32 %v695_v48  ;;  %v445_v48 = vld [vmem:[%s8722_s6 + $0x70] sm:$0xff] }
 0x5df   :  { %v924_v63 = vpop.permute.xlu1 %923 }
 0x5e6   :  { %v7230_v51 = vpop.eup %7229 }
 0x5e7   :  { %v697_v55 = vmul.f32 %v7230_v51, %v7228_v39  ;;  %v7720_v51 = vpack.c.bf16 %v446_v50, %v445_v48 }
 0x5e9   :  { %6545 = vmatmul.mubr.msk.f32.vlgmr.msra.gmra.mrb[2].mxu0 %vm524_vm3, %v697_v55 }
 0x5ea   :  { %6903 = vmatpush3.bf16.msra.mxu0 %v7623_v54  ;;  %6566 = vmatprep.mubr.msk.f32.mxu0 %vm7311_vm1, %v7310_v22 }
 0x5eb   :  { %6904 = vmatprep.subr.bf16.mxu0 %v7314_v41 }
 0x5ee   :  { %6906 = vmatpush3.bf16.msra.mxu0 %v7633_v61 }
 0x5ef   :  { %6574 = vmatprep.subr.mxu0 %v7310_v22 }
 0x5f1   :  { %6567 = vmatmul.mubr.msk.f32.vlgmr.msra.gmra.mrb[8].mxu0 %vm447_vm2, %v605_v30 }
 0x5f2   :  { %6576 = vmatprep.mubr.msk.f32.mxu0 %vm7311_vm1, %v7310_v22 }
 0x6bc   :  { %v771_v62 = vpop.f32.mrb[2].mxu0 }
 0x6bd   :  { %v6546_v0 = vpop.f32.mrb[3].mxu0  ;;  %6556 = vmatmul.mubr.msk.f32.vlgmr.msra.gmra.mrb[10].mxu1 %vm447_vm2, %v771_v62 }
 0x6be   :  { %6570 = vmatpush3.xpose.msk.msra.mxu1 %vm447_vm2, %v924_v63  ;;  %6571 = vmatprep.mubr.msk.f32.mxu1 %vm7311_vm1, %v7310_v22 }
 0x6bf   :  { %6907 = vmatprep.subr.bf16.mxu1 %v7314_v41 }
 0x6c1   :  { %6572 = vmatmul.mubr.msk.f32.vlgmr.msra.gmra.mrb[12].mxu1 %vm447_vm2, %v922_v1 }
 0x6c2   :  { %6587 = vmatprep.mubr.msk.f32.mxu1 %vm7311_vm1, %v7310_v22 }
 0x6c4   :  { %v917_v2 = vpop.f32.mrb[8].mxu0 }
 0x6c5   :  { %v6568_v4 = vpop.f32.mrb[9].mxu0 }
 0x790   :  { %v844_v5 = vpop.f32.mrb[10].mxu1 }
 0x791   :  { %v7651_v7 = vadd.f32 %v917_v2, %v844_v5  ;;  %v6557_v8 = vpop.f32.mrb[11].mxu1 }
 0x794   :  { %v995_v11 = vpop.f32.mrb[12].mxu1 }
 0x795   :  { %v6573_v12 = vpop.f32.mrb[13].mxu1  ;;  %v999_v16 = vsel %vm524_vm3, %v995_v11, -inf }
 0x796   :  { %1000 = vmax.xlane.f32.xlu0 %v999_v16 }
 0x7ac   :  { %1010 = vrot.lane.b32.xlu0 %v7568_v15, %s7313_s26 }
 0x7b0   :  { %1160 = vrot.lane.b32.xlu0 %v7565_v14, %s7315_s2  ;;  %v440_v14 = vld [vmem:[%s8722_s6 + $0x48] sm:$0xff] }
 0x7b1   :  { %v7671_v26 = vpack.c.bf16 %v440_v14, %v439_v24 }
 0x7b3   :  { %6909 = vmatpush3.bf16.msra.mxu1 %v7671_v26 }
 0x7b4   :  { %6910 = vmatprep.subr.bf16.mxu1 %v7314_v41 }
 0x823   :  { %v1001_v17 = vpop.xlane.xlu0 %1000 }
 0x824   :  { %v1002_v18 = vsub.f32 %v995_v11, %v1001_v17 }
 0x826   :  { %v1003_v19 = vmul.f32 1.442695, %v1002_v18 }
 0x827   :  { %v1011_v20 = vpop.permute.xlu0 %1010 }
 0x828   :  { %7231 = vpow2.f32 %v1003_v19  ;;  %6575 = vmatpush3.msra.mxu0 %v1011_v20 }
 0x829   :  { %6590 = vmatprep.subr.mxu0 %v7310_v22 }
 0x82b   :  { %v1161_v32 = vpop.permute.xlu0 %1160 }
 0x832   :  { %v7232_v21 = vpop.eup %7231 }
 0x833   :  { %v1005_v23 = vsel %vm524_vm3, %v7232_v21, 0.0 }
 0x834   :  { %1006 = vadd.xlane.f32.xlu1 %v1005_v23 }
 0x845   :  { %1162 = vrot.lane.b32.xlu1 %v7553_v6, %s7315_s2  ;;  %v7677_v6 = vpack.c.bf16 %v442_v27, %v441_v25 }
 0x847   :  { %6912 = vmatpush3.bf16.msra.mxu1 %v7677_v6 }
 0x848   :  { %6913 = vmatprep.subr.bf16.mxu1 %v7314_v41 }
 0x8c1   :  { %v1007_v28 = vpop.xlane.xlu1 %1006 }
 0x8c2   :  { %7233 = vrcp.f32 %v1007_v28 }
 0x8c5   :  { %v1163_v31 = vpop.permute.xlu1 %1162 }
 0x8cc   :  { %v7234_v29 = vpop.eup %7233 }
 0x8cd   :  { %v1009_v30 = vmul.f32 %v7234_v29, %v7232_v21 }
 0x8cf   :  { %6577 = vmatmul.mubr.msk.f32.vlgmr.msra.gmra.mrb[10].mxu0 %vm524_vm3, %v1009_v30 }
 0x8d0   :  { %6591 = vmatpush3.xpose.msk.msra.mxu0 %vm447_vm2, %v1163_v31  ;;  %6592 = vmatprep.mubr.msk.f32.mxu0 %vm7311_vm1, %v7310_v22 }
 0x8d1   :  { %6595 = vmatprep.subr.mxu0 %v7310_v22 }
 0x8d3   :  { %6593 = vmatmul.mubr.msk.f32.vlgmr.msra.gmra.mrb[12].mxu0 %vm447_vm2, %v1161_v32 }
 0x8d4   :  { %6597 = vmatprep.mubr.msk.f32.mxu0 %vm7311_vm1, %v7310_v22 }
 0x9a2   :  { %v1082_v33 = vpop.f32.mrb[10].mxu0 }
 0x9a3   :  { %v6578_v34 = vpop.f32.mrb[11].mxu0  ;;  %6588 = vmatmul.mubr.msk.f32.vlgmr.msra.gmra.mrb[14].mxu1 %vm447_vm2, %v1082_v33 }
 0x9a4   :  { %6608 = vmatprep.mubr.msk.f32.mxu1 %vm7311_vm1, %v7310_v22 }
 0x9a6   :  { %v1234_v35 = vpop.f32.mrb[12].mxu0 }
 0x9a7   :  { %v6594_v36 = vpop.f32.mrb[13].mxu0  ;;  %v1238_v37 = vsel %vm524_vm3, %v1234_v35, -inf }
 0x9a8   :  { %1239 = vmax.xlane.f32.xlu0 %v1238_v37 }
 0x9be   :  { %1249 = vrot.lane.b32.xlu0 %v7568_v15, %s7315_s2  ;;  %v444_v15 = vld [vmem:[%s8722_s6 + $0x68] sm:$0xff] }
 0x9bf   :  { %v7714_v49 = vpack.c.bf16 %v444_v15, %v443_v9 }
 0x9c1   :  { %6915 = vmatpush3.bf16.msra.mxu1 %v7714_v49 }
 0x9c2   :  { %1559 = vrot.lane.b32.xlu0 %v7697_v38, %s7312_s25  ;;  %6916 = vmatprep.subr.bf16.mxu1 %v7314_v41 }
 0x9c5   :  { %6918 = vmatpush3.bf16.msra.mxu1 %v7720_v51 }
 0x9c6   :  { %6621 = vmatprep.subr.mxu1 %v7310_v22 }
 0xa35   :  { %v1240_v39 = vpop.xlane.xlu0 %1239 }
 0xa36   :  { %v1241_v40 = vsub.f32 %v1234_v35, %v1240_v39 }
 0xa38   :  { %v1242_v42 = vmul.f32 1.442695, %v1241_v40 }
 0xa39   :  { %v1250_v43 = vpop.permute.xlu0 %1249 }
 0xa3a   :  { %7235 = vpow2.f32 %v1242_v42  ;;  %6596 = vmatpush3.msra.mxu0 %v1250_v43 }
 0xa3b   :  { %6611 = vmatprep.subr.mxu0 %v7310_v22 }
 0xa3d   :  { %v1560_v5 = vpop.permute.xlu0 %1559 }
 0xa44   :  { %v7236_v44 = vpop.eup %7235 }
 0xa45   :  { %v1244_v46 = vsel %vm524_vm3, %v7236_v44, 0.0 }
 0xa46   :  { %1245 = vadd.xlane.f32.xlu1 %v1244_v46 }
 0xa57   :  { %1561 = vrot.lane.b32.xlu1 %v7559_v13, %s7312_s25 }
 0xa76   :  { %v1155_v55 = vpop.f32.mrb[14].mxu1 }
 0xa77   :  { %v1159_v59 = vadd.f32 %v1155_v55, %v7651_v7  ;;  %v6589_v60 = vpop.f32.mrb[15].mxu1 }
 0xad3   :  { %v1246_v62 = vpop.xlane.xlu1 %1245 }
 0xad4   :  { %7237 = vrcp.f32 %v1246_v62 }
 0xad7   :  { %v1562_v2 = vpop.permute.xlu1 %1561 }
 0xade   :  { %v7238_v63 = vpop.eup %7237 }
 0xadf   :  { %v1248_v0 = vmul.f32 %v7238_v63, %v7236_v44 }
 0xae1   :  { %6598 = vmatmul.mubr.msk.f32.vlgmr.msra.gmra.mrb[14].mxu0 %vm524_vm3, %v1248_v0 }
 0xae2   :  { %6612 = vmatpush3.xpose.msk.msra.mxu0 %vm447_vm2, %v7559_v13  ;;  %6613 = vmatprep.mubr.msk.f32.mxu0 %vm7311_vm1, %v7310_v22 }
 0xae3   :  { %6616 = vmatprep.subr.mxu0 %v7310_v22 }
 0xae5   :  { %6614 = vmatmul.mubr.msk.f32.vlgmr.msra.gmra.mrb[16].mxu0 %vm447_vm2, %v7697_v38 }
 0xae6   :  { %6617 = vmatpush3.msra.mxu0 %v7557_v10  ;;  %6618 = vmatprep.mubr.msk.f32.mxu0 %vm7311_vm1, %v7310_v22 }
 0xae7   :  { %6626 = vmatprep.subr.mxu0 %v7310_v22 }
 0xbb4   :  { %v1321_v1 = vpop.f32.mrb[14].mxu0 }
 0xbb5   :  { %v6599_v4 = vpop.f32.mrb[15].mxu0  ;;  %6609 = vmatmul.mubr.msk.f32.vlgmr.msra.gmra.mrb[16].mxu1 %vm447_vm2, %v1321_v1 }
 0xbb6   :  { %6622 = vmatpush3.xpose.msk.msra.mxu1 %vm447_vm2, %v1562_v2  ;;  %6623 = vmatprep.mubr.msk.f32.mxu1 %vm7311_vm1, %v7310_v22 }
 0xbb7   :  { %6919 = vmatprep.subr.bf16.mxu1 %v7314_v41 }
 0xbb8   :  { %v1471_v7 = vpop.f32.mrb[16].mxu0 }
 0xbb9   :  { %v6615_v8 = vpop.f32.mrb[17].mxu0  ;;  %6624 = vmatmul.mubr.msk.f32.vlgmr.msra.gmra.mrb[18].mxu1 %vm447_vm2, %v1560_v5  ;;  %v1475_v11 = vsel %vm524_vm3, %v1471_v7, -inf }
 0xbba   :  { %1476 = vmax.xlane.f32.xlu0 %v1475_v11  ;;  %6921 = vmatpush3.bf16.msra.mxu1 %v7606_v45 }
 0xbbb   :  { %6922 = vmatprep.subr.bf16.mxu1 %v7314_v41  ;;  %6639 = vmatprep.mubr.msk.f32.mxu1 %vm7311_vm1, %v7310_v22 }
 0xbbe   :  { %6924 = vmatpush3.bf16.msra.mxu1 %v7612_v47 }
 0xbbf   :  { %6653 = vmatprep.subr.mxu1 %v7310_v22 }
 0xc47   :  { %v1477_v12 = vpop.xlane.xlu0 %1476 }
 0xc48   :  { %v1478_v16 = vsub.f32 %v1471_v7, %v1477_v12 }
 0xc4a   :  { %v1479_v17 = vmul.f32 1.442695, %v1478_v16 }
 0xc4c   :  { %7239 = vpow2.f32 %v1479_v17 }
 0xc56   :  { %v7240_v18 = vpop.eup %7239 }
 0xc57   :  { %v1481_v19 = vsel %vm524_vm3, %v7240_v18, 0.0 }
 0xc58   :  { %1482 = vadd.xlane.f32.xlu0 %v1481_v19 }
 0xc88   :  { %v1394_v20 = vpop.f32.mrb[16].mxu1 }
 0xc89   :  { %v7752_v21 = vadd.f32 %v1394_v20, %v1159_v59  ;;  %v6610_v45 = vpop.f32.mrb[17].mxu1 }
 0xc8c   :  { %v1633_v23 = vpop.f32.mrb[18].mxu1 }
 0xc8d   :  { %v6625_v24 = vpop.f32.mrb[19].mxu1  ;;  %v1637_v14 = vsel %vm524_vm3, %v1633_v23, -inf }
 0xc8e   :  { %1638 = vmax.xlane.f32.xlu1 %v1637_v14 }
 0xc9f   :  { %1649 = vrot.lane.b32.xlu1 %v7557_v10, %s7312_s25 }
 0xca3   :  { %1871 = vrot.lane.b32.xlu1 %v7697_v38, %s7313_s26 }
 0xce5   :  { %v1483_v47 = vpop.xlane.xlu0 %1482 }
 0xce6   :  { %7241 = vrcp.f32 %v1483_v47 }
 0xcf0   :  { %v7242_v25 = vpop.eup %7241 }
 0xcf1   :  { %v1485_v27 = vmul.f32 %v7242_v25, %v7240_v18 }
 0xcf3   :  { %6619 = vmatmul.mubr.msk.f32.vlgmr.msra.gmra.mrb[18].mxu0 %vm524_vm3, %v1485_v27 }
 0xcf4   :  { %6628 = vmatprep.mubr.msk.f32.mxu0 %vm7311_vm1, %v7310_v22 }
 0xd1b   :  { %v1639_v28 = vpop.xlane.xlu1 %1638 }
 0xd1c   :  { %v1640_v29 = vsub.f32 %v1633_v23, %v1639_v28 }
 0xd1e   :  { %v1641_v30 = vmul.f32 1.442695, %v1640_v29 }
 0xd1f   :  { %v1650_v31 = vpop.permute.xlu1 %1649 }
 0xd20   :  { %7243 = vpow2.f32 %v1641_v30  ;;  %6627 = vmatpush3.msra.mxu0 %v1650_v31 }
 0xd21   :  { %6925 = vmatprep.subr.bf16.mxu0 %v7314_v41 }
 0xd2a   :  { %v7244_v32 = vpop.eup %7243 }
 0xd2b   :  { %v1643_v33 = vsel %vm524_vm3, %v7244_v32, 0.0 }
 0xd2c   :  { %1644 = vadd.xlane.f32.xlu0 %v1643_v33 }
 0xd42   :  { %1873 = vrot.lane.b32.xlu0 %v7559_v13, %s7313_s26 }
 0xdb9   :  { %v1645_v34 = vpop.xlane.xlu0 %1644 }
 0xdba   :  { %7245 = vrcp.f32 %v1645_v34 }
 0xdbd   :  { %v1874_v42 = vpop.permute.xlu0 %1873 }
 0xdc4   :  { %v7246_v35 = vpop.eup %7245 }
 0xdc5   :  { %v1647_v36 = vmul.f32 %v7246_v35, %v7244_v32 }
 0xdc6   :  { %v1555_v37 = vpop.f32.mrb[18].mxu0 }
 0xdc7   :  { %v6620_v39 = vpop.f32.mrb[19].mxu0  ;;  %6629 = vmatmul.mubr.msk.f32.vlgmr.msra.gmra.mrb[20].mxu0 %vm524_vm3, %v1647_v36  ;;  %v7031_v36 = vld [vmem:[%s8723_s7] ss:$16 sps:$4 sm:$0xff]  }
 0xdc8   :  { %6927 = vmatpush3.bf16.msra.mxu0 %v7623_v54  ;;  %6650 = vmatprep.mubr.msk.f32.mxu0 %vm7311_vm1, %v7310_v22  ;;  %v1872_v54 = vpop.permute.xlu1 %1871  ;;  %v7034_v39 = vld [vmem:[%s8723_s7 + $0x8] ss:$16 sps:$4 sm:$0xff]  }
 0xdc9   :  { %6928 = vmatprep.subr.bf16.mxu0 %v7314_v41 }
 0xdcc   :  { %6930 = vmatpush3.bf16.msra.mxu0 %v7633_v61 }
 0xdcd   :  { %6658 = vmatprep.subr.mxu0 %v7310_v22 }
 0xdcf   :  { %6651 = vmatmul.mubr.msk.f32.vlgmr.msra.gmra.mrb[22].mxu0 %vm447_vm2, %v1555_v37  ;;  %v7033_v37 = vld [vmem:[%s8723_s7 + $0x4] ss:$16 sps:$4 sm:$0xff]  }
 0xdd0   :  { %6660 = vmatprep.mubr.msk.f32.mxu0 %vm7311_vm1, %v7310_v22 }
 0xe9a   :  { %v1721_v40 = vpop.f32.mrb[20].mxu0 }
 0xe9b   :  { %v6630_v43 = vpop.f32.mrb[21].mxu0  ;;  %6640 = vmatmul.mubr.msk.f32.vlgmr.msra.gmra.mrb[20].mxu1 %vm447_vm2, %v1721_v40  ;;  %v7037_v40 = vld [vmem:[%s8723_s7 + $0x20] ss:$16 sps:$4 sm:$0xff]  }
 0xe9c   :  { %6654 = vmatpush3.xpose.msk.msra.mxu1 %vm447_vm2, %v1874_v42  ;;  %6655 = vmatprep.mubr.msk.f32.mxu1 %vm7311_vm1, %v7310_v22  ;;  %v7039_v42 = vld [vmem:[%s8723_s7 + $0x24] ss:$16 sps:$4 sm:$0xff]   ;;  %v7040_v43 = vld [vmem:[%s8723_s7 + $0x28] ss:$16 sps:$4 sm:$0xff]  }
 0xe9d   :  { %6931 = vmatprep.subr.bf16.mxu1 %v7314_v41 }
 0xe9f   :  { %6656 = vmatmul.mubr.msk.f32.vlgmr.msra.gmra.mrb[22].mxu1 %vm447_vm2, %v1872_v54  ;;  %v7042_v54 = vld [vmem:[%s8723_s7 + $0x2c] ss:$16 sps:$4 sm:$0xff]  }
 0xea0   :  { %6933 = vmatpush3.bf16.msra.mxu1 %v7671_v26  ;;  %6671 = vmatprep.mubr.msk.f32.mxu1 %vm7311_vm1, %v7310_v22 }
 0xea1   :  { %6934 = vmatprep.subr.bf16.mxu1 %v7314_v41 }
 0xea2   :  { %v1867_v61 = vpop.f32.mrb[22].mxu0 }
 0xea3   :  { %v6652_v44 = vpop.f32.mrb[23].mxu0 }
 0xea4   :  { %6936 = vmatpush3.bf16.msra.mxu1 %v7677_v6  ;;  %v7045_v44 = vld [vmem:[%s8723_s7 + $0x44] ss:$16 sps:$4 sm:$0xff]  }
 0xea5   :  { %6937 = vmatprep.subr.bf16.mxu1 %v7314_v41 }
 0xf6e   :  { %v1794_v46 = vpop.f32.mrb[20].mxu1 }
 0xf6f   :  { %v1868_v9 = vadd.f32 %v1867_v61, %v1794_v46  ;;  %v6641_v15 = vpop.f32.mrb[21].mxu1  ;;  %v7043_v61 = vld [vmem:[%s8723_s7 + $0x40] ss:$16 sps:$4 sm:$0xff]   ;;  %v7046_v46 = vld [vmem:[%s8723_s7 + $0x48] ss:$16 sps:$4 sm:$0xff]  }
 0xf72   :  { %v1945_v48 = vpop.f32.mrb[22].mxu1 }
 0xf73   :  { %v6657_v50 = vpop.f32.mrb[23].mxu1  ;;  %v1949_v55 = vsel %vm524_vm3, %v1945_v48, -inf }
 0xf74   :  { %1950 = vmax.xlane.f32.xlu1 %v1949_v55 }
 0xf85   :  { %2112 = vrot.lane.b32.xlu1 %v7559_v13, %s7315_s2 }
 0xf89   :  { %2110 = vrot.lane.b32.xlu1 %v7697_v38, %s7315_s2 }
0x1001   :  { %v1951_v26 = vpop.xlane.xlu1 %1950 }
0x1002   :  { %v1952_v59 = vsub.f32 %v1945_v48, %v1951_v26  ;;  %v7051_v26 = vld [vmem:[%s8723_s7 + $0x64] ss:$16 sps:$4 sm:$0xff]  }
0x1004   :  { %v1953_v60 = vmul.f32 1.442695, %v1952_v59  ;;  %v7054_v59 = vld [vmem:[%s8723_s7 + $0x6c] ss:$16 sps:$4 sm:$0xff]  }
0x1005   :  { %v2113_v1 = vpop.permute.xlu1 %2112 }
0x1006   :  { %7247 = vpow2.f32 %v1953_v60  ;;  %v7049_v60 = vld [vmem:[%s8723_s7 + $0x60] ss:$16 sps:$4 sm:$0xff]  }
0x1009   :  { %v2111_v2 = vpop.permute.xlu1 %2110 }
0x1010   :  { %v7248_v6 = vpop.eup %7247 }
0x1011   :  { %v1955_v62 = vsel %vm524_vm3, %v7248_v6, 0.0 }
0x1012   :  { %1956 = vadd.xlane.f32.xlu0 %v1955_v62  ;;  %v7057_v62 = vld [vmem:[%s8723_s7 + $0x84] ss:$16 sps:$4 sm:$0xff]  }
0x1028   :  { %1960 = vrot.lane.b32.xlu0 %v7557_v10, %s7313_s26 }
0x109f   :  { %v1957_v63 = vpop.xlane.xlu0 %1956 }
0x10a0   :  { %7249 = vrcp.f32 %v1957_v63  ;;  %v7060_v63 = vld [vmem:[%s8723_s7 + $0x8c] ss:$16 sps:$4 sm:$0xff]  }
0x10a3   :  { %v1961_v0 = vpop.permute.xlu0 %1960 }
0x10a4   :  { %6659 = vmatpush3.msra.mxu0 %v1961_v0  ;;  %v7055_v0 = vld [vmem:[%s8723_s7 + $0x80] ss:$16 sps:$4 sm:$0xff]  }
0x10a5   :  { %6674 = vmatprep.subr.mxu0 %v7310_v22 }
0x10aa   :  { %v7250_v13 = vpop.eup %7249 }
0x10ab   :  { %v1959_v38 = vmul.f32 %v7250_v13, %v7248_v6  ;;  %v7052_v6 = vld [vmem:[%s8723_s7 + $0x68] ss:$16 sps:$4 sm:$0xff]  }
0x10ac   :  { %v7058_v13 = vld [vmem:[%s8723_s7 + $0x88] ss:$16 sps:$4 sm:$0xff]  }
0x10ad   :  { %6661 = vmatmul.mubr.msk.f32.vlgmr.msra.gmra.mrb[24].mxu0 %vm524_vm3, %v1959_v38  ;;  %v7066_v38 = vld [vmem:[%s8723_s7 + $0xac] ss:$16 sps:$4 sm:$0xff]  }
0x10ae   :  { %6675 = vmatpush3.xpose.msk.msra.mxu0 %vm447_vm2, %v2113_v1  ;;  %6676 = vmatprep.mubr.msk.f32.mxu0 %vm7311_vm1, %v7310_v22  ;;  %v7063_v1 = vld [vmem:[%s8723_s7 + $0xa4] ss:$16 sps:$4 sm:$0xff]  }
0x10af   :  { %6679 = vmatprep.subr.mxu0 %v7310_v22 }
0x10b1   :  { %6677 = vmatmul.mubr.msk.f32.vlgmr.msra.gmra.mrb[26].mxu0 %vm447_vm2, %v2111_v2  ;;  %v7061_v2 = vld [vmem:[%s8723_s7 + $0xa0] ss:$16 sps:$4 sm:$0xff]  }
0x10b2   :  { %6681 = vmatprep.mubr.msk.f32.mxu0 %vm7311_vm1, %v7310_v22 }
0x1180   :  { %v2032_v4 = vpop.f32.mrb[24].mxu0 }
0x1181   :  { %v6662_v5 = vpop.f32.mrb[25].mxu0  ;;  %6672 = vmatmul.mubr.msk.f32.vlgmr.msra.gmra.mrb[24].mxu1 %vm447_vm2, %v2032_v4  ;;  %v7064_v4 = vld [vmem:[%s8723_s7 + $0xa8] ss:$16 sps:$4 sm:$0xff]  }
0x1182   :  { %6939 = vmatpush3.bf16.msra.mxu1 %v7714_v49  ;;  %6692 = vmatprep.mubr.msk.f32.mxu1 %vm7311_vm1, %v7310_v22  ;;  %v2351_v49 = vsub.s32 1, %v7533_v56  ;;  %v7069_v5 = vld [vmem:[%s8723_s7 + $0xc4] ss:$16 sps:$4 sm:$0xff]  }
0x1183   :  { %6940 = vmatprep.subr.bf16.mxu1 %v7314_v41 }
0x1184   :  { %v2184_v7 = vpop.f32.mrb[26].mxu0  ;;  %v2352_v19 = vrot.slane %v7541_v58, %v2351_v49 }
0x1185   :  { %v6678_v8 = vpop.f32.mrb[27].mxu0  ;;  %v2188_v11 = vsel %vm524_vm3, %v2184_v7, -inf }
0x1186   :  { %2189 = vmax.xlane.f32.xlu0 %v2188_v11  ;;  %6942 = vmatpush3.bf16.msra.mxu1 %v7720_v51  ;;  %v2353_v45 = vadd.f32 %v2352_v19, %v7752_v21  ;;  %v7067_v8 = vld [vmem:[%s8723_s7 + $0xc0] ss:$16 sps:$4 sm:$0xff]   ;;  %v7070_v11 = vld [vmem:[%s8723_s7 + $0xc8] ss:$16 sps:$4 sm:$0xff]  }
0x119c   :  { %2199 = vrot.lane.b32.xlu0 %v7557_v10, %s7315_s2  ;;  %v2355_v10 = vadd.f32 %v2353_v45, %v7525_v53 }
0x1213   :  { %v2190_v12 = vpop.xlane.xlu0 %2189 }
0x1214   :  { %v2191_v16 = vsub.f32 %v2184_v7, %v2190_v12  ;;  %v7072_v7 = vld [vmem:[%s8723_s7 + $0xcc] ss:$16 sps:$4 sm:$0xff]   ;;  %v7075_v12 = vld [vmem:[%s8723_s7 + $0xe4] ss:$16 sps:$4 sm:$0xff]  }
0x1216   :  { %v2192_v17 = vmul.f32 1.442695, %v2191_v16  ;;  %v7078_v16 = vld [vmem:[%s8723_s7 + $0xec] ss:$16 sps:$4 sm:$0xff]  }
0x1217   :  { %v2200_v18 = vpop.permute.xlu0 %2199 }
0x1218   :  { %7251 = vpow2.f32 %v2192_v17  ;;  %6680 = vmatpush3.msra.mxu0 %v2200_v18  ;;  %v7073_v17 = vld [vmem:[%s8723_s7 + $0xe0] ss:$16 sps:$4 sm:$0xff]   ;;  %v7076_v18 = vld [vmem:[%s8723_s7 + $0xe8] ss:$16 sps:$4 sm:$0xff]  }
0x1219   :  { %2601 = vmatprep.subr.bf16.mxu0 %v7033_v37 }
0x1222   :  { %v7252_v20 = vpop.eup %7251 }
0x1223   :  { %v2194_v51 = vsel %vm524_vm3, %v7252_v20, 0.0 }
0x1224   :  { %2195 = vadd.xlane.f32.xlu1 %v2194_v51 }
0x1228   :  { %2357 = vadd.xlane.f32.xlu1 %v2355_v10 }
0x1254   :  { %v2105_v23 = vpop.f32.mrb[24].mxu1 }
0x1255   :  { %v2109_v24 = vadd.f32 %v2105_v23, %v1868_v9  ;;  %v6673_v14 = vpop.f32.mrb[25].mxu1  ;;  %v7048_v9 = vld [vmem:[%s8723_s7 + $0x4c] ss:$16 sps:$4 sm:$0xff]  }
0x12b1   :  { %v2196_v47 = vpop.xlane.xlu1 %2195 }
0x12b2   :  { %7253 = vrcp.f32 %v2196_v47  ;;  %v2382_v47 = vsub.s32 2, %v7533_v56 }
0x12b5   :  { %v2358_v21 = vpop.xlane.xlu1 %2357 }
0x12b6   :  { %v2362_v29 = vmul.f32 0.0078125, %v2358_v21  ;;  %v2388_v21 = vsub.s32 3, %v7533_v56 }
0x12b8   :  { %v7825_v33 = vsub.f32 %v2355_v10, %v2362_v29 }
0x12ba   :  { %v2366_v35 = vmul.f32 %v7825_v33, %v7825_v33 }
0x12bc   :  { %v7254_v25 = vpop.eup %7253 }
0x12bd   :  { %v2198_v27 = vmul.f32 %v7254_v25, %v7252_v20  ;;  %v7080_v20 = vld [vmem:[%s8724_s8 + $0xc0] sm:$0xff]  }
0x12bf   :  { %6682 = vmatmul.mubr.msk.f32.vlgmr.msra.gmra.mrb[28].mxu0 %vm524_vm3, %v2198_v27 }
0x12c0   :  { %2633 = vmatprep.mubr.bf16.mxu0 %v7309_v3  ;;  %2602 = vmatpush1.bf16.msra.mxu0 %v7031_v36  ;;  %v7082_v36 = vld [vmem:[%s8724_s8 + $0x80] sm:$0xff]  }
0x12c1   :  { %2603 = vmatprep.subr.bf16.mxu0 %v7039_v42  ;;  %v7086_v42 = vld [vmem:[%s8724_s8 + $0x88] sm:$0xff]  }
0x12c4   :  { %2604 = vmatpush1.bf16.msra.mxu0 %v7037_v40  ;;  %v7085_v40 = vld [vmem:[%s8724_s8 + $0x8] sm:$0xff]  }
0x12c5   :  { %2605 = vmatprep.subr.bf16.mxu0 %v7045_v44  ;;  %v7090_v44 = vld [vmem:[%s8724_s8 + $0x90] sm:$0xff]  }
0x12c8   :  { %2606 = vmatpush1.bf16.msra.mxu0 %v7043_v61  ;;  %v7089_v61 = vld [vmem:[%s8724_s8 + $0x10] sm:$0xff]  }
0x12c9   :  { %2607 = vmatprep.subr.bf16.mxu0 %v7051_v26  ;;  %v7097_v26 = vld [vmem:[%s8724_s8 + $0x20] sm:$0xff]  }
0x12cc   :  { %2608 = vmatpush1.bf16.msra.mxu0 %v7049_v60  ;;  %v7099_v60 = vld [vmem:[%s8724_s8 + $0x68] sm:$0xff]  }
0x12cd   :  { %2609 = vmatprep.subr.bf16.mxu0 %v7057_v62  ;;  %v7101_v62 = vld [vmem:[%s8724_s8 + $0x28] sm:$0xff]  }
0x12d0   :  { %2610 = vmatpush1.bf16.msra.mxu0 %v7055_v0  ;;  %v7103_v0 = vld [vmem:[%s8724_s8 + $0x70] sm:$0xff]  }
0x12d1   :  { %2611 = vmatprep.subr.bf16.mxu0 %v7063_v1  ;;  %v7105_v1 = vld [vmem:[%s8724_s8 + $0x30] sm:$0xff]  }
0x12d4   :  { %2612 = vmatpush1.bf16.msra.mxu0 %v7061_v2  ;;  %v7107_v2 = vld [vmem:[%s8724_s8 + $0x78] sm:$0xff]  }
0x12d5   :  { %2613 = vmatprep.subr.bf16.mxu0 %v7069_v5  ;;  %v7109_v5 = vld [vmem:[%s8724_s8 + $0x38] sm:$0xff]  }
0x12d8   :  { %2614 = vmatpush1.bf16.msra.mxu0 %v7067_v8  ;;  %v8049_v8 = vsub.s32 4, %v7533_v56 }
0x12d9   :  { %2615 = vmatprep.subr.bf16.mxu0 %v7075_v12 }
0x12dc   :  { %2616 = vmatpush1.bf16.msra.mxu0 %v7073_v17 }
0x1392   :  { %v2271_v58 = vpop.f32.mrb[28].mxu0 }
0x1393   :  { %v6683_v28 = vpop.f32.mrb[29].mxu0  ;;  %6693 = vmatmul.mubr.msk.f32.vlgmr.msra.gmra.mrb[26].mxu1 %vm447_vm2, %v2271_v58  ;;  %v7941_v58 = vld [vmem:[%s8721_s9] sm:$0xff] }
0x1394   :  { %2676 = vmatprep.mubr.bf16.mxu1 %v7309_v3  ;;  %v2383_v28 = vrot.slane %v7941_v58, %v2382_v47  ;;  %v2428_v12 = vrot.slane %v7941_v58, %v8049_v8 }
0x1466   :  { %v2344_v53 = vpop.f32.mrb[26].mxu1 }
0x1467   :  { %v2348_v30 = vadd.f32 %v2344_v53, %v2109_v24  ;;  %v6694_v31 = vpop.f32.mrb[27].mxu1 }
0x1468   :  { %v2389_v31 = vrot.slane %v7941_v58, %v2388_v21 }
0x1469   :  { %v2354_v32 = vadd.f32 %v2352_v19, %v2348_v30  ;;  %v7079_v19 = vld [vmem:[%s8724_s8 + $0x40] sm:$0xff]  }
0x146a   :  { %6323 = vmatprep.subr.bf16.mxu0 %v7079_v19 }
0x146b   :  { %v2356_v34 = vadd.f32 %v2354_v32, %v7523_v52  ;;  %v7036_v52 = vld [vmem:[%s8723_s7 + $0xc] ss:$16 sps:$4 sm:$0xff]  }
0x146c   :  { %2644 = vmatprep.subr.bf16.mxu1 %v7036_v52  ;;  %v7084_v52 = vld [vmem:[%s8724_s8 + $0xc8] sm:$0xff]  }
0x146d   :  { %2359 = vadd.xlane.f32.xlu1 %v2356_v34  ;;  %2645 = vmatpush1.bf16.msra.mxu1 %v7034_v39  ;;  %v7083_v39 = vld [vmem:[%s8724_s8 + $0x48] sm:$0xff]  }
0x146e   :  { %2646 = vmatprep.subr.bf16.mxu1 %v7042_v54  ;;  %v7088_v54 = vld [vmem:[%s8724_s8 + $0xd0] sm:$0xff]  }
0x1471   :  { %2368 = vadd.xlane.f32.xlu1 %v2366_v35  ;;  %2647 = vmatpush1.bf16.msra.mxu1 %v7040_v43  ;;  %v7081_v35 = vld [vmem:[%s8724_s8] sm:$0xff]   ;;  %v7087_v43 = vld [vmem:[%s8724_s8 + $0x50] sm:$0xff]  }
0x1472   :  { %2648 = vmatprep.subr.bf16.mxu1 %v7048_v9  ;;  %v7092_v9 = vld [vmem:[%s8724_s8 + $0xd8] sm:$0xff]  }
0x1475   :  { %2649 = vmatpush1.bf16.msra.mxu1 %v7046_v46  ;;  %v7091_v46 = vld [vmem:[%s8724_s8 + $0x58] sm:$0xff]  }
0x1476   :  { %2650 = vmatprep.subr.bf16.mxu1 %v7054_v59  ;;  %v7098_v59 = vld [vmem:[%s8724_s8 + $0xa0] sm:$0xff]  }
0x1479   :  { %2651 = vmatpush1.bf16.msra.mxu1 %v7052_v6  ;;  %v7100_v6 = vld [vmem:[%s8724_s8 + $0xe8] sm:$0xff]  }
0x147a   :  { %2652 = vmatprep.subr.bf16.mxu1 %v7060_v63  ;;  %v7102_v63 = vld [vmem:[%s8724_s8 + $0xa8] sm:$0xff]  }
0x147d   :  { %2653 = vmatpush1.bf16.msra.mxu1 %v7058_v13  ;;  %v7104_v13 = vld [vmem:[%s8724_s8 + $0xf0] sm:$0xff]  }
0x147e   :  { %2654 = vmatprep.subr.bf16.mxu1 %v7066_v38  ;;  %v7106_v38 = vld [vmem:[%s8724_s8 + $0xb0] sm:$0xff]  }
0x1481   :  { %2655 = vmatpush1.bf16.msra.mxu1 %v7064_v4  ;;  %v7108_v4 = vld [vmem:[%s8724_s8 + $0xf8] sm:$0xff]  }
0x1482   :  { %2656 = vmatprep.subr.bf16.mxu1 %v7072_v7  ;;  %v7110_v7 = vld [vmem:[%s8724_s8 + $0xb8] sm:$0xff]  }
0x1485   :  { %2657 = vmatpush1.bf16.msra.mxu1 %v7070_v11  ;;  %v171_v11 = vld [vmem:[%s8721_s9 + $0x18] sm:$0xff] }
0x1486   :  { %2658 = vmatprep.subr.bf16.mxu1 %v7078_v16  ;;  %v7304_v16 = vld [vmem:[%s8721_s9 + $0x10] sm:$0xff] }
0x1487   :  { %v2436_v17 = vrot.slane %v7304_v16, %v8049_v8 }
0x1489   :  { %2659 = vmatpush1.bf16.msra.mxu1 %v7076_v18  ;;  %v7305_v18 = vld [vmem:[%s8721_s9 + $0x8] sm:$0xff] }
0x148a   :  { %6345 = vmatprep.subr.bf16.mxu1 %v7080_v20  ;;  %v2432_v19 = vrot.slane %v7305_v18, %v8049_v8  ;;  %v2440_v20 = vrot.slane %v171_v11, %v8049_v8  ;;  %v7113_v18 = vld [vmem:[%s8725_s10 + $0x4] ss:$12 sps:$4 sm:$0xff]  }
0x14fa   :  { %v2360_v15 = vpop.xlane.xlu1 %2359 }
0x14fb   :  { %v2363_v48 = vmul.f32 0.0078125, %v2360_v15  ;;  %v7093_v15 = vld [vmem:[%s8724_s8 + $0x18] sm:$0xff]  }
0x14fd   :  { %v7866_v50 = vsub.f32 %v2356_v34, %v2363_v48  ;;  %v7094_v48 = vld [vmem:[%s8724_s8 + $0x98] sm:$0xff]  }
0x14fe   :  { %v2369_v45 = vpop.xlane.xlu1 %2368 }
0x14ff   :  { %v2367_v55 = vmul.f32 %v7866_v50, %v7866_v50  ;;  %v2372_v51 = vmul.f32 0.0078125, %v2369_v45 }
0x1501   :  { %2370 = vadd.xlane.f32.xlu1 %v2367_v55  ;;  %v2374_v10 = vadd.f32 1e-05, %v2372_v51  ;;  %v7096_v55 = vld [vmem:[%s8724_s8 + $0xe0] sm:$0xff]  }
0x1503   :  { %7255 = vrsqrt.f32 %v2374_v10 }
0x150d   :  { %v7256_v25 = vpop.eup %7255 }
0x150e   :  { %v2378_v27 = vmul.f32 %v7256_v25, %v7825_v33 }
0x1510   :  { %v2384_v30 = vmul.f32 %v2383_v28, %v2378_v27 }
0x1512   :  { %v7951_v33 = vadd.f32 %v2389_v31, %v2384_v30 }
0x158e   :  { %v2371_v23 = vpop.xlane.xlu1 %2370 }
0x158f   :  { %v2373_v24 = vmul.f32 0.0078125, %v2371_v23 }
0x1591   :  { %v2375_v14 = vadd.f32 1e-05, %v2373_v24 }
0x1593   :  { %7257 = vrsqrt.f32 %v2375_v14 }
0x159d   :  { %v7258_v53 = vpop.eup %7257 }
0x159e   :  { %v2379_v29 = vmul.f32 %v7258_v53, %v7866_v50  ;;  %v7095_v50 = vld [vmem:[%s8724_s8 + $0x60] sm:$0xff]  }
0x15a0   :  { %v2385_v32 = vmul.f32 %v2383_v28, %v2379_v29 }
0x15a2   :  { %v7953_v34 = vadd.f32 %v2389_v31, %v2385_v32 }
0x15a4   :  { %v2392_v37 = vpack.c.bf16 %v7953_v34, %v7951_v33 }
0x15a6   :  { %2634 = vmatmul.mubr.bf16.vlgmr.msra.gmra.mrb[32].mxu0 %v2392_v37  ;;  %2677 = vmatmul.mubr.bf16.vlgmr.msra.gmra.mrb[28].mxu1 %v2392_v37 }
0x15a7   :  { %6324 = vmatpush3.bf16.msra.mxu0 %v7081_v35  ;;  %6346 = vmatpush3.bf16.msra.mxu1 %v7082_v36 }
0x15a8   :  { %6325 = vmatprep.subr.bf16.mxu0 %v7083_v39  ;;  %6347 = vmatprep.subr.bf16.mxu1 %v7084_v52 }
0x15ab   :  { %6326 = vmatpush3.bf16.msra.mxu0 %v7085_v40  ;;  %6348 = vmatpush3.bf16.msra.mxu1 %v7086_v42 }
0x15ac   :  { %6327 = vmatprep.subr.bf16.mxu0 %v7087_v43  ;;  %6349 = vmatprep.subr.bf16.mxu1 %v7088_v54 }
0x15af   :  { %6328 = vmatpush3.bf16.msra.mxu0 %v7089_v61  ;;  %6350 = vmatpush3.bf16.msra.mxu1 %v7090_v44 }
0x15b0   :  { %6329 = vmatprep.subr.bf16.mxu0 %v7091_v46  ;;  %6351 = vmatprep.subr.bf16.mxu1 %v7092_v9 }
0x15b3   :  { %6330 = vmatpush3.bf16.msra.mxu0 %v7093_v15  ;;  %6352 = vmatpush3.bf16.msra.mxu1 %v7094_v48  ;;  %v2765_v48 = vsub.s32 5, %v7533_v56 }
0x15b4   :  { %6331 = vmatprep.subr.bf16.mxu0 %v7095_v50  ;;  %6353 = vmatprep.subr.bf16.mxu1 %v7096_v55 }
0x15b7   :  { %6332 = vmatpush3.bf16.msra.mxu0 %v7097_v26  ;;  %6354 = vmatpush3.bf16.msra.mxu1 %v7098_v59  ;;  %v2766_v26 = vrot.slane %v7941_v58, %v2765_v48 }
0x15b8   :  { %6333 = vmatprep.subr.bf16.mxu0 %v7099_v60  ;;  %6355 = vmatprep.subr.bf16.mxu1 %v7100_v6 }
0x15bb   :  { %6334 = vmatpush3.bf16.msra.mxu0 %v7101_v62  ;;  %6356 = vmatpush3.bf16.msra.mxu1 %v7102_v63 }
0x15bc   :  { %6335 = vmatprep.subr.bf16.mxu0 %v7103_v0  ;;  %6357 = vmatprep.subr.bf16.mxu1 %v7104_v13 }
0x15bf   :  { %6336 = vmatpush3.bf16.msra.mxu0 %v7105_v1  ;;  %6358 = vmatpush3.bf16.msra.mxu1 %v7106_v38 }
0x15c0   :  { %6337 = vmatprep.subr.bf16.mxu0 %v7107_v2  ;;  %6359 = vmatprep.subr.bf16.mxu1 %v7108_v4 }
0x15c3   :  { %6338 = vmatpush3.bf16.msra.mxu0 %v7109_v5  ;;  %6360 = vmatpush3.bf16.msra.mxu1 %v7110_v7 }
0x15c4   :  { %6695 = vmatprep.subr.bf16.mxu1 %v7310_v22  ;;  %3254 = vmatprep.subr.bf16.mxu0 %v7113_v18 }
0x1679   :  { %v2635_v45 = vpop.f32.mrb[32].mxu0  ;;  %v2678_v51 = vpop.f32.mrb[28].mxu1 }
0x167a   :  { %v2636_v10 = vadd.f32 %v2635_v45, %v2428_v12  ;;  %v2679_v23 = vadd.f32 %v2678_v51, %v2436_v17  ;;  %v2637_v24 = vpop.f32.mrb[33].mxu0  ;;  %v2680_v14 = vpop.f32.mrb[29].mxu1 }
0x167b   :  { %v2638_v25 = vadd.f32 %v2637_v24, %v2432_v19  ;;  %v2681_v27 = vadd.f32 %v2680_v14, %v2440_v20  ;;  %v2639_v28 = vpop.f32.mrb[34].mxu0  ;;  %v2682_v53 = vpop.f32.mrb[30].mxu1 }
0x167c   :  { %v2640_v29 = vadd.f32 %v2639_v28, %v2428_v12  ;;  %v2683_v30 = vadd.f32 %v2682_v53, %v2436_v17  ;;  %v2641_v31 = vpop.f32.mrb[35].mxu0  ;;  %v2684_v32 = vpop.f32.mrb[31].mxu1  ;;  %v2687_v37 = vmax.f32 %v2636_v10, 0.0  ;;  %v2689_v39 = vmax.f32 %v2679_v23, 0.0  ;;  %v7111_v17 = vld [vmem:[%s8725_s10] ss:$12 sps:$4 sm:$0xff]  }
0x167d   :  { %v2642_v35 = vadd.f32 %v2641_v31, %v2432_v19  ;;  %v2685_v36 = vadd.f32 %v2684_v32, %v2440_v20  ;;  %v2688_v42 = vmax.f32 %v2638_v25, 0.0  ;;  %v2690_v43 = vmax.f32 %v2681_v27, 0.0  ;;  %v7114_v19 = vld [vmem:[%s8725_s10 + $0x8] ss:$12 sps:$4 sm:$0xff]   ;;  %v7118_v27 = vld [vmem:[%s8725_s10 + $0x20] ss:$12 sps:$4 sm:$0xff]  }
0x167e   :  { %v2691_v52 = vmax.f32 %v2640_v29, 0.0  ;;  %v2693_v40 = vmax.f32 %v2683_v30, 0.0  ;;  %v7121_v28 = vld [vmem:[%s8725_s10 + $0x34] ss:$12 sps:$4 sm:$0xff]   ;;  %v7119_v53 = vld [vmem:[%s8725_s10 + $0x30] ss:$12 sps:$4 sm:$0xff]  }
0x167f   :  { %v2692_v54 = vmax.f32 %v2642_v35, 0.0  ;;  %v2694_v61 = vmax.f32 %v2685_v36, 0.0  ;;  %v7122_v29 = vld [vmem:[%s8725_s10 + $0x38] ss:$12 sps:$4 sm:$0xff]   ;;  %v7123_v31 = vld [vmem:[%s8725_s10 + $0x48] ss:$12 sps:$4 sm:$0xff]  }
0x1680   :  { %v2695_v44 = vpack.c.bf16 %v2691_v52, %v2687_v37  ;;  %v2697_v46 = vpack.c.bf16 %v2693_v40, %v2689_v39  ;;  %v7125_v30 = vld [vmem:[%s8725_s10 + $0x4c] ss:$12 sps:$4 sm:$0xff]   ;;  %v7126_v32 = vld [vmem:[%s8725_s10 + $0x50] ss:$12 sps:$4 sm:$0xff]   ;;  %v7130_v37 = vld [vmem:[%s8725_s10 + $0x68] ss:$12 sps:$4 sm:$0xff]  }
0x1681   :  { %v2696_v9 = vpack.c.bf16 %v2692_v54, %v2688_v42  ;;  %v2698_v15 = vpack.c.bf16 %v2694_v61, %v2690_v43  ;;  %v7129_v35 = vld [vmem:[%s8725_s10 + $0x64] ss:$12 sps:$4 sm:$0xff]   ;;  %v7127_v36 = vld [vmem:[%s8725_s10 + $0x60] ss:$12 sps:$4 sm:$0xff]   ;;  %v7133_v39 = vld [vmem:[%s8725_s10 + $0x7c] ss:$12 sps:$4 sm:$0xff]  }
0x1682   :  { %v7131_v52 = vld [vmem:[%s8725_s10 + $0x78] ss:$12 sps:$4 sm:$0xff]   ;;  %v7134_v40 = vld [vmem:[%s8725_s10 + $0x80] ss:$12 sps:$4 sm:$0xff]   ;;  %v7135_v43 = vld [vmem:[%s8725_s10 + $0x90] ss:$12 sps:$4 sm:$0xff]  }
0x1683   :  { %2991 = vmatprep.mubr.bf16.mxu0 %v2696_v9  ;;  %3032 = vmatprep.mubr.bf16.mxu1 %v2698_v15  ;;  %v7137_v42 = vld [vmem:[%s8725_s10 + $0x94] ss:$12 sps:$4 sm:$0xff]   ;;  %v7138_v54 = vld [vmem:[%s8725_s10 + $0x98] ss:$12 sps:$4 sm:$0xff]  }
0x1684   :  { %2992 = vmatmul.mubr.bf16.vlgmr.msra.gmra.mrb[36].mxu0 %v2695_v44  ;;  %3033 = vmatmul.mubr.bf16.vlgmr.msra.gmra.mrb[32].mxu1 %v2697_v46  ;;  %v7141_v61 = vld [vmem:[%s8725_s10 + $0xac] ss:$12 sps:$4 sm:$0xff]   ;;  %v7139_v44 = vld [vmem:[%s8725_s10 + $0xa8] ss:$12 sps:$4 sm:$0xff]   ;;  %v7142_v46 = vld [vmem:[%s8725_s10 + $0xb0] ss:$12 sps:$4 sm:$0xff]  }
0x1685   :  { %3286 = vmatprep.mubr.bf16.mxu0 %v7309_v3  ;;  %6711 = vmatprep.mubr.msk.bf16.mxu1 %vm7311_vm1, %v7310_v22 }
0x1686   :  { %3255 = vmatpush1.bf16.msra.mxu0 %v7111_v17  ;;  %6696 = vmatpush3.bf16.msra.mxu1 %v7114_v19  ;;  %v3079_v17 = vld [vmem:[%s8726_s14 + $0x10] sm:$0xff] }
0x1687   :  { %6697 = vmatprep.subr.bf16.mxu1 %v7310_v22 }
0x168a   :  { %6698 = vmatpush3.bf16.msra.mxu1 %v7118_v27 }
0x168b   :  { %6699 = vmatprep.subr.bf16.mxu1 %v7310_v22 }
0x168e   :  { %6700 = vmatpush3.bf16.msra.mxu1 %v7122_v29 }
0x168f   :  { %6701 = vmatprep.subr.bf16.mxu1 %v7310_v22 }
0x1692   :  { %6702 = vmatpush3.bf16.msra.mxu1 %v7126_v32 }
0x1693   :  { %6703 = vmatprep.subr.bf16.mxu1 %v7310_v22 }
0x1696   :  { %6704 = vmatpush3.bf16.msra.mxu1 %v7130_v37 }
0x1697   :  { %6705 = vmatprep.subr.bf16.mxu1 %v7310_v22 }
0x169a   :  { %6706 = vmatpush3.bf16.msra.mxu1 %v7134_v40 }
0x169b   :  { %6707 = vmatprep.subr.bf16.mxu1 %v7310_v22 }
0x169e   :  { %6708 = vmatpush3.bf16.msra.mxu1 %v7138_v54 }
0x169f   :  { %6709 = vmatprep.subr.bf16.mxu1 %v7310_v22 }
0x16a2   :  { %6710 = vmatpush3.bf16.msra.mxu1 %v7142_v46 }
0x16a3   :  { %6725 = vmatprep.subr.mxu1 %v7310_v22 }
0x1757   :  { %v6339_v50 = vpop.f32.mrb[36].mxu0  ;;  %v6361_v55 = vpop.f32.mrb[32].mxu1 }
0x1758   :  { %v6340_v59 = vpop.f32.mrb[37].mxu0  ;;  %v6362_v60 = vpop.f32.mrb[33].mxu1 }
0x1759   :  { %v6341_v6 = vadd.f32 %v6340_v59, %v6339_v50  ;;  %v6363_v62 = vadd.f32 %v6362_v60, %v6361_v55  ;;  %v6342_v63 = vpop.f32.mrb[38].mxu0  ;;  %v6364_v0 = vpop.f32.mrb[34].mxu1  ;;  %v3067_v60 = vsub.s32 6, %v7533_v56 }
0x175a   :  { %v6343_v13 = vpop.f32.mrb[39].mxu0  ;;  %v6365_v1 = vpop.f32.mrb[35].mxu1 }
0x175b   :  { %v2994_v38 = vadd.f32 %v6341_v6, %v2766_v26  ;;  %v6344_v2 = vadd.f32 %v6343_v13, %v6342_v63  ;;  %v6366_v4 = vadd.f32 %v6365_v1, %v6364_v0  ;;  %v3068_v63 = vrot.slane %v7941_v58, %v3067_v60 }
0x175c   :  { %v3073_v0 = vsub.s32 7, %v7533_v56 }
0x175d   :  { %v3035_v5 = vadd.f32 %v6363_v62, %v2994_v38  ;;  %v2997_v7 = vadd.f32 %v6344_v2, %v2766_v26 }
0x175e   :  { %v3074_v2 = vrot.slane %v7941_v58, %v3073_v0  ;;  %v8186_v58 = vld [vmem:[%s8726_s14] sm:$0xff] }
0x175f   :  { %v3038_v11 = vadd.f32 %v6366_v4, %v2997_v7  ;;  %v3041_v12 = vadd.f32 %v3035_v5, %v7951_v33  ;;  %v7115_v33 = vld [vmem:[%s8725_s10 + $0x18] ss:$12 sps:$4 sm:$0xff]  }
0x1761   :  { %3043 = vadd.xlane.f32.xlu0 %v3041_v12  ;;  %v3042_v16 = vadd.f32 %v3038_v11, %v7953_v34  ;;  %v7117_v34 = vld [vmem:[%s8725_s10 + $0x1c] ss:$12 sps:$4 sm:$0xff]  }
0x1762   :  { %3256 = vmatprep.subr.bf16.mxu0 %v7117_v34 }
0x1763   :  { %3045 = vadd.xlane.f32.xlu1 %v3042_v16  ;;  %3257 = vmatpush1.bf16.msra.mxu0 %v7115_v33 }
0x1764   :  { %3258 = vmatprep.subr.bf16.mxu0 %v7121_v28 }
0x1767   :  { %3259 = vmatpush1.bf16.msra.mxu0 %v7119_v53 }
0x1768   :  { %3260 = vmatprep.subr.bf16.mxu0 %v7125_v30 }
0x176b   :  { %3261 = vmatpush1.bf16.msra.mxu0 %v7123_v31 }
0x176c   :  { %3262 = vmatprep.subr.bf16.mxu0 %v7129_v35 }
0x176f   :  { %3263 = vmatpush1.bf16.msra.mxu0 %v7127_v36 }
0x1770   :  { %3264 = vmatprep.subr.bf16.mxu0 %v7133_v39 }
0x1773   :  { %3265 = vmatpush1.bf16.msra.mxu0 %v7131_v52 }
0x1774   :  { %3266 = vmatprep.subr.bf16.mxu0 %v7137_v42 }
0x1777   :  { %3267 = vmatpush1.bf16.msra.mxu0 %v7135_v43 }
0x1778   :  { %3268 = vmatprep.subr.bf16.mxu0 %v7141_v61 }
0x177b   :  { %3269 = vmatpush1.bf16.msra.mxu0 %v7139_v44 }
0x177c   :  { %6715 = vmatprep.subr.mxu0 %v7310_v22 }
0x17ee   :  { %v3044_v20 = vpop.xlane.xlu0 %3043 }
0x17ef   :  { %v3047_v45 = vmul.f32 0.0078125, %v3044_v20  ;;  %v3125_v20 = vrot.slane %v3079_v17, %v7536_v57 }
0x17f0   :  { %v3046_v51 = vpop.xlane.xlu1 %3045 }
0x17f1   :  { %v8090_v10 = vsub.f32 %v3041_v12, %v3047_v45  ;;  %v3048_v23 = vmul.f32 0.0078125, %v3046_v51  ;;  %v3078_v12 = vld [vmem:[%s8726_s14 + $0x8] sm:$0xff] }
0x17f2   :  { %v3121_v18 = vrot.slane %v3078_v12, %v7536_v57  ;;  %v3341_v12 = vld [vmem:[%s8727_s11 + $0x8] sm:$0xff] }
0x17f3   :  { %v8092_v24 = vsub.f32 %v3042_v16, %v3048_v23  ;;  %v3051_v14 = vmul.f32 %v8090_v10, %v8090_v10  ;;  %v3117_v16 = vrot.slane %v8186_v58, %v7536_v57 }
0x17f5   :  { %3053 = vadd.xlane.f32.xlu1 %v3051_v14  ;;  %v3052_v25 = vmul.f32 %v8092_v24, %v8092_v24 }
0x17f9   :  { %3055 = vadd.xlane.f32.xlu1 %v3052_v25 }
0x1882   :  { %v3054_v9 = vpop.xlane.xlu1 %3053 }
0x1883   :  { %v3057_v15 = vmul.f32 0.0078125, %v3054_v9 }
0x1885   :  { %v3059_v50 = vadd.f32 1e-05, %v3057_v15 }
0x1886   :  { %v3056_v55 = vpop.xlane.xlu1 %3055 }
0x1887   :  { %7259 = vrsqrt.f32 %v3059_v50  ;;  %v3058_v26 = vmul.f32 0.0078125, %v3056_v55 }
0x1889   :  { %v3060_v59 = vadd.f32 1e-05, %v3058_v26 }
0x188b   :  { %7261 = vrsqrt.f32 %v3060_v59 }
0x1891   :  { %v7260_v6 = vpop.eup %7259 }
0x1892   :  { %v3063_v62 = vmul.f32 %v7260_v6, %v8090_v10  ;;  %v3344_v6 = vld [vmem:[%s8727_s11 + $0x20] sm:$0xff] }
0x1894   :  { %v3069_v38 = vmul.f32 %v3068_v63, %v3063_v62  ;;  %v3345_v62 = vld [vmem:[%s8727_s11 + $0x28] sm:$0xff] }
0x1895   :  { %v7262_v13 = vpop.eup %7261 }
0x1896   :  { %v3064_v1 = vmul.f32 %v7262_v13, %v8092_v24  ;;  %v8173_v5 = vadd.f32 %v3074_v2, %v3069_v38  ;;  %v8250_v13 = vpack.c.bf16 %v3345_v62, %v3344_v6 }
0x1898   :  { %v3070_v4 = vmul.f32 %v3068_v63, %v3064_v1  ;;  %v3346_v63 = vld [vmem:[%s8727_s11 + $0x30] sm:$0xff]  ;;  %v3347_v1 = vld [vmem:[%s8727_s11 + $0x38] sm:$0xff] }
0x1899   :  { %v8256_v38 = vpack.c.bf16 %v3347_v1, %v3346_v63 }
0x189a   :  { %v8175_v7 = vadd.f32 %v3074_v2, %v3070_v4 }
0x189c   :  { %v3081_v11 = vpack.c.bf16 %v8175_v7, %v8173_v5 }
0x189e   :  { %3287 = vmatmul.mubr.bf16.vlgmr.msra.gmra.mrb[40].mxu0 %v3081_v11  ;;  %6712 = vmatmul.mubr.bf16.vlgmr.msra.gmra.mrb[36].mxu1 %v3081_v11  ;;  %v3340_v11 = vld [vmem:[%s8727_s11] sm:$0xff] }
0x189f   :  { %6717 = vmatprep.mubr.msk.f32.mxu0 %vm7311_vm1, %v7310_v22  ;;  %6727 = vmatprep.mubr.msk.f32.mxu1 %vm7311_vm1, %v7310_v22  ;;  %v8268_v17 = vpack.c.bf16 %v3341_v12, %v3340_v11 }
0x1971   :  { %v3288_v19 = vpop.f32.mrb[40].mxu0  ;;  %v3331_v33 = vpop.f32.mrb[36].mxu1 }
0x1972   :  { %v3289_v34 = vadd.f32 %v3288_v19, %v3117_v16  ;;  %v3290_v45 = vpop.f32.mrb[41].mxu0  ;;  %v6713_v51 = vpop.f32.mrb[37].mxu1  ;;  %v8213_v29 = vadd.f32 %v3331_v33, %v3125_v20  ;;  %v3342_v19 = vld [vmem:[%s8727_s11 + $0x10] sm:$0xff]  ;;  %v3343_v33 = vld [vmem:[%s8727_s11 + $0x18] sm:$0xff] }
0x1973   :  { %v8198_v10 = vadd.f32 %v3290_v45, %v3121_v18  ;;  %v3292_v23 = vpop.f32.mrb[42].mxu0  ;;  %v3334_v24 = vpop.f32.mrb[38].mxu1 }
0x1974   :  { %v8200_v14 = vadd.f32 %v3292_v23, %v3117_v16  ;;  %v8202_v25 = vadd.f32 %v3334_v24, %v3125_v20  ;;  %v3294_v27 = vpop.f32.mrb[43].mxu0  ;;  %v6714_v28 = vpop.f32.mrb[39].mxu1  ;;  %v8210_v57 = vmul.f32 0.17677669, %v3289_v34  ;;  %v8278_v34 = vpack.c.bf16 %v3343_v33, %v3342_v19 }
0x1975   :  { %v8204_v53 = vadd.f32 %v3294_v27, %v3121_v18  ;;  %3518 = vrot.lane.b32.xlu1 %v8198_v10, %s7312_s25  ;;  %6716 = vmatpush3.xpose.msk.msra.mxu0 %vm447_vm2, %v8198_v10 }
0x1976   :  { %6720 = vmatprep.subr.mxu0 %v7310_v22  ;;  %v8345_v33 = vmul.f32 0.17677669, %v8200_v14  ;;  %v3355_v14 = vld [vmem:[%s8727_s11 + $0x78] sm:$0xff] }
0x1978   :  { %6718 = vmatmul.mubr.msk.f32.vlgmr.msra.gmra.mrb[30].mxu0 %vm447_vm2, %v8210_v57 }
0x1979   :  { %3516 = vrot.lane.b32.xlu1 %v8210_v57, %s7312_s25  ;;  %6721 = vmatpush3.msra.mxu0 %v8213_v29 }
0x197a   :  { %6722 = vmatprep.mubr.msk.f32.mxu0 %vm7311_vm1, %v7310_v22  ;;  %6730 = vmatprep.subr.mxu0 %v7310_v22 }
0x19e7   :  { %v3519_v30 = vpop.permute.xlu1 %3518 }
0x19e8   :  { %6726 = vmatpush3.xpose.msk.msra.mxu1 %vm447_vm2, %v3519_v30 }
0x19e9   :  { %6943 = vmatprep.subr.bf16.mxu1 %v7314_v41 }
0x19eb   :  { %v3517_v31 = vpop.permute.xlu1 %3516 }
0x19ec   :  { %6728 = vmatmul.mubr.msk.f32.vlgmr.msra.gmra.mrb[40].mxu1 %vm447_vm2, %v3517_v31 }
0x19ed   :  { %6743 = vmatprep.mubr.msk.f32.mxu1 %vm7311_vm1, %v7310_v22  ;;  %6945 = vmatpush3.bf16.msra.mxu1 %v8250_v13 }
0x19ee   :  { %6946 = vmatprep.subr.bf16.mxu1 %v7314_v41 }
0x19f1   :  { %6948 = vmatpush3.bf16.msra.mxu1 %v8256_v38 }
0x19f2   :  { %6757 = vmatprep.subr.mxu1 %v7310_v22 }
0x1a4b   :  { %v3428_v32 = vpop.f32.mrb[30].mxu0 }
0x1a4c   :  { %v6719_v35 = vpop.f32.mrb[31].mxu0  ;;  %v3432_v36 = vsel %vm524_vm3, %v3428_v32, -inf }
0x1a4d   :  { %3433 = vmax.xlane.f32.xlu0 %v3432_v36 }
0x1abf   :  { %v3590_v37 = vpop.f32.mrb[40].mxu1 }
0x1ac0   :  { %v6729_v39 = vpop.f32.mrb[41].mxu1  ;;  %v3594_v52 = vsel %vm524_vm3, %v3590_v37, -inf }
0x1ac1   :  { %3595 = vmax.xlane.f32.xlu1 %v3594_v52 }
0x1ada   :  { %v3434_v40 = vpop.xlane.xlu0 %3433 }
0x1adb   :  { %v3435_v42 = vsub.f32 %v3428_v32, %v3434_v40 }
0x1add   :  { %v3436_v43 = vmul.f32 1.442695, %v3435_v42 }
0x1adf   :  { %7263 = vpow2.f32 %v3436_v43 }
0x1ae9   :  { %v7264_v54 = vpop.eup %7263 }
0x1aea   :  { %v3438_v61 = vsel %vm524_vm3, %v7264_v54, 0.0 }
0x1aeb   :  { %3439 = vadd.xlane.f32.xlu0 %v3438_v61 }
0x1b4e   :  { %v3596_v44 = vpop.xlane.xlu1 %3595 }
0x1b4f   :  { %v3597_v46 = vsub.f32 %v3590_v37, %v3596_v44  ;;  %v3348_v44 = vld [vmem:[%s8727_s11 + $0x40] sm:$0xff] }
0x1b51   :  { %v3598_v9 = vmul.f32 1.442695, %v3597_v46 }
0x1b53   :  { %7265 = vpow2.f32 %v3598_v9  ;;  %v3351_v9 = vld [vmem:[%s8727_s11 + $0x58] sm:$0xff] }
0x1b5d   :  { %v7266_v15 = vpop.eup %7265 }
0x1b5e   :  { %v3600_v50 = vsel %vm524_vm3, %v7266_v15, 0.0 }
0x1b5f   :  { %3601 = vadd.xlane.f32.xlu0 %v3600_v50 }
0x1b75   :  { %3606 = vrot.lane.b32.xlu0 %v8213_v29, %s7312_s25 }
0x1b78   :  { %v3440_v55 = vpop.xlane.xlu0 %3439 }
0x1b79   :  { %7267 = vrcp.f32 %v3440_v55  ;;  %3830 = vrot.lane.b32.xlu0 %v8198_v10, %s7313_s26 }
0x1b7d   :  { %3828 = vrot.lane.b32.xlu0 %v8210_v57, %s7313_s26 }
0x1b83   :  { %v7268_v26 = vpop.eup %7267 }
0x1b84   :  { %v3442_v59 = vmul.f32 %v7268_v26, %v7264_v54 }
0x1b86   :  { %6723 = vmatmul.mubr.msk.f32.vlgmr.msra.gmra.mrb[44].mxu0 %vm524_vm3, %v3442_v59 }
0x1b87   :  { %6732 = vmatprep.mubr.msk.f32.mxu0 %vm7311_vm1, %v7310_v22 }
0x1bec   :  { %v3602_v2 = vpop.xlane.xlu0 %3601 }
0x1bed   :  { %7269 = vrcp.f32 %v3602_v2 }
0x1bf0   :  { %v3607_v4 = vpop.permute.xlu0 %3606 }
0x1bf1   :  { %6731 = vmatpush3.msra.mxu0 %v3607_v4 }
0x1bf2   :  { %6949 = vmatprep.subr.bf16.mxu0 %v7314_v41 }
0x1bf4   :  { %v3831_v51 = vpop.permute.xlu0 %3830 }
0x1bf7   :  { %v7270_v16 = vpop.eup %7269 }
0x1bf8   :  { %v3604_v18 = vmul.f32 %v7270_v16, %v7266_v15  ;;  %v3829_v27 = vpop.permute.xlu0 %3828 }
0x1bfa   :  { %6733 = vmatmul.mubr.msk.f32.vlgmr.msra.gmra.mrb[46].mxu0 %vm524_vm3, %v3604_v18 }
0x1bfb   :  { %6951 = vmatpush3.bf16.msra.mxu0 %v8268_v17  ;;  %6754 = vmatprep.mubr.msk.f32.mxu0 %vm7311_vm1, %v7310_v22 }
0x1bfc   :  { %6952 = vmatprep.subr.bf16.mxu0 %v7314_v41 }
0x1bff   :  { %6954 = vmatpush3.bf16.msra.mxu0 %v8278_v34 }
0x1c00   :  { %6762 = vmatprep.subr.mxu0 %v7310_v22 }
0x1c59   :  { %v3512_v20 = vpop.f32.mrb[44].mxu0 }
0x1c5a   :  { %v6724_v45 = vpop.f32.mrb[45].mxu0  ;;  %6755 = vmatmul.mubr.msk.f32.vlgmr.msra.gmra.mrb[48].mxu0 %vm447_vm2, %v3512_v20  ;;  %v3352_v20 = vld [vmem:[%s8727_s11 + $0x60] sm:$0xff] }
0x1c5b   :  { %6764 = vmatprep.mubr.msk.f32.mxu0 %vm7311_vm1, %v7310_v22  ;;  %v3353_v45 = vld [vmem:[%s8727_s11 + $0x68] sm:$0xff] }
0x1ccd   :  { %v3678_v23 = vpop.f32.mrb[46].mxu0 }
0x1cce   :  { %v6734_v24 = vpop.f32.mrb[47].mxu0  ;;  %6744 = vmatmul.mubr.msk.f32.vlgmr.msra.gmra.mrb[42].mxu1 %vm447_vm2, %v3678_v23 }
0x1ccf   :  { %6758 = vmatpush3.xpose.msk.msra.mxu1 %vm447_vm2, %v3831_v51  ;;  %6759 = vmatprep.mubr.msk.f32.mxu1 %vm7311_vm1, %v7310_v22  ;;  %v8358_v51 = vpack.c.bf16 %v3353_v45, %v3352_v20 }
0x1cd0   :  { %6955 = vmatprep.subr.bf16.mxu1 %v7314_v41 }
0x1cd2   :  { %6760 = vmatmul.mubr.msk.f32.vlgmr.msra.gmra.mrb[44].mxu1 %vm447_vm2, %v3829_v27 }
0x1cd3   :  { %6775 = vmatprep.mubr.msk.f32.mxu1 %vm7311_vm1, %v7310_v22 }
0x1d2d   :  { %v3824_v28 = vpop.f32.mrb[48].mxu0 }
0x1d2e   :  { %v6756_v30 = vpop.f32.mrb[49].mxu0 }
0x1da1   :  { %v3751_v31 = vpop.f32.mrb[42].mxu1 }
0x1da2   :  { %v8296_v32 = vadd.f32 %v3824_v28, %v3751_v31  ;;  %v6745_v35 = vpop.f32.mrb[43].mxu1 }
0x1da5   :  { %v3902_v36 = vpop.f32.mrb[44].mxu1 }
0x1da6   :  { %v6761_v37 = vpop.f32.mrb[45].mxu1  ;;  %v3906_v39 = vsel %vm524_vm3, %v3902_v36, -inf }
0x1da7   :  { %3907 = vmax.xlane.f32.xlu1 %v3906_v39 }
0x1db8   :  { %3917 = vrot.lane.b32.xlu1 %v8213_v29, %s7313_s26 }
0x1dbc   :  { %4069 = vrot.lane.b32.xlu1 %v8198_v10, %s7315_s2  ;;  %v3349_v10 = vld [vmem:[%s8727_s11 + $0x48] sm:$0xff] }
0x1dbd   :  { %v8316_v46 = vpack.c.bf16 %v3349_v10, %v3348_v44 }
0x1dbf   :  { %6957 = vmatpush3.bf16.msra.mxu1 %v8316_v46 }
0x1dc0   :  { %4067 = vrot.lane.b32.xlu1 %v8210_v57, %s7315_s2  ;;  %v3350_v57 = vld [vmem:[%s8727_s11 + $0x50] sm:$0xff]  ;;  %6958 = vmatprep.subr.bf16.mxu1 %v7314_v41 }
0x1dc1   :  { %v8322_v15 = vpack.c.bf16 %v3351_v9, %v3350_v57 }
0x1dc3   :  { %6960 = vmatpush3.bf16.msra.mxu1 %v8322_v15 }
0x1dc4   :  { %6961 = vmatprep.subr.bf16.mxu1 %v7314_v41 }
0x1e34   :  { %v3908_v52 = vpop.xlane.xlu1 %3907 }
0x1e35   :  { %v3909_v40 = vsub.f32 %v3902_v36, %v3908_v52 }
0x1e37   :  { %v3910_v42 = vmul.f32 1.442695, %v3909_v40 }
0x1e38   :  { %v3918_v43 = vpop.permute.xlu1 %3917 }
0x1e39   :  { %7271 = vpow2.f32 %v3910_v42  ;;  %6763 = vmatpush3.msra.mxu0 %v3918_v43 }
0x1e3a   :  { %6778 = vmatprep.subr.mxu0 %v7310_v22 }
0x1e3c   :  { %v4070_v26 = vpop.permute.xlu1 %4069 }
0x1e40   :  { %v4068_v6 = vpop.permute.xlu1 %4067 }
0x1e43   :  { %v7272_v54 = vpop.eup %7271 }
0x1e44   :  { %v3912_v61 = vsel %vm524_vm3, %v7272_v54, 0.0 }
0x1e45   :  { %3913 = vadd.xlane.f32.xlu0 %v3912_v61 }
0x1ed2   :  { %v3914_v50 = vpop.xlane.xlu0 %3913 }
0x1ed3   :  { %7273 = vrcp.f32 %v3914_v50 }
0x1edd   :  { %v7274_v55 = vpop.eup %7273 }
0x1ede   :  { %v3916_v59 = vmul.f32 %v7274_v55, %v7272_v54 }
0x1ee0   :  { %6765 = vmatmul.mubr.msk.f32.vlgmr.msra.gmra.mrb[50].mxu0 %vm524_vm3, %v3916_v59 }
0x1ee1   :  { %6779 = vmatpush3.xpose.msk.msra.mxu0 %vm447_vm2, %v4070_v26  ;;  %6780 = vmatprep.mubr.msk.f32.mxu0 %vm7311_vm1, %v7310_v22 }
0x1ee2   :  { %6783 = vmatprep.subr.mxu0 %v7310_v22 }
0x1ee4   :  { %6781 = vmatmul.mubr.msk.f32.vlgmr.msra.gmra.mrb[52].mxu0 %vm447_vm2, %v4068_v6 }
0x1ee5   :  { %6785 = vmatprep.mubr.msk.f32.mxu0 %vm7311_vm1, %v7310_v22 }
0x1fb3   :  { %v3989_v62 = vpop.f32.mrb[50].mxu0 }
0x1fb4   :  { %v6766_v63 = vpop.f32.mrb[51].mxu0  ;;  %6776 = vmatmul.mubr.msk.f32.vlgmr.msra.gmra.mrb[46].mxu1 %vm447_vm2, %v3989_v62 }
0x1fb5   :  { %6796 = vmatprep.mubr.msk.f32.mxu1 %vm7311_vm1, %v7310_v22  ;;  %6963 = vmatpush3.bf16.msra.mxu1 %v8358_v51 }
0x1fb6   :  { %6964 = vmatprep.subr.bf16.mxu1 %v7314_v41 }
0x1fb7   :  { %v4141_v1 = vpop.f32.mrb[52].mxu0 }
0x1fb8   :  { %v6782_v2 = vpop.f32.mrb[53].mxu0  ;;  %v4145_v4 = vsel %vm524_vm3, %v4141_v1, -inf }
0x1fb9   :  { %4146 = vmax.xlane.f32.xlu1 %v4145_v4 }
0x2046   :  { %v4147_v11 = vpop.xlane.xlu1 %4146 }
0x2047   :  { %v4148_v12 = vsub.f32 %v4141_v1, %v4147_v11 }
0x2049   :  { %v4149_v16 = vmul.f32 1.442695, %v4148_v12 }
0x204b   :  { %7275 = vpow2.f32 %v4149_v16 }
0x2055   :  { %v7276_v18 = vpop.eup %7275 }
0x2056   :  { %v4151_v19 = vsel %vm524_vm3, %v7276_v18, 0.0 }
0x2057   :  { %4152 = vadd.xlane.f32.xlu0 %v4151_v19 }
0x206d   :  { %4156 = vrot.lane.b32.xlu0 %v8213_v29, %s7315_s2  ;;  %v3354_v29 = vld [vmem:[%s8727_s11 + $0x70] sm:$0xff] }
0x206e   :  { %v8364_v23 = vpack.c.bf16 %v3355_v14, %v3354_v29 }
0x2070   :  { %6966 = vmatpush3.bf16.msra.mxu1 %v8364_v23 }
0x2071   :  { %4468 = vrot.lane.b32.xlu0 %v8204_v53, %s7312_s25  ;;  %6809 = vmatprep.subr.mxu1 %v7310_v22 }
0x2075   :  { %4466 = vrot.lane.b32.xlu0 %v8345_v33, %s7312_s25 }
0x2087   :  { %v4062_v24 = vpop.f32.mrb[46].mxu1 }
0x2088   :  { %v4066_v27 = vadd.f32 %v4062_v24, %v8296_v32  ;;  %v6777_v28 = vpop.f32.mrb[47].mxu1 }
0x20e4   :  { %v4153_v30 = vpop.xlane.xlu0 %4152 }
0x20e5   :  { %7277 = vrcp.f32 %v4153_v30 }
0x20e8   :  { %v4157_v31 = vpop.permute.xlu0 %4156 }
0x20e9   :  { %6784 = vmatpush3.msra.mxu0 %v4157_v31 }
0x20ea   :  { %6799 = vmatprep.subr.mxu0 %v7310_v22 }
0x20ec   :  { %v4469_v32 = vpop.permute.xlu0 %4468 }
0x20ef   :  { %v7278_v35 = vpop.eup %7277 }
0x20f0   :  { %v4155_v36 = vmul.f32 %v7278_v35, %v7276_v18  ;;  %v4467_v52 = vpop.permute.xlu0 %4466 }
0x20f2   :  { %6786 = vmatmul.mubr.msk.f32.vlgmr.msra.gmra.mrb[54].mxu0 %vm524_vm3, %v4155_v36 }
0x20f3   :  { %6800 = vmatpush3.xpose.msk.msra.mxu0 %vm447_vm2, %v8204_v53  ;;  %6801 = vmatprep.mubr.msk.f32.mxu0 %vm7311_vm1, %v7310_v22 }
0x20f4   :  { %6804 = vmatprep.subr.mxu0 %v7310_v22 }
0x20f6   :  { %6802 = vmatmul.mubr.msk.f32.vlgmr.msra.gmra.mrb[56].mxu0 %vm447_vm2, %v8345_v33 }
0x20f7   :  { %6805 = vmatpush3.msra.mxu0 %v8202_v25  ;;  %6806 = vmatprep.mubr.msk.f32.mxu0 %vm7311_vm1, %v7310_v22 }
0x20f8   :  { %6814 = vmatprep.subr.mxu0 %v7310_v22 }
0x21c5   :  { %v4228_v37 = vpop.f32.mrb[54].mxu0 }
0x21c6   :  { %v6787_v39 = vpop.f32.mrb[55].mxu0  ;;  %6797 = vmatmul.mubr.msk.f32.vlgmr.msra.gmra.mrb[48].mxu1 %vm447_vm2, %v4228_v37 }
0x21c7   :  { %6810 = vmatpush3.xpose.msk.msra.mxu1 %vm447_vm2, %v4469_v32  ;;  %6811 = vmatprep.mubr.msk.f32.mxu1 %vm7311_vm1, %v7310_v22 }
0x21c8   :  { %6967 = vmatprep.subr.bf16.mxu1 %v7314_v41 }
0x21c9   :  { %v4378_v40 = vpop.f32.mrb[56].mxu0 }
0x21ca   :  { %v6803_v42 = vpop.f32.mrb[57].mxu0  ;;  %6812 = vmatmul.mubr.msk.f32.vlgmr.msra.gmra.mrb[50].mxu1 %vm447_vm2, %v4467_v52  ;;  %v4382_v43 = vsel %vm524_vm3, %v4378_v40, -inf }
0x21cb   :  { %4383 = vmax.xlane.f32.xlu1 %v4382_v43  ;;  %6969 = vmatpush3.bf16.msra.mxu1 %v8250_v13 }
0x21cc   :  { %6970 = vmatprep.subr.bf16.mxu1 %v7314_v41  ;;  %6827 = vmatprep.mubr.msk.f32.mxu1 %vm7311_vm1, %v7310_v22 }
0x21cf   :  { %6972 = vmatpush3.bf16.msra.mxu1 %v8256_v38 }
0x21d0   :  { %6841 = vmatprep.subr.mxu1 %v7310_v22 }
0x2258   :  { %v4384_v54 = vpop.xlane.xlu1 %4383 }
0x2259   :  { %v4385_v61 = vsub.f32 %v4378_v40, %v4384_v54 }
0x225b   :  { %v4386_v44 = vmul.f32 1.442695, %v4385_v61 }
0x225d   :  { %7279 = vpow2.f32 %v4386_v44 }
0x2267   :  { %v7280_v10 = vpop.eup %7279 }
0x2268   :  { %v4388_v57 = vsel %vm524_vm3, %v7280_v10, 0.0 }
0x2269   :  { %4389 = vadd.xlane.f32.xlu1 %v4388_v57 }
0x2299   :  { %v4301_v9 = vpop.f32.mrb[48].mxu1 }
0x229a   :  { %v8397_v50 = vadd.f32 %v4301_v9, %v4066_v27  ;;  %v6798_v13 = vpop.f32.mrb[49].mxu1 }
0x229d   :  { %v4540_v55 = vpop.f32.mrb[50].mxu1 }
0x229e   :  { %v6813_v26 = vpop.f32.mrb[51].mxu1  ;;  %v4544_v59 = vsel %vm524_vm3, %v4540_v55, -inf }
0x229f   :  { %4545 = vmax.xlane.f32.xlu0 %v4544_v59 }
0x22f6   :  { %v4390_v38 = vpop.xlane.xlu1 %4389 }
0x22f7   :  { %7281 = vrcp.f32 %v4390_v38 }
0x2301   :  { %v7282_v6 = vpop.eup %7281 }
0x2302   :  { %v4392_v62 = vmul.f32 %v7282_v6, %v7280_v10 }
0x2304   :  { %6807 = vmatmul.mubr.msk.f32.vlgmr.msra.gmra.mrb[58].mxu0 %vm524_vm3, %v4392_v62 }
0x2305   :  { %6816 = vmatprep.mubr.msk.f32.mxu0 %vm7311_vm1, %v7310_v22 }
0x232c   :  { %v4546_v63 = vpop.xlane.xlu0 %4545 }
0x232d   :  { %v4547_v1 = vsub.f32 %v4540_v55, %v4546_v63 }
0x232f   :  { %v4548_v2 = vmul.f32 1.442695, %v4547_v1 }
0x2331   :  { %7283 = vpow2.f32 %v4548_v2 }
0x233b   :  { %v7284_v4 = vpop.eup %7283 }
0x233c   :  { %v4550_v11 = vsel %vm524_vm3, %v7284_v4, 0.0 }
0x233d   :  { %4551 = vadd.xlane.f32.xlu1 %v4550_v11 }
0x234e   :  { %4556 = vrot.lane.b32.xlu1 %v8202_v25, %s7312_s25 }
0x2352   :  { %4780 = vrot.lane.b32.xlu1 %v8204_v53, %s7313_s26 }
0x2356   :  { %4778 = vrot.lane.b32.xlu1 %v8345_v33, %s7313_s26 }
0x23ca   :  { %v4552_v12 = vpop.xlane.xlu1 %4551 }
0x23cb   :  { %7285 = vrcp.f32 %v4552_v12 }
0x23ce   :  { %v4557_v16 = vpop.permute.xlu1 %4556 }
0x23cf   :  { %6815 = vmatpush3.msra.mxu0 %v4557_v16 }
0x23d0   :  { %6973 = vmatprep.subr.bf16.mxu0 %v7314_v41 }
0x23d2   :  { %v4781_v29 = vpop.permute.xlu1 %4780 }
0x23d5   :  { %v7286_v18 = vpop.eup %7285 }
0x23d6   :  { %v4554_v19 = vmul.f32 %v7286_v18, %v7284_v4 }
0x23d7   :  { %v4462_v20 = vpop.f32.mrb[58].mxu0 }
0x23d8   :  { %v6808_v45 = vpop.f32.mrb[59].mxu0  ;;  %6817 = vmatmul.mubr.msk.f32.vlgmr.msra.gmra.mrb[60].mxu0 %vm524_vm3, %v4554_v19 }
0x23d9   :  { %6975 = vmatpush3.bf16.msra.mxu0 %v8268_v17  ;;  %6838 = vmatprep.mubr.msk.f32.mxu0 %vm7311_vm1, %v7310_v22  ;;  %v4779_v17 = vpop.permute.xlu1 %4778  ;;  %v7143_v45 = vld [vmem:[%s8728_s12] ss:$16 sps:$4 sm:$0xff]  }
0x23da   :  { %6976 = vmatprep.subr.bf16.mxu0 %v7314_v41 }
0x23dd   :  { %6978 = vmatpush3.bf16.msra.mxu0 %v8278_v34 }
0x23de   :  { %6846 = vmatprep.subr.mxu0 %v7310_v22 }
0x23e0   :  { %6839 = vmatmul.mubr.msk.f32.vlgmr.msra.gmra.mrb[62].mxu0 %vm447_vm2, %v4462_v20 }
0x23e1   :  { %6848 = vmatprep.mubr.msk.f32.mxu0 %vm7311_vm1, %v7310_v22 }
0x24ab   :  { %v4628_v14 = vpop.f32.mrb[60].mxu0 }
0x24ac   :  { %v6818_v24 = vpop.f32.mrb[61].mxu0  ;;  %6828 = vmatmul.mubr.msk.f32.vlgmr.msra.gmra.mrb[52].mxu1 %vm447_vm2, %v4628_v14  ;;  %v7149_v14 = vld [vmem:[%s8728_s12 + $0x20] ss:$16 sps:$4 sm:$0xff]  }
0x24ad   :  { %6842 = vmatpush3.xpose.msk.msra.mxu1 %vm447_vm2, %v4781_v29  ;;  %6843 = vmatprep.mubr.msk.f32.mxu1 %vm7311_vm1, %v7310_v22  ;;  %v7146_v29 = vld [vmem:[%s8728_s12 + $0x8] ss:$16 sps:$4 sm:$0xff]   ;;  %v7151_v24 = vld [vmem:[%s8728_s12 + $0x24] ss:$16 sps:$4 sm:$0xff]  }
0x24ae   :  { %6979 = vmatprep.subr.bf16.mxu1 %v7314_v41 }
0x24b0   :  { %6844 = vmatmul.mubr.msk.f32.vlgmr.msra.gmra.mrb[54].mxu1 %vm447_vm2, %v4779_v17  ;;  %v7152_v17 = vld [vmem:[%s8728_s12 + $0x28] ss:$16 sps:$4 sm:$0xff]  }
0x24b1   :  { %6981 = vmatpush3.bf16.msra.mxu1 %v8316_v46  ;;  %6859 = vmatprep.mubr.msk.f32.mxu1 %vm7311_vm1, %v7310_v22 }
0x24b2   :  { %6982 = vmatprep.subr.bf16.mxu1 %v7314_v41 }
0x24b3   :  { %v4774_v34 = vpop.f32.mrb[62].mxu0 }
0x24b4   :  { %v6840_v27 = vpop.f32.mrb[63].mxu0 }
0x24b5   :  { %6984 = vmatpush3.bf16.msra.mxu1 %v8322_v15  ;;  %v7155_v27 = vld [vmem:[%s8728_s12 + $0x40] ss:$16 sps:$4 sm:$0xff]  }
0x24b6   :  { %6985 = vmatprep.subr.bf16.mxu1 %v7314_v41 }
0x257f   :  { %v4701_v28 = vpop.f32.mrb[52].mxu1 }
0x2580   :  { %v4775_v30 = vadd.f32 %v4774_v34, %v4701_v28  ;;  %v6829_v31 = vpop.f32.mrb[53].mxu1  ;;  %v7154_v34 = vld [vmem:[%s8728_s12 + $0x2c] ss:$16 sps:$4 sm:$0xff]   ;;  %v7157_v28 = vld [vmem:[%s8728_s12 + $0x44] ss:$16 sps:$4 sm:$0xff]  }
0x2581   :  { %v7160_v31 = vld [vmem:[%s8728_s12 + $0x4c] ss:$16 sps:$4 sm:$0xff]  }
0x2583   :  { %v4852_v35 = vpop.f32.mrb[54].mxu1 }
0x2584   :  { %v6845_v36 = vpop.f32.mrb[55].mxu1  ;;  %v4856_v32 = vsel %vm524_vm3, %v4852_v35, -inf }
0x2585   :  { %4857 = vmax.xlane.f32.xlu0 %v4856_v32 }
0x259b   :  { %4867 = vrot.lane.b32.xlu0 %v8202_v25, %s7313_s26 }
0x259f   :  { %5019 = vrot.lane.b32.xlu0 %v8204_v53, %s7315_s2 }
0x25a3   :  { %5017 = vrot.lane.b32.xlu0 %v8345_v33, %s7315_s2 }
0x2612   :  { %v4858_v46 = vpop.xlane.xlu0 %4857 }
0x2613   :  { %v4859_v15 = vsub.f32 %v4852_v35, %v4858_v46 }
0x2615   :  { %v4860_v37 = vmul.f32 1.442695, %v4859_v15  ;;  %v7163_v15 = vld [vmem:[%s8728_s12 + $0x64] ss:$16 sps:$4 sm:$0xff]  }
0x2616   :  { %v4868_v39 = vpop.permute.xlu0 %4867 }
0x2617   :  { %7287 = vpow2.f32 %v4860_v37  ;;  %6847 = vmatpush3.msra.mxu0 %v4868_v39  ;;  %v7166_v37 = vld [vmem:[%s8728_s12 + $0x6c] ss:$16 sps:$4 sm:$0xff]   ;;  %v7161_v39 = vld [vmem:[%s8728_s12 + $0x60] ss:$16 sps:$4 sm:$0xff]  }
0x2618   :  { %6862 = vmatprep.subr.mxu0 %v7310_v22 }
0x261a   :  { %v5020_v54 = vpop.permute.xlu0 %5019 }
0x261e   :  { %v5018_v33 = vpop.permute.xlu0 %5017 }
0x2621   :  { %v7288_v52 = vpop.eup %7287 }
0x2622   :  { %v4862_v40 = vsel %vm524_vm3, %v7288_v52, 0.0 }
0x2623   :  { %4863 = vadd.xlane.f32.xlu1 %v4862_v40  ;;  %v7169_v40 = vld [vmem:[%s8728_s12 + $0x84] ss:$16 sps:$4 sm:$0xff]  }
0x26b0   :  { %v4864_v42 = vpop.xlane.xlu1 %4863 }
0x26b1   :  { %7289 = vrcp.f32 %v4864_v42  ;;  %v7172_v42 = vld [vmem:[%s8728_s12 + $0x8c] ss:$16 sps:$4 sm:$0xff]  }
0x26bb   :  { %v7290_v43 = vpop.eup %7289 }
0x26bc   :  { %v4866_v53 = vmul.f32 %v7290_v43, %v7288_v52  ;;  %v7164_v52 = vld [vmem:[%s8728_s12 + $0x68] ss:$16 sps:$4 sm:$0xff]   ;;  %v7167_v43 = vld [vmem:[%s8728_s12 + $0x80] ss:$16 sps:$4 sm:$0xff]  }
0x26be   :  { %6849 = vmatmul.mubr.msk.f32.vlgmr.msra.gmra.mrb[64].mxu0 %vm524_vm3, %v4866_v53  ;;  %v7175_v53 = vld [vmem:[%s8728_s12 + $0xa4] ss:$16 sps:$4 sm:$0xff]  }
0x26bf   :  { %6863 = vmatpush3.xpose.msk.msra.mxu0 %vm447_vm2, %v5020_v54  ;;  %6864 = vmatprep.mubr.msk.f32.mxu0 %vm7311_vm1, %v7310_v22  ;;  %v7170_v54 = vld [vmem:[%s8728_s12 + $0x88] ss:$16 sps:$4 sm:$0xff]  }
0x26c0   :  { %6867 = vmatprep.subr.mxu0 %v7310_v22 }
0x26c2   :  { %6865 = vmatmul.mubr.msk.f32.vlgmr.msra.gmra.mrb[66].mxu0 %vm447_vm2, %v5018_v33  ;;  %v7178_v33 = vld [vmem:[%s8728_s12 + $0xac] ss:$16 sps:$4 sm:$0xff]  }
0x26c3   :  { %6869 = vmatprep.mubr.msk.f32.mxu0 %vm7311_vm1, %v7310_v22 }
0x2791   :  { %v4939_v61 = vpop.f32.mrb[64].mxu0 }
0x2792   :  { %v6850_v44 = vpop.f32.mrb[65].mxu0  ;;  %6860 = vmatmul.mubr.msk.f32.vlgmr.msra.gmra.mrb[56].mxu1 %vm447_vm2, %v4939_v61  ;;  %v7173_v61 = vld [vmem:[%s8728_s12 + $0xa0] ss:$16 sps:$4 sm:$0xff]  }
0x2793   :  { %6987 = vmatpush3.bf16.msra.mxu1 %v8358_v51  ;;  %6880 = vmatprep.mubr.msk.f32.mxu1 %vm7311_vm1, %v7310_v22  ;;  %v5259_v22 = vrot.slane %v8186_v58, %v2351_v49  ;;  %v7176_v44 = vld [vmem:[%s8728_s12 + $0xa8] ss:$16 sps:$4 sm:$0xff]  }
0x2794   :  { %6988 = vmatprep.subr.bf16.mxu1 %v7314_v41 }
0x2795   :  { %v5091_v10 = vpop.f32.mrb[66].mxu0  ;;  %v5260_v41 = vadd.f32 %v5259_v22, %v8397_v50 }
0x2796   :  { %v6866_v57 = vpop.f32.mrb[67].mxu0  ;;  %v5095_v9 = vsel %vm524_vm3, %v5091_v10, -inf }
0x2797   :  { %5096 = vmax.xlane.f32.xlu0 %v5095_v9  ;;  %6990 = vmatpush3.bf16.msra.mxu1 %v8364_v23  ;;  %v5262_v62 = vadd.f32 %v5260_v41, %v8173_v5  ;;  %v7184_v57 = vld [vmem:[%s8728_s12 + $0xcc] ss:$16 sps:$4 sm:$0xff]   ;;  %v7179_v9 = vld [vmem:[%s8728_s12 + $0xc0] ss:$16 sps:$4 sm:$0xff]  }
0x2798   :  { %v7192_v41 = vld [vmem:[%s8729_s13 + $0xc0] sm:$0xff]  }
0x2824   :  { %v5097_v13 = vpop.xlane.xlu0 %5096 }
0x2825   :  { %v5098_v55 = vsub.f32 %v5091_v10, %v5097_v13  ;;  %v7181_v10 = vld [vmem:[%s8728_s12 + $0xc4] ss:$16 sps:$4 sm:$0xff]   ;;  %v7182_v13 = vld [vmem:[%s8728_s12 + $0xc8] ss:$16 sps:$4 sm:$0xff]  }
0x2827   :  { %v5099_v26 = vmul.f32 1.442695, %v5098_v55  ;;  %v7187_v55 = vld [vmem:[%s8728_s12 + $0xe4] ss:$16 sps:$4 sm:$0xff]  }
0x2829   :  { %7291 = vpow2.f32 %v5099_v26  ;;  %v7190_v26 = vld [vmem:[%s8728_s12 + $0xec] ss:$16 sps:$4 sm:$0xff]  }
0x2833   :  { %v7292_v59 = vpop.eup %7291 }
0x2834   :  { %v5101_v38 = vsel %vm524_vm3, %v7292_v59, 0.0 }
0x2835   :  { %5102 = vadd.xlane.f32.xlu1 %v5101_v38  ;;  %v7188_v38 = vld [vmem:[%s8728_s12 + $0xe8] ss:$16 sps:$4 sm:$0xff]  }
0x2846   :  { %5106 = vrot.lane.b32.xlu1 %v8202_v25, %s7315_s2 }
0x2865   :  { %v5012_v51 = vpop.f32.mrb[56].mxu1 }
0x2866   :  { %v5016_v6 = vadd.f32 %v5012_v51, %v4775_v30  ;;  %v6861_v23 = vpop.f32.mrb[57].mxu1  ;;  %v7158_v30 = vld [vmem:[%s8728_s12 + $0x48] ss:$16 sps:$4 sm:$0xff]  }
0x286a   :  { %5264 = vadd.xlane.f32.xlu1 %v5262_v62 }
0x28c2   :  { %v5103_v63 = vpop.xlane.xlu1 %5102 }
0x28c3   :  { %7293 = vrcp.f32 %v5103_v63 }
0x28c6   :  { %v5107_v1 = vpop.permute.xlu1 %5106 }
0x28c7   :  { %6868 = vmatpush3.msra.mxu0 %v5107_v1 }
0x28cd   :  { %v7294_v2 = vpop.eup %7293 }
0x28ce   :  { %v5105_v4 = vmul.f32 %v7294_v2, %v7292_v59  ;;  %v7185_v59 = vld [vmem:[%s8728_s12 + $0xe0] ss:$16 sps:$4 sm:$0xff]  }
0x28d0   :  { %6870 = vmatmul.mubr.msk.f32.vlgmr.msra.gmra.mrb[68].mxu0 %vm524_vm3, %v5105_v4 }
0x28d1   :  { %5539 = vmatprep.mubr.bf16.mxu0 %v7309_v3 }
0x28f7   :  { %v5265_v58 = vpop.xlane.xlu1 %5264 }
0x28f8   :  { %v5268_v5 = vmul.f32 0.0078125, %v5265_v58 }
0x28fa   :  { %v8469_v18 = vsub.f32 %v5262_v62, %v5268_v5 }
0x28fc   :  { %v5272_v20 = vmul.f32 %v8469_v18, %v8469_v18 }
0x29a3   :  { %v5178_v25 = vpop.f32.mrb[68].mxu0 }
0x29a4   :  { %v6871_v49 = vpop.f32.mrb[69].mxu0  ;;  %6881 = vmatmul.mubr.msk.f32.vlgmr.msra.gmra.mrb[58].mxu1 %vm447_vm2, %v5178_v25  ;;  %v8580_v25 = vld [vmem:[%s8726_s14] sm:$0xff] }
0x29a5   :  { %5582 = vmatprep.mubr.bf16.mxu1 %v7309_v3  ;;  %v7145_v3 = vld [vmem:[%s8728_s12 + $0x4] ss:$16 sps:$4 sm:$0xff]   ;;  %v5289_v49 = vrot.slane %v8580_v25, %v2382_v47 }
0x29a6   :  { %5507 = vmatprep.subr.bf16.mxu0 %v7145_v3  ;;  %v7194_v47 = vld [vmem:[%s8729_s13 + $0x80] sm:$0xff]   ;;  %v7197_v3 = vld [vmem:[%s8729_s13 + $0x8] sm:$0xff]  }
0x29a7   :  { %5508 = vmatpush1.bf16.msra.mxu0 %v7143_v45  ;;  %v7196_v45 = vld [vmem:[%s8729_s13 + $0xc8] sm:$0xff]  }
0x29a8   :  { %5509 = vmatprep.subr.bf16.mxu0 %v7151_v24  ;;  %v7201_v24 = vld [vmem:[%s8729_s13 + $0x10] sm:$0xff]  }
0x29ab   :  { %5510 = vmatpush1.bf16.msra.mxu0 %v7149_v14  ;;  %v7200_v14 = vld [vmem:[%s8729_s13 + $0xd0] sm:$0xff]  }
0x29ac   :  { %5511 = vmatprep.subr.bf16.mxu0 %v7157_v28  ;;  %v7205_v28 = vld [vmem:[%s8729_s13 + $0x18] sm:$0xff]  }
0x29af   :  { %5512 = vmatpush1.bf16.msra.mxu0 %v7155_v27  ;;  %v7204_v27 = vld [vmem:[%s8729_s13 + $0xd8] sm:$0xff]  }
0x29b0   :  { %5513 = vmatprep.subr.bf16.mxu0 %v7163_v15  ;;  %v7212_v15 = vld [vmem:[%s8729_s13 + $0xe8] sm:$0xff]  }
0x29b3   :  { %5514 = vmatpush1.bf16.msra.mxu0 %v7161_v39  ;;  %v7214_v39 = vld [vmem:[%s8729_s13 + $0xa8] sm:$0xff]  }
0x29b4   :  { %5515 = vmatprep.subr.bf16.mxu0 %v7169_v40  ;;  %v7216_v40 = vld [vmem:[%s8729_s13 + $0xf0] sm:$0xff]  }
0x29b7   :  { %5516 = vmatpush1.bf16.msra.mxu0 %v7167_v43  ;;  %v7218_v43 = vld [vmem:[%s8729_s13 + $0xb0] sm:$0xff]  }
0x29b8   :  { %5517 = vmatprep.subr.bf16.mxu0 %v7175_v53  ;;  %v7220_v53 = vld [vmem:[%s8729_s13 + $0xf8] sm:$0xff]  }
0x29bb   :  { %5518 = vmatpush1.bf16.msra.mxu0 %v7173_v61  ;;  %v7222_v61 = vld [vmem:[%s8729_s13 + $0xb8] sm:$0xff]  }
0x29bc   :  { %5519 = vmatprep.subr.bf16.mxu0 %v7181_v10  ;;  %v5334_v10 = vrot.slane %v8580_v25, %v8049_v8 }
0x29bf   :  { %5520 = vmatpush1.bf16.msra.mxu0 %v7179_v9 }
0x29c0   :  { %5521 = vmatprep.subr.bf16.mxu0 %v7187_v55 }
0x29c3   :  { %5522 = vmatpush1.bf16.msra.mxu0 %v7185_v59 }
0x2a77   :  { %v5251_v50 = vpop.f32.mrb[58].mxu1 }
0x2a78   :  { %v5255_v11 = vadd.f32 %v5251_v50, %v5016_v6  ;;  %v6882_v12 = vpop.f32.mrb[59].mxu1 }
0x2a7a   :  { %v5261_v16 = vadd.f32 %v5259_v22, %v5255_v11  ;;  %v7191_v22 = vld [vmem:[%s8729_s13 + $0x40] sm:$0xff]   ;;  %v5295_v11 = vrot.slane %v8580_v25, %v2388_v21  ;;  %v7195_v21 = vld [vmem:[%s8729_s13 + $0x48] sm:$0xff]  }
0x2a7b   :  { %6448 = vmatprep.subr.bf16.mxu0 %v7191_v22 }
0x2a7c   :  { %v5263_v19 = vadd.f32 %v5261_v16, %v8175_v7  ;;  %v7148_v7 = vld [vmem:[%s8728_s12 + $0xc] ss:$16 sps:$4 sm:$0xff]  }
0x2a7d   :  { %5550 = vmatprep.subr.bf16.mxu1 %v7148_v7  ;;  %v7199_v7 = vld [vmem:[%s8729_s13 + $0x50] sm:$0xff]  }
0x2a7e   :  { %5266 = vadd.xlane.f32.xlu0 %v5263_v19  ;;  %5551 = vmatpush1.bf16.msra.mxu1 %v7146_v29  ;;  %v7198_v29 = vld [vmem:[%s8729_s13 + $0x88] sm:$0xff]  }
0x2a7f   :  { %5552 = vmatprep.subr.bf16.mxu1 %v7154_v34  ;;  %v7203_v34 = vld [vmem:[%s8729_s13 + $0x58] sm:$0xff]  }
0x2a82   :  { %5274 = vadd.xlane.f32.xlu0 %v5272_v20  ;;  %5553 = vmatpush1.bf16.msra.mxu1 %v7152_v17  ;;  %v7202_v17 = vld [vmem:[%s8729_s13 + $0x90] sm:$0xff]  }
0x2a83   :  { %5554 = vmatprep.subr.bf16.mxu1 %v7160_v31  ;;  %v7207_v31 = vld [vmem:[%s8729_s13 + $0x60] sm:$0xff]  }
0x2a86   :  { %5555 = vmatpush1.bf16.msra.mxu1 %v7158_v30  ;;  %v7206_v30 = vld [vmem:[%s8729_s13 + $0x98] sm:$0xff]  }
0x2a87   :  { %5556 = vmatprep.subr.bf16.mxu1 %v7166_v37  ;;  %v7213_v37 = vld [vmem:[%s8729_s13 + $0x28] sm:$0xff]  }
0x2a8a   :  { %5557 = vmatpush1.bf16.msra.mxu1 %v7164_v52  ;;  %v7215_v52 = vld [vmem:[%s8729_s13 + $0x70] sm:$0xff]  }
0x2a8b   :  { %5558 = vmatprep.subr.bf16.mxu1 %v7172_v42  ;;  %v7217_v42 = vld [vmem:[%s8729_s13 + $0x30] sm:$0xff]  }
0x2a8e   :  { %5559 = vmatpush1.bf16.msra.mxu1 %v7170_v54  ;;  %v7219_v54 = vld [vmem:[%s8729_s13 + $0x78] sm:$0xff]  }
0x2a8f   :  { %5560 = vmatprep.subr.bf16.mxu1 %v7178_v33  ;;  %v7221_v33 = vld [vmem:[%s8729_s13 + $0x38] sm:$0xff]  }
0x2a92   :  { %5561 = vmatpush1.bf16.msra.mxu1 %v7176_v44  ;;  %v3080_v44 = vld [vmem:[%s8726_s14 + $0x18] sm:$0xff] }
0x2a93   :  { %5562 = vmatprep.subr.bf16.mxu1 %v7184_v57  ;;  %v7307_v57 = vld [vmem:[%s8726_s14 + $0x10] sm:$0xff] }
0x2a94   :  { %v5342_v9 = vrot.slane %v7307_v57, %v8049_v8 }
0x2a96   :  { %5563 = vmatpush1.bf16.msra.mxu1 %v7182_v13  ;;  %v7308_v13 = vld [vmem:[%s8726_s14 + $0x8] sm:$0xff] }
0x2a97   :  { %5564 = vmatprep.subr.bf16.mxu1 %v7190_v26  ;;  %v5338_v55 = vrot.slane %v7308_v13, %v8049_v8  ;;  %v5346_v26 = vrot.slane %v3080_v44, %v8049_v8 }
0x2a9a   :  { %5565 = vmatpush1.bf16.msra.mxu1 %v7188_v38 }
0x2a9b   :  { %6470 = vmatprep.subr.bf16.mxu1 %v7192_v41 }
0x2b0b   :  { %v5267_v35 = vpop.xlane.xlu0 %5266 }
0x2b0c   :  { %v5269_v36 = vmul.f32 0.0078125, %v5267_v35  ;;  %v7208_v35 = vld [vmem:[%s8729_s13 + $0xe0] sm:$0xff]  }
0x2b0e   :  { %v5271_v32 = vsub.f32 %v5263_v19, %v5269_v36  ;;  %v7193_v19 = vld [vmem:[%s8729_s13] sm:$0xff]  }
0x2b0f   :  { %v5275_v51 = vpop.xlane.xlu0 %5274  ;;  %v7209_v36 = vld [vmem:[%s8729_s13 + $0x20] sm:$0xff]  }
0x2b10   :  { %v5273_v46 = vmul.f32 %v5271_v32, %v5271_v32  ;;  %v5278_v6 = vmul.f32 0.0078125, %v5275_v51 }
0x2b12   :  { %5276 = vadd.xlane.f32.xlu0 %v5273_v46  ;;  %v5280_v23 = vadd.f32 1e-05, %v5278_v6  ;;  %v7211_v46 = vld [vmem:[%s8729_s13 + $0x68] sm:$0xff]  }
0x2b14   :  { %7295 = vrsqrt.f32 %v5280_v23 }
0x2b1e   :  { %v7296_v2 = vpop.eup %7295 }
0x2b1f   :  { %v5284_v4 = vmul.f32 %v7296_v2, %v8469_v18 }
0x2b21   :  { %v5290_v5 = vmul.f32 %v5289_v49, %v5284_v4 }
0x2b23   :  { %v8588_v16 = vadd.f32 %v5295_v11, %v5290_v5 }
0x2b9f   :  { %v5277_v62 = vpop.xlane.xlu0 %5276 }
0x2ba0   :  { %v5279_v63 = vmul.f32 0.0078125, %v5277_v62 }
0x2ba2   :  { %v5281_v1 = vadd.f32 1e-05, %v5279_v63 }
0x2ba4   :  { %7297 = vrsqrt.f32 %v5281_v1 }
0x2bae   :  { %v7298_v58 = vpop.eup %7297 }
0x2baf   :  { %v5285_v50 = vmul.f32 %v7298_v58, %v5271_v32  ;;  %v7210_v32 = vld [vmem:[%s8729_s13 + $0xa0] sm:$0xff]  }
0x2bb1   :  { %v5291_v12 = vmul.f32 %v5289_v49, %v5285_v50 }
0x2bb3   :  { %v8590_v18 = vadd.f32 %v5295_v11, %v5291_v12 }
0x2bb5   :  { %v5298_v20 = vpack.c.bf16 %v8590_v18, %v8588_v16 }
0x2bb7   :  { %5540 = vmatmul.mubr.bf16.vlgmr.msra.gmra.mrb[72].mxu0 %v5298_v20  ;;  %5583 = vmatmul.mubr.bf16.vlgmr.msra.gmra.mrb[60].mxu1 %v5298_v20 }
0x2bb8   :  { %6449 = vmatpush3.bf16.msra.mxu0 %v7193_v19  ;;  %6471 = vmatpush3.bf16.msra.mxu1 %v7194_v47 }
0x2bb9   :  { %6450 = vmatprep.subr.bf16.mxu0 %v7195_v21  ;;  %6472 = vmatprep.subr.bf16.mxu1 %v7196_v45 }
0x2bbc   :  { %6451 = vmatpush3.bf16.msra.mxu0 %v7197_v3  ;;  %6473 = vmatpush3.bf16.msra.mxu1 %v7198_v29 }
0x2bbd   :  { %6452 = vmatprep.subr.bf16.mxu0 %v7199_v7  ;;  %6474 = vmatprep.subr.bf16.mxu1 %v7200_v14 }
0x2bc0   :  { %6453 = vmatpush3.bf16.msra.mxu0 %v7201_v24  ;;  %6475 = vmatpush3.bf16.msra.mxu1 %v7202_v17 }
0x2bc1   :  { %6454 = vmatprep.subr.bf16.mxu0 %v7203_v34  ;;  %6476 = vmatprep.subr.bf16.mxu1 %v7204_v27  ;;  %v5672_v34 = vrot.slane %v8580_v25, %v2765_v48 }
0x2bc4   :  { %6455 = vmatpush3.bf16.msra.mxu0 %v7205_v28  ;;  %6477 = vmatpush3.bf16.msra.mxu1 %v7206_v30 }
0x2bc5   :  { %6456 = vmatprep.subr.bf16.mxu0 %v7207_v31  ;;  %6478 = vmatprep.subr.bf16.mxu1 %v7208_v35 }
0x2bc8   :  { %6457 = vmatpush3.bf16.msra.mxu0 %v7209_v36  ;;  %6479 = vmatpush3.bf16.msra.mxu1 %v7210_v32 }
0x2bc9   :  { %6458 = vmatprep.subr.bf16.mxu0 %v7211_v46  ;;  %6480 = vmatprep.subr.bf16.mxu1 %v7212_v15 }
0x2bcc   :  { %6459 = vmatpush3.bf16.msra.mxu0 %v7213_v37  ;;  %6481 = vmatpush3.bf16.msra.mxu1 %v7214_v39 }
0x2bcd   :  { %6460 = vmatprep.subr.bf16.mxu0 %v7215_v52  ;;  %6482 = vmatprep.subr.bf16.mxu1 %v7216_v40 }
0x2bd0   :  { %6461 = vmatpush3.bf16.msra.mxu0 %v7217_v42  ;;  %6483 = vmatpush3.bf16.msra.mxu1 %v7218_v43 }
0x2bd1   :  { %6462 = vmatprep.subr.bf16.mxu0 %v7219_v54  ;;  %6484 = vmatprep.subr.bf16.mxu1 %v7220_v53 }
0x2bd4   :  { %6463 = vmatpush3.bf16.msra.mxu0 %v7221_v33  ;;  %6485 = vmatpush3.bf16.msra.mxu1 %v7222_v61 }
0x2c8a   :  { %v5541_v59 = vpop.f32.mrb[72].mxu0  ;;  %v5584_v38 = vpop.f32.mrb[60].mxu1 }
0x2c8b   :  { %v5542_v22 = vadd.f32 %v5541_v59, %v5334_v10  ;;  %v5585_v41 = vadd.f32 %v5584_v38, %v5342_v9  ;;  %v5543_v51 = vpop.f32.mrb[73].mxu0  ;;  %v5586_v6 = vpop.f32.mrb[61].mxu1 }
0x2c8c   :  { %v5544_v23 = vadd.f32 %v5543_v51, %v5338_v55  ;;  %v5587_v62 = vadd.f32 %v5586_v6, %v5346_v26  ;;  %v5545_v63 = vpop.f32.mrb[74].mxu0  ;;  %v5588_v1 = vpop.f32.mrb[62].mxu1 }
0x2c8d   :  { %v5546_v2 = vadd.f32 %v5545_v63, %v5334_v10  ;;  %v5589_v4 = vadd.f32 %v5588_v1, %v5342_v9  ;;  %v5547_v49 = vpop.f32.mrb[75].mxu0  ;;  %v5590_v58 = vpop.f32.mrb[63].mxu1  ;;  %v5593_v11 = vmax.f32 %v5542_v22, 0.0  ;;  %v5595_v12 = vmax.f32 %v5585_v41, 0.0 }
0x2c8e   :  { %v5548_v50 = vadd.f32 %v5547_v49, %v5338_v55  ;;  %v5591_v5 = vadd.f32 %v5590_v58, %v5346_v26  ;;  %v5594_v47 = vmax.f32 %v5544_v23, 0.0  ;;  %v5596_v20 = vmax.f32 %v5587_v62, 0.0 }
0x2c8f   :  { %v5597_v19 = vmax.f32 %v5546_v2, 0.0  ;;  %v5599_v8 = vmax.f32 %v5589_v4, 0.0  ;;  %v5980_v41 = vrot.slane %v8580_v25, %v3073_v0 }
0x2c90   :  { %v5598_v21 = vmax.f32 %v5548_v50, 0.0  ;;  %v5600_v45 = vmax.f32 %v5591_v5, 0.0 }
0x2c91   :  { %v5601_v3 = vpack.c.bf16 %v5597_v19, %v5593_v11  ;;  %v5603_v29 = vpack.c.bf16 %v5599_v8, %v5595_v12 }
0x2c92   :  { %v5602_v7 = vpack.c.bf16 %v5598_v21, %v5594_v47  ;;  %v5604_v14 = vpack.c.bf16 %v5600_v45, %v5596_v20 }
0x2c94   :  { %5897 = vmatprep.mubr.bf16.mxu0 %v5602_v7  ;;  %5938 = vmatprep.mubr.bf16.mxu1 %v5604_v14 }
0x2c95   :  { %5898 = vmatmul.mubr.bf16.vlgmr.msra.gmra.mrb[76].mxu0 %v5601_v3  ;;  %5939 = vmatmul.mubr.bf16.vlgmr.msra.gmra.mrb[64].mxu1 %v5603_v29 }
0x2d68   :  { %v6464_v24 = vpop.f32.mrb[76].mxu0  ;;  %v6486_v17 = vpop.f32.mrb[64].mxu1 }
0x2d69   :  { %v6465_v27 = vpop.f32.mrb[77].mxu0  ;;  %v6487_v28 = vpop.f32.mrb[65].mxu1 }
0x2d6a   :  { %v6466_v30 = vadd.f32 %v6465_v27, %v6464_v24  ;;  %v6488_v31 = vadd.f32 %v6487_v28, %v6486_v17  ;;  %v6467_v35 = vpop.f32.mrb[78].mxu0  ;;  %v6489_v36 = vpop.f32.mrb[66].mxu1 }
0x2d6b   :  { %v6468_v32 = vpop.f32.mrb[79].mxu0  ;;  %v6490_v46 = vpop.f32.mrb[67].mxu1 }
0x2d6c   :  { %v5900_v15 = vadd.f32 %v6466_v30, %v5672_v34  ;;  %v6469_v37 = vadd.f32 %v6468_v32, %v6467_v35  ;;  %v6491_v39 = vadd.f32 %v6490_v46, %v6489_v36 }
0x2d6e   :  { %v5941_v52 = vadd.f32 %v6488_v31, %v5900_v15  ;;  %v5903_v40 = vadd.f32 %v6469_v37, %v5672_v34 }
0x2d70   :  { %v5944_v42 = vadd.f32 %v6491_v39, %v5903_v40  ;;  %v5947_v43 = vadd.f32 %v5941_v52, %v8588_v16 }
0x2d72   :  { %5949 = vadd.xlane.f32.xlu0 %v5947_v43  ;;  %v5948_v54 = vadd.f32 %v5944_v42, %v8590_v18  ;;  %v5974_v18 = vrot.slane %v8580_v25, %v3067_v60 }
0x2d76   :  { %5951 = vadd.xlane.f32.xlu0 %v5948_v54 }
0x2dff   :  { %v5950_v48 = vpop.xlane.xlu0 %5949 }
0x2e00   :  { %v5953_v53 = vmul.f32 0.0078125, %v5950_v48 }
0x2e02   :  { %v5955_v33 = vsub.f32 %v5947_v43, %v5953_v53 }
0x2e03   :  { %v5952_v61 = vpop.xlane.xlu0 %5951 }
0x2e04   :  { %v5954_v44 = vmul.f32 0.0078125, %v5952_v61  ;;  %v5957_v10 = vmul.f32 %v5955_v33, %v5955_v33 }
0x2e06   :  { %v5956_v57 = vsub.f32 %v5948_v54, %v5954_v44  ;;  %5959 = vadd.xlane.f32.xlu0 %v5957_v10 }
0x2e08   :  { %v5958_v9 = vmul.f32 %v5956_v57, %v5956_v57 }
0x2e0a   :  { %5961 = vadd.xlane.f32.xlu0 %v5958_v9 }
0x2e93   :  { %v5960_v13 = vpop.xlane.xlu0 %5959 }
0x2e94   :  { %v5963_v55 = vmul.f32 0.0078125, %v5960_v13 }
0x2e96   :  { %v5965_v26 = vadd.f32 1e-05, %v5963_v55 }
0x2e97   :  { %v5962_v59 = vpop.xlane.xlu0 %5961 }
0x2e98   :  { %7299 = vrsqrt.f32 %v5965_v26  ;;  %v5964_v16 = vmul.f32 0.0078125, %v5962_v59 }
0x2e9a   :  { %v5966_v38 = vadd.f32 1e-05, %v5964_v16 }
0x2e9c   :  { %7301 = vrsqrt.f32 %v5966_v38 }
0x2ea2   :  { %v7300_v22 = vpop.eup %7299 }
0x2ea3   :  { %v5969_v51 = vmul.f32 %v7300_v22, %v5955_v33 }
0x2ea5   :  { %v5975_v6 = vmul.f32 %v5974_v18, %v5969_v51 }
0x2ea6   :  { %v7302_v23 = vpop.eup %7301 }
0x2ea7   :  { %v5981_v62 = vadd.f32 %v5980_v41, %v5975_v6  ;;  %v5970_v63 = vmul.f32 %v7302_v23, %v5956_v57 }
0x2ea9   :  { %5983 = vst [vmem:[%s8730_s15] sm:$0x7f] %v5981_v62  ;;  %v5976_v1 = vmul.f32 %v5974_v18, %v5970_v63 }
0x2eab   :  { %v5982_v2 = vadd.f32 %v5980_v41, %v5976_v1 }
0x2ead   :  { %6233 = vst [vmem:[%s8730_s15 + $0x8] sm:$0x7f] %v5982_v2 }

// kernel: local_global_forward.2
= control target key start
LH: loop header
LB: loop body
LE: loop exit
PB: predicated region body
PF: predicated region fallthrough
CT: control target
= control target key end

     0   :  { %s14525_s0 = inlined_call_operand.vmem [shape: f32[64,1], index: 0, kind: input, shape index: {}]   ;;  %s14526_s1 = inlined_call_operand.vmem [shape: f32[64,1], index: 1, kind: input, shape index: {}]   ;;  %s14527_s2 = inlined_call_operand.vmem [shape: f32[64,1], index: 2, kind: input, shape index: {}]   ;;  %s14528_s3 = inlined_call_operand.vmem [shape: f32[3,128], index: 3, kind: input, shape index: {}]   ;;  %s14529_s4 = inlined_call_operand.vmem [shape: f32[64,128], index: 4, kind: input, shape index: {}]   ;;  %s14530_s5 = inlined_call_operand.hbm [shape: bf16[128,384], index: 5, kind: input, shape index: {}]   ;;  %s14531_s6 = inlined_call_operand.hbm [shape: f32[128,128], index: 6, kind: input, shape index: {}]   ;;  %s14532_s7 = inlined_call_operand.vmem [shape: bf16[128,512], index: 7, kind: input, shape index: {}]   ;;  %s14533_s8 = inlined_call_operand.vmem [shape: bf16[512,128], index: 8, kind: input, shape index: {}]   ;;  %s14534_s9 = inlined_call_operand.vmem [shape: f32[8,512], index: 9, kind: input, shape index: {}]   ;;  %s14535_s10 = inlined_call_operand.hbm [shape: bf16[128,384], index: 10, kind: input, shape index: {}]   ;;  %s14536_s11 = inlined_call_operand.hbm [shape: f32[128,128], index: 11, kind: input, shape index: {}]   ;;  %s14537_s12 = inlined_call_operand.vmem [shape: bf16[128,512], index: 12, kind: input, shape index: {}]   ;;  %s14538_s13 = inlined_call_operand.hbm [shape: bf16[512,128], index: 13, kind: input, shape index: {}]   ;;  %s14539_s14 = inlined_call_operand.vmem [shape: f32[8,512], index: 14, kind: input, shape index: {}]   ;;  %s14540_s15 = inlined_call_operand.vmem [shape: f32[2,24,128], index: 15, kind: output, shape index: {}]  }
   0x1   :  { %14544 = sst [smem:[#allocation13_spill]] %s14540_s15 }
   0x2   :  { %20 = vsyncpa [#allocation3], 0 }
   0x3   :  { %21 = vsyncpa [#allocation5], 0 }
   0x4   :  { %22 = vsyncpa [#allocation8], 0  ;;  %s12083_s18 = smov [#allocation4]   ;;  %s11967_s22 = scalar_lea.hbm %s14531_s6, 2048 }
   0x5   :  { %s50_s19 = sshll.u32 %s12083_s18, 4  ;;  %p11968_p0 = scmp.ne.s32.totalorder %s14531_s6, %s11967_s22  ;;  %s51_s19 = int_to_ptr.vmem [resolvable:$true] %s50_s19 }
   0x6   :  { %p11971_p1 = scmp.lt.u32.totalorder %s11967_s22, %s14531_s6 }
   0x8   :  { %p11973_p2 = pnand %p11971_p1, %p11968_p0 }
   0xa   :  { %11976 = shalt.err (!%p11973_p2)
}
   0xb   :  { %s11977_s27 = scalar_lea.vmem %s51_s19, 2048  ;;  %p11982_p4 = scmp.lt.s32.totalorder %s51_s19, %s51_s19 }
   0xc   :  { %p11978_p3 = scmp.ne.s32.totalorder %s51_s19, %s11977_s27  ;;  %p11983_p5 = scmp.lt.s32.totalorder %s11977_s27, %s11977_s27 }
   0xe   :  { %p11984_p6 = por %p11983_p5, %p11982_p4 }
  0x10   :  { %p11985_p7 = pnand %p11984_p6, %p11978_p3 }
  0x12   :  { %11988 = shalt.err (!%p11985_p7)
}
  0x13   :  { %s12084_s28 = smov 128   ;;  %s12085_s29 = smov 8  }
  0x14   :  { %56 = dma.hbm_to_vmem [thread:$0]  %s14531_s6, 2048, %s51_s19, [#allocation5], %s12084_s28, %s12084_s28, %s12085_s29  }
  0x15   :  { %s12086_s17 = smov [#allocation7]   ;;  %s12087_s20 = smov [#allocation2]  }
  0x16   :  { %s80_s18 = sshll.u32 %s12086_s17, 4  ;;  %s38_s21 = sshll.u32 %s12087_s20, 4  ;;  %s81_s18 = int_to_ptr.vmem [resolvable:$true] %s80_s18  ;;  %s39_s21 = int_to_ptr.vmem [resolvable:$true] %s38_s21 }
  0x17   :  { %s11989_s24 = scalar_lea.hbm %s14536_s11, 2048 }
  0x18   :  { %p11990_p8 = scmp.ne.s32.totalorder %s14536_s11, %s11989_s24  ;;  %p11993_p9 = scmp.lt.u32.totalorder %s11989_s24, %s14536_s11 }
  0x1a   :  { %p11995_p10 = pnand %p11993_p9, %p11990_p8 }
  0x1c   :  { %11998 = shalt.err (!%p11995_p10)
}
  0x1d   :  { %s11999_s6 = scalar_lea.vmem %s81_s18, 2048  ;;  %p12004_p12 = scmp.lt.s32.totalorder %s81_s18, %s81_s18 }
  0x1e   :  { %p12000_p11 = scmp.ne.s32.totalorder %s81_s18, %s11999_s6  ;;  %p12005_p13 = scmp.lt.s32.totalorder %s11999_s6, %s11999_s6 }
  0x20   :  { %p12006_p0 = por %p12005_p13, %p12004_p12 }
  0x22   :  { %p12007_p1 = pnand %p12006_p0, %p12000_p11 }
  0x24   :  { %12010 = shalt.err (!%p12007_p1)
}
  0x25   :  { %86 = dma.hbm_to_vmem [thread:$0]  %s14536_s11, 2048, %s81_s18, [#allocation8], %s12084_s28, %s12084_s28, %s12085_s29  }
  0x26   :  { %s12011_s20 = scalar_lea.hbm %s14530_s5, 3072 }
  0x27   :  { %p12012_p2 = scmp.ne.s32.totalorder %s14530_s5, %s12011_s20  ;;  %p12015_p3 = scmp.lt.u32.totalorder %s12011_s20, %s14530_s5 }
  0x29   :  { %p12017_p4 = pnand %p12015_p3, %p12012_p2 }
  0x2b   :  { %12020 = shalt.err (!%p12017_p4)
}
  0x2c   :  { %s12021_s25 = scalar_lea.vmem %s39_s21, 3072  ;;  %p12026_p6 = scmp.lt.s32.totalorder %s39_s21, %s39_s21 }
  0x2d   :  { %p12022_p5 = scmp.ne.s32.totalorder %s39_s21, %s12021_s25  ;;  %p12027_p7 = scmp.lt.s32.totalorder %s12021_s25, %s12021_s25 }
  0x2f   :  { %p12028_p8 = por %p12027_p7, %p12026_p6 }
  0x31   :  { %p12029_p9 = pnand %p12028_p8, %p12022_p5 }
  0x33   :  { %12032 = shalt.err (!%p12029_p9)
}
  0x34   :  { %s12088_s11 = smov 192   ;;  %s12089_s28 = smov 12  }
  0x35   :  { %44 = dma.hbm_to_vmem [thread:$0]  %s14530_s5, 3072, %s39_s21, [#allocation3], %s12088_s11, %s12088_s11, %s12089_s28  }
  0x36   :  { %s12090_s26 = smov [#allocation6]   ;;  %s12091_s6 = smov [#allocation9]  }
  0x37   :  { %s68_s27 = sshll.u32 %s12090_s26, 4  ;;  %s94_s19 = sshll.u32 %s12091_s6, 4  ;;  %s69_s27 = int_to_ptr.vmem [resolvable:$true] %s68_s27  ;;  %s95_s19 = int_to_ptr.vmem [resolvable:$true] %s94_s19 }
  0x38   :  { %s12033_s17 = scalar_lea.hbm %s14535_s10, 3072 }
  0x39   :  { %p12034_p10 = scmp.ne.s32.totalorder %s14535_s10, %s12033_s17  ;;  %p12037_p11 = scmp.lt.u32.totalorder %s12033_s17, %s14535_s10 }
  0x3b   :  { %p12039_p12 = pnand %p12037_p11, %p12034_p10 }
  0x3d   :  { %12042 = shalt.err (!%p12039_p12)
}
  0x3e   :  { %s12043_s5 = scalar_lea.vmem %s69_s27, 3072  ;;  %p12048_p0 = scmp.lt.s32.totalorder %s69_s27, %s69_s27 }
  0x3f   :  { %p12044_p13 = scmp.ne.s32.totalorder %s69_s27, %s12043_s5  ;;  %p12049_p1 = scmp.lt.s32.totalorder %s12043_s5, %s12043_s5 }
  0x41   :  { %p12050_p2 = por %p12049_p1, %p12048_p0 }
  0x43   :  { %p12051_p3 = pnand %p12050_p2, %p12044_p13 }
  0x45   :  { %12054 = shalt.err (!%p12051_p3)
}
  0x46   :  { %74 = dma.hbm_to_vmem [thread:$0]  %s14535_s10, 3072, %s69_s27, [#allocation5], %s12088_s11, %s12088_s11, %s12089_s28  }
  0x47   :  { %s12055_s18 = scalar_lea.hbm %s14538_s13, 4096 }
  0x48   :  { %p12056_p4 = scmp.ne.s32.totalorder %s14538_s13, %s12055_s18  ;;  %p12059_p5 = scmp.lt.u32.totalorder %s12055_s18, %s14538_s13 }
  0x4a   :  { %p12061_p6 = pnand %p12059_p5, %p12056_p4 }
  0x4c   :  { %12064 = shalt.err (!%p12061_p6)
}
  0x4d   :  { %s12065_s17 = scalar_lea.vmem %s95_s19, 4096  ;;  %p12070_p8 = scmp.lt.s32.totalorder %s95_s19, %s95_s19 }
  0x4e   :  { %p12066_p7 = scmp.ne.s32.totalorder %s95_s19, %s12065_s17  ;;  %p12071_p9 = scmp.lt.s32.totalorder %s12065_s17, %s12065_s17 }
  0x50   :  { %p12072_p10 = por %p12071_p9, %p12070_p8 }
  0x52   :  { %p12073_p11 = pnand %p12072_p10, %p12066_p7 }
  0x54   :  { %12076 = shalt.err (!%p12073_p11)
}
  0x55   :  { %s12092_s10 = smov 64   ;;  %s12093_s11 = smov 4  }
  0x56   :  { %100 = dma.hbm_to_vmem [thread:$0]  %s14538_s13, 4096, %s95_s19, [#allocation8], %s12092_s10, %s12092_s10, %s12093_s11  }
  0x57   :  { %12077 = dma.done.wait [#allocation3], 3072  }
  0x58   :  { %12078 = vsyncadd [#allocation3], 4294964224 }
  0x59   :  { %12079 = dma.done.wait [#allocation5], 5120  }
  0x5a   :  { %12080 = vsyncadd [#allocation5], 4294962176 }
  0x5b   :  { %12081 = dma.done.wait [#allocation8], 6144  }
  0x5c   :  { %12082 = vsyncadd [#allocation8], 4294961152  ;;  %v12094_v0 = vmov 0   ;;  %v180_v1 = vld [vmem:[%s14526_s1] sm:$0xff]  ;;  %v181_v3 = vld [vmem:[%s14526_s1 + $0x8] sm:$0xff]  ;;  %v168_v49 = vlaneseq  ;;  %vm682_vm0 = vcmask 261120  }
  0x5d   :  { %11178 = vset.pattern.permute.xlu1 %v12094_v0  ;;  %11177 = vset.pattern.permute.xlu0 %v12094_v0  ;;  %v120_v2 = vld [vmem:[%s14525_s0] sm:$0xff]  ;;  %v121_v4 = vld [vmem:[%s14525_s0 + $0x8] sm:$0xff]  ;;  %v123_v5 = vld [vmem:[%s14525_s0 + $0x18] sm:$0xff]  ;;  %s12095_s19 = smov 96   ;;  %s12096_s5 = smov 32  }
  0x5e   :  { %552 = vmatprep.mubr.bf16.mxu0 %v12094_v0  ;;  %190 = vperm.xlu1 %11178, %v180_v1   ;;  %v122_v6 = vld [vmem:[%s14525_s0 + $0x10] sm:$0xff]  ;;  %v183_v7 = vld [vmem:[%s14526_s1 + $0x18] sm:$0xff]  ;;  %v11421_v10 = vld [vmem:[#allocation2] ss:$12 sps:$4 sm:$0xff]   ;;  %v12314_v50 = vshrl.u32 %v168_v49, 7  ;;  %s14549_s27 = sld [smem:[#allocation13_spill]] }
  0x5f   :  { %130 = vperm.xlu0 %11177, %v120_v2   ;;  %v182_v8 = vld [vmem:[%s14526_s1 + $0x10] sm:$0xff]  ;;  %v11422_v11 = vld [vmem:[#allocation2 + $0x1c] ss:$12 sps:$4 sm:$0xff]   ;;  %v11425_v13 = vld [vmem:[#allocation2 + $0x18] ss:$12 sps:$4 sm:$0xff]  }
  0x60   :  { %v11419_v9 = vld [vmem:[#allocation2 + $0x4] ss:$12 sps:$4 sm:$0xff]   ;;  %v11424_v12 = vld [vmem:[#allocation2 + $0x8] ss:$12 sps:$4 sm:$0xff]   ;;  %v11428_v16 = vld [vmem:[#allocation2 + $0x20] ss:$12 sps:$4 sm:$0xff]  }
  0x61   :  { %520 = vmatprep.subr.bf16.mxu0 %v11419_v9  ;;  %v11426_v14 = vld [vmem:[#allocation2 + $0x34] ss:$12 sps:$4 sm:$0xff]   ;;  %v277_v15 = vld [vmem:[%s14527_s2 + $0x8] sm:$0xff]  ;;  %9947 = vmatprep.subr.bf16.mxu1 %v11424_v12  ;;  %v11429_v18 = vld [vmem:[#allocation2 + $0x30] ss:$12 sps:$4 sm:$0xff]   ;;  %v12317_v51 = vsub.s32 1, %v12314_v50 }
  0x62   :  { %195 = vperm.xlu1 %11178, %v181_v3   ;;  %521 = vmatpush1.bf16.msra.mxu0 %v11421_v10  ;;  %v276_v17 = vld [vmem:[%s14527_s2] sm:$0xff]  ;;  %v11430_v19 = vld [vmem:[#allocation2 + $0x4c] ss:$12 sps:$4 sm:$0xff]   ;;  %v278_v22 = vld [vmem:[%s14527_s2 + $0x10] sm:$0xff]  ;;  %v12320_v52 = vsub.s32 0, %v12314_v50  ;;  %v12334_v60 = vsub.s32 2, %v12314_v50 }
  0x63   :  { %135 = vperm.xlu0 %11177, %v121_v4   ;;  %522 = vmatprep.subr.bf16.mxu0 %v11422_v11  ;;  %v11432_v20 = vld [vmem:[#allocation2 + $0x38] ss:$12 sps:$4 sm:$0xff]   ;;  %v11433_v23 = vld [vmem:[#allocation2 + $0x48] ss:$12 sps:$4 sm:$0xff]   ;;  %v11436_v25 = vld [vmem:[#allocation2 + $0x50] ss:$12 sps:$4 sm:$0xff]  }
  0x64   :  { %9948 = vmatpush3.bf16.msra.mxu1 %v11424_v12  ;;  %v279_v21 = vld [vmem:[%s14527_s2 + $0x18] sm:$0xff]  ;;  %v11434_v24 = vld [vmem:[#allocation2 + $0x64] ss:$12 sps:$4 sm:$0xff]   ;;  %v125_v26 = vld [vmem:[%s14525_s0 + $0x28] sm:$0xff] }
  0x65   :  { %9949 = vmatprep.subr.bf16.mxu1 %v11428_v16  ;;  %v124_v27 = vld [vmem:[%s14525_s0 + $0x20] sm:$0xff]  ;;  %v11438_v29 = vld [vmem:[#allocation2 + $0x7c] ss:$12 sps:$4 sm:$0xff]   ;;  %v126_v36 = vld [vmem:[%s14525_s0 + $0x30] sm:$0xff] }
  0x66   :  { %145 = vperm.xlu1 %11178, %v123_v5   ;;  %523 = vmatpush1.bf16.msra.mxu0 %v11425_v13  ;;  %v11437_v28 = vld [vmem:[#allocation2 + $0x60] ss:$12 sps:$4 sm:$0xff]   ;;  %v11440_v30 = vld [vmem:[#allocation2 + $0x68] ss:$12 sps:$4 sm:$0xff]   ;;  %v11441_v33 = vld [vmem:[#allocation2 + $0x78] ss:$12 sps:$4 sm:$0xff]  }
  0x67   :  { %140 = vperm.xlu0 %11177, %v122_v6   ;;  %524 = vmatprep.subr.bf16.mxu0 %v11426_v14  ;;  %v185_v31 = vld [vmem:[%s14526_s1 + $0x28] sm:$0xff]  ;;  %v184_v32 = vld [vmem:[%s14526_s1 + $0x20] sm:$0xff]  ;;  %v127_v35 = vld [vmem:[%s14525_s0 + $0x38] sm:$0xff] }
  0x68   :  { %9950 = vmatpush3.bf16.msra.mxu1 %v11428_v16  ;;  %v11442_v34 = vld [vmem:[#allocation2 + $0x94] ss:$12 sps:$4 sm:$0xff]   ;;  %v11445_v38 = vld [vmem:[#allocation2 + $0x90] ss:$12 sps:$4 sm:$0xff]   ;;  %v11446_v39 = vld [vmem:[#allocation2 + $0xac] ss:$12 sps:$4 sm:$0xff]  }
  0x69   :  { %9951 = vmatprep.subr.bf16.mxu1 %v11432_v20  ;;  %v11444_v37 = vld [vmem:[#allocation2 + $0x80] ss:$12 sps:$4 sm:$0xff]   ;;  %v11448_v40 = vld [vmem:[#allocation2 + $0x98] ss:$12 sps:$4 sm:$0xff]   ;;  %v186_v42 = vld [vmem:[%s14526_s1 + $0x30] sm:$0xff] }
  0x6a   :  { %205 = vperm.xlu1 %11178, %v183_v7   ;;  %525 = vmatpush1.bf16.msra.mxu0 %v11429_v18  ;;  %v187_v41 = vld [vmem:[%s14526_s1 + $0x38] sm:$0xff]  ;;  %v11449_v43 = vld [vmem:[#allocation2 + $0xa8] ss:$12 sps:$4 sm:$0xff]   ;;  %v280_v46 = vld [vmem:[%s14527_s2 + $0x20] sm:$0xff] }
  0x6b   :  { %200 = vperm.xlu0 %11177, %v182_v8   ;;  %526 = vmatprep.subr.bf16.mxu0 %v11430_v19  ;;  %v11450_v44 = vld [vmem:[#allocation2 + $0xb0] ss:$12 sps:$4 sm:$0xff]   ;;  %v281_v45 = vld [vmem:[%s14527_s2 + $0x28] sm:$0xff]  ;;  %v119_v53 = vld [vmem:[%s14528_s3] sm:$0x7] }
  0x6c   :  { %9952 = vmatpush3.bf16.msra.mxu1 %v11432_v20  ;;  %v283_v47 = vld [vmem:[%s14527_s2 + $0x38] sm:$0xff]  ;;  %v282_v48 = vld [vmem:[%s14527_s2 + $0x30] sm:$0xff]  ;;  %v12326_v54 = vrot.slane %v119_v53, %v12317_v51  ;;  %v12329_v55 = vrot.slane %v119_v53, %v12320_v52  ;;  %v12339_v4 = vrot.slane %v119_v53, %v12334_v60  ;;  %v269_v19 = vld [vmem:[%s14529_s4 + $0x8] sm:$0xff] }
  0x6d   :  { %9953 = vmatprep.subr.bf16.mxu1 %v11436_v25  ;;  %vm12439_vm1 = vmpackc.low %vm682_vm0, %vm682_vm0 }
  0x6e   :  { %291 = vperm.xlu1 %11178, %v277_v15   ;;  %527 = vmatpush1.bf16.msra.mxu0 %v11433_v23 }
  0x6f   :  { %286 = vperm.xlu0 %11177, %v276_v17   ;;  %528 = vmatprep.subr.bf16.mxu0 %v11434_v24 }
  0x70   :  { %9954 = vmatpush3.bf16.msra.mxu1 %v11436_v25 }
  0x71   :  { %9955 = vmatprep.subr.bf16.mxu1 %v11440_v30 }
  0x72   :  { %301 = vperm.xlu1 %11178, %v279_v21   ;;  %529 = vmatpush1.bf16.msra.mxu0 %v11437_v28  ;;  %v268_v21 = vld [vmem:[%s14529_s4] sm:$0xff] }
  0x73   :  { %296 = vperm.xlu0 %11177, %v278_v22   ;;  %530 = vmatprep.subr.bf16.mxu0 %v11438_v29 }
  0x74   :  { %9956 = vmatpush3.bf16.msra.mxu1 %v11440_v30 }
  0x75   :  { %9957 = vmatprep.subr.bf16.mxu1 %v11444_v37 }
  0x76   :  { %155 = vperm.xlu1 %11178, %v125_v26   ;;  %531 = vmatpush1.bf16.msra.mxu0 %v11441_v33  ;;  %v270_v33 = vld [vmem:[%s14529_s4 + $0x10] sm:$0xff] }
  0x77   :  { %150 = vperm.xlu0 %11177, %v124_v27   ;;  %532 = vmatprep.subr.bf16.mxu0 %v11442_v34 }
  0x78   :  { %9958 = vmatpush3.bf16.msra.mxu1 %v11444_v37 }
  0x79   :  { %9959 = vmatprep.subr.bf16.mxu1 %v11448_v40 }
  0x7a   :  { %215 = vperm.xlu1 %11178, %v185_v31   ;;  %533 = vmatpush1.bf16.msra.mxu0 %v11445_v38  ;;  %v271_v31 = vld [vmem:[%s14529_s4 + $0x18] sm:$0xff] }
  0x7b   :  { %210 = vperm.xlu0 %11177, %v184_v32   ;;  %534 = vmatprep.subr.bf16.mxu0 %v11446_v39 }
  0x7c   :  { %9960 = vmatpush3.bf16.msra.mxu1 %v11448_v40 }
  0x7d   :  { %9961 = vmatprep.subr.bf16.mxu1 %v11450_v44 }
  0x7e   :  { %165 = vperm.xlu1 %11178, %v127_v35   ;;  %535 = vmatpush1.bf16.msra.mxu0 %v11449_v43 }
  0x7f   :  { %160 = vperm.xlu0 %11177, %v126_v36  }
  0x80   :  { %9962 = vmatpush3.bf16.msra.mxu1 %v11450_v44 }
  0x82   :  { %225 = vperm.xlu1 %11178, %v187_v41  }
  0x83   :  { %220 = vperm.xlu0 %11177, %v186_v42  }
  0x86   :  { %311 = vperm.xlu1 %11178, %v281_v45  }
  0x87   :  { %306 = vperm.xlu0 %11177, %v280_v46  }
  0x8a   :  { %321 = vperm.xlu1 %11178, %v283_v47  }
  0x8b   :  { %316 = vperm.xlu0 %11177, %v282_v48  }
  0xdd   :  { %v191_v56 = vpop.permute.xlu1 %190 }
  0xde   :  { %v131_v57 = vpop.permute.xlu0 %130  ;;  %v232_v58 = vmul.f32 %v12326_v54, %v191_v56 }
  0xdf   :  { %v172_v59 = vmul.f32 %v12329_v55, %v131_v57 }
  0xe1   :  { %v196_v61 = vpop.permute.xlu1 %195  ;;  %v240_v2 = vadd.f32 %v232_v58, %v172_v59 }
  0xe2   :  { %v136_v62 = vpop.permute.xlu0 %135  ;;  %v233_v63 = vmul.f32 %v12326_v54, %v196_v61 }
  0xe3   :  { %v173_v1 = vmul.f32 %v12329_v55, %v136_v62  ;;  %v252_v8 = vadd.f32 %v12339_v4, %v240_v2 }
  0xe5   :  { %v241_v3 = vadd.f32 %v233_v63, %v173_v1  ;;  %v146_v5 = vpop.permute.xlu1 %145  ;;  %v260_v18 = vmax.f32 %v252_v8, 0.0 }
  0xe6   :  { %v141_v6 = vpop.permute.xlu0 %140  ;;  %v175_v11 = vmul.f32 %v12329_v55, %v146_v5 }
  0xe7   :  { %v253_v7 = vadd.f32 %v12339_v4, %v241_v3  ;;  %v174_v12 = vmul.f32 %v12329_v55, %v141_v6 }
  0xe9   :  { %v206_v9 = vpop.permute.xlu1 %205  ;;  %v261_v17 = vmax.f32 %v253_v7, 0.0 }
  0xea   :  { %v201_v10 = vpop.permute.xlu0 %200  ;;  %v235_v13 = vmul.f32 %v12326_v54, %v206_v9  ;;  %v273_v9 = vld [vmem:[%s14529_s4 + $0x28] sm:$0xff] }
  0xeb   :  { %v234_v14 = vmul.f32 %v12326_v54, %v201_v10 }
  0xec   :  { %v243_v15 = vadd.f32 %v235_v13, %v175_v11  ;;  %v272_v11 = vld [vmem:[%s14529_s4 + $0x20] sm:$0xff] }
  0xed   :  { %v242_v16 = vadd.f32 %v234_v14, %v174_v12  ;;  %v292_v20 = vpop.permute.xlu1 %291 }
  0xee   :  { %v287_v22 = vpop.permute.xlu0 %286  ;;  %v325_v23 = vmul.f32 %v292_v20, %v261_v17  ;;  %v255_v25 = vadd.f32 %v12339_v4, %v243_v15 }
  0xef   :  { %v324_v24 = vmul.f32 %v287_v22, %v260_v18  ;;  %v254_v26 = vadd.f32 %v12339_v4, %v242_v16 }
  0xf0   :  { %v12355_v27 = vadd.f32 %v325_v23, %v269_v19  ;;  %v263_v29 = vmax.f32 %v255_v25, 0.0  ;;  %v275_v19 = vld [vmem:[%s14529_s4 + $0x38] sm:$0xff] }
  0xf1   :  { %v12357_v28 = vadd.f32 %v324_v24, %v268_v21  ;;  %v262_v30 = vmax.f32 %v254_v26, 0.0  ;;  %v302_v32 = vpop.permute.xlu1 %301  ;;  %v274_v21 = vld [vmem:[%s14529_s4 + $0x30] sm:$0xff] }
  0xf2   :  { %v297_v34 = vpop.permute.xlu0 %296  ;;  %v327_v35 = vmul.f32 %v302_v32, %v263_v29  ;;  %v341_v32 = vld [vmem:[%s14534_s9 + $0x8] sm:$0xff] }
  0xf3   :  { %v326_v36 = vmul.f32 %v297_v34, %v262_v30  ;;  %v344_v37 = vpack.c.bf16 %v12355_v27, %v12357_v28  ;;  %v340_v30 = vld [vmem:[%s14534_s9] sm:$0xff]  ;;  %v12422_v34 = vrot.slane %v341_v32, %v12320_v52 }
  0xf4   :  { %v12367_v38 = vadd.f32 %v327_v35, %v271_v31  ;;  %v12416_v31 = vrot.slane %v340_v30, %v12320_v52  ;;  %v342_v35 = vld [vmem:[%s14534_s9 + $0x10] sm:$0xff] }
  0xf5   :  { %v12369_v39 = vadd.f32 %v326_v36, %v270_v33  ;;  %553 = vmatmul.mubr.bf16.vlgmr.msra.gmra.mrb[0].mxu0 %v344_v37  ;;  %9963 = vmatprep.mubr.bf16.mxu1 %v344_v37  ;;  %v156_v40 = vpop.permute.xlu1 %155 }
  0xf6   :  { %v151_v41 = vpop.permute.xlu0 %150  ;;  %562 = vmatprep.mubr.bf16.mxu0 %v12094_v0  ;;  %v177_v45 = vmul.f32 %v12329_v55, %v156_v40 }
  0xf7   :  { %v345_v42 = vpack.c.bf16 %v12367_v38, %v12369_v39  ;;  %v176_v46 = vmul.f32 %v12329_v55, %v151_v41 }
  0xf9   :  { %9964 = vmatmul.mubr.bf16.vlgmr.msra.gmra.mrb[0].mxu1 %v345_v42  ;;  %v216_v43 = vpop.permute.xlu1 %215 }
  0xfa   :  { %v211_v44 = vpop.permute.xlu0 %210  ;;  %v237_v47 = vmul.f32 %v12326_v54, %v216_v43  ;;  %v12431_v43 = vrot.slane %v342_v35, %v12320_v52 }
  0xfb   :  { %v236_v48 = vmul.f32 %v12326_v54, %v211_v44 }
  0xfc   :  { %v245_v49 = vadd.f32 %v237_v47, %v177_v45 }
  0xfd   :  { %v244_v53 = vadd.f32 %v236_v48, %v176_v46  ;;  %563 = vmatmul.mubr.bf16.gmra.mrb[4].mxu0 %v345_v42  ;;  %v166_v56 = vpop.permute.xlu1 %165 }
  0xfe   :  { %v161_v57 = vpop.permute.xlu0 %160  ;;  %572 = vmatprep.mubr.bf16.mxu0 %v12094_v0  ;;  %v257_v58 = vadd.f32 %v12339_v4, %v245_v49  ;;  %v179_v63 = vmul.f32 %v12329_v55, %v166_v56 }
  0xff   :  { %v256_v59 = vadd.f32 %v12339_v4, %v244_v53  ;;  %v178_v1 = vmul.f32 %v12329_v55, %v161_v57 }
 0x100   :  { %v265_v7 = vmax.f32 %v257_v58, 0.0 }
 0x101   :  { %v226_v61 = vpop.permute.xlu1 %225  ;;  %v264_v8 = vmax.f32 %v256_v59, 0.0 }
 0x102   :  { %v221_v62 = vpop.permute.xlu0 %220  ;;  %v239_v2 = vmul.f32 %v12326_v54, %v226_v61 }
 0x103   :  { %v238_v3 = vmul.f32 %v12326_v54, %v221_v62 }
 0x104   :  { %v247_v5 = vadd.f32 %v239_v2, %v179_v63 }
 0x105   :  { %v246_v6 = vadd.f32 %v238_v3, %v178_v1  ;;  %v312_v10 = vpop.permute.xlu1 %311 }
 0x106   :  { %v307_v12 = vpop.permute.xlu0 %306  ;;  %v329_v13 = vmul.f32 %v312_v10, %v265_v7  ;;  %v259_v14 = vadd.f32 %v12339_v4, %v247_v5 }
 0x107   :  { %v328_v55 = vmul.f32 %v307_v12, %v264_v8  ;;  %v258_v54 = vadd.f32 %v12339_v4, %v246_v6 }
 0x108   :  { %v12393_v15 = vadd.f32 %v329_v13, %v273_v9  ;;  %v267_v17 = vmax.f32 %v259_v14, 0.0 }
 0x109   :  { %v12395_v16 = vadd.f32 %v328_v55, %v272_v11  ;;  %v266_v18 = vmax.f32 %v258_v54, 0.0  ;;  %v322_v20 = vpop.permute.xlu1 %321 }
 0x10a   :  { %v317_v22 = vpop.permute.xlu0 %316  ;;  %v331_v23 = vmul.f32 %v322_v20, %v267_v17 }
 0x10b   :  { %v330_v24 = vmul.f32 %v317_v22, %v266_v18  ;;  %v346_v4 = vpack.c.bf16 %v12393_v15, %v12395_v16 }
 0x10c   :  { %v12405_v25 = vadd.f32 %v331_v23, %v275_v19 }
 0x10d   :  { %v12407_v26 = vadd.f32 %v330_v24, %v274_v21  ;;  %573 = vmatmul.mubr.bf16.gmra.mrb[8].mxu0 %v346_v4  ;;  %9967 = vmatprep.mubr.bf16.mxu1 %v346_v4 }
 0x10e   :  { %582 = vmatprep.mubr.bf16.mxu0 %v12094_v0 }
 0x10f   :  { %v347_v29 = vpack.c.bf16 %v12405_v25, %v12407_v26 }
 0x111   :  { %9968 = vmatmul.mubr.bf16.gmra.mrb[4].mxu1 %v347_v29 }
 0x115   :  { %583 = vmatmul.mubr.bf16.gmra.mrb[12].mxu0 %v347_v29 }
 0x1c8   :  { %v554_v33 = vpop.f32.mrb[0].mxu0 }
 0x1c9   :  { %v555_v36 = vadd.f32 %v554_v33, %v12416_v31  ;;  %v556_v37 = vpop.f32.mrb[1].mxu0 }
 0x1ca   :  { %v558_v40 = vpop.f32.mrb[2].mxu0  ;;  %v557_v44 = vadd.f32 %v556_v37, %v12422_v34 }
 0x1cb   :  { %v12428_v41 = vmul.f32 0.17677669, %v555_v36  ;;  %v560_v42 = vpop.f32.mrb[3].mxu0  ;;  %v559_v12 = vadd.f32 %v558_v40, %v12416_v31 }
 0x1cc   :  { %v561_v45 = vadd.f32 %v560_v42, %v12422_v34  ;;  %v9965_v46 = vpop.f32.mrb[0].mxu1 }
 0x1cd   :  { %v627_v47 = vpop.f32.mrb[1].mxu1  ;;  %9979 = vmatprep.mubr.msk.f32.mxu1 %vm682_vm0, %v12428_v41  ;;  %v636_v57 = vadd.f32 %v9965_v46, %v12431_v43  ;;  %v12477_v54 = vmul.f32 0.17677669, %v559_v12 }
 0x1ce   :  { %v9966_v49 = vpop.f32.mrb[2].mxu1  ;;  %v12443_v53 = vpack.i.bf16 %v561_v45, %v557_v44  ;;  %v10667_v56 = vpack.c.bf16 %v561_v45, %v557_v44  ;;  %v628_v61 = vadd.f32 %v627_v47, %v12431_v43 }
 0x1cf   :  { %v639_v58 = vadd.f32 %v9966_v49, %v12431_v43  ;;  %v630_v59 = vpop.f32.mrb[3].mxu1 }
 0x1d0   :  { %v631_v62 = vadd.f32 %v630_v59, %v12431_v43  ;;  %v564_v63 = vpop.f32.mrb[4].mxu0  ;;  %11180 = vrot.lane.b32.xlu0 %v12443_v53, %s12095_s19  ;;  %10669 = vmatprep.subr.msk.bf16.mxu1 %vm12439_vm1, %v10667_v56 }
 0x1d1   :  { %v566_v1 = vpop.f32.mrb[5].mxu0  ;;  %10672 = vmatpush3.bf16.xpose.msk.msra.mxu1 %vm12439_vm1, %v10667_v56  ;;  %v10683_v2 = vpack.c.bf16 %v639_v58, %v636_v57  ;;  %v12455_v3 = vpack.i.bf16 %v639_v58, %v636_v57  ;;  %v565_v8 = vadd.f32 %v564_v63, %v12416_v31 }
 0x1d2   :  { %v568_v5 = vpop.f32.mrb[6].mxu0  ;;  %v10679_v6 = vpack.c.bf16 %v631_v62, %v628_v61  ;;  %v12457_v7 = vpack.i.bf16 %v631_v62, %v628_v61  ;;  %v567_v10 = vadd.f32 %v566_v1, %v12422_v34 }
 0x1d3   :  { %v570_v9 = vpop.f32.mrb[7].mxu0  ;;  %v12467_v14 = vmul.f32 0.17677669, %v565_v8  ;;  %v569_v17 = vadd.f32 %v568_v5, %v12416_v31 }
 0x1d4   :  { %v571_v11 = vadd.f32 %v570_v9, %v12422_v34  ;;  %933 = vrot.lane.b32.xlu0 %v12428_v41, %s12095_s19 }
 0x1d5   :  { %v12482_v18 = vmul.f32 0.17677669, %v569_v17 }
 0x1d6   :  { %v12465_v13 = vpack.i.bf16 %v571_v11, %v567_v10  ;;  %v10673_v55 = vpack.c.bf16 %v571_v11, %v567_v10 }
 0x1d8   :  { %11185 = vrot.lane.b32.xlu1 %v12465_v13, %s12095_s19  ;;  %10675 = vmatprep.subr.msk.bf16.mxu1 %vm12439_vm1, %v10673_v55 }
 0x1d9   :  { %937 = vrot.lane.b32.xlu0 %v12467_v14, %s12095_s19  ;;  %10678 = vmatpush3.bf16.xpose.msk.msra.mxu1 %vm12439_vm1, %v10673_v55 }
 0x1da   :  { %10680 = vmatprep.subr.bf16.mxu1 %v10679_v6 }
 0x1dc   :  { %935 = vrot.lane.b32.xlu1 %v12477_v54, %s12095_s19 }
 0x1e0   :  { %v574_v19 = vpop.f32.mrb[8].mxu0  ;;  %939 = vrot.lane.b32.xlu1 %v12482_v18, %s12095_s19  ;;  %9980 = vmatmul.mubr.msk.f32.vlgmr.msra.gmra.mrb[8].mxu1 %vm682_vm0, %v12477_v54 }
 0x1e1   :  { %v12489_v20 = vadd.f32 %v574_v19, %v12416_v31  ;;  %v576_v21 = vpop.f32.mrb[9].mxu0  ;;  %9982 = vmatprep.mubr.msk.f32.mxu1 %vm682_vm0, %v12467_v14  ;;  %10682 = vmatpush3.bf16.msra.mxu1 %v10679_v6 }
 0x1e2   :  { %v577_v22 = vadd.f32 %v576_v21, %v12422_v34  ;;  %v578_v23 = vpop.f32.mrb[10].mxu0  ;;  %10684 = vmatprep.subr.bf16.mxu1 %v10683_v2 }
 0x1e3   :  { %v12495_v24 = vadd.f32 %v578_v23, %v12416_v31  ;;  %v580_v4 = vpop.f32.mrb[11].mxu0 }
 0x1e4   :  { %v581_v29 = vadd.f32 %v580_v4, %v12422_v34  ;;  %v9969_v30 = vpop.f32.mrb[4].mxu1  ;;  %9983 = vmatmul.mubr.msk.f32.gmra.mrb[10].mxu1 %vm682_vm0, %v12482_v18 }
 0x1e5   :  { %v652_v32 = vadd.f32 %v9969_v30, %v12431_v43  ;;  %v643_v33 = vpop.f32.mrb[5].mxu1  ;;  %10686 = vmatpush3.bf16.msra.mxu1 %v10683_v2 }
 0x1e6   :  { %v644_v35 = vadd.f32 %v643_v33, %v12431_v43  ;;  %v9970_v36 = vpop.f32.mrb[6].mxu1  ;;  %v12502_v37 = vpack.c.bf16 %v581_v29, %v577_v22  ;;  %v12504_v40 = vpack.i.bf16 %v581_v29, %v577_v22 }
 0x1e7   :  { %v655_v42 = vadd.f32 %v9970_v36, %v12431_v43  ;;  %v646_v44 = vpop.f32.mrb[7].mxu1 }
 0x1e8   :  { %v647_v45 = vadd.f32 %v646_v44, %v12431_v43  ;;  %v584_v46 = vpop.f32.mrb[12].mxu0 }
 0x1e9   :  { %v12509_v47 = vadd.f32 %v584_v46, %v12416_v31  ;;  %v586_v49 = vpop.f32.mrb[13].mxu0  ;;  %v12511_v56 = vpack.i.bf16 %v655_v42, %v652_v32  ;;  %v12513_v57 = vpack.c.bf16 %v655_v42, %v652_v32 }
 0x1ea   :  { %v587_v58 = vadd.f32 %v586_v49, %v12422_v34  ;;  %v588_v59 = vpop.f32.mrb[14].mxu0  ;;  %v12516_v61 = vpack.c.bf16 %v647_v45, %v644_v35  ;;  %v12518_v62 = vpack.i.bf16 %v647_v45, %v644_v35 }
 0x1eb   :  { %v12521_v63 = vadd.f32 %v588_v59, %v12416_v31  ;;  %v590_v43 = vpop.f32.mrb[15].mxu0 }
 0x1ec   :  { %v591_v1 = vadd.f32 %v590_v43, %v12422_v34 }
 0x1ee   :  { %v12524_v2 = vpack.c.bf16 %v591_v1, %v587_v58  ;;  %v12526_v5 = vpack.i.bf16 %v591_v1, %v587_v58 }
 0x242   :  { %v11181_v6 = vpop.permute.xlu0 %11180 }
 0x243   :  { %v11183_v8 = vunpack.i.h.bf16 %v11181_v6  ;;  %v11182_v9 = vunpack.i.l.bf16 %v11181_v6 }
 0x245   :  { %v10687_v10 = vpack.c.bf16 %v11183_v8, %v11182_v9 }
 0x246   :  { %v934_v11 = vpop.permute.xlu0 %933 }
 0x247   :  { %10689 = vmatprep.subr.msk.bf16.mxu0 %vm12439_vm1, %v10687_v10  ;;  %10007 = vmatprep.mubr.msk.f32.mxu0 %vm682_vm0, %v934_v11 }
 0x248   :  { %10692 = vmatpush3.bf16.xpose.msk.msra.mxu0 %vm12439_vm1, %v10687_v10 }
 0x24a   :  { %v11186_v31 = vpop.permute.xlu1 %11185 }
 0x24b   :  { %v11188_v12 = vunpack.i.h.bf16 %v11186_v31  ;;  %v11187_v34 = vunpack.i.l.bf16 %v11186_v31  ;;  %v938_v19 = vpop.permute.xlu0 %937 }
 0x24d   :  { %v10693_v55 = vpack.c.bf16 %v11188_v12, %v11187_v34 }
 0x24e   :  { %v936_v17 = vpop.permute.xlu1 %935 }
 0x24f   :  { %10695 = vmatprep.subr.msk.bf16.mxu0 %vm12439_vm1, %v10693_v55 }
 0x250   :  { %10698 = vmatpush3.bf16.xpose.msk.msra.mxu0 %vm12439_vm1, %v10693_v55 }
 0x252   :  { %v940_v21 = vpop.permute.xlu1 %939 }
 0x257   :  { %10008 = vmatmul.mubr.msk.f32.vlgmr.msra.gmra.mrb[16].mxu0 %vm682_vm0, %v936_v17 }
 0x258   :  { %10010 = vmatprep.mubr.msk.f32.mxu0 %vm682_vm0, %v938_v19 }
 0x25b   :  { %10011 = vmatmul.mubr.msk.f32.gmra.mrb[18].mxu0 %vm682_vm0, %v940_v21 }
 0x2b3   :  { %v9981_v22 = vpop.f32.mrb[8].mxu1 }
 0x2b4   :  { %v773_v23 = vpop.f32.mrb[9].mxu1  ;;  %v795_v4 = vsel %vm682_vm0, %v9981_v22, -inf }
 0x2b5   :  { %796 = vmax.xlane.f32.xlu1 %v795_v4  ;;  %v792_v29 = vsel %vm682_vm0, %v773_v23, -inf }
 0x2b6   :  { %793 = vmax.xlane.f32.xlu0 %v792_v29 }
 0x2b7   :  { %v9984_v30 = vpop.f32.mrb[10].mxu1 }
 0x2b8   :  { %v783_v32 = vpop.f32.mrb[11].mxu1  ;;  %v801_v35 = vsel %vm682_vm0, %v9984_v30, -inf }
 0x2b9   :  { %v798_v33 = vsel %vm682_vm0, %v783_v32, -inf }
 0x2ba   :  { %799 = vmax.xlane.f32.xlu0 %v798_v33 }
 0x2be   :  { %802 = vmax.xlane.f32.xlu0 %v801_v35 }
 0x32a   :  { %v10009_v36 = vpop.f32.mrb[16].mxu0 }
 0x32b   :  { %v1031_v42 = vpop.f32.mrb[17].mxu0  ;;  %v1053_v44 = vsel %vm682_vm0, %v10009_v36, -inf }
 0x32c   :  { %1054 = vmax.xlane.f32.xlu0 %v1053_v44  ;;  %v1050_v45 = vsel %vm682_vm0, %v1031_v42, -inf }
 0x32d   :  { %1051 = vmax.xlane.f32.xlu1 %v1050_v45 }
 0x32e   :  { %v10012_v46 = vpop.f32.mrb[18].mxu0 }
 0x32f   :  { %v12546_v49 = vpop.f32.mrb[19].mxu0  ;;  %v1059_v58 = vsel %vm682_vm0, %v10012_v46, -inf }
 0x330   :  { %1060 = vmax.xlane.f32.xlu0 %v1059_v58 }
 0x33e   :  { %11190 = vrot.lane.b32.xlu1 %v12457_v7, %s12095_s19 }
 0x342   :  { %v797_v59 = vpop.xlane.xlu1 %796 }
 0x343   :  { %v805_v43 = vsub.f32 %v9981_v22, %v797_v59  ;;  %v794_v1 = vpop.xlane.xlu0 %793 }
 0x344   :  { %v804_v31 = vsub.f32 %v773_v23, %v794_v1  ;;  %v1056_v23 = vsel %vm682_vm0, %v12546_v49, -inf }
 0x345   :  { %v810_v6 = vmul.f32 1.442695, %v805_v43 }
 0x346   :  { %v808_v55 = vmul.f32 1.442695, %v804_v31 }
 0x347   :  { %11643 = vpow2.f32 %v810_v6  ;;  %v800_v8 = vpop.xlane.xlu0 %799 }
 0x348   :  { %v806_v17 = vsub.f32 %v783_v32, %v800_v8 }
 0x34a   :  { %v812_v19 = vmul.f32 1.442695, %v806_v17 }
 0x34b   :  { %v803_v9 = vpop.xlane.xlu0 %802 }
 0x34c   :  { %v807_v10 = vsub.f32 %v9984_v30, %v803_v9 }
 0x34e   :  { %v814_v11 = vmul.f32 1.442695, %v807_v10 }
 0x350   :  { %11645 = vpow2.f32 %v814_v11 }
 0x351   :  { %v12551_v12 = vpop.eup %11643  ;;  %11647 = vpow2.f32 %v808_v55 }
 0x352   :  { %v819_v34 = vsel %vm682_vm0, %v12551_v12, 0.0  ;;  %11649 = vpow2.f32 %v812_v19 }
 0x353   :  { %820 = vadd.xlane.f32.xlu0 %v819_v34 }
 0x35a   :  { %v12555_v21 = vpop.eup %11645 }
 0x35b   :  { %v825_v22 = vsel %vm682_vm0, %v12555_v21, 0.0  ;;  %v11648_v4 = vpop.eup %11647 }
 0x35c   :  { %826 = vadd.xlane.f32.xlu0 %v825_v22  ;;  %v816_v29 = vsel %vm682_vm0, %v11648_v4, 0.0  ;;  %v11650_v30 = vpop.eup %11649 }
 0x35d   :  { %v822_v32 = vsel %vm682_vm0, %v11650_v30, 0.0 }
 0x362   :  { %1057 = vmax.xlane.f32.xlu1 %v1056_v23 }
 0x366   :  { %817 = vadd.xlane.f32.xlu1 %v816_v29 }
 0x36a   :  { %823 = vadd.xlane.f32.xlu1 %v822_v32 }
 0x37b   :  { %11200 = vrot.lane.b32.xlu1 %v12443_v53, %s12092_s10 }
 0x37f   :  { %11205 = vrot.lane.b32.xlu1 %v12465_v13, %s12092_s10 }
 0x3b9   :  { %v1055_v33 = vpop.xlane.xlu0 %1054 }
 0x3ba   :  { %v1063_v35 = vsub.f32 %v10009_v36, %v1055_v33  ;;  %v1052_v44 = vpop.xlane.xlu1 %1051 }
 0x3bb   :  { %v1062_v45 = vsub.f32 %v1031_v42, %v1052_v44 }
 0x3bc   :  { %v1068_v58 = vmul.f32 1.442695, %v1063_v35 }
 0x3bd   :  { %v1066_v59 = vmul.f32 1.442695, %v1062_v45  ;;  %v1061_v42 = vpop.xlane.xlu0 %1060 }
 0x3be   :  { %11651 = vpow2.f32 %v1068_v58  ;;  %v11191_v43 = vpop.permute.xlu1 %11190  ;;  %v1065_v31 = vsub.f32 %v10012_v46, %v1061_v42 }
 0x3bf   :  { %11653 = vpow2.f32 %v1066_v59  ;;  %v11193_v1 = vunpack.i.h.bf16 %v11191_v43  ;;  %v11192_v6 = vunpack.i.l.bf16 %v11191_v43 }
 0x3c0   :  { %v1072_v34 = vmul.f32 1.442695, %v1065_v31 }
 0x3c1   :  { %v10699_v8 = vpack.c.bf16 %v11193_v1, %v11192_v6 }
 0x3c2   :  { %11655 = vpow2.f32 %v1072_v34 }
 0x3c3   :  { %10700 = vmatprep.subr.bf16.mxu1 %v10699_v8 }
 0x3c8   :  { %v12567_v9 = vpop.eup %11651 }
 0x3c9   :  { %v12569_v10 = vpop.eup %11653  ;;  %v1077_v11 = vsel %vm682_vm0, %v12567_v9, 0.0 }
 0x3ca   :  { %1078 = vadd.xlane.f32.xlu0 %v1077_v11  ;;  %v1074_v36 = vsel %vm682_vm0, %v12569_v10, 0.0 }
 0x3cb   :  { %1075 = vadd.xlane.f32.xlu1 %v1074_v36  ;;  %v671_v36 = vld [vmem:[#allocation4 + $0x28] sm:$0xff] }
 0x3cc   :  { %v12580_v33 = vpop.eup %11655 }
 0x3cd   :  { %v1083_v46 = vsel %vm682_vm0, %v12580_v33, 0.0 }
 0x3dc   :  { %1403 = vrot.lane.b32.xlu1 %v12477_v54, %s12092_s10 }
 0x3e0   :  { %11195 = vrot.lane.b32.xlu0 %v12455_v3, %s12095_s19  ;;  %v821_v17 = vpop.xlane.xlu0 %820 }
 0x3e1   :  { %11657 = vrcp.f32 %v821_v17 }
 0x3e9   :  { %v827_v29 = vpop.xlane.xlu0 %826 }
 0x3eb   :  { %v11658_v35 = vpop.eup %11657 }
 0x3ec   :  { %v833_v43 = vmul.f32 %v11658_v35, %v12551_v12 }
 0x3ef   :  { %v1058_v55 = vpop.xlane.xlu1 %1057 }
 0x3f0   :  { %v1064_v19 = vsub.f32 %v12546_v49, %v1058_v55 }
 0x3f2   :  { %v1070_v22 = vmul.f32 1.442695, %v1064_v19 }
 0x3f3   :  { %v818_v23 = vpop.xlane.xlu1 %817 }
 0x3f4   :  { %11659 = vpow2.f32 %v1070_v22 }
 0x3f5   :  { %11661 = vrcp.f32 %v818_v23 }
 0x3f6   :  { %11663 = vrcp.f32 %v827_v29 }
 0x3f7   :  { %v824_v32 = vpop.xlane.xlu1 %823 }
 0x3f8   :  { %11665 = vrcp.f32 %v824_v32 }
 0x3fe   :  { %v12582_v44 = vpop.eup %11659 }
 0x3ff   :  { %v11662_v45 = vpop.eup %11661  ;;  %1084 = vadd.xlane.f32.xlu0 %v1083_v46  ;;  %v1080_v49 = vsel %vm682_vm0, %v12582_v44, 0.0 }
 0x400   :  { %1081 = vadd.xlane.f32.xlu1 %v1080_v49  ;;  %v832_v58 = vmul.f32 %v11662_v45, %v11648_v4  ;;  %v11664_v59 = vpop.eup %11663 }
 0x401   :  { %v835_v11 = vmul.f32 %v11664_v59, %v12555_v21 }
 0x402   :  { %v11666_v1 = vpop.eup %11665  ;;  %9993 = vmatprep.mubr.msk.f32.mxu1 %vm682_vm0, %v832_v58 }
 0x403   :  { %9994 = vmatmul.mubr.msk.f32.vlgmr.msra.gmra.mrb[12].mxu1 %vm682_vm0, %v833_v43  ;;  %v834_v6 = vmul.f32 %v11666_v1, %v11650_v30 }
 0x404   :  { %10702 = vmatpush3.bf16.msra.mxu1 %v10699_v8  ;;  %v670_v8 = vld [vmem:[#allocation4 + $0x20] sm:$0xff] }
 0x405   :  { %9996 = vmatprep.mubr.msk.f32.mxu1 %vm682_vm0, %v834_v6  ;;  %v12612_v34 = vpack.c.bf16 %v671_v36, %v670_v8 }
 0x407   :  { %9997 = vmatmul.mubr.msk.f32.gmra.mrb[14].mxu1 %vm682_vm0, %v835_v11  ;;  %10708 = vmatprep.subr.bf16.mxu0 %v12612_v34 }
 0x408   :  { %10710 = vmatpush3.bf16.msra.mxu0 %v12612_v34 }
 0x411   :  { %1407 = vrot.lane.b32.xlu1 %v12482_v18, %s12092_s10 }
 0x415   :  { %11215 = vrot.lane.b32.xlu1 %v12465_v13, %s12096_s5  ;;  %1401 = vrot.lane.b32.xlu0 %v12428_v41, %s12092_s10  ;;  %v11201_v13 = vpop.permute.xlu1 %11200 }
 0x416   :  { %v11203_v4 = vunpack.i.h.bf16 %v11201_v13  ;;  %v11202_v42 = vunpack.i.l.bf16 %v11201_v13 }
 0x418   :  { %v10723_v17 = vpack.c.bf16 %v11203_v4, %v11202_v42  ;;  %v12661_v42 = vmul.f32 0.17677669, %v12489_v20  ;;  %v12675_v20 = vmul.f32 0.17677669, %v12509_v47  ;;  %v668_v47 = vld [vmem:[#allocation4 + $0x10] sm:$0xff] }
 0x419   :  { %1774 = vrot.lane.b32.xlu1 %v12477_v54, %s12096_s5  ;;  %1405 = vrot.lane.b32.xlu0 %v12467_v14, %s12092_s10  ;;  %v11206_v12 = vpop.permute.xlu1 %11205 }
 0x41a   :  { %v11208_v29 = vunpack.i.h.bf16 %v11206_v12  ;;  %v11207_v32 = vunpack.i.l.bf16 %v11206_v12 }
 0x41c   :  { %v10729_v46 = vpack.c.bf16 %v11208_v29, %v11207_v32 }
 0x41d   :  { %1778 = vrot.lane.b32.xlu1 %v12482_v18, %s12096_s5  ;;  %11210 = vrot.lane.b32.xlu0 %v12443_v53, %s12096_s5  ;;  %v672_v18 = vld [vmem:[#allocation4 + $0x30] sm:$0xff] }
 0x421   :  { %1772 = vrot.lane.b32.xlu0 %v12428_v41, %s12096_s5  ;;  %v673_v41 = vld [vmem:[#allocation4 + $0x38] sm:$0xff] }
 0x422   :  { %v12614_v55 = vpack.c.bf16 %v673_v41, %v672_v18  ;;  %v667_v41 = vld [vmem:[#allocation4 + $0x8] sm:$0xff] }
 0x424   :  { %10712 = vmatprep.subr.bf16.mxu0 %v12614_v55 }
 0x425   :  { %1776 = vrot.lane.b32.xlu0 %v12467_v14, %s12096_s5  ;;  %10714 = vmatpush3.bf16.msra.mxu0 %v12614_v55 }
 0x457   :  { %v1079_v21 = vpop.xlane.xlu0 %1078 }
 0x458   :  { %11667 = vrcp.f32 %v1079_v21  ;;  %v1076_v54 = vpop.xlane.xlu1 %1075 }
 0x459   :  { %11669 = vrcp.f32 %v1076_v54 }
 0x45b   :  { %v11196_v30 = vpop.permute.xlu0 %11195 }
 0x45c   :  { %v11198_v31 = vunpack.i.h.bf16 %v11196_v30  ;;  %v11197_v53 = vunpack.i.l.bf16 %v11196_v30  ;;  %v1404_v45 = vpop.permute.xlu1 %1403 }
 0x45e   :  { %v10703_v14 = vpack.c.bf16 %v11198_v31, %v11197_v53  ;;  %v666_v53 = vld [vmem:[#allocation4] sm:$0xff] }
 0x460   :  { %10704 = vmatprep.subr.bf16.mxu1 %v10703_v14 }
 0x461   :  { %10706 = vmatpush3.bf16.msra.mxu1 %v10703_v14  ;;  %v12672_v14 = vpack.c.bf16 %v667_v41, %v666_v53 }
 0x462   :  { %v11668_v19 = vpop.eup %11667  ;;  %10725 = vmatprep.subr.msk.bf16.mxu1 %vm12439_vm1, %v10723_v17 }
 0x463   :  { %v11670_v22 = vpop.eup %11669  ;;  %v1091_v35 = vmul.f32 %v11668_v19, %v12567_v9  ;;  %10716 = vmatprep.subr.bf16.mxu0 %v12672_v14 }
 0x464   :  { %v1090_v23 = vmul.f32 %v11670_v22, %v12569_v10 }
 0x466   :  { %10021 = vmatprep.mubr.msk.f32.mxu1 %vm682_vm0, %v1090_v23  ;;  %v669_v23 = vld [vmem:[#allocation4 + $0x18] sm:$0xff] }
 0x467   :  { %10022 = vmatmul.mubr.msk.f32.vlgmr.msra.gmra.mrb[16].mxu1 %vm682_vm0, %v1091_v35  ;;  %v12687_v35 = vpack.c.bf16 %v669_v23, %v668_v47 }
 0x46a   :  { %10728 = vmatpush3.bf16.xpose.msk.msra.mxu1 %vm12439_vm1, %v10723_v17 }
 0x46b   :  { %10731 = vmatprep.subr.msk.bf16.mxu1 %vm12439_vm1, %v10729_v46 }
 0x472   :  { %10734 = vmatpush3.bf16.xpose.msk.msra.mxu1 %vm12439_vm1, %v10729_v46 }
 0x48c   :  { %v1085_v10 = vpop.xlane.xlu0 %1084 }
 0x48d   :  { %11671 = vrcp.f32 %v1085_v10  ;;  %v1082_v49 = vpop.xlane.xlu1 %1081 }
 0x48e   :  { %11673 = vrcp.f32 %v1082_v49 }
 0x490   :  { %v1402_v9 = vpop.permute.xlu0 %1401 }
 0x491   :  { %v1408_v58 = vpop.permute.xlu1 %1407 }
 0x494   :  { %v1406_v59 = vpop.permute.xlu0 %1405 }
 0x495   :  { %v11216_v11 = vpop.permute.xlu1 %11215 }
 0x496   :  { %v11218_v30 = vunpack.i.h.bf16 %v11216_v11  ;;  %v11217_v8 = vunpack.i.l.bf16 %v11216_v11 }
 0x497   :  { %v11672_v43 = vpop.eup %11671 }
 0x498   :  { %v11674_v1 = vpop.eup %11673  ;;  %v11211_v6 = vpop.permute.xlu0 %11210  ;;  %v1093_v54 = vmul.f32 %v11672_v43, %v12580_v33  ;;  %v10757_v36 = vpack.c.bf16 %v11218_v30, %v11217_v8 }
 0x499   :  { %v11213_v13 = vunpack.i.h.bf16 %v11211_v6  ;;  %v11212_v12 = vunpack.i.l.bf16 %v11211_v6  ;;  %v1092_v21 = vmul.f32 %v11674_v1, %v12582_v44  ;;  %v1775_v44 = vpop.permute.xlu1 %1774 }
 0x49b   :  { %v10751_v4 = vpack.c.bf16 %v11213_v13, %v11212_v12  ;;  %10024 = vmatprep.mubr.msk.f32.mxu1 %vm682_vm0, %v1092_v21 }
 0x49c   :  { %10025 = vmatmul.mubr.msk.f32.gmra.mrb[18].mxu1 %vm682_vm0, %v1093_v54  ;;  %v1773_v33 = vpop.permute.xlu0 %1772 }
 0x49d   :  { %10063 = vmatprep.mubr.msk.f32.mxu1 %vm682_vm0, %v1402_v9  ;;  %10753 = vmatprep.subr.msk.bf16.mxu1 %vm12439_vm1, %v10751_v4  ;;  %v1779_v31 = vpop.permute.xlu1 %1778 }
 0x4a0   :  { %10064 = vmatmul.mubr.msk.f32.vlgmr.msra.gmra.mrb[20].mxu1 %vm682_vm0, %v1404_v45  ;;  %v1777_v18 = vpop.permute.xlu0 %1776 }
 0x4a1   :  { %10756 = vmatpush3.bf16.xpose.msk.msra.mxu1 %vm12439_vm1, %v10751_v4  ;;  %10066 = vmatprep.mubr.msk.f32.mxu1 %vm682_vm0, %v1406_v59 }
 0x4a2   :  { %10759 = vmatprep.subr.msk.bf16.mxu1 %vm12439_vm1, %v10757_v36 }
 0x4a4   :  { %10067 = vmatmul.mubr.msk.f32.gmra.mrb[22].mxu1 %vm682_vm0, %v1408_v58 }
 0x4a5   :  { %10105 = vmatprep.mubr.msk.f32.mxu1 %vm682_vm0, %v1773_v33 }
 0x4a9   :  { %10762 = vmatpush3.bf16.xpose.msk.msra.mxu1 %vm12439_vm1, %v10757_v36 }
 0x4aa   :  { %10781 = vmatprep.subr.msk.bf16.mxu1 %vm12439_vm1, %v12502_v37 }
 0x4b0   :  { %10106 = vmatmul.mubr.msk.f32.vlgmr.msra.gmra.mrb[24].mxu1 %vm682_vm0, %v1775_v44 }
 0x4b1   :  { %10108 = vmatprep.mubr.msk.f32.mxu1 %vm682_vm0, %v1777_v18  ;;  %10784 = vmatpush3.bf16.xpose.msk.msra.mxu1 %vm12439_vm1, %v12502_v37  ;;  %v12670_v37 = vmul.f32 0.17677669, %v12495_v24 }
 0x4b2   :  { %10787 = vmatprep.subr.msk.bf16.mxu1 %vm12439_vm1, %v12524_v2 }
 0x4b4   :  { %10109 = vmatmul.mubr.msk.f32.gmra.mrb[26].mxu1 %vm682_vm0, %v1779_v31 }
 0x4b5   :  { %10147 = vmatprep.mubr.msk.f32.mxu1 %vm682_vm0, %v12661_v42 }
 0x4b9   :  { %10790 = vmatpush3.bf16.xpose.msk.msra.mxu1 %vm12439_vm1, %v12524_v2  ;;  %v12683_v2 = vmul.f32 0.17677669, %v12521_v63 }
 0x4c0   :  { %10148 = vmatmul.mubr.msk.f32.vlgmr.msra.gmra.mrb[28].mxu1 %vm682_vm0, %v12670_v37 }
 0x4c1   :  { %10150 = vmatprep.mubr.msk.f32.mxu1 %vm682_vm0, %v12675_v20 }
 0x4c4   :  { %10151 = vmatmul.mubr.msk.f32.gmra.mrb[30].mxu1 %vm682_vm0, %v12683_v2 }
 0x4d6   :  { %v9995_v24 = vpop.f32.mrb[12].mxu1 }
 0x4d7   :  { %v914_v17 = vpop.f32.mrb[13].mxu1 }
 0x4da   :  { %v9998_v19 = vpop.f32.mrb[14].mxu1 }
 0x4db   :  { %v924_v22 = vpop.f32.mrb[15].mxu1 }
 0x53a   :  { %v10023_v29 = vpop.f32.mrb[16].mxu1 }
 0x53b   :  { %v1188_v32 = vpop.f32.mrb[17].mxu1 }
 0x53c   :  { %10035 = vmatprep.mubr.msk.f32.mxu0 %vm682_vm0, %v1188_v32 }
 0x53d   :  { %10036 = vmatmul.mubr.msk.f32.vlgmr.msra.gmra.mrb[20].mxu0 %vm682_vm0, %v10023_v29 }
 0x53e   :  { %10718 = vmatpush3.bf16.msra.mxu0 %v12672_v14 }
 0x53f   :  { %10720 = vmatprep.subr.bf16.mxu0 %v12687_v35 }
 0x542   :  { %10722 = vmatpush3.bf16.msra.mxu0 %v12687_v35 }
 0x56f   :  { %v10026_v63 = vpop.f32.mrb[18].mxu1 }
 0x570   :  { %v1198_v46 = vpop.f32.mrb[19].mxu1 }
 0x571   :  { %10038 = vmatprep.mubr.msk.f32.mxu0 %vm682_vm0, %v1198_v46 }
 0x572   :  { %10039 = vmatmul.mubr.msk.f32.gmra.mrb[22].mxu0 %vm682_vm0, %v10026_v63 }
 0x573   :  { %10049 = vmatprep.mubr.msk.f32.mxu0 %vm682_vm0, %v914_v17  ;;  %v10065_v45 = vpop.f32.mrb[20].mxu1 }
 0x574   :  { %v1499_v10 = vpop.f32.mrb[21].mxu1  ;;  %v1521_v49 = vsel %vm682_vm0, %v10065_v45, -inf }
 0x575   :  { %1522 = vmax.xlane.f32.xlu1 %v1521_v49  ;;  %v1518_v9 = vsel %vm682_vm0, %v1499_v10, -inf }
 0x576   :  { %1519 = vmax.xlane.f32.xlu0 %v1518_v9  ;;  %10050 = vmatmul.mubr.msk.f32.vlgmr.msra.gmra.mrb[20].mxu0 %vm682_vm0, %v9995_v24 }
 0x577   :  { %10052 = vmatprep.mubr.msk.f32.mxu0 %vm682_vm0, %v924_v22  ;;  %v10068_v58 = vpop.f32.mrb[22].mxu1 }
 0x578   :  { %v1509_v59 = vpop.f32.mrb[23].mxu1  ;;  %v1527_v1 = vsel %vm682_vm0, %v10068_v58, -inf }
 0x579   :  { %v1524_v43 = vsel %vm682_vm0, %v1509_v59, -inf }
 0x57a   :  { %1525 = vmax.xlane.f32.xlu0 %v1524_v43  ;;  %10053 = vmatmul.mubr.msk.f32.gmra.mrb[22].mxu0 %vm682_vm0, %v9998_v19 }
 0x57e   :  { %1528 = vmax.xlane.f32.xlu0 %v1527_v1 }
 0x583   :  { %v12704_v6 = vpop.f32.mrb[24].mxu1 }
 0x584   :  { %v12706_v11 = vpop.f32.mrb[25].mxu1  ;;  %v1892_v9 = vsel %vm682_vm0, %v12704_v6, -inf }
 0x585   :  { %v1889_v49 = vsel %vm682_vm0, %v12706_v11, -inf }
 0x587   :  { %v12708_v13 = vpop.f32.mrb[26].mxu1 }
 0x588   :  { %v12710_v12 = vpop.f32.mrb[27].mxu1 }
 0x593   :  { %v12712_v21 = vpop.f32.mrb[28].mxu1 }
 0x594   :  { %v12714_v54 = vpop.f32.mrb[29].mxu1 }
 0x597   :  { %v12716_v4 = vpop.f32.mrb[30].mxu1 }
 0x598   :  { %v12718_v30 = vpop.f32.mrb[31].mxu1 }
 0x602   :  { %v1523_v8 = vpop.xlane.xlu1 %1522 }
 0x603   :  { %v1531_v36 = vsub.f32 %v10065_v45, %v1523_v8  ;;  %v1520_v33 = vpop.xlane.xlu0 %1519 }
 0x604   :  { %v1530_v44 = vsub.f32 %v1499_v10, %v1520_v33 }
 0x605   :  { %v1536_v18 = vmul.f32 1.442695, %v1531_v36 }
 0x606   :  { %v1534_v31 = vmul.f32 1.442695, %v1530_v44 }
 0x607   :  { %11675 = vpow2.f32 %v1536_v18  ;;  %v1526_v53 = vpop.xlane.xlu0 %1525 }
 0x608   :  { %11677 = vpow2.f32 %v1534_v31  ;;  %v1532_v41 = vsub.f32 %v1509_v59, %v1526_v53  ;;  %v1898_v59 = vsel %vm682_vm0, %v12708_v13, -inf }
 0x60a   :  { %v1538_v24 = vmul.f32 1.442695, %v1532_v41 }
 0x60b   :  { %v1529_v17 = vpop.xlane.xlu0 %1528 }
 0x60c   :  { %11679 = vpow2.f32 %v1538_v24  ;;  %v1533_v19 = vsub.f32 %v10068_v58, %v1529_v17  ;;  %v1895_v58 = vsel %vm682_vm0, %v12710_v12, -inf }
 0x60e   :  { %v1540_v22 = vmul.f32 1.442695, %v1533_v19 }
 0x610   :  { %11681 = vpow2.f32 %v1540_v22 }
 0x611   :  { %v12720_v47 = vpop.eup %11675 }
 0x612   :  { %v11678_v23 = vpop.eup %11677  ;;  %v1545_v29 = vsel %vm682_vm0, %v12720_v47, 0.0 }
 0x613   :  { %1546 = vadd.xlane.f32.xlu0 %v1545_v29  ;;  %v1542_v32 = vsel %vm682_vm0, %v11678_v23, 0.0 }
 0x614   :  { %1543 = vadd.xlane.f32.xlu1 %v1542_v32 }
 0x616   :  { %v11680_v63 = vpop.eup %11679 }
 0x617   :  { %v1548_v46 = vsel %vm682_vm0, %v11680_v63, 0.0 }
 0x618   :  { %1549 = vadd.xlane.f32.xlu1 %v1548_v46 }
 0x61a   :  { %v11682_v45 = vpop.eup %11681 }
 0x61b   :  { %v1551_v10 = vsel %vm682_vm0, %v11682_v45, 0.0 }
 0x61c   :  { %1552 = vadd.xlane.f32.xlu0 %v1551_v10 }
 0x629   :  { %11220 = vrot.lane.b32.xlu1 %v12457_v7, %s12092_s10 }
 0x62d   :  { %11230 = vrot.lane.b32.xlu1 %v12504_v40, %s12095_s19 }
 0x631   :  { %11235 = vrot.lane.b32.xlu1 %v12526_v5, %s12095_s19 }
 0x632   :  { %11225 = vrot.lane.b32.xlu0 %v12455_v3, %s12092_s10 }
 0x635   :  { %2395 = vrot.lane.b32.xlu1 %v12670_v37, %s12095_s19 }
 0x636   :  { %2393 = vrot.lane.b32.xlu0 %v12661_v42, %s12095_s19 }
 0x639   :  { %2399 = vrot.lane.b32.xlu1 %v12683_v2, %s12095_s19 }
 0x63a   :  { %2397 = vrot.lane.b32.xlu0 %v12675_v20, %s12095_s19 }
 0x659   :  { %1890 = vmax.xlane.f32.xlu0 %v1889_v49 }
 0x65d   :  { %1893 = vmax.xlane.f32.xlu1 %v1892_v9  ;;  %1896 = vmax.xlane.f32.xlu0 %v1895_v58 }
 0x661   :  { %1899 = vmax.xlane.f32.xlu0 %v1898_v59 }
 0x6a0   :  { %v1547_v1 = vpop.xlane.xlu0 %1546 }
 0x6a1   :  { %v1544_v43 = vpop.xlane.xlu1 %1543 }
 0x6a2   :  { %11683 = vrcp.f32 %v1544_v43 }
 0x6a3   :  { %11685 = vrcp.f32 %v1547_v1 }
 0x6a5   :  { %v1550_v8 = vpop.xlane.xlu1 %1549 }
 0x6a6   :  { %11687 = vrcp.f32 %v1550_v8 }
 0x6a9   :  { %v11221_v36 = vpop.permute.xlu1 %11220  ;;  %v1553_v33 = vpop.xlane.xlu0 %1552 }
 0x6aa   :  { %v11223_v44 = vunpack.i.h.bf16 %v11221_v36  ;;  %v11222_v18 = vunpack.i.l.bf16 %v11221_v36  ;;  %11689 = vrcp.f32 %v1553_v33 }
 0x6ac   :  { %v11684_v31 = vpop.eup %11683  ;;  %v10735_v53 = vpack.c.bf16 %v11223_v44, %v11222_v18 }
 0x6ad   :  { %v11231_v41 = vpop.permute.xlu1 %11230  ;;  %v11226_v24 = vpop.permute.xlu0 %11225  ;;  %v1558_v17 = vmul.f32 %v11684_v31, %v11678_v23 }
 0x6ae   :  { %v11233_v19 = vunpack.i.h.bf16 %v11231_v41  ;;  %v11232_v22 = vunpack.i.l.bf16 %v11231_v41  ;;  %v11228_v29 = vunpack.i.h.bf16 %v11226_v24  ;;  %v11227_v32 = vunpack.i.l.bf16 %v11226_v24  ;;  %10736 = vmatprep.subr.bf16.mxu0 %v10735_v53  ;;  %v11686_v49 = vpop.eup %11685 }
 0x6af   :  { %10738 = vmatpush3.bf16.msra.mxu0 %v10735_v53  ;;  %10077 = vmatprep.mubr.msk.f32.mxu0 %vm682_vm0, %v1558_v17  ;;  %v1559_v23 = vmul.f32 %v11686_v49, %v12720_v47 }
 0x6b0   :  { %v10799_v46 = vpack.c.bf16 %v11233_v19, %v11232_v22  ;;  %v10739_v10 = vpack.c.bf16 %v11228_v29, %v11227_v32  ;;  %v11688_v59 = vpop.eup %11687 }
 0x6b1   :  { %v11236_v9 = vpop.permute.xlu1 %11235  ;;  %v2394_v58 = vpop.permute.xlu0 %2393  ;;  %v1560_v33 = vmul.f32 %v11688_v59, %v11680_v63 }
 0x6b2   :  { %v11238_v43 = vunpack.i.h.bf16 %v11236_v9  ;;  %v11237_v1 = vunpack.i.l.bf16 %v11236_v9  ;;  %10740 = vmatprep.subr.bf16.mxu0 %v10739_v10  ;;  %10801 = vmatprep.subr.msk.bf16.mxu1 %vm12439_vm1, %v10799_v46 }
 0x6b3   :  { %10175 = vmatprep.mubr.msk.f32.mxu1 %vm682_vm0, %v2394_v58  ;;  %10742 = vmatpush3.bf16.msra.mxu0 %v10739_v10 }
 0x6b4   :  { %v10805_v8 = vpack.c.bf16 %v11238_v43, %v11237_v1  ;;  %10804 = vmatpush3.bf16.xpose.msk.msra.mxu1 %vm12439_vm1, %v10799_v46  ;;  %v11690_v36 = vpop.eup %11689  ;;  %v674_v43 = vld [vmem:[#allocation4 + $0x40] sm:$0xff]  ;;  %v675_v1 = vld [vmem:[#allocation4 + $0x48] sm:$0xff] }
 0x6b5   :  { %v1561_v44 = vmul.f32 %v11690_v36, %v11682_v45  ;;  %v2396_v47 = vpop.permute.xlu1 %2395  ;;  %v2398_v18 = vpop.permute.xlu0 %2397  ;;  %v677_v36 = vld [vmem:[#allocation4 + $0x58] sm:$0xff] }
 0x6b6   :  { %10078 = vmatmul.mubr.msk.f32.vlgmr.msra.gmra.mrb[24].mxu0 %vm682_vm0, %v1559_v23  ;;  %10807 = vmatprep.subr.msk.bf16.mxu1 %vm12439_vm1, %v10805_v8  ;;  %v12785_v23 = vpack.c.bf16 %v675_v1, %v674_v43  ;;  %v678_v43 = vld [vmem:[#allocation4 + $0x60] sm:$0xff]  ;;  %v679_v1 = vld [vmem:[#allocation4 + $0x68] sm:$0xff] }
 0x6b7   :  { %10080 = vmatprep.mubr.msk.f32.mxu0 %vm682_vm0, %v1560_v33 }
 0x6b8   :  { %10744 = vmatprep.subr.bf16.mxu0 %v12785_v23 }
 0x6b9   :  { %v2400_v63 = vpop.permute.xlu1 %2399  ;;  %10746 = vmatpush3.bf16.msra.mxu0 %v12785_v23 }
 0x6ba   :  { %10081 = vmatmul.mubr.msk.f32.gmra.mrb[26].mxu0 %vm682_vm0, %v1561_v44  ;;  %v2258_v44 = vsel %vm682_vm0, %v12718_v30, -inf }
 0x6bc   :  { %10810 = vmatpush3.bf16.xpose.msk.msra.mxu1 %vm12439_vm1, %v10805_v8  ;;  %v676_v8 = vld [vmem:[#allocation4 + $0x50] sm:$0xff] }
 0x6bd   :  { %v12789_v33 = vpack.c.bf16 %v677_v36, %v676_v8 }
 0x6bf   :  { %10748 = vmatprep.subr.bf16.mxu0 %v12789_v33 }
 0x6c0   :  { %10750 = vmatpush3.bf16.msra.mxu0 %v12789_v33 }
 0x6c3   :  { %10176 = vmatmul.mubr.msk.f32.vlgmr.msra.gmra.mrb[32].mxu1 %vm682_vm0, %v2396_v47  ;;  %v2261_v47 = vsel %vm682_vm0, %v12716_v4, -inf }
 0x6c4   :  { %10178 = vmatprep.mubr.msk.f32.mxu1 %vm682_vm0, %v2398_v18 }
 0x6c7   :  { %10179 = vmatmul.mubr.msk.f32.gmra.mrb[34].mxu1 %vm682_vm0, %v2400_v63 }
 0x6e6   :  { %v1891_v31 = vpop.xlane.xlu0 %1890 }
 0x6e7   :  { %v1901_v53 = vsub.f32 %v12706_v11, %v1891_v31 }
 0x6e9   :  { %v1905_v41 = vmul.f32 1.442695, %v1901_v53 }
 0x6ea   :  { %v1894_v24 = vpop.xlane.xlu1 %1893  ;;  %v1897_v45 = vpop.xlane.xlu0 %1896 }
 0x6eb   :  { %11691 = vpow2.f32 %v1905_v41  ;;  %v1902_v17 = vsub.f32 %v12704_v6, %v1894_v24  ;;  %v1903_v19 = vsub.f32 %v12710_v12, %v1897_v45 }
 0x6ed   :  { %v1907_v22 = vmul.f32 1.442695, %v1902_v17  ;;  %v1909_v29 = vmul.f32 1.442695, %v1903_v19 }
 0x6ee   :  { %v1900_v32 = vpop.xlane.xlu0 %1899 }
 0x6ef   :  { %11693 = vpow2.f32 %v1907_v22  ;;  %v1904_v46 = vsub.f32 %v12708_v13, %v1900_v32 }
 0x6f0   :  { %11695 = vpow2.f32 %v1909_v29 }
 0x6f1   :  { %v1911_v10 = vmul.f32 1.442695, %v1904_v46 }
 0x6f3   :  { %11697 = vpow2.f32 %v1911_v10 }
 0x6f5   :  { %v11692_v49 = vpop.eup %11691 }
 0x6f6   :  { %v1913_v11 = vsel %vm682_vm0, %v11692_v49, 0.0 }
 0x6f7   :  { %1914 = vadd.xlane.f32.xlu1 %v1913_v11 }
 0x6f9   :  { %v12773_v9 = vpop.eup %11693 }
 0x6fa   :  { %v12775_v58 = vpop.eup %11695  ;;  %v1916_v6 = vsel %vm682_vm0, %v12773_v9, 0.0 }
 0x6fb   :  { %1917 = vadd.xlane.f32.xlu0 %v1916_v6  ;;  %v1919_v12 = vsel %vm682_vm0, %v12775_v58, 0.0 }
 0x6fc   :  { %1920 = vadd.xlane.f32.xlu1 %v1919_v12 }
 0x6fd   :  { %v12781_v13 = vpop.eup %11697 }
 0x6fe   :  { %v1922_v59 = vsel %vm682_vm0, %v12781_v13, 0.0 }
 0x6ff   :  { %1923 = vadd.xlane.f32.xlu0 %v1922_v59 }
 0x70d   :  { %11240 = vrot.lane.b32.xlu1 %v12457_v7, %s12096_s5  ;;  %v2252_v7 = vsel %vm682_vm0, %v12714_v54, -inf }
 0x711   :  { %11250 = vrot.lane.b32.xlu1 %v12504_v40, %s12092_s10 }
 0x715   :  { %11255 = vrot.lane.b32.xlu1 %v12526_v5, %s12092_s10  ;;  %11245 = vrot.lane.b32.xlu0 %v12455_v3, %s12096_s5  ;;  %v2255_v3 = vsel %vm682_vm0, %v12712_v21, -inf }
 0x719   :  { %2863 = vrot.lane.b32.xlu1 %v12670_v37, %s12092_s10  ;;  %2861 = vrot.lane.b32.xlu0 %v12661_v42, %s12092_s10 }
 0x71d   :  { %2867 = vrot.lane.b32.xlu1 %v12683_v2, %s12092_s10  ;;  %2865 = vrot.lane.b32.xlu0 %v12675_v20, %s12092_s10 }
 0x73c   :  { %2253 = vmax.xlane.f32.xlu0 %v2252_v7 }
 0x740   :  { %2259 = vmax.xlane.f32.xlu0 %v2258_v44 }
 0x741   :  { %2256 = vmax.xlane.f32.xlu1 %v2255_v3 }
 0x744   :  { %2262 = vmax.xlane.f32.xlu0 %v2261_v47  ;;  %v12822_v47 = vpack.c.bf16 %v679_v1, %v678_v43 }
 0x784   :  { %v1915_v18 = vpop.xlane.xlu1 %1914 }
 0x785   :  { %11699 = vrcp.f32 %v1915_v18 }
 0x788   :  { %v1918_v63 = vpop.xlane.xlu0 %1917 }
 0x789   :  { %v1921_v31 = vpop.xlane.xlu1 %1920  ;;  %v10079_v53 = vpop.f32.mrb[24].mxu0  ;;  %11701 = vrcp.f32 %v1918_v63 }
 0x78a   :  { %v1652_v41 = vpop.f32.mrb[25].mxu0  ;;  %11703 = vrcp.f32 %v1921_v31  ;;  %v681_v31 = vld [vmem:[#allocation4 + $0x78] sm:$0xff] }
 0x78b   :  { %10091 = vmatprep.mubr.msk.f32.mxu0 %vm682_vm0, %v1652_v41 }
 0x78c   :  { %v1924_v24 = vpop.xlane.xlu0 %1923  ;;  %10092 = vmatmul.mubr.msk.f32.vlgmr.msra.gmra.mrb[20].mxu0 %vm682_vm0, %v10079_v53 }
 0x78d   :  { %v11241_v45 = vpop.permute.xlu1 %11240  ;;  %v10082_v17 = vpop.f32.mrb[26].mxu0  ;;  %11705 = vrcp.f32 %v1924_v24 }
 0x78e   :  { %v11243_v19 = vunpack.i.h.bf16 %v11241_v45  ;;  %v11242_v22 = vunpack.i.l.bf16 %v11241_v45  ;;  %v1662_v29 = vpop.f32.mrb[27].mxu0 }
 0x78f   :  { %v11700_v32 = vpop.eup %11699  ;;  %10094 = vmatprep.mubr.msk.f32.mxu0 %vm682_vm0, %v1662_v29 }
 0x790   :  { %v11246_v46 = vpop.permute.xlu0 %11245  ;;  %10095 = vmatmul.mubr.msk.f32.gmra.mrb[22].mxu0 %vm682_vm0, %v10082_v17  ;;  %v10763_v10 = vpack.c.bf16 %v11243_v19, %v11242_v22  ;;  %v1929_v11 = vmul.f32 %v11700_v32, %v11692_v49  ;;  %v680_v49 = vld [vmem:[#allocation4 + $0x70] sm:$0xff] }
 0x791   :  { %v11251_v6 = vpop.permute.xlu1 %11250  ;;  %v11248_v12 = vunpack.i.h.bf16 %v11246_v46  ;;  %v11247_v59 = vunpack.i.l.bf16 %v11246_v46  ;;  %v12839_v46 = vpack.c.bf16 %v681_v31, %v680_v49 }
 0x792   :  { %v11253_v8 = vunpack.i.h.bf16 %v11251_v6  ;;  %v11252_v36 = vunpack.i.l.bf16 %v11251_v6  ;;  %10764 = vmatprep.subr.bf16.mxu0 %v10763_v10  ;;  %10119 = vmatprep.mubr.msk.f32.mxu0 %vm682_vm0, %v1929_v11 }
 0x793   :  { %10766 = vmatpush3.bf16.msra.mxu0 %v10763_v10  ;;  %v10767_v7 = vpack.c.bf16 %v11248_v12, %v11247_v59  ;;  %v11702_v18 = vpop.eup %11701 }
 0x794   :  { %v10835_v44 = vpack.c.bf16 %v11253_v8, %v11252_v36  ;;  %v2862_v3 = vpop.permute.xlu0 %2861  ;;  %v11704_v53 = vpop.eup %11703  ;;  %v1930_v22 = vmul.f32 %v11702_v18, %v12773_v9 }
 0x795   :  { %v11256_v63 = vpop.permute.xlu1 %11255  ;;  %10768 = vmatprep.subr.bf16.mxu0 %v10767_v7  ;;  %10231 = vmatprep.mubr.msk.f32.mxu1 %vm682_vm0, %v2862_v3  ;;  %v1931_v11 = vmul.f32 %v11704_v53, %v12775_v58 }
 0x796   :  { %v11258_v41 = vunpack.i.h.bf16 %v11256_v63  ;;  %v11257_v24 = vunpack.i.l.bf16 %v11256_v63  ;;  %v12825_v45 = vpop.f32.mrb[32].mxu1  ;;  %10837 = vmatprep.subr.msk.bf16.mxu1 %vm12439_vm1, %v10835_v44 }
 0x797   :  { %10770 = vmatpush3.bf16.msra.mxu0 %v10767_v7  ;;  %v12829_v17 = vpop.f32.mrb[33].mxu1  ;;  %10840 = vmatpush3.bf16.xpose.msk.msra.mxu1 %vm12439_vm1, %v10835_v44  ;;  %v2513_v19 = vsel %vm682_vm0, %v12825_v45, -inf  ;;  %v11706_v10 = vpop.eup %11705 }
 0x798   :  { %v10841_v29 = vpack.c.bf16 %v11258_v41, %v11257_v24  ;;  %2514 = vmax.xlane.f32.xlu0 %v2513_v19  ;;  %v2510_v32 = vsel %vm682_vm0, %v12829_v17, -inf  ;;  %10772 = vmatprep.subr.bf16.mxu0 %v12822_v47  ;;  %v1932_v43 = vmul.f32 %v11706_v10, %v12781_v13  ;;  %v2866_v1 = vpop.permute.xlu0 %2865 }
 0x799   :  { %2511 = vmax.xlane.f32.xlu1 %v2510_v32  ;;  %v2864_v58 = vpop.permute.xlu1 %2863 }
 0x79a   :  { %10120 = vmatmul.mubr.msk.f32.vlgmr.msra.gmra.mrb[28].mxu0 %vm682_vm0, %v1930_v22  ;;  %v10180_v6 = vpop.f32.mrb[34].mxu1  ;;  %10843 = vmatprep.subr.msk.bf16.mxu1 %vm12439_vm1, %v10841_v29 }
 0x79b   :  { %10122 = vmatprep.mubr.msk.f32.mxu0 %vm682_vm0, %v1931_v11  ;;  %10774 = vmatpush3.bf16.msra.mxu0 %v12822_v47  ;;  %v2501_v9 = vpop.f32.mrb[35].mxu1  ;;  %v2519_v12 = vsel %vm682_vm0, %v10180_v6, -inf }
 0x79c   :  { %2520 = vmax.xlane.f32.xlu0 %v2519_v12  ;;  %v2516_v59 = vsel %vm682_vm0, %v2501_v9, -inf  ;;  %10776 = vmatprep.subr.bf16.mxu0 %v12839_v46 }
 0x79d   :  { %2517 = vmax.xlane.f32.xlu1 %v2516_v59  ;;  %v2868_v8 = vpop.permute.xlu1 %2867 }
 0x79e   :  { %10123 = vmatmul.mubr.msk.f32.gmra.mrb[30].mxu0 %vm682_vm0, %v1932_v43 }
 0x79f   :  { %10778 = vmatpush3.bf16.msra.mxu0 %v12839_v46  ;;  %10846 = vmatpush3.bf16.xpose.msk.msra.mxu1 %vm12439_vm1, %v10841_v29 }
 0x7a0   :  { %10792 = vmatprep.subr.bf16.mxu0 %v12516_v61 }
 0x7a6   :  { %10232 = vmatmul.mubr.msk.f32.vlgmr.msra.gmra.mrb[36].mxu1 %vm682_vm0, %v2864_v58 }
 0x7a7   :  { %10234 = vmatprep.mubr.msk.f32.mxu1 %vm682_vm0, %v2866_v1 }
 0x7aa   :  { %10235 = vmatmul.mubr.msk.f32.gmra.mrb[38].mxu1 %vm682_vm0, %v2868_v8 }
 0x7c9   :  { %v2254_v13 = vpop.xlane.xlu0 %2253 }
 0x7ca   :  { %v2264_v36 = vsub.f32 %v12714_v54, %v2254_v13 }
 0x7cc   :  { %v2268_v7 = vmul.f32 1.442695, %v2264_v36 }
 0x7cd   :  { %v2260_v44 = vpop.xlane.xlu0 %2259 }
 0x7ce   :  { %11707 = vpow2.f32 %v2268_v7  ;;  %v2257_v3 = vpop.xlane.xlu1 %2256  ;;  %v2266_v18 = vsub.f32 %v12718_v30, %v2260_v44 }
 0x7cf   :  { %v2265_v63 = vsub.f32 %v12712_v21, %v2257_v3 }
 0x7d0   :  { %v2272_v49 = vmul.f32 1.442695, %v2266_v18 }
 0x7d1   :  { %v2270_v31 = vmul.f32 1.442695, %v2265_v63  ;;  %v2263_v53 = vpop.xlane.xlu0 %2262 }
 0x7d2   :  { %11709 = vpow2.f32 %v2272_v49  ;;  %v2267_v41 = vsub.f32 %v12716_v4, %v2263_v53 }
 0x7d3   :  { %11711 = vpow2.f32 %v2270_v31 }
 0x7d4   :  { %v2274_v24 = vmul.f32 1.442695, %v2267_v41 }
 0x7d6   :  { %11713 = vpow2.f32 %v2274_v24 }
 0x7d8   :  { %v12863_v19 = vpop.eup %11707 }
 0x7d9   :  { %v2276_v54 = vsel %vm682_vm0, %v12863_v19, 0.0 }
 0x7da   :  { %2277 = vadd.xlane.f32.xlu1 %v2276_v54 }
 0x7dc   :  { %v12867_v22 = vpop.eup %11709 }
 0x7dd   :  { %v12869_v30 = vpop.eup %11711  ;;  %v2282_v21 = vsel %vm682_vm0, %v12867_v22, 0.0 }
 0x7de   :  { %v2279_v29 = vsel %vm682_vm0, %v12869_v30, 0.0  ;;  %2283 = vadd.xlane.f32.xlu1 %v2282_v21 }
 0x7df   :  { %2280 = vadd.xlane.f32.xlu0 %v2279_v29 }
 0x7e0   :  { %v12875_v4 = vpop.eup %11713 }
 0x7e1   :  { %v2285_v32 = vsel %vm682_vm0, %v12875_v4, 0.0 }
 0x7e3   :  { %2286 = vadd.xlane.f32.xlu0 %v2285_v32 }
 0x825   :  { %v2515_v10 = vpop.xlane.xlu0 %2514 }
 0x826   :  { %v2523_v11 = vsub.f32 %v12825_v45, %v2515_v10  ;;  %v2512_v12 = vpop.xlane.xlu1 %2511 }
 0x827   :  { %v2522_v59 = vsub.f32 %v12829_v17, %v2512_v12 }
 0x828   :  { %v2528_v43 = vmul.f32 1.442695, %v2523_v11 }
 0x829   :  { %v2526_v58 = vmul.f32 1.442695, %v2522_v59  ;;  %v2521_v1 = vpop.xlane.xlu0 %2520 }
 0x82a   :  { %11715 = vpow2.f32 %v2528_v43  ;;  %v2525_v8 = vsub.f32 %v10180_v6, %v2521_v1  ;;  %v2518_v13 = vpop.xlane.xlu1 %2517 }
 0x82b   :  { %11717 = vpow2.f32 %v2526_v58  ;;  %v2524_v36 = vsub.f32 %v2501_v9, %v2518_v13 }
 0x82c   :  { %v2532_v7 = vmul.f32 1.442695, %v2525_v8 }
 0x82d   :  { %v2530_v44 = vmul.f32 1.442695, %v2524_v36 }
 0x82e   :  { %11719 = vpow2.f32 %v2532_v7 }
 0x82f   :  { %11721 = vpow2.f32 %v2530_v44 }
 0x834   :  { %v12881_v3 = vpop.eup %11715 }
 0x835   :  { %v12883_v18 = vpop.eup %11717  ;;  %v2537_v45 = vsel %vm682_vm0, %v12881_v3, 0.0 }
 0x836   :  { %2538 = vadd.xlane.f32.xlu0 %v2537_v45  ;;  %v2534_v17 = vsel %vm682_vm0, %v12883_v18, 0.0 }
 0x837   :  { %2535 = vadd.xlane.f32.xlu1 %v2534_v17 }
 0x838   :  { %v12889_v6 = vpop.eup %11719 }
 0x839   :  { %v12891_v63 = vpop.eup %11721  ;;  %v2543_v9 = vsel %vm682_vm0, %v12889_v6, 0.0 }
 0x83a   :  { %2544 = vadd.xlane.f32.xlu0 %v2543_v9  ;;  %v2540_v49 = vsel %vm682_vm0, %v12891_v63, 0.0 }
 0x83b   :  { %2541 = vadd.xlane.f32.xlu1 %v2540_v49 }
 0x84c   :  { %11260 = vrot.lane.b32.xlu1 %v12518_v62, %s12095_s19 }
 0x850   :  { %11270 = vrot.lane.b32.xlu1 %v12504_v40, %s12096_s5  ;;  %11265 = vrot.lane.b32.xlu0 %v12511_v56, %s12095_s19 }
 0x854   :  { %11275 = vrot.lane.b32.xlu1 %v12526_v5, %s12096_s5  ;;  %3232 = vrot.lane.b32.xlu0 %v12661_v42, %s12096_s5 }
 0x858   :  { %3234 = vrot.lane.b32.xlu1 %v12670_v37, %s12096_s5  ;;  %3236 = vrot.lane.b32.xlu0 %v12675_v20, %s12096_s5 }
 0x85c   :  { %3238 = vrot.lane.b32.xlu1 %v12683_v2, %s12096_s5 }
 0x867   :  { %v2278_v31 = vpop.xlane.xlu1 %2277 }
 0x868   :  { %11723 = vrcp.f32 %v2278_v31 }
 0x86b   :  { %v2284_v40 = vpop.xlane.xlu1 %2283 }
 0x86c   :  { %11725 = vrcp.f32 %v2284_v40  ;;  %v2281_v53 = vpop.xlane.xlu0 %2280 }
 0x86d   :  { %11727 = vrcp.f32 %v2281_v53  ;;  %v10121_v41 = vpop.f32.mrb[28].mxu0 }
 0x86e   :  { %v2023_v5 = vpop.f32.mrb[29].mxu0 }
 0x86f   :  { %10133 = vmatprep.mubr.msk.f32.mxu0 %vm682_vm0, %v2023_v5 }
 0x870   :  { %v2287_v42 = vpop.xlane.xlu0 %2286  ;;  %10134 = vmatmul.mubr.msk.f32.vlgmr.msra.gmra.mrb[20].mxu0 %vm682_vm0, %v10121_v41 }
 0x871   :  { %11729 = vrcp.f32 %v2287_v42  ;;  %10794 = vmatpush3.bf16.msra.mxu0 %v12516_v61  ;;  %v10124_v37 = vpop.f32.mrb[30].mxu0 }
 0x872   :  { %v11724_v20 = vpop.eup %11723  ;;  %10796 = vmatprep.subr.bf16.mxu0 %v12513_v57  ;;  %v2033_v2 = vpop.f32.mrb[31].mxu0 }
 0x873   :  { %10136 = vmatprep.mubr.msk.f32.mxu0 %vm682_vm0, %v2033_v2  ;;  %v2292_v24 = vmul.f32 %v11724_v20, %v12863_v19 }
 0x874   :  { %10137 = vmatmul.mubr.msk.f32.gmra.mrb[22].mxu0 %vm682_vm0, %v10124_v37 }
 0x875   :  { %10798 = vmatpush3.bf16.msra.mxu0 %v12513_v57  ;;  %10161 = vmatprep.mubr.msk.f32.mxu0 %vm682_vm0, %v2292_v24 }
 0x876   :  { %v11726_v54 = vpop.eup %11725 }
 0x877   :  { %v11728_v21 = vpop.eup %11727  ;;  %v2294_v29 = vmul.f32 %v11726_v54, %v12867_v22 }
 0x878   :  { %v2293_v61 = vmul.f32 %v11728_v21, %v12869_v30 }
 0x879   :  { %v12924_v32 = vpop.f32.mrb[36].mxu1 }
 0x87a   :  { %10162 = vmatmul.mubr.msk.f32.vlgmr.msra.gmra.mrb[32].mxu0 %vm682_vm0, %v2293_v61  ;;  %v12927_v10 = vpop.f32.mrb[37].mxu1  ;;  %v2981_v30 = vsel %vm682_vm0, %v12924_v32, -inf }
 0x87b   :  { %v11730_v11 = vpop.eup %11729  ;;  %10164 = vmatprep.mubr.msk.f32.mxu0 %vm682_vm0, %v2294_v29  ;;  %v2978_v57 = vsel %vm682_vm0, %v12927_v10, -inf }
 0x87c   :  { %2979 = vmax.xlane.f32.xlu0 %v2978_v57  ;;  %v2295_v19 = vmul.f32 %v11730_v11, %v12875_v4 }
 0x87d   :  { %v12933_v12 = vpop.f32.mrb[38].mxu1 }
 0x87e   :  { %10165 = vmatmul.mubr.msk.f32.gmra.mrb[34].mxu0 %vm682_vm0, %v2295_v19  ;;  %v12936_v22 = vpop.f32.mrb[39].mxu1  ;;  %v2987_v43 = vsel %vm682_vm0, %v12933_v12, -inf }
 0x87f   :  { %v2984_v59 = vsel %vm682_vm0, %v12936_v22, -inf }
 0x880   :  { %2982 = vmax.xlane.f32.xlu1 %v2981_v30  ;;  %2985 = vmax.xlane.f32.xlu0 %v2984_v59 }
 0x884   :  { %2988 = vmax.xlane.f32.xlu0 %v2987_v43 }
 0x8c3   :  { %v2539_v58 = vpop.xlane.xlu0 %2538 }
 0x8c4   :  { %v2536_v4 = vpop.xlane.xlu1 %2535 }
 0x8c5   :  { %11731 = vrcp.f32 %v2536_v4 }
 0x8c6   :  { %11733 = vrcp.f32 %v2539_v58 }
 0x8c7   :  { %v2545_v1 = vpop.xlane.xlu0 %2544 }
 0x8c8   :  { %v2542_v8 = vpop.xlane.xlu1 %2541 }
 0x8c9   :  { %11735 = vrcp.f32 %v2542_v8 }
 0x8ca   :  { %11737 = vrcp.f32 %v2545_v1 }
 0x8cb   :  { %v11266_v13 = vpop.permute.xlu0 %11265 }
 0x8cc   :  { %v11261_v36 = vpop.permute.xlu1 %11260  ;;  %v11268_v7 = vunpack.i.h.bf16 %v11266_v13  ;;  %v11267_v44 = vunpack.i.l.bf16 %v11266_v13 }
 0x8cd   :  { %v11263_v45 = vunpack.i.h.bf16 %v11261_v36  ;;  %v11262_v17 = vunpack.i.l.bf16 %v11261_v36 }
 0x8ce   :  { %v10815_v42 = vpack.c.bf16 %v11268_v7, %v11267_v44 }
 0x8cf   :  { %v11732_v9 = vpop.eup %11731  ;;  %v3233_v49 = vpop.permute.xlu0 %3232  ;;  %v10811_v31 = vpack.c.bf16 %v11263_v45, %v11262_v17 }
 0x8d0   :  { %v11271_v40 = vpop.permute.xlu1 %11270  ;;  %10273 = vmatprep.mubr.msk.f32.mxu1 %vm682_vm0, %v3233_v49  ;;  %v2550_v53 = vmul.f32 %v11732_v9, %v12883_v18  ;;  %v11734_v20 = vpop.eup %11733 }
 0x8d1   :  { %v11273_v41 = vunpack.i.h.bf16 %v11271_v40  ;;  %v11272_v5 = vunpack.i.l.bf16 %v11271_v40  ;;  %10812 = vmatprep.subr.bf16.mxu0 %v10811_v31  ;;  %v2551_v18 = vmul.f32 %v11734_v20, %v12881_v3 }
 0x8d2   :  { %10814 = vmatpush3.bf16.msra.mxu0 %v10811_v31  ;;  %10189 = vmatprep.mubr.msk.f32.mxu0 %vm682_vm0, %v2550_v53 }
 0x8d3   :  { %v10863_v37 = vpack.c.bf16 %v11273_v41, %v11272_v5  ;;  %10816 = vmatprep.subr.bf16.mxu0 %v10815_v42  ;;  %v11736_v24 = vpop.eup %11735 }
 0x8d4   :  { %v11276_v2 = vpop.permute.xlu1 %11275  ;;  %v11738_v61 = vpop.eup %11737  ;;  %v2552_v11 = vmul.f32 %v11736_v24, %v12891_v63 }
 0x8d5   :  { %v11278_v54 = vunpack.i.h.bf16 %v11276_v2  ;;  %v11277_v21 = vunpack.i.l.bf16 %v11276_v2  ;;  %10865 = vmatprep.subr.msk.bf16.mxu1 %vm12439_vm1, %v10863_v37  ;;  %v2553_v57 = vmul.f32 %v11738_v61, %v12889_v6  ;;  %v3237_v63 = vpop.permute.xlu0 %3236 }
 0x8d6   :  { %10818 = vmatpush3.bf16.msra.mxu0 %v10815_v42  ;;  %10868 = vmatpush3.bf16.xpose.msk.msra.mxu1 %vm12439_vm1, %v10863_v37 }
 0x8d7   :  { %v10869_v29 = vpack.c.bf16 %v11278_v54, %v11277_v21  ;;  %10820 = vmatprep.subr.bf16.mxu0 %v12612_v34 }
 0x8d8   :  { %v3235_v3 = vpop.permute.xlu1 %3234 }
 0x8d9   :  { %10190 = vmatmul.mubr.msk.f32.vlgmr.msra.gmra.mrb[36].mxu0 %vm682_vm0, %v2551_v18  ;;  %10871 = vmatprep.subr.msk.bf16.mxu1 %vm12439_vm1, %v10869_v29 }
 0x8da   :  { %10192 = vmatprep.mubr.msk.f32.mxu0 %vm682_vm0, %v2552_v11  ;;  %10822 = vmatpush3.bf16.msra.mxu0 %v12612_v34 }
 0x8db   :  { %10824 = vmatprep.subr.bf16.mxu0 %v12614_v55 }
 0x8dc   :  { %v3239_v34 = vpop.permute.xlu1 %3238 }
 0x8dd   :  { %10193 = vmatmul.mubr.msk.f32.gmra.mrb[38].mxu0 %vm682_vm0, %v2553_v57 }
 0x8de   :  { %10874 = vmatpush3.bf16.xpose.msk.msra.mxu1 %vm12439_vm1, %v10869_v29  ;;  %10826 = vmatpush3.bf16.msra.mxu0 %v12614_v55 }
 0x8df   :  { %10828 = vmatprep.subr.bf16.mxu0 %v12672_v14 }
 0x8e5   :  { %10274 = vmatmul.mubr.msk.f32.vlgmr.msra.gmra.mrb[40].mxu1 %vm682_vm0, %v3235_v3 }
 0x8e6   :  { %10276 = vmatprep.mubr.msk.f32.mxu1 %vm682_vm0, %v3237_v63 }
 0x8e9   :  { %10277 = vmatmul.mubr.msk.f32.gmra.mrb[42].mxu1 %vm682_vm0, %v3239_v34 }
 0x8ea   :  { %3980 = vmatprep.mubr.bf16.mxu1 %v12094_v0 }
 0x909   :  { %v2980_v6 = vpop.xlane.xlu0 %2979 }
 0x90a   :  { %v2990_v19 = vsub.f32 %v12927_v10, %v2980_v6 }
 0x90c   :  { %v2994_v30 = vmul.f32 1.442695, %v2990_v19 }
 0x90d   :  { %v2983_v59 = vpop.xlane.xlu1 %2982  ;;  %v2986_v43 = vpop.xlane.xlu0 %2985 }
 0x90e   :  { %11739 = vpow2.f32 %v2994_v30  ;;  %v2991_v55 = vsub.f32 %v12924_v32, %v2983_v59  ;;  %v2992_v58 = vsub.f32 %v12936_v22, %v2986_v43 }
 0x910   :  { %v2996_v4 = vmul.f32 1.442695, %v2991_v55  ;;  %v2998_v1 = vmul.f32 1.442695, %v2992_v58 }
 0x911   :  { %v2989_v8 = vpop.xlane.xlu0 %2988 }
 0x912   :  { %11741 = vpow2.f32 %v2996_v4  ;;  %v2993_v13 = vsub.f32 %v12933_v12, %v2989_v8 }
 0x913   :  { %11743 = vpow2.f32 %v2998_v1 }
 0x914   :  { %v3000_v36 = vmul.f32 1.442695, %v2993_v13 }
 0x916   :  { %11745 = vpow2.f32 %v3000_v36 }
 0x918   :  { %v11740_v7 = vpop.eup %11739 }
 0x919   :  { %v3002_v10 = vsel %vm682_vm0, %v11740_v7, 0.0 }
 0x91a   :  { %3003 = vadd.xlane.f32.xlu1 %v3002_v10 }
 0x91c   :  { %v12975_v44 = vpop.eup %11741 }
 0x91d   :  { %v12977_v45 = vpop.eup %11743  ;;  %v3005_v32 = vsel %vm682_vm0, %v12975_v44, 0.0 }
 0x91e   :  { %3006 = vadd.xlane.f32.xlu0 %v3005_v32  ;;  %v3008_v22 = vsel %vm682_vm0, %v12977_v45, 0.0 }
 0x91f   :  { %3009 = vadd.xlane.f32.xlu1 %v3008_v22 }
 0x920   :  { %v12983_v12 = vpop.eup %11745 }
 0x921   :  { %v3011_v17 = vsel %vm682_vm0, %v12983_v12, 0.0 }
 0x922   :  { %3012 = vadd.xlane.f32.xlu0 %v3011_v17 }
 0x930   :  { %11280 = vrot.lane.b32.xlu1 %v12518_v62, %s12092_s10 }
 0x938   :  { %11285 = vrot.lane.b32.xlu0 %v12511_v56, %s12092_s10 }
 0x943   :  { %v12991_v9 = vpop.f32.mrb[20].mxu0 }
 0x944   :  { %v12993_v49 = vpop.f32.mrb[21].mxu0 }
 0x947   :  { %v12995_v31 = vpop.f32.mrb[22].mxu0 }
 0x948   :  { %v12997_v40 = vpop.f32.mrb[23].mxu0 }
 0x94d   :  { %v10163_v53 = vpop.f32.mrb[32].mxu0 }
 0x94e   :  { %v2374_v41 = vpop.f32.mrb[33].mxu0 }
 0x951   :  { %v10166_v5 = vpop.f32.mrb[34].mxu0 }
 0x952   :  { %v2384_v42 = vpop.f32.mrb[35].mxu0 }
 0x9a7   :  { %v3004_v37 = vpop.xlane.xlu1 %3003 }
 0x9a8   :  { %11747 = vrcp.f32 %v3004_v37 }
 0x9ab   :  { %v3007_v20 = vpop.xlane.xlu0 %3006 }
 0x9ac   :  { %v3010_v2 = vpop.xlane.xlu1 %3009  ;;  %v10191_v24 = vpop.f32.mrb[36].mxu0  ;;  %11749 = vrcp.f32 %v3007_v20 }
 0x9ad   :  { %v2648_v54 = vpop.f32.mrb[37].mxu0  ;;  %11751 = vrcp.f32 %v3010_v2 }
 0x9ae   :  { %10203 = vmatprep.mubr.msk.f32.mxu0 %vm682_vm0, %v2648_v54 }
 0x9af   :  { %v3013_v21 = vpop.xlane.xlu0 %3012  ;;  %10204 = vmatmul.mubr.msk.f32.vlgmr.msra.gmra.mrb[40].mxu0 %vm682_vm0, %v10191_v24 }
 0x9b0   :  { %v11281_v18 = vpop.permute.xlu1 %11280  ;;  %10830 = vmatpush3.bf16.msra.mxu0 %v12672_v14  ;;  %v10194_v29 = vpop.f32.mrb[38].mxu0  ;;  %11753 = vrcp.f32 %v3013_v21 }
 0x9b1   :  { %v11283_v61 = vunpack.i.h.bf16 %v11281_v18  ;;  %v11282_v11 = vunpack.i.l.bf16 %v11281_v18  ;;  %v2658_v57 = vpop.f32.mrb[39].mxu0  ;;  %10832 = vmatprep.subr.bf16.mxu0 %v12687_v35 }
 0x9b2   :  { %10206 = vmatprep.mubr.msk.f32.mxu0 %vm682_vm0, %v2658_v57  ;;  %v11748_v19 = vpop.eup %11747  ;;  %v13045_v57 = vld [vmem:[%s14534_s9] sm:$0xff] }
 0x9b3   :  { %v11286_v3 = vpop.permute.xlu0 %11285  ;;  %10207 = vmatmul.mubr.msk.f32.gmra.mrb[42].mxu0 %vm682_vm0, %v10194_v29  ;;  %v10847_v63 = vpack.c.bf16 %v11283_v61, %v11282_v11 }
 0x9b4   :  { %v11288_v34 = vunpack.i.h.bf16 %v11286_v3  ;;  %v11287_v6 = vunpack.i.l.bf16 %v11286_v3  ;;  %10834 = vmatpush3.bf16.msra.mxu0 %v12687_v35  ;;  %10217 = vmatprep.mubr.msk.f32.mxu0 %vm682_vm0, %v2374_v41  ;;  %v3018_v35 = vmul.f32 %v11748_v19, %v11740_v7  ;;  %v13049_v3 = vrot.slane %v13045_v57, %v12317_v51 }
 0x9b5   :  { %10848 = vmatprep.subr.bf16.mxu0 %v10847_v63 }
 0x9b6   :  { %v10851_v14 = vpack.c.bf16 %v11288_v34, %v11287_v6  ;;  %v11750_v55 = vpop.eup %11749  ;;  %v3607_v34 = vadd.f32 %v13049_v3, %v12993_v49 }
 0x9b7   :  { %10218 = vmatmul.mubr.msk.f32.vlgmr.msra.gmra.mrb[40].mxu0 %vm682_vm0, %v10163_v53  ;;  %v11752_v4 = vpop.eup %11751  ;;  %v3019_v8 = vmul.f32 %v11750_v55, %v12975_v44 }
 0x9b8   :  { %10850 = vmatpush3.bf16.msra.mxu0 %v10847_v63  ;;  %10220 = vmatprep.mubr.msk.f32.mxu0 %vm682_vm0, %v2384_v42  ;;  %v10275_v30 = vpop.f32.mrb[40].mxu1  ;;  %v3020_v7 = vmul.f32 %v11752_v4, %v12977_v45  ;;  %v3608_v63 = vadd.f32 %v12991_v9, %v13049_v3  ;;  %v13061_v6 = vadd.f32 %v3607_v34, %v12357_v28  ;;  %v11457_v34 = vld [vmem:[%s14532_s7 + $0x40] ss:$16 sps:$4 sm:$0xff]  }
 0x9b9   :  { %10852 = vmatprep.subr.bf16.mxu0 %v10851_v14  ;;  %v3330_v59 = vpop.f32.mrb[41].mxu1  ;;  %v3352_v43 = vsel %vm682_vm0, %v10275_v30, -inf }
 0x9ba   :  { %3353 = vmax.xlane.f32.xlu0 %v3352_v43  ;;  %v3349_v58 = vsel %vm682_vm0, %v3330_v59, -inf  ;;  %v11754_v10 = vpop.eup %11753 }
 0x9bb   :  { %3350 = vmax.xlane.f32.xlu1 %v3349_v58  ;;  %10221 = vmatmul.mubr.msk.f32.gmra.mrb[42].mxu0 %vm682_vm0, %v10166_v5  ;;  %v3021_v44 = vmul.f32 %v11754_v10, %v12983_v12 }
 0x9bc   :  { %10854 = vmatpush3.bf16.msra.mxu0 %v10851_v14  ;;  %10245 = vmatprep.mubr.msk.f32.mxu0 %vm682_vm0, %v3018_v35  ;;  %v10278_v1 = vpop.f32.mrb[42].mxu1  ;;  %v3609_v14 = vadd.f32 %v13049_v3, %v12997_v40  ;;  %v11456_v40 = vld [vmem:[%s14532_s7 + $0x24] ss:$16 sps:$4 sm:$0xff]  }
 0x9bd   :  { %v3340_v13 = vpop.f32.mrb[43].mxu1  ;;  %v3358_v36 = vsel %vm682_vm0, %v10278_v1, -inf  ;;  %10856 = vmatprep.subr.bf16.mxu0 %v12785_v23 }
 0x9be   :  { %3359 = vmax.xlane.f32.xlu0 %v3358_v36  ;;  %v3355_v32 = vsel %vm682_vm0, %v3340_v13, -inf }
 0x9bf   :  { %3356 = vmax.xlane.f32.xlu1 %v3355_v32  ;;  %10246 = vmatmul.mubr.msk.f32.vlgmr.msra.gmra.mrb[44].mxu0 %vm682_vm0, %v3019_v8 }
 0x9c0   :  { %10248 = vmatprep.mubr.msk.f32.mxu0 %vm682_vm0, %v3020_v7  ;;  %10858 = vmatpush3.bf16.msra.mxu0 %v12785_v23 }
 0x9c1   :  { %10860 = vmatprep.subr.bf16.mxu0 %v12789_v33 }
 0x9c3   :  { %10249 = vmatmul.mubr.msk.f32.gmra.mrb[46].mxu0 %vm682_vm0, %v3021_v44 }
 0x9c4   :  { %10862 = vmatpush3.bf16.msra.mxu0 %v12789_v33 }
 0xa47   :  { %v3354_v22 = vpop.xlane.xlu0 %3353 }
 0xa48   :  { %v3362_v17 = vsub.f32 %v10275_v30, %v3354_v22  ;;  %v3351_v53 = vpop.xlane.xlu1 %3350  ;;  %v11454_v30 = vld [vmem:[%s14532_s7 + $0x20] ss:$16 sps:$4 sm:$0xff]  }
 0xa49   :  { %v3361_v41 = vsub.f32 %v3330_v59, %v3351_v53 }
 0xa4a   :  { %v3367_v45 = vmul.f32 1.442695, %v3362_v17 }
 0xa4b   :  { %v3365_v5 = vmul.f32 1.442695, %v3361_v41  ;;  %v3360_v42 = vpop.xlane.xlu0 %3359 }
 0xa4c   :  { %11755 = vpow2.f32 %v3367_v45  ;;  %v3364_v37 = vsub.f32 %v10278_v1, %v3360_v42  ;;  %v3357_v20 = vpop.xlane.xlu1 %3356 }
 0xa4d   :  { %11757 = vpow2.f32 %v3365_v5  ;;  %v3363_v23 = vsub.f32 %v3340_v13, %v3357_v20 }
 0xa4e   :  { %v3371_v2 = vmul.f32 1.442695, %v3364_v37 }
 0xa4f   :  { %v3369_v12 = vmul.f32 1.442695, %v3363_v23 }
 0xa50   :  { %11759 = vpow2.f32 %v3371_v2 }
 0xa51   :  { %11761 = vpow2.f32 %v3369_v12 }
 0xa56   :  { %v13025_v24 = vpop.eup %11755 }
 0xa57   :  { %v11758_v54 = vpop.eup %11757  ;;  %v3376_v33 = vsel %vm682_vm0, %v13025_v24, 0.0 }
 0xa58   :  { %3377 = vadd.xlane.f32.xlu0 %v3376_v33  ;;  %v3373_v21 = vsel %vm682_vm0, %v11758_v54, 0.0 }
 0xa59   :  { %3374 = vadd.xlane.f32.xlu1 %v3373_v21 }
 0xa5a   :  { %v13030_v18 = vpop.eup %11759 }
 0xa5b   :  { %v13032_v29 = vpop.eup %11761  ;;  %v3382_v61 = vsel %vm682_vm0, %v13030_v18, 0.0 }
 0xa5c   :  { %3383 = vadd.xlane.f32.xlu0 %v3382_v61  ;;  %v3379_v11 = vsel %vm682_vm0, %v13032_v29, 0.0 }
 0xa5d   :  { %3380 = vadd.xlane.f32.xlu1 %v3379_v11 }
 0xa6e   :  { %11290 = vrot.lane.b32.xlu1 %v12518_v62, %s12096_s5  ;;  %v13056_v62 = vadd.f32 %v3608_v63, %v12355_v27  ;;  %v13071_v27 = vadd.f32 %v3609_v14, %v12369_v39  ;;  %v11453_v39 = vld [vmem:[%s14532_s7 + $0x4] ss:$16 sps:$4 sm:$0xff]   ;;  %v11463_v14 = vld [vmem:[%s14532_s7 + $0x80] ss:$16 sps:$4 sm:$0xff]  }
 0xa6f   :  { %3948 = vmatprep.subr.bf16.mxu1 %v11453_v39  ;;  %v11459_v63 = vld [vmem:[%s14532_s7 + $0x44] ss:$16 sps:$4 sm:$0xff]  }
 0xa72   :  { %11295 = vrot.lane.b32.xlu0 %v12511_v56, %s12096_s5  ;;  %v3610_v56 = vadd.f32 %v12995_v31, %v13049_v3 }
 0xa74   :  { %v13068_v19 = vadd.f32 %v3610_v56, %v12367_v38  ;;  %v11451_v38 = vld [vmem:[%s14532_s7] ss:$16 sps:$4 sm:$0xff]  }
 0xa75   :  { %3949 = vmatpush1.bf16.msra.mxu1 %v11451_v38  ;;  %v11460_v56 = vld [vmem:[%s14532_s7 + $0x60] ss:$16 sps:$4 sm:$0xff]   ;;  %v11477_v38 = vld [vmem:[%s14532_s7 + $0xc] ss:$16 sps:$4 sm:$0xff]  }
 0xa76   :  { %3950 = vmatprep.subr.bf16.mxu1 %v11456_v40 }
 0xa79   :  { %3951 = vmatpush1.bf16.msra.mxu1 %v11454_v30 }
 0xa7a   :  { %3952 = vmatprep.subr.bf16.mxu1 %v11459_v63 }
 0xa7d   :  { %3953 = vmatpush1.bf16.msra.mxu1 %v11457_v34  ;;  %v11483_v34 = vld [vmem:[%s14532_s7 + $0x4c] ss:$16 sps:$4 sm:$0xff]  }
 0xa91   :  { %3625 = vadd.xlane.f32.xlu0 %v13056_v62 }
 0xa92   :  { %3623 = vadd.xlane.f32.xlu1 %v13061_v6  ;;  %v10247_v9 = vpop.f32.mrb[44].mxu0 }
 0xa93   :  { %v3112_v49 = vpop.f32.mrb[45].mxu0 }
 0xa94   :  { %10259 = vmatprep.mubr.msk.f32.mxu0 %vm682_vm0, %v3112_v49  ;;  %v11471_v49 = vld [vmem:[%s14532_s7 + $0xc4] ss:$16 sps:$4 sm:$0xff]  }
 0xa95   :  { %3629 = vadd.xlane.f32.xlu0 %v13068_v19  ;;  %10260 = vmatmul.mubr.msk.f32.vlgmr.msra.gmra.mrb[40].mxu0 %vm682_vm0, %v10247_v9  ;;  %v11468_v9 = vld [vmem:[%s14532_s7 + $0xa4] ss:$16 sps:$4 sm:$0xff]  }
 0xa96   :  { %3627 = vadd.xlane.f32.xlu1 %v13071_v27  ;;  %v10250_v28 = vpop.f32.mrb[46].mxu0 }
 0xa97   :  { %v3122_v31 = vpop.f32.mrb[47].mxu0 }
 0xa98   :  { %10262 = vmatprep.mubr.msk.f32.mxu0 %vm682_vm0, %v3122_v31  ;;  %v11474_v31 = vld [vmem:[%s14532_s7 + $0xe4] ss:$16 sps:$4 sm:$0xff]  }
 0xa99   :  { %10263 = vmatmul.mubr.msk.f32.gmra.mrb[42].mxu0 %vm682_vm0, %v10250_v28  ;;  %v11472_v28 = vld [vmem:[%s14532_s7 + $0xe0] ss:$16 sps:$4 sm:$0xff]  }
 0xae5   :  { %v3378_v59 = vpop.xlane.xlu0 %3377 }
 0xae6   :  { %v3375_v43 = vpop.xlane.xlu1 %3374 }
 0xae7   :  { %11763 = vrcp.f32 %v3375_v43 }
 0xae8   :  { %11765 = vrcp.f32 %v3378_v59 }
 0xae9   :  { %v3384_v55 = vpop.xlane.xlu0 %3383 }
 0xaea   :  { %v3381_v58 = vpop.xlane.xlu1 %3380 }
 0xaeb   :  { %11767 = vrcp.f32 %v3381_v58 }
 0xaec   :  { %11769 = vrcp.f32 %v3384_v55 }
 0xaed   :  { %v11296_v35 = vpop.permute.xlu0 %11295 }
 0xaee   :  { %v11291_v4 = vpop.permute.xlu1 %11290  ;;  %v11298_v1 = vunpack.i.h.bf16 %v11296_v35  ;;  %v11297_v8 = vunpack.i.l.bf16 %v11296_v35 }
 0xaef   :  { %v11293_v13 = vunpack.i.h.bf16 %v11291_v4  ;;  %v11292_v36 = vunpack.i.l.bf16 %v11291_v4 }
 0xaf0   :  { %v10879_v44 = vpack.c.bf16 %v11298_v1, %v11297_v8 }
 0xaf1   :  { %v11764_v10 = vpop.eup %11763  ;;  %v10875_v32 = vpack.c.bf16 %v11293_v13, %v11292_v36  ;;  %v3726_v36 = vsub.s32 3, %v12314_v50 }
 0xaf2   :  { %v3389_v7 = vmul.f32 %v11764_v10, %v11758_v54  ;;  %v11766_v22 = vpop.eup %11765  ;;  %v13152_v10 = vrot.slane %v13045_v57, %v12334_v60 }
 0xaf3   :  { %10876 = vmatprep.subr.bf16.mxu0 %v10875_v32  ;;  %v3390_v53 = vmul.f32 %v11766_v22, %v13025_v24  ;;  %v13157_v22 = vrot.slane %v13045_v57, %v3726_v36 }
 0xaf4   :  { %10878 = vmatpush3.bf16.msra.mxu0 %v10875_v32  ;;  %10287 = vmatprep.mubr.msk.f32.mxu0 %vm682_vm0, %v3389_v7 }
 0xaf5   :  { %10880 = vmatprep.subr.bf16.mxu0 %v10879_v44  ;;  %v11768_v17 = vpop.eup %11767 }
 0xaf6   :  { %v11770_v41 = vpop.eup %11769  ;;  %v3391_v45 = vmul.f32 %v11768_v17, %v13032_v29 }
 0xaf7   :  { %v3392_v5 = vmul.f32 %v11770_v41, %v13030_v18 }
 0xaf8   :  { %10882 = vmatpush3.bf16.msra.mxu0 %v10879_v44 }
 0xaf9   :  { %10884 = vmatprep.subr.bf16.mxu0 %v12822_v47 }
 0xafb   :  { %10288 = vmatmul.mubr.msk.f32.vlgmr.msra.gmra.mrb[48].mxu0 %vm682_vm0, %v3390_v53 }
 0xafc   :  { %10290 = vmatprep.mubr.msk.f32.mxu0 %vm682_vm0, %v3391_v45  ;;  %10886 = vmatpush3.bf16.msra.mxu0 %v12822_v47 }
 0xafd   :  { %10888 = vmatprep.subr.bf16.mxu0 %v12839_v46 }
 0xaff   :  { %10291 = vmatmul.mubr.msk.f32.gmra.mrb[50].mxu0 %vm682_vm0, %v3392_v5 }
 0xb00   :  { %10890 = vmatpush3.bf16.msra.mxu0 %v12839_v46 }
 0xb01   :  { %4021 = vmatprep.subr.bf16.mxu0 %v11477_v38  ;;  %v11496_v38 = vld [vmem:[%s14532_s7 + $0xe8] ss:$16 sps:$4 sm:$0xff]  }
 0xb1e   :  { %v3626_v42 = vpop.xlane.xlu0 %3625 }
 0xb1f   :  { %v3641_v37 = vmul.f32 0.0078125, %v3626_v42  ;;  %v3624_v20 = vpop.xlane.xlu1 %3623 }
 0xb20   :  { %v3640_v23 = vmul.f32 0.0078125, %v3624_v20 }
 0xb21   :  { %v3649_v2 = vsub.f32 %v13056_v62, %v3641_v37  ;;  %v11462_v62 = vld [vmem:[%s14532_s7 + $0x64] ss:$16 sps:$4 sm:$0xff]  }
 0xb22   :  { %v13104_v12 = vsub.f32 %v13061_v6, %v3640_v23  ;;  %v3630_v24 = vpop.xlane.xlu0 %3629  ;;  %3954 = vmatprep.subr.bf16.mxu1 %v11462_v62  ;;  %v11465_v6 = vld [vmem:[%s14532_s7 + $0x84] ss:$16 sps:$4 sm:$0xff]   ;;  %v11481_v62 = vld [vmem:[%s14532_s7 + $0x48] ss:$16 sps:$4 sm:$0xff]  }
 0xb23   :  { %v3643_v54 = vmul.f32 0.0078125, %v3630_v24  ;;  %v3628_v47 = vpop.xlane.xlu1 %3627  ;;  %v3657_v33 = vmul.f32 %v3649_v2, %v3649_v2  ;;  %3955 = vmatpush1.bf16.msra.mxu1 %v11460_v56  ;;  %v11486_v56 = vld [vmem:[%s14532_s7 + $0x6c] ss:$16 sps:$4 sm:$0xff]  }
 0xb24   :  { %v3642_v21 = vmul.f32 0.0078125, %v3628_v47  ;;  %v3656_v18 = vmul.f32 %v13104_v12, %v13104_v12  ;;  %3956 = vmatprep.subr.bf16.mxu1 %v11465_v6  ;;  %v11484_v6 = vld [vmem:[%s14532_s7 + $0x68] ss:$16 sps:$4 sm:$0xff]  }
 0xb25   :  { %v3651_v29 = vsub.f32 %v13068_v19, %v3643_v54  ;;  %3666 = vadd.xlane.f32.xlu0 %v3657_v33  ;;  %v11466_v19 = vld [vmem:[%s14532_s7 + $0xa0] ss:$16 sps:$4 sm:$0xff]  }
 0xb26   :  { %v3650_v46 = vsub.f32 %v13071_v27, %v3642_v21  ;;  %3664 = vadd.xlane.f32.xlu1 %v3656_v18  ;;  %v11469_v27 = vld [vmem:[%s14532_s7 + $0xc0] ss:$16 sps:$4 sm:$0xff]   ;;  %v11475_v21 = vld [vmem:[%s14532_s7 + $0x8] ss:$16 sps:$4 sm:$0xff]  }
 0xb27   :  { %v3659_v61 = vmul.f32 %v3651_v29, %v3651_v29  ;;  %3957 = vmatpush1.bf16.msra.mxu1 %v11463_v14  ;;  %v11489_v14 = vld [vmem:[%s14532_s7 + $0x8c] ss:$16 sps:$4 sm:$0xff]  }
 0xb28   :  { %v3658_v11 = vmul.f32 %v3650_v46, %v3650_v46  ;;  %3958 = vmatprep.subr.bf16.mxu1 %v11468_v9  ;;  %v11487_v9 = vld [vmem:[%s14532_s7 + $0x88] ss:$16 sps:$4 sm:$0xff]  }
 0xb29   :  { %3670 = vadd.xlane.f32.xlu0 %v3659_v61 }
 0xb2a   :  { %3668 = vadd.xlane.f32.xlu1 %v3658_v11  ;;  %v11478_v11 = vld [vmem:[%s14532_s7 + $0x28] ss:$16 sps:$4 sm:$0xff]  }
 0xb2b   :  { %3959 = vmatpush1.bf16.msra.mxu1 %v11466_v19  ;;  %v11492_v19 = vld [vmem:[%s14532_s7 + $0xac] ss:$16 sps:$4 sm:$0xff]  }
 0xb2c   :  { %3960 = vmatprep.subr.bf16.mxu1 %v11471_v49  ;;  %v11490_v49 = vld [vmem:[%s14532_s7 + $0xa8] ss:$16 sps:$4 sm:$0xff]  }
 0xb2f   :  { %3961 = vmatpush1.bf16.msra.mxu1 %v11469_v27  ;;  %v11495_v27 = vld [vmem:[%s14532_s7 + $0xcc] ss:$16 sps:$4 sm:$0xff]  }
 0xb30   :  { %3962 = vmatprep.subr.bf16.mxu1 %v11474_v31  ;;  %v11498_v31 = vld [vmem:[%s14532_s7 + $0xec] ss:$16 sps:$4 sm:$0xff]  }
 0xb33   :  { %3963 = vmatpush1.bf16.msra.mxu1 %v11472_v28  ;;  %v11493_v28 = vld [vmem:[%s14532_s7 + $0xc8] ss:$16 sps:$4 sm:$0xff]  }
 0xbb2   :  { %v3667_v39 = vpop.xlane.xlu0 %3666 }
 0xbb3   :  { %v3681_v40 = vmul.f32 0.0078125, %v3667_v39  ;;  %v3665_v30 = vpop.xlane.xlu1 %3664  ;;  %v13235_v39 = vsub.s32 4, %v12314_v50 }
 0xbb4   :  { %v3680_v59 = vmul.f32 0.0078125, %v3665_v30  ;;  %v11960_v30 = vld [vmem:[%s14534_s9 + $0x8] sm:$0xff] }
 0xbb5   :  { %v3689_v43 = vadd.f32 1e-05, %v3681_v40  ;;  %v13239_v40 = vrot.slane %v13045_v57, %v13235_v39 }
 0xbb6   :  { %v3688_v55 = vadd.f32 1e-05, %v3680_v59  ;;  %v3671_v58 = vpop.xlane.xlu0 %3670  ;;  %v13245_v59 = vrot.slane %v11960_v30, %v13235_v39 }
 0xbb7   :  { %11771 = vrsqrt.f32 %v3689_v43  ;;  %v3683_v35 = vmul.f32 0.0078125, %v3671_v58  ;;  %v3669_v4 = vpop.xlane.xlu1 %3668 }
 0xbb8   :  { %11773 = vrsqrt.f32 %v3688_v55  ;;  %v3682_v1 = vmul.f32 0.0078125, %v3669_v4 }
 0xbb9   :  { %v3691_v8 = vadd.f32 1e-05, %v3683_v35 }
 0xbba   :  { %v3690_v13 = vadd.f32 1e-05, %v3682_v1 }
 0xbbb   :  { %11775 = vrsqrt.f32 %v3691_v8 }
 0xbbc   :  { %11777 = vrsqrt.f32 %v3690_v13 }
 0xbc1   :  { %v11772_v32 = vpop.eup %11771 }
 0xbc2   :  { %v11774_v7 = vpop.eup %11773  ;;  %v3705_v44 = vmul.f32 %v11772_v32, %v3649_v2 }
 0xbc3   :  { %v3704_v17 = vmul.f32 %v11774_v7, %v13104_v12 }
 0xbc4   :  { %v3717_v53 = vmul.f32 %v13152_v10, %v3705_v44 }
 0xbc5   :  { %v11776_v41 = vpop.eup %11775  ;;  %v3716_v45 = vmul.f32 %v13152_v10, %v3704_v17 }
 0xbc6   :  { %v11778_v5 = vpop.eup %11777  ;;  %v13163_v42 = vadd.f32 %v13157_v22, %v3717_v53  ;;  %v3707_v37 = vmul.f32 %v11776_v41, %v3651_v29  ;;  %v11480_v29 = vld [vmem:[%s14532_s7 + $0x2c] ss:$16 sps:$4 sm:$0xff]  }
 0xbc7   :  { %v13166_v20 = vadd.f32 %v13157_v22, %v3716_v45  ;;  %v3706_v23 = vmul.f32 %v11778_v5, %v3650_v46 }
 0xbc8   :  { %v3719_v12 = vmul.f32 %v13152_v10, %v3707_v37 }
 0xbc9   :  { %v3736_v2 = vpack.c.bf16 %v13163_v42, %v13166_v20  ;;  %v3718_v24 = vmul.f32 %v13152_v10, %v3706_v23 }
 0xbca   :  { %v13177_v47 = vadd.f32 %v13157_v22, %v3719_v12 }
 0xbcb   :  { %3981 = vmatmul.mubr.bf16.vlgmr.msra.gmra.mrb[44].mxu1 %v3736_v2  ;;  %v13174_v54 = vadd.f32 %v13157_v22, %v3718_v24 }
 0xbcc   :  { %3990 = vmatprep.mubr.bf16.mxu1 %v12094_v0 }
 0xbcd   :  { %v3737_v46 = vpack.c.bf16 %v13177_v47, %v13174_v54 }
 0xbce   :  { %v10289_v33 = vpop.f32.mrb[48].mxu0 }
 0xbcf   :  { %v3483_v18 = vpop.f32.mrb[49].mxu0 }
 0xbd0   :  { %10301 = vmatprep.mubr.msk.f32.mxu0 %vm682_vm0, %v3483_v18 }
 0xbd1   :  { %10302 = vmatmul.mubr.msk.f32.vlgmr.msra.gmra.mrb[40].mxu0 %vm682_vm0, %v10289_v33 }
 0xbd2   :  { %4022 = vmatpush1.bf16.msra.mxu0 %v11475_v21  ;;  %v10292_v61 = vpop.f32.mrb[50].mxu0 }
 0xbd3   :  { %v3493_v63 = vpop.f32.mrb[51].mxu0  ;;  %3991 = vmatmul.mubr.bf16.gmra.mrb[48].mxu1 %v3737_v46  ;;  %4023 = vmatprep.subr.bf16.mxu0 %v11480_v29 }
 0xbd4   :  { %10304 = vmatprep.mubr.msk.f32.mxu0 %vm682_vm0, %v3493_v63  ;;  %4000 = vmatprep.mubr.bf16.mxu1 %v12094_v0 }
 0xbd5   :  { %10305 = vmatmul.mubr.msk.f32.gmra.mrb[42].mxu0 %vm682_vm0, %v10292_v61 }
 0xbd6   :  { %4024 = vmatpush1.bf16.msra.mxu0 %v11478_v11  ;;  %4053 = vmatprep.mubr.bf16.mxu0 %v12094_v0 }
 0xbd7   :  { %4025 = vmatprep.subr.bf16.mxu0 %v11483_v34 }
 0xbda   :  { %4026 = vmatpush1.bf16.msra.mxu0 %v11481_v62 }
 0xbdb   :  { %4027 = vmatprep.subr.bf16.mxu0 %v11486_v56 }
 0xbde   :  { %4028 = vmatpush1.bf16.msra.mxu0 %v11484_v6 }
 0xbdf   :  { %4029 = vmatprep.subr.bf16.mxu0 %v11489_v14 }
 0xbe2   :  { %4030 = vmatpush1.bf16.msra.mxu0 %v11487_v9 }
 0xbe3   :  { %4031 = vmatprep.subr.bf16.mxu0 %v11492_v19 }
 0xbe6   :  { %4032 = vmatpush1.bf16.msra.mxu0 %v11490_v49 }
 0xbe7   :  { %4033 = vmatprep.subr.bf16.mxu0 %v11495_v27 }
 0xbea   :  { %4034 = vmatpush1.bf16.msra.mxu0 %v11493_v28  ;;  %v343_v28 = vld [vmem:[%s14534_s9 + $0x18] sm:$0xff] }
 0xbeb   :  { %4035 = vmatprep.subr.bf16.mxu0 %v11498_v31  ;;  %v13281_v31 = vrot.slane %v343_v28, %v13235_v39 }
 0xbee   :  { %4036 = vmatpush1.bf16.msra.mxu0 %v11496_v38 }
 0xbf1   :  { %4054 = vmatmul.mubr.bf16.vlgmr.msra.gmra.mrb[52].mxu0 %v3736_v2 }
 0xbf2   :  { %4063 = vmatprep.mubr.bf16.mxu0 %v12094_v0 }
 0xbf9   :  { %4064 = vmatmul.mubr.bf16.gmra.mrb[56].mxu0 %v3737_v46 }
 0xbfa   :  { %4073 = vmatprep.mubr.bf16.mxu0 %v12094_v0 }
 0xc9e   :  { %v3982_v43 = vpop.f32.mrb[44].mxu1 }
 0xc9f   :  { %v3983_v55 = vadd.f32 %v3982_v43, %v13239_v40  ;;  %v3984_v58 = vpop.f32.mrb[45].mxu1 }
 0xca0   :  { %v3985_v35 = vadd.f32 %v3984_v58, %v13245_v59  ;;  %v3986_v4 = vpop.f32.mrb[46].mxu1 }
 0xca1   :  { %v3987_v1 = vadd.f32 %v3986_v4, %v13239_v40  ;;  %v3988_v8 = vpop.f32.mrb[47].mxu1  ;;  %v4094_v32 = vmax.f32 %v3983_v55, 0.0 }
 0xca2   :  { %v3989_v13 = vadd.f32 %v3988_v8, %v13245_v59  ;;  %v4095_v44 = vmax.f32 %v3985_v35, 0.0 }
 0xca3   :  { %v4098_v7 = vmax.f32 %v3987_v1, 0.0 }
 0xca4   :  { %v4099_v17 = vmax.f32 %v3989_v13, 0.0  ;;  %v10303_v53 = vpop.f32.mrb[40].mxu0 }
 0xca5   :  { %v13251_v41 = vpack.c.bf16 %v4098_v7, %v4094_v32  ;;  %v3612_v45 = vadd.f32 %v10303_v53, %v13049_v3  ;;  %v3580_v5 = vpop.f32.mrb[41].mxu0 }
 0xca6   :  { %v13254_v37 = vpack.c.bf16 %v4099_v17, %v4095_v44  ;;  %v3611_v23 = vadd.f32 %v13049_v3, %v3580_v5  ;;  %v3992_v2 = vpop.f32.mrb[48].mxu1 }
 0xca7   :  { %v3620_v24 = vadd.f32 %v3612_v45, %v12393_v15  ;;  %v3993_v12 = vadd.f32 %v3992_v2, %v13239_v40  ;;  %v3994_v33 = vpop.f32.mrb[49].mxu1 }
 0xca8   :  { %v3619_v21 = vadd.f32 %v3611_v23, %v12395_v16  ;;  %v3995_v18 = vadd.f32 %v3994_v33, %v13245_v59  ;;  %v10306_v29 = vpop.f32.mrb[42].mxu0  ;;  %v3996_v46 = vpop.f32.mrb[50].mxu1 }
 0xca9   :  { %v3614_v61 = vadd.f32 %v10306_v29, %v13049_v3  ;;  %v3997_v11 = vadd.f32 %v3996_v46, %v13239_v40  ;;  %v3998_v63 = vpop.f32.mrb[51].mxu1  ;;  %3633 = vadd.xlane.f32.xlu0 %v3620_v24  ;;  %v3590_v34 = vpop.f32.mrb[43].mxu0  ;;  %v4102_v56 = vmax.f32 %v3993_v12, 0.0 }
 0xcaa   :  { %v3999_v62 = vadd.f32 %v3998_v63, %v13245_v59  ;;  %v3613_v15 = vadd.f32 %v13049_v3, %v3590_v34  ;;  %3631 = vadd.xlane.f32.xlu1 %v3619_v21  ;;  %v4103_v14 = vmax.f32 %v3995_v18, 0.0  ;;  %v11961_v3 = vld [vmem:[%s14534_s9 + $0x10] sm:$0xff] }
 0xcab   :  { %v3622_v6 = vadd.f32 %v3614_v61, %v12405_v25  ;;  %v4106_v16 = vmax.f32 %v3997_v11, 0.0  ;;  %v13278_v25 = vrot.slane %v11961_v3, %v13235_v39 }
 0xcac   :  { %v4107_v9 = vmax.f32 %v3999_v62, 0.0  ;;  %v3621_v19 = vadd.f32 %v3613_v15, %v12407_v26 }
 0xcad   :  { %v13267_v49 = vpack.c.bf16 %v4106_v16, %v4102_v56  ;;  %3637 = vadd.xlane.f32.xlu0 %v3622_v6 }
 0xcae   :  { %v13269_v27 = vpack.c.bf16 %v4107_v9, %v4103_v14  ;;  %3635 = vadd.xlane.f32.xlu1 %v3621_v19 }
 0xcc4   :  { %v4055_v26 = vpop.f32.mrb[52].mxu0 }
 0xcc5   :  { %v4056_v38 = vadd.f32 %v4055_v26, %v13278_v25  ;;  %v4057_v30 = vpop.f32.mrb[53].mxu0 }
 0xcc6   :  { %v4058_v43 = vadd.f32 %v4057_v30, %v13281_v31  ;;  %v4059_v55 = vpop.f32.mrb[54].mxu0 }
 0xcc7   :  { %v4060_v58 = vadd.f32 %v4059_v55, %v13278_v25  ;;  %v4061_v35 = vpop.f32.mrb[55].mxu0  ;;  %v4096_v1 = vmax.f32 %v4056_v38, 0.0 }
 0xcc8   :  { %v4062_v4 = vadd.f32 %v4061_v35, %v13281_v31  ;;  %v4097_v13 = vmax.f32 %v4058_v43, 0.0  ;;  %v11502_v35 = vld [vmem:[%s14533_s8 + $0x80] sm:$0xff]  }
 0xcc9   :  { %v4100_v8 = vmax.f32 %v4060_v58, 0.0  ;;  %v11499_v58 = vld [vmem:[%s14533_s8 + $0x40] sm:$0xff]  }
 0xcca   :  { %v4101_v32 = vmax.f32 %v4062_v4, 0.0  ;;  %9583 = vmatprep.subr.bf16.mxu1 %v11499_v58  ;;  %v11503_v4 = vld [vmem:[%s14533_s8 + $0x48] sm:$0xff]  }
 0xccb   :  { %v13287_v7 = vpack.c.bf16 %v4100_v8, %v4096_v1  ;;  %v11504_v1 = vld [vmem:[%s14533_s8 + $0xc8] sm:$0xff]  }
 0xccc   :  { %v13289_v44 = vpack.c.bf16 %v4101_v32, %v4097_v13  ;;  %v4065_v17 = vpop.f32.mrb[56].mxu0  ;;  %v11505_v8 = vld [vmem:[%s14533_s8 + $0x8] sm:$0xff]   ;;  %v11507_v32 = vld [vmem:[%s14533_s8 + $0x50] sm:$0xff]  }
 0xccd   :  { %v4066_v53 = vadd.f32 %v4065_v17, %v13278_v25  ;;  %v4067_v45 = vpop.f32.mrb[57].mxu0  ;;  %v11506_v13 = vld [vmem:[%s14533_s8 + $0x88] sm:$0xff]   ;;  %v11508_v17 = vld [vmem:[%s14533_s8 + $0xd0] sm:$0xff]  }
 0xcce   :  { %v4068_v5 = vadd.f32 %v4067_v45, %v13281_v31  ;;  %v4069_v23 = vpop.f32.mrb[58].mxu0  ;;  %v11510_v45 = vld [vmem:[%s14533_s8 + $0x90] sm:$0xff]  }
 0xccf   :  { %v4070_v2 = vadd.f32 %v4069_v23, %v13278_v25  ;;  %v4071_v12 = vpop.f32.mrb[59].mxu0  ;;  %v4104_v18 = vmax.f32 %v4066_v53, 0.0  ;;  %v11509_v53 = vld [vmem:[%s14533_s8 + $0x10] sm:$0xff]   ;;  %v11512_v23 = vld [vmem:[%s14533_s8 + $0xd8] sm:$0xff]  }
 0xcd0   :  { %v4072_v33 = vadd.f32 %v4071_v12, %v13281_v31  ;;  %v4105_v46 = vmax.f32 %v4068_v5, 0.0  ;;  %v11511_v5 = vld [vmem:[%s14533_s8 + $0x58] sm:$0xff]  }
 0xcd1   :  { %v4108_v29 = vmax.f32 %v4070_v2, 0.0  ;;  %v11513_v2 = vld [vmem:[%s14533_s8 + $0x18] sm:$0xff]  }
 0xcd2   :  { %v4109_v61 = vmax.f32 %v4072_v33, 0.0  ;;  %v11514_v12 = vld [vmem:[%s14533_s8 + $0x98] sm:$0xff]   ;;  %v11515_v33 = vld [vmem:[%s14533_s8 + $0x60] sm:$0xff]  }
 0xcd3   :  { %v13295_v11 = vpack.c.bf16 %v4108_v29, %v4104_v18  ;;  %v11516_v18 = vld [vmem:[%s14533_s8 + $0xe0] sm:$0xff]  }
 0xcd4   :  { %v13297_v63 = vpack.c.bf16 %v4109_v61, %v4105_v46  ;;  %v11517_v29 = vld [vmem:[%s14533_s8 + $0x20] sm:$0xff]   ;;  %v11519_v61 = vld [vmem:[%s14533_s8 + $0x68] sm:$0xff]  }
 0xcd5   :  { %v11518_v46 = vld [vmem:[%s14533_s8 + $0xa0] sm:$0xff]  }
 0xd36   :  { %v3634_v34 = vpop.xlane.xlu0 %3633 }
 0xd37   :  { %v3645_v62 = vmul.f32 0.0078125, %v3634_v34  ;;  %v3632_v15 = vpop.xlane.xlu1 %3631  ;;  %v11520_v34 = vld [vmem:[%s14533_s8 + $0xe8] sm:$0xff]  }
 0xd38   :  { %v3644_v56 = vmul.f32 0.0078125, %v3632_v15  ;;  %v11522_v15 = vld [vmem:[%s14533_s8 + $0xa8] sm:$0xff]  }
 0xd39   :  { %v13299_v16 = vsub.f32 %v3620_v24, %v3645_v62  ;;  %v11521_v62 = vld [vmem:[%s14533_s8 + $0x28] sm:$0xff]  }
 0xd3a   :  { %v13301_v14 = vsub.f32 %v3619_v21, %v3644_v56  ;;  %v3638_v9 = vpop.xlane.xlu0 %3637  ;;  %v11523_v56 = vld [vmem:[%s14533_s8 + $0x70] sm:$0xff]  }
 0xd3b   :  { %v3647_v28 = vmul.f32 0.0078125, %v3638_v9  ;;  %v3636_v3 = vpop.xlane.xlu1 %3635  ;;  %v3661_v26 = vmul.f32 %v13299_v16, %v13299_v16  ;;  %v11524_v9 = vld [vmem:[%s14533_s8 + $0xf0] sm:$0xff]  }
 0xd3c   :  { %v3646_v38 = vmul.f32 0.0078125, %v3636_v3  ;;  %v3660_v30 = vmul.f32 %v13301_v14, %v13301_v14  ;;  %v11526_v3 = vld [vmem:[%s14533_s8 + $0xb0] sm:$0xff]  }
 0xd3d   :  { %v13307_v43 = vsub.f32 %v3622_v6, %v3647_v28  ;;  %3674 = vadd.xlane.f32.xlu0 %v3661_v26  ;;  %v11500_v6 = vld [vmem:[%s14533_s8 + $0xc0] sm:$0xff]   ;;  %v11525_v28 = vld [vmem:[%s14533_s8 + $0x30] sm:$0xff]   ;;  %v11527_v26 = vld [vmem:[%s14533_s8 + $0x78] sm:$0xff]  }
 0xd3e   :  { %v13309_v55 = vsub.f32 %v3621_v19, %v3646_v38  ;;  %3672 = vadd.xlane.f32.xlu1 %v3660_v30  ;;  %v11501_v19 = vld [vmem:[%s14533_s8] sm:$0xff]   ;;  %9623 = vmatprep.subr.bf16.mxu0 %v11500_v6  ;;  %v11528_v38 = vld [vmem:[%s14533_s8 + $0xf8] sm:$0xff]  }
 0xd3f   :  { %v3663_v24 = vmul.f32 %v13307_v43, %v13307_v43  ;;  %9584 = vmatpush3.bf16.msra.mxu1 %v11501_v19  ;;  %9624 = vmatpush3.bf16.msra.mxu0 %v11502_v35  ;;  %v11529_v30 = vld [vmem:[%s14533_s8 + $0x38] sm:$0xff]  }
 0xd40   :  { %v3662_v21 = vmul.f32 %v13309_v55, %v13309_v55  ;;  %9585 = vmatprep.subr.bf16.mxu1 %v11503_v4  ;;  %9625 = vmatprep.subr.bf16.mxu0 %v11504_v1 }
 0xd41   :  { %3678 = vadd.xlane.f32.xlu0 %v3663_v24  ;;  %v11530_v24 = vld [vmem:[%s14533_s8 + $0xb8] sm:$0xff]  }
 0xd42   :  { %3676 = vadd.xlane.f32.xlu1 %v3662_v21 }
 0xd43   :  { %9586 = vmatpush3.bf16.msra.mxu1 %v11505_v8  ;;  %9626 = vmatpush3.bf16.msra.mxu0 %v11506_v13 }
 0xd44   :  { %9587 = vmatprep.subr.bf16.mxu1 %v11507_v32  ;;  %9627 = vmatprep.subr.bf16.mxu0 %v11508_v17 }
 0xd47   :  { %9588 = vmatpush3.bf16.msra.mxu1 %v11509_v53  ;;  %9628 = vmatpush3.bf16.msra.mxu0 %v11510_v45 }
 0xd48   :  { %9589 = vmatprep.subr.bf16.mxu1 %v11511_v5  ;;  %9629 = vmatprep.subr.bf16.mxu0 %v11512_v23 }
 0xd4b   :  { %9590 = vmatpush3.bf16.msra.mxu1 %v11513_v2  ;;  %9630 = vmatpush3.bf16.msra.mxu0 %v11514_v12 }
 0xd4c   :  { %9591 = vmatprep.subr.bf16.mxu1 %v11515_v33  ;;  %9631 = vmatprep.subr.bf16.mxu0 %v11516_v18 }
 0xd4f   :  { %9592 = vmatpush3.bf16.msra.mxu1 %v11517_v29  ;;  %9632 = vmatpush3.bf16.msra.mxu0 %v11518_v46 }
 0xd50   :  { %9593 = vmatprep.subr.bf16.mxu1 %v11519_v61  ;;  %9633 = vmatprep.subr.bf16.mxu0 %v11520_v34 }
 0xd53   :  { %9594 = vmatpush3.bf16.msra.mxu1 %v11521_v62  ;;  %9634 = vmatpush3.bf16.msra.mxu0 %v11522_v15 }
 0xd54   :  { %9595 = vmatprep.subr.bf16.mxu1 %v11523_v56  ;;  %9635 = vmatprep.subr.bf16.mxu0 %v11524_v9 }
 0xd57   :  { %9596 = vmatpush3.bf16.msra.mxu1 %v11525_v28  ;;  %9636 = vmatpush3.bf16.msra.mxu0 %v11526_v3 }
 0xd58   :  { %9597 = vmatprep.subr.bf16.mxu1 %v11527_v26  ;;  %9637 = vmatprep.subr.bf16.mxu0 %v11528_v38 }
 0xd5b   :  { %9598 = vmatpush3.bf16.msra.mxu1 %v11529_v30  ;;  %9638 = vmatpush3.bf16.msra.mxu0 %v11530_v24 }
 0xdca   :  { %v3675_v21 = vpop.xlane.xlu0 %3674 }
 0xdcb   :  { %v3685_v58 = vmul.f32 0.0078125, %v3675_v21  ;;  %v3673_v6 = vpop.xlane.xlu1 %3672 }
 0xdcc   :  { %v3684_v19 = vmul.f32 0.0078125, %v3673_v6 }
 0xdcd   :  { %v3693_v35 = vadd.f32 1e-05, %v3685_v58 }
 0xdce   :  { %v3692_v4 = vadd.f32 1e-05, %v3684_v19  ;;  %v3679_v1 = vpop.xlane.xlu0 %3678 }
 0xdcf   :  { %11779 = vrsqrt.f32 %v3693_v35  ;;  %v3687_v8 = vmul.f32 0.0078125, %v3679_v1  ;;  %v3677_v13 = vpop.xlane.xlu1 %3676 }
 0xdd0   :  { %11781 = vrsqrt.f32 %v3692_v4  ;;  %v3686_v32 = vmul.f32 0.0078125, %v3677_v13 }
 0xdd1   :  { %v3695_v17 = vadd.f32 1e-05, %v3687_v8 }
 0xdd2   :  { %v3694_v53 = vadd.f32 1e-05, %v3686_v32 }
 0xdd3   :  { %11783 = vrsqrt.f32 %v3695_v17 }
 0xdd4   :  { %11785 = vrsqrt.f32 %v3694_v53 }
 0xdd9   :  { %v11780_v45 = vpop.eup %11779 }
 0xdda   :  { %v11782_v5 = vpop.eup %11781  ;;  %v3709_v23 = vmul.f32 %v11780_v45, %v13299_v16 }
 0xddb   :  { %v3708_v2 = vmul.f32 %v11782_v5, %v13301_v14 }
 0xddc   :  { %v3721_v12 = vmul.f32 %v13152_v10, %v3709_v23 }
 0xddd   :  { %v11784_v33 = vpop.eup %11783  ;;  %v3720_v18 = vmul.f32 %v13152_v10, %v3708_v2 }
 0xdde   :  { %v11786_v29 = vpop.eup %11785  ;;  %v13416_v46 = vadd.f32 %v13157_v22, %v3721_v12  ;;  %v3711_v61 = vmul.f32 %v11784_v33, %v13307_v43 }
 0xddf   :  { %v13420_v34 = vadd.f32 %v13157_v22, %v3720_v18  ;;  %v3710_v62 = vmul.f32 %v11786_v29, %v13309_v55 }
 0xde0   :  { %v3723_v15 = vmul.f32 %v13152_v10, %v3711_v61 }
 0xde1   :  { %v3738_v16 = vpack.c.bf16 %v13416_v46, %v13420_v34  ;;  %v3722_v14 = vmul.f32 %v13152_v10, %v3710_v62 }
 0xde2   :  { %v13433_v56 = vadd.f32 %v13157_v22, %v3723_v15 }
 0xde3   :  { %4001 = vmatmul.mubr.bf16.gmra.mrb[52].mxu1 %v3738_v16  ;;  %4074 = vmatmul.mubr.bf16.gmra.mrb[60].mxu0 %v3738_v16  ;;  %v13430_v43 = vadd.f32 %v13157_v22, %v3722_v14 }
 0xde4   :  { %4010 = vmatprep.mubr.bf16.mxu1 %v12094_v0  ;;  %4083 = vmatprep.mubr.bf16.mxu0 %v12094_v0 }
 0xde5   :  { %v3739_v55 = vpack.c.bf16 %v13433_v56, %v13430_v43 }
 0xdeb   :  { %4011 = vmatmul.mubr.bf16.gmra.mrb[56].mxu1 %v3739_v55  ;;  %4084 = vmatmul.mubr.bf16.gmra.mrb[64].mxu0 %v3739_v55 }
 0xdec   :  { %4434 = vmatprep.mubr.bf16.mxu1 %v13254_v37  ;;  %4499 = vmatprep.mubr.bf16.mxu0 %v13289_v44 }
 0xdf3   :  { %4435 = vmatmul.mubr.bf16.vlgmr.msra.gmra.mrb[60].mxu1 %v13251_v41  ;;  %4500 = vmatmul.mubr.bf16.vlgmr.msra.gmra.mrb[68].mxu0 %v13287_v7 }
 0xdf4   :  { %4442 = vmatprep.mubr.bf16.mxu1 %v13269_v27  ;;  %4507 = vmatprep.mubr.bf16.mxu0 %v13297_v63 }
 0xdfb   :  { %4443 = vmatmul.mubr.bf16.gmra.mrb[64].mxu1 %v13267_v49  ;;  %4508 = vmatmul.mubr.bf16.gmra.mrb[72].mxu0 %v13295_v11 }
 0xeb6   :  { %v4002_v10 = vpop.f32.mrb[52].mxu1  ;;  %v4075_v22 = vpop.f32.mrb[60].mxu0 }
 0xeb7   :  { %v4003_v9 = vadd.f32 %v4002_v10, %v13239_v40  ;;  %v4076_v37 = vadd.f32 %v4075_v22, %v13278_v25  ;;  %v4004_v28 = vpop.f32.mrb[53].mxu1  ;;  %v4077_v44 = vpop.f32.mrb[61].mxu0  ;;  %v4208_v22 = vsub.s32 5, %v12314_v50 }
 0xeb8   :  { %v4005_v41 = vadd.f32 %v4004_v28, %v13245_v59  ;;  %v4078_v7 = vadd.f32 %v4077_v44, %v13281_v31  ;;  %v4006_v3 = vpop.f32.mrb[54].mxu1  ;;  %v4079_v27 = vpop.f32.mrb[62].mxu0 }
 0xeb9   :  { %v4007_v63 = vadd.f32 %v4006_v3, %v13239_v40  ;;  %v4080_v49 = vadd.f32 %v4079_v27, %v13278_v25  ;;  %v4008_v26 = vpop.f32.mrb[55].mxu1  ;;  %v4081_v11 = vpop.f32.mrb[63].mxu0  ;;  %v4110_v24 = vmax.f32 %v4003_v9, 0.0  ;;  %v4112_v21 = vmax.f32 %v4076_v37, 0.0 }
 0xeba   :  { %v4009_v38 = vadd.f32 %v4008_v26, %v13245_v59  ;;  %v4082_v30 = vadd.f32 %v4081_v11, %v13281_v31  ;;  %v4111_v19 = vmax.f32 %v4005_v41, 0.0  ;;  %v4113_v35 = vmax.f32 %v4078_v7, 0.0 }
 0xebb   :  { %v4114_v58 = vmax.f32 %v4007_v63, 0.0  ;;  %v4116_v6 = vmax.f32 %v4080_v49, 0.0 }
 0xebc   :  { %v4115_v4 = vmax.f32 %v4009_v38, 0.0  ;;  %v4117_v1 = vmax.f32 %v4082_v30, 0.0 }
 0xebd   :  { %v4134_v8 = vpack.c.bf16 %v4114_v58, %v4110_v24  ;;  %v4136_v13 = vpack.c.bf16 %v4116_v6, %v4112_v21 }
 0xebe   :  { %v4135_v32 = vpack.c.bf16 %v4115_v4, %v4111_v19  ;;  %v4137_v17 = vpack.c.bf16 %v4117_v1, %v4113_v35  ;;  %v4012_v53 = vpop.f32.mrb[56].mxu1  ;;  %v4085_v45 = vpop.f32.mrb[64].mxu0 }
 0xebf   :  { %v4013_v5 = vadd.f32 %v4012_v53, %v13239_v40  ;;  %v4086_v23 = vadd.f32 %v4085_v45, %v13278_v25  ;;  %v4014_v2 = vpop.f32.mrb[57].mxu1  ;;  %v4087_v12 = vpop.f32.mrb[65].mxu0 }
 0xec0   :  { %v4015_v33 = vadd.f32 %v4014_v2, %v13245_v59  ;;  %v4088_v18 = vadd.f32 %v4087_v12, %v13281_v31  ;;  %v4016_v29 = vpop.f32.mrb[58].mxu1  ;;  %v4089_v61 = vpop.f32.mrb[66].mxu0  ;;  %4450 = vmatprep.mubr.bf16.mxu1 %v4135_v32  ;;  %4515 = vmatprep.mubr.bf16.mxu0 %v4137_v17 }
 0xec1   :  { %v4017_v62 = vadd.f32 %v4016_v29, %v13239_v40  ;;  %v4090_v16 = vadd.f32 %v4089_v61, %v13278_v25  ;;  %v4018_v14 = vpop.f32.mrb[59].mxu1  ;;  %v4091_v15 = vpop.f32.mrb[67].mxu0  ;;  %4451 = vmatmul.mubr.bf16.gmra.mrb[68].mxu1 %v4134_v8  ;;  %4516 = vmatmul.mubr.bf16.gmra.mrb[76].mxu0 %v4136_v13  ;;  %v4118_v9 = vmax.f32 %v4013_v5, 0.0  ;;  %v4120_v37 = vmax.f32 %v4086_v23, 0.0 }
 0xec2   :  { %v4019_v55 = vadd.f32 %v4018_v14, %v13245_v59  ;;  %v4092_v10 = vadd.f32 %v4091_v15, %v13281_v31  ;;  %v4119_v41 = vmax.f32 %v4015_v33, 0.0  ;;  %v4121_v7 = vmax.f32 %v4088_v18, 0.0 }
 0xec3   :  { %v4122_v28 = vmax.f32 %v4017_v62, 0.0  ;;  %v4124_v44 = vmax.f32 %v4090_v16, 0.0  ;;  %v13465_v59 = vrot.slane %v13045_v57, %v4208_v22 }
 0xec4   :  { %v4123_v3 = vmax.f32 %v4019_v55, 0.0  ;;  %v4125_v40 = vmax.f32 %v4092_v10, 0.0 }
 0xec5   :  { %v4138_v27 = vpack.c.bf16 %v4122_v28, %v4118_v9  ;;  %v4140_v25 = vpack.c.bf16 %v4124_v44, %v4120_v37  ;;  %v11531_v37 = vld [vmem:[#allocation6] ss:$12 sps:$4 sm:$0xff]   ;;  %v11533_v28 = vld [vmem:[#allocation6 + $0x4] ss:$12 sps:$4 sm:$0xff]  }
 0xec6   :  { %v4139_v63 = vpack.c.bf16 %v4123_v3, %v4119_v41  ;;  %v4141_v49 = vpack.c.bf16 %v4125_v40, %v4121_v7  ;;  %v9599_v26 = vpop.f32.mrb[60].mxu1  ;;  %v9639_v11 = vpop.f32.mrb[68].mxu0  ;;  %4832 = vmatprep.subr.bf16.mxu1 %v11533_v28  ;;  %v11534_v44 = vld [vmem:[#allocation6 + $0x18] ss:$12 sps:$4 sm:$0xff]  }
 0xec7   :  { %v9600_v31 = vpop.f32.mrb[61].mxu1  ;;  %v9640_v38 = vpop.f32.mrb[69].mxu0  ;;  %4833 = vmatpush1.bf16.msra.mxu1 %v11531_v37 }
 0xec8   :  { %v9601_v30 = vadd.f32 %v9600_v31, %v9599_v26  ;;  %v9641_v24 = vadd.f32 %v9640_v38, %v9639_v11  ;;  %v9602_v21 = vpop.f32.mrb[62].mxu1  ;;  %4458 = vmatprep.mubr.bf16.mxu1 %v4139_v63  ;;  %v9642_v58 = vpop.f32.mrb[70].mxu0  ;;  %4523 = vmatprep.mubr.bf16.mxu0 %v4141_v49 }
 0xec9   :  { %v9603_v6 = vpop.f32.mrb[63].mxu1  ;;  %4459 = vmatmul.mubr.bf16.gmra.mrb[72].mxu1 %v4138_v27  ;;  %v9643_v19 = vpop.f32.mrb[71].mxu0  ;;  %4524 = vmatmul.mubr.bf16.gmra.mrb[80].mxu0 %v4140_v25 }
 0xeca   :  { %v4437_v35 = vadd.f32 %v9601_v30, %v13465_v59  ;;  %v9604_v4 = vadd.f32 %v9603_v6, %v9602_v21  ;;  %v9644_v1 = vadd.f32 %v9643_v19, %v9642_v58  ;;  %4864 = vmatprep.mubr.bf16.mxu1 %v12094_v0  ;;  %v11539_v21 = vld [vmem:[#allocation6 + $0x34] ss:$12 sps:$4 sm:$0xff]   ;;  %v11537_v6 = vld [vmem:[#allocation6 + $0x30] ss:$12 sps:$4 sm:$0xff]   ;;  %v11543_v19 = vld [vmem:[#allocation6 + $0x4c] ss:$12 sps:$4 sm:$0xff]  }
 0xecb   :  { %v11540_v58 = vld [vmem:[#allocation6 + $0x8] ss:$12 sps:$4 sm:$0xff]  }
 0xecc   :  { %v4502_v57 = vadd.f32 %v9641_v24, %v4437_v35  ;;  %v4440_v8 = vadd.f32 %v9604_v4, %v13465_v59  ;;  %10307 = vmatprep.subr.bf16.mxu0 %v11540_v58  ;;  %v11544_v35 = vld [vmem:[#allocation6 + $0x20] ss:$12 sps:$4 sm:$0xff]   ;;  %v11541_v4 = vld [vmem:[#allocation6 + $0x48] ss:$12 sps:$4 sm:$0xff]  }
 0xecd   :  { %10308 = vmatpush3.bf16.msra.mxu0 %v11540_v58 }
 0xece   :  { %v4505_v13 = vadd.f32 %v9644_v1, %v4440_v8  ;;  %v9605_v32 = vpop.f32.mrb[64].mxu1  ;;  %v9645_v17 = vpop.f32.mrb[72].mxu0  ;;  %v4532_v53 = vadd.f32 %v4502_v57, %v13166_v20  ;;  %10309 = vmatprep.subr.bf16.mxu0 %v11544_v35  ;;  %v11547_v1 = vld [vmem:[#allocation6 + $0x64] ss:$12 sps:$4 sm:$0xff]   ;;  %v11545_v8 = vld [vmem:[#allocation6 + $0x60] ss:$12 sps:$4 sm:$0xff]  }
 0xecf   :  { %v9606_v45 = vpop.f32.mrb[65].mxu1  ;;  %v9646_v5 = vpop.f32.mrb[73].mxu0  ;;  %v11548_v57 = vld [vmem:[#allocation6 + $0x38] ss:$12 sps:$4 sm:$0xff]  }
 0xed0   :  { %v9607_v23 = vadd.f32 %v9606_v45, %v9605_v32  ;;  %v9647_v2 = vadd.f32 %v9646_v5, %v9645_v17  ;;  %v9608_v12 = vpop.f32.mrb[66].mxu1  ;;  %v9648_v33 = vpop.f32.mrb[74].mxu0  ;;  %4540 = vadd.xlane.f32.xlu1 %v4532_v53  ;;  %v4533_v18 = vadd.f32 %v4505_v13, %v13163_v42  ;;  %v11536_v42 = vld [vmem:[#allocation6 + $0x1c] ss:$12 sps:$4 sm:$0xff]   ;;  %v11549_v17 = vld [vmem:[#allocation6 + $0x78] ss:$12 sps:$4 sm:$0xff]  }
 0xed1   :  { %v9609_v29 = vpop.f32.mrb[67].mxu1  ;;  %v9649_v61 = vpop.f32.mrb[75].mxu0  ;;  %4834 = vmatprep.subr.bf16.mxu1 %v11536_v42  ;;  %10310 = vmatpush3.bf16.msra.mxu0 %v11544_v35  ;;  %v11551_v13 = vld [vmem:[#allocation6 + $0x7c] ss:$12 sps:$4 sm:$0xff]  }
 0xed2   :  { %v4445_v62 = vadd.f32 %v9607_v23, %v13465_v59  ;;  %v9610_v16 = vadd.f32 %v9609_v29, %v9608_v12  ;;  %v9650_v14 = vadd.f32 %v9649_v61, %v9648_v33  ;;  %4542 = vadd.xlane.f32.xlu0 %v4533_v18  ;;  %4835 = vmatpush1.bf16.msra.mxu1 %v11534_v44  ;;  %v11552_v32 = vld [vmem:[#allocation6 + $0x50] ss:$12 sps:$4 sm:$0xff]   ;;  %v11556_v45 = vld [vmem:[#allocation6 + $0x68] ss:$12 sps:$4 sm:$0xff]   ;;  %v11560_v12 = vld [vmem:[#allocation6 + $0x80] ss:$12 sps:$4 sm:$0xff]  }
 0xed3   :  { %4836 = vmatprep.subr.bf16.mxu1 %v11539_v21  ;;  %10311 = vmatprep.subr.bf16.mxu0 %v11548_v57  ;;  %v11553_v5 = vld [vmem:[#allocation6 + $0x90] ss:$12 sps:$4 sm:$0xff]   ;;  %v11557_v23 = vld [vmem:[#allocation6 + $0xa8] ss:$12 sps:$4 sm:$0xff]   ;;  %v11561_v33 = vld [vmem:[#allocation6 + $0x98] ss:$12 sps:$4 sm:$0xff]  }
 0xed4   :  { %v4510_v15 = vadd.f32 %v9647_v2, %v4445_v62  ;;  %v4448_v55 = vadd.f32 %v9610_v16, %v13465_v59  ;;  %v11559_v2 = vld [vmem:[#allocation6 + $0xac] ss:$12 sps:$4 sm:$0xff]  }
 0xed5   :  { %10312 = vmatpush3.bf16.msra.mxu0 %v11548_v57 }
 0xed6   :  { %v4513_v20 = vadd.f32 %v9650_v14, %v4448_v55  ;;  %v4534_v10 = vadd.f32 %v4510_v15, %v13174_v54  ;;  %4837 = vmatpush1.bf16.msra.mxu1 %v11537_v6  ;;  %10313 = vmatprep.subr.bf16.mxu0 %v11552_v32 }
 0xed7   :  { %4838 = vmatprep.subr.bf16.mxu1 %v11543_v19 }
 0xed8   :  { %4544 = vadd.xlane.f32.xlu1 %v4534_v10  ;;  %v4535_v9 = vadd.f32 %v4513_v20, %v13177_v47 }
 0xed9   :  { %10314 = vmatpush3.bf16.msra.mxu0 %v11552_v32 }
 0xeda   :  { %4546 = vadd.xlane.f32.xlu0 %v4535_v9  ;;  %4839 = vmatpush1.bf16.msra.mxu1 %v11541_v4 }
 0xedb   :  { %4840 = vmatprep.subr.bf16.mxu1 %v11547_v1  ;;  %10315 = vmatprep.subr.bf16.mxu0 %v11556_v45 }
 0xedd   :  { %10316 = vmatpush3.bf16.msra.mxu0 %v11556_v45 }
 0xede   :  { %4841 = vmatpush1.bf16.msra.mxu1 %v11545_v8  ;;  %10317 = vmatprep.subr.bf16.mxu0 %v11560_v12 }
 0xedf   :  { %4842 = vmatprep.subr.bf16.mxu1 %v11551_v13 }
 0xee1   :  { %10318 = vmatpush3.bf16.msra.mxu0 %v11560_v12 }
 0xee2   :  { %4843 = vmatpush1.bf16.msra.mxu1 %v11549_v17  ;;  %10319 = vmatprep.subr.bf16.mxu0 %v11561_v33 }
 0xee5   :  { %10320 = vmatpush3.bf16.msra.mxu0 %v11561_v33 }
 0xf5d   :  { %v4541_v41 = vpop.xlane.xlu1 %4540 }
 0xf5e   :  { %v4556_v7 = vmul.f32 0.0078125, %v4541_v41 }
 0xf5f   :  { %v4543_v3 = vpop.xlane.xlu0 %4542 }
 0xf60   :  { %v13476_v40 = vsub.f32 %v4532_v53, %v4556_v7  ;;  %v4557_v27 = vmul.f32 0.0078125, %v4543_v3  ;;  %v11555_v53 = vld [vmem:[#allocation6 + $0x94] ss:$12 sps:$4 sm:$0xff]  }
 0xf61   :  { %4844 = vmatprep.subr.bf16.mxu1 %v11555_v53 }
 0xf62   :  { %v13478_v25 = vsub.f32 %v4533_v18, %v4557_v27  ;;  %v4572_v54 = vmul.f32 %v13476_v40, %v13476_v40  ;;  %4845 = vmatpush1.bf16.msra.mxu1 %v11553_v5  ;;  %v11562_v18 = vld [vmem:[#allocation6 + $0xb0] ss:$12 sps:$4 sm:$0xff]  }
 0xf63   :  { %4846 = vmatprep.subr.bf16.mxu1 %v11559_v2  ;;  %10321 = vmatprep.subr.bf16.mxu0 %v11562_v18  ;;  %v14543_v2 = vsub.s32 6, %v12314_v50 }
 0xf64   :  { %4580 = vadd.xlane.f32.xlu1 %v4572_v54  ;;  %v4573_v47 = vmul.f32 %v13478_v25, %v13478_v25  ;;  %10322 = vmatpush3.bf16.msra.mxu0 %v11562_v18 }
 0xf65   :  { %v4545_v63 = vpop.xlane.xlu1 %4544 }
 0xf66   :  { %v4558_v49 = vmul.f32 0.0078125, %v4545_v63  ;;  %4582 = vadd.xlane.f32.xlu0 %v4573_v47  ;;  %4847 = vmatpush1.bf16.msra.mxu1 %v11557_v23 }
 0xf67   :  { %v4547_v26 = vpop.xlane.xlu0 %4546 }
 0xf68   :  { %v13484_v11 = vsub.f32 %v4534_v10, %v4558_v49  ;;  %v4559_v31 = vmul.f32 0.0078125, %v4547_v26 }
 0xf6a   :  { %v13486_v38 = vsub.f32 %v4535_v9, %v4559_v31  ;;  %v4574_v30 = vmul.f32 %v13484_v11, %v13484_v11 }
 0xf6c   :  { %4584 = vadd.xlane.f32.xlu1 %v4574_v30  ;;  %v4575_v24 = vmul.f32 %v13486_v38, %v13486_v38 }
 0xf6e   :  { %4586 = vadd.xlane.f32.xlu0 %v4575_v24 }
 0xf94   :  { %v9611_v29 = vpop.f32.mrb[68].mxu1  ;;  %v9651_v61 = vpop.f32.mrb[76].mxu0 }
 0xf95   :  { %v9612_v62 = vpop.f32.mrb[69].mxu1  ;;  %v9652_v16 = vpop.f32.mrb[77].mxu0 }
 0xf96   :  { %v9613_v14 = vadd.f32 %v9612_v62, %v9611_v29  ;;  %v9653_v15 = vadd.f32 %v9652_v16, %v9651_v61  ;;  %v9614_v55 = vpop.f32.mrb[70].mxu1  ;;  %v9654_v20 = vpop.f32.mrb[78].mxu0  ;;  %v14542_v29 = vsub.s32 7, %v12314_v50 }
 0xf97   :  { %v9615_v10 = vpop.f32.mrb[71].mxu1  ;;  %v9655_v9 = vpop.f32.mrb[79].mxu0 }
 0xf98   :  { %v4453_v37 = vadd.f32 %v9613_v14, %v13465_v59  ;;  %v9616_v28 = vadd.f32 %v9615_v10, %v9614_v55  ;;  %v9656_v42 = vadd.f32 %v9655_v9, %v9654_v20 }
 0xf9a   :  { %v4518_v44 = vadd.f32 %v9653_v15, %v4453_v37  ;;  %v4456_v41 = vadd.f32 %v9616_v28, %v13465_v59 }
 0xf9c   :  { %v4521_v7 = vadd.f32 %v9656_v42, %v4456_v41  ;;  %v9617_v3 = vpop.f32.mrb[72].mxu1  ;;  %v9657_v27 = vpop.f32.mrb[80].mxu0  ;;  %v13495_v54 = vadd.f32 %v4518_v44, %v13420_v34 }
 0xf9d   :  { %v9618_v47 = vpop.f32.mrb[73].mxu1  ;;  %v9658_v63 = vpop.f32.mrb[81].mxu0 }
 0xf9e   :  { %v9619_v49 = vadd.f32 %v9618_v47, %v9617_v3  ;;  %v9659_v26 = vadd.f32 %v9658_v63, %v9657_v27  ;;  %v9660_v31 = vpop.f32.mrb[82].mxu0  ;;  %4548 = vadd.xlane.f32.xlu1 %v13495_v54  ;;  %v9620_v30 = vpop.f32.mrb[74].mxu1  ;;  %v13499_v24 = vadd.f32 %v4521_v7, %v13416_v46 }
 0xf9f   :  { %v9621_v21 = vpop.f32.mrb[75].mxu1  ;;  %v9661_v58 = vpop.f32.mrb[83].mxu0 }
 0xfa0   :  { %v4461_v6 = vadd.f32 %v9619_v49, %v13465_v59  ;;  %v9622_v19 = vadd.f32 %v9621_v21, %v9620_v30  ;;  %v9662_v35 = vadd.f32 %v9661_v58, %v9660_v31  ;;  %4550 = vadd.xlane.f32.xlu0 %v13499_v24 }
 0xfa2   :  { %v4526_v34 = vadd.f32 %v9659_v26, %v4461_v6  ;;  %v4464_v4 = vadd.f32 %v9622_v19, %v13465_v59 }
 0xfa4   :  { %v4529_v1 = vadd.f32 %v9662_v35, %v4464_v4  ;;  %v4538_v57 = vadd.f32 %v4526_v34, %v13430_v43 }
 0xfa6   :  { %4552 = vadd.xlane.f32.xlu1 %v4538_v57  ;;  %v4539_v8 = vadd.f32 %v4529_v1, %v13433_v56  ;;  %v11962_v56 = vld [vmem:[%s14534_s9] sm:$0xff] }
 0xfa7   :  { %v13512_v18 = vrot.slane %v11962_v56, %v14543_v2  ;;  %v13520_v55 = vrot.slane %v11962_v56, %v14542_v29 }
 0xfa8   :  { %4554 = vadd.xlane.f32.xlu0 %v4539_v8 }
 0xff1   :  { %v4581_v46 = vpop.xlane.xlu1 %4580 }
 0xff2   :  { %v4596_v13 = vmul.f32 0.0078125, %v4581_v46 }
 0xff3   :  { %v4583_v32 = vpop.xlane.xlu0 %4582 }
 0xff4   :  { %v4604_v17 = vadd.f32 1e-05, %v4596_v13  ;;  %v4597_v53 = vmul.f32 0.0078125, %v4583_v32 }
 0xff6   :  { %11787 = vrsqrt.f32 %v4604_v17  ;;  %v4605_v45 = vadd.f32 1e-05, %v4597_v53 }
 0xff8   :  { %11789 = vrsqrt.f32 %v4605_v45 }
 0xff9   :  { %v4585_v5 = vpop.xlane.xlu1 %4584 }
 0xffa   :  { %v4598_v23 = vmul.f32 0.0078125, %v4585_v5 }
 0xffb   :  { %v4587_v59 = vpop.xlane.xlu0 %4586 }
 0xffc   :  { %v4606_v12 = vadd.f32 1e-05, %v4598_v23  ;;  %v4599_v33 = vmul.f32 0.0078125, %v4587_v59 }
 0xffe   :  { %11791 = vrsqrt.f32 %v4606_v12  ;;  %v4607_v43 = vadd.f32 1e-05, %v4599_v33 }
0x1000   :  { %v11788_v61 = vpop.eup %11787  ;;  %11793 = vrsqrt.f32 %v4607_v43 }
0x1001   :  { %v4620_v62 = vmul.f32 %v11788_v61, %v13476_v40 }
0x1002   :  { %v11790_v16 = vpop.eup %11789 }
0x1003   :  { %v4632_v14 = vmul.f32 %v13512_v18, %v4620_v62  ;;  %v4621_v15 = vmul.f32 %v11790_v16, %v13478_v25 }
0x1005   :  { %v4633_v20 = vmul.f32 %v13512_v18, %v4621_v15  ;;  %v13524_v10 = vadd.f32 %v13520_v55, %v4632_v14 }
0x1007   :  { %v13527_v9 = vadd.f32 %v13520_v55, %v4633_v20 }
0x1008   :  { %v11792_v37 = vpop.eup %11791 }
0x1009   :  { %v4656_v40 = vpack.c.bf16 %v13527_v9, %v13524_v10  ;;  %v4622_v28 = vmul.f32 %v11792_v37, %v13484_v11 }
0x100a   :  { %v11794_v42 = vpop.eup %11793 }
0x100b   :  { %4865 = vmatmul.mubr.bf16.vlgmr.msra.gmra.mrb[76].mxu1 %v4656_v40  ;;  %10323 = vmatprep.mubr.bf16.mxu0 %v4656_v40  ;;  %v4623_v25 = vmul.f32 %v11794_v42, %v13486_v38  ;;  %v4634_v44 = vmul.f32 %v13512_v18, %v4622_v28  ;;  %v4652_v40 = vld [vmem:[%s14539_s14] sm:$0xff] }
0x100c   :  { %4874 = vmatprep.mubr.bf16.mxu1 %v12094_v0 }
0x100d   :  { %v4635_v41 = vmul.f32 %v13512_v18, %v4623_v25  ;;  %v13537_v7 = vadd.f32 %v13520_v55, %v4634_v44  ;;  %v13563_v25 = vrot.slane %v4652_v40, %v12320_v52  ;;  %v4653_v44 = vld [vmem:[%s14539_s14 + $0x8] sm:$0xff] }
0x100f   :  { %v13540_v3 = vadd.f32 %v13520_v55, %v4635_v41 }
0x1011   :  { %v4657_v11 = vpack.c.bf16 %v13540_v3, %v13537_v7 }
0x1013   :  { %4875 = vmatmul.mubr.bf16.gmra.mrb[80].mxu1 %v4657_v11  ;;  %10324 = vmatmul.mubr.bf16.vlgmr.msra.gmra.mrb[84].mxu0 %v4657_v11 }
0x1014   :  { %4884 = vmatprep.mubr.bf16.mxu1 %v12094_v0 }
0x102b   :  { %v4549_v38 = vpop.xlane.xlu1 %4548 }
0x102c   :  { %v4560_v27 = vmul.f32 0.0078125, %v4549_v38 }
0x102d   :  { %v4551_v47 = vpop.xlane.xlu0 %4550 }
0x102e   :  { %v4568_v63 = vsub.f32 %v13495_v54, %v4560_v27  ;;  %v4561_v49 = vmul.f32 0.0078125, %v4551_v47  ;;  %v13576_v47 = vrot.slane %v4653_v44, %v12320_v52 }
0x1030   :  { %v4569_v26 = vsub.f32 %v13499_v24, %v4561_v49  ;;  %v4576_v31 = vmul.f32 %v4568_v63, %v4568_v63 }
0x1032   :  { %4588 = vadd.xlane.f32.xlu1 %v4576_v31  ;;  %v4577_v30 = vmul.f32 %v4569_v26, %v4569_v26 }
0x1033   :  { %v4553_v21 = vpop.xlane.xlu1 %4552 }
0x1034   :  { %v4562_v58 = vmul.f32 0.0078125, %v4553_v21  ;;  %4590 = vadd.xlane.f32.xlu0 %v4577_v30 }
0x1035   :  { %v4555_v6 = vpop.xlane.xlu0 %4554 }
0x1036   :  { %v4570_v19 = vsub.f32 %v4538_v57, %v4562_v58  ;;  %v4563_v35 = vmul.f32 0.0078125, %v4555_v6  ;;  %v4654_v58 = vld [vmem:[%s14539_s14 + $0x10] sm:$0xff] }
0x1038   :  { %v4571_v34 = vsub.f32 %v4539_v8, %v4563_v35  ;;  %v4578_v4 = vmul.f32 %v4570_v19, %v4570_v19 }
0x103a   :  { %4592 = vadd.xlane.f32.xlu1 %v4578_v4  ;;  %v4579_v1 = vmul.f32 %v4571_v34, %v4571_v34 }
0x103c   :  { %4594 = vadd.xlane.f32.xlu0 %v4579_v1 }
0x10bf   :  { %v4589_v46 = vpop.xlane.xlu1 %4588 }
0x10c0   :  { %v4600_v13 = vmul.f32 0.0078125, %v4589_v46 }
0x10c1   :  { %v4591_v54 = vpop.xlane.xlu0 %4590 }
0x10c2   :  { %v4608_v32 = vadd.f32 1e-05, %v4600_v13  ;;  %v4601_v17 = vmul.f32 0.0078125, %v4591_v54 }
0x10c4   :  { %11795 = vrsqrt.f32 %v4608_v32  ;;  %v4609_v24 = vadd.f32 1e-05, %v4601_v17 }
0x10c6   :  { %11797 = vrsqrt.f32 %v4609_v24 }
0x10c7   :  { %v4593_v53 = vpop.xlane.xlu1 %4592 }
0x10c8   :  { %v4602_v45 = vmul.f32 0.0078125, %v4593_v53 }
0x10c9   :  { %v4595_v5 = vpop.xlane.xlu0 %4594 }
0x10ca   :  { %v4610_v23 = vadd.f32 1e-05, %v4602_v45  ;;  %v4603_v59 = vmul.f32 0.0078125, %v4595_v5 }
0x10cc   :  { %11799 = vrsqrt.f32 %v4610_v23  ;;  %v4611_v57 = vadd.f32 1e-05, %v4603_v59 }
0x10ce   :  { %v11796_v8 = vpop.eup %11795  ;;  %11801 = vrsqrt.f32 %v4611_v57 }
0x10cf   :  { %v4624_v12 = vmul.f32 %v11796_v8, %v4568_v63 }
0x10d0   :  { %v11798_v33 = vpop.eup %11797 }
0x10d1   :  { %v4625_v43 = vmul.f32 %v11798_v33, %v4569_v26  ;;  %v4636_v56 = vmul.f32 %v13512_v18, %v4624_v12 }
0x10d3   :  { %v4637_v61 = vmul.f32 %v13512_v18, %v4625_v43  ;;  %v13550_v62 = vadd.f32 %v13520_v55, %v4636_v56 }
0x10d5   :  { %v13553_v16 = vadd.f32 %v13520_v55, %v4637_v61 }
0x10d6   :  { %v11800_v14 = vpop.eup %11799 }
0x10d7   :  { %v4658_v15 = vpack.c.bf16 %v13553_v16, %v13550_v62  ;;  %v4626_v20 = vmul.f32 %v11800_v14, %v4570_v19 }
0x10d8   :  { %v11802_v37 = vpop.eup %11801 }
0x10d9   :  { %4885 = vmatmul.mubr.bf16.gmra.mrb[84].mxu1 %v4658_v15  ;;  %10327 = vmatprep.mubr.bf16.mxu0 %v4658_v15  ;;  %v4627_v28 = vmul.f32 %v11802_v37, %v4571_v34  ;;  %v4638_v42 = vmul.f32 %v13512_v18, %v4626_v20  ;;  %v13594_v34 = vrot.slane %v4654_v58, %v12320_v52 }
0x10da   :  { %4894 = vmatprep.mubr.bf16.mxu1 %v12094_v0 }
0x10db   :  { %v4639_v41 = vmul.f32 %v13512_v18, %v4627_v28  ;;  %v13570_v11 = vadd.f32 %v13520_v55, %v4638_v42 }
0x10dd   :  { %v13573_v38 = vadd.f32 %v13520_v55, %v4639_v41 }
0x10de   :  { %v4866_v27 = vpop.f32.mrb[76].mxu1 }
0x10df   :  { %v4867_v63 = vadd.f32 %v4866_v27, %v13563_v25  ;;  %v4868_v49 = vpop.f32.mrb[77].mxu1  ;;  %v4659_v26 = vpack.c.bf16 %v13573_v38, %v13570_v11 }
0x10e0   :  { %v4870_v31 = vpop.f32.mrb[78].mxu1  ;;  %v4869_v21 = vadd.f32 %v4868_v49, %v13576_v47 }
0x10e1   :  { %v13581_v30 = vmul.f32 0.17677669, %v4867_v63  ;;  %v4872_v18 = vpop.f32.mrb[79].mxu1  ;;  %4895 = vmatmul.mubr.bf16.gmra.mrb[88].mxu1 %v4659_v26  ;;  %10328 = vmatmul.mubr.bf16.gmra.mrb[88].mxu0 %v4659_v26  ;;  %v4871_v35 = vadd.f32 %v4870_v31, %v13563_v25 }
0x10e2   :  { %v4873_v55 = vadd.f32 %v4872_v18, %v13576_v47 }
0x10e3   :  { %10339 = vmatprep.mubr.msk.f32.mxu0 %vm682_vm0, %v13581_v30  ;;  %v13602_v17 = vmul.f32 0.17677669, %v4871_v35 }
0x10e4   :  { %v10891_v6 = vpack.c.bf16 %v4873_v55, %v4869_v21  ;;  %v13590_v19 = vpack.i.bf16 %v4873_v55, %v4869_v21 }
0x10e6   :  { %v4876_v4 = vpop.f32.mrb[80].mxu1  ;;  %v10325_v1 = vpop.f32.mrb[84].mxu0  ;;  %10893 = vmatprep.subr.msk.bf16.mxu0 %vm12439_vm1, %v10891_v6  ;;  %11300 = vrot.lane.b32.xlu1 %v13590_v19, %s12095_s19 }
0x10e7   :  { %v4878_v46 = vpop.f32.mrb[81].mxu1  ;;  %v4939_v13 = vpop.f32.mrb[85].mxu0  ;;  %10896 = vmatpush3.bf16.xpose.msk.msra.mxu0 %vm12439_vm1, %v10891_v6  ;;  %v4877_v52 = vadd.f32 %v4876_v4, %v13563_v25  ;;  %v4948_v24 = vadd.f32 %v10325_v1, %v13594_v34 }
0x10e8   :  { %v4880_v54 = vpop.f32.mrb[82].mxu1  ;;  %v10326_v32 = vpop.f32.mrb[86].mxu0  ;;  %v4879_v23 = vadd.f32 %v4878_v46, %v13576_v47  ;;  %v4940_v59 = vadd.f32 %v4939_v13, %v13594_v34 }
0x10e9   :  { %v4951_v53 = vadd.f32 %v10326_v32, %v13594_v34  ;;  %v4882_v45 = vpop.f32.mrb[83].mxu1  ;;  %v4942_v5 = vpop.f32.mrb[87].mxu0  ;;  %v4881_v12 = vadd.f32 %v4880_v54, %v13563_v25  ;;  %v13628_v20 = vmul.f32 0.17677669, %v4877_v52 }
0x10ea   :  { %v4883_v57 = vadd.f32 %v4882_v45, %v13576_v47  ;;  %v4943_v8 = vadd.f32 %v4942_v5, %v13594_v34  ;;  %5244 = vrot.lane.b32.xlu1 %v13581_v30, %s12095_s19 }
0x10eb   :  { %v10907_v33 = vpack.c.bf16 %v4951_v53, %v4948_v24  ;;  %v13614_v43 = vpack.i.bf16 %v4951_v53, %v4948_v24  ;;  %v13630_v37 = vmul.f32 0.17677669, %v4881_v12 }
0x10ec   :  { %v10897_v56 = vpack.c.bf16 %v4883_v57, %v4879_v23  ;;  %v10903_v61 = vpack.c.bf16 %v4943_v8, %v4940_v59  ;;  %v13616_v14 = vpack.i.bf16 %v4883_v57, %v4879_v23  ;;  %v13618_v15 = vpack.i.bf16 %v4943_v8, %v4940_v59 }
0x10ee   :  { %10899 = vmatprep.subr.msk.bf16.mxu0 %vm12439_vm1, %v10897_v56  ;;  %10904 = vmatprep.subr.bf16.mxu1 %v10903_v61 }
0x10ef   :  { %11305 = vrot.lane.b32.xlu0 %v13616_v14, %s12095_s19  ;;  %5246 = vrot.lane.b32.xlu1 %v13602_v17, %s12095_s19 }
0x10f0   :  { %10902 = vmatpush3.bf16.xpose.msk.msra.mxu0 %vm12439_vm1, %v10897_v56  ;;  %10906 = vmatpush3.bf16.msra.mxu1 %v10903_v61 }
0x10f1   :  { %10908 = vmatprep.subr.bf16.mxu1 %v10907_v33 }
0x10f3   :  { %5248 = vrot.lane.b32.xlu0 %v13628_v20, %s12095_s19  ;;  %5250 = vrot.lane.b32.xlu1 %v13630_v37, %s12095_s19 }
0x10f4   :  { %10910 = vmatpush3.bf16.msra.mxu1 %v10907_v33 }
0x10f7   :  { %11310 = vrot.lane.b32.xlu0 %v13590_v19, %s12092_s10  ;;  %11315 = vrot.lane.b32.xlu1 %v13616_v14, %s12092_s10 }
0x10f8   :  { %10340 = vmatmul.mubr.msk.f32.vlgmr.msra.gmra.mrb[92].mxu0 %vm682_vm0, %v13602_v17 }
0x10f9   :  { %10342 = vmatprep.mubr.msk.f32.mxu0 %vm682_vm0, %v13628_v20 }
0x10fb   :  { %5712 = vrot.lane.b32.xlu0 %v13581_v30, %s12092_s10  ;;  %5714 = vrot.lane.b32.xlu1 %v13602_v17, %s12092_s10 }
0x10fc   :  { %10343 = vmatmul.mubr.msk.f32.gmra.mrb[94].mxu0 %vm682_vm0, %v13630_v37 }
0x10ff   :  { %5716 = vrot.lane.b32.xlu0 %v13628_v20, %s12092_s10  ;;  %5718 = vrot.lane.b32.xlu1 %v13630_v37, %s12092_s10 }
0x1158   :  { %v11301_v40 = vpop.permute.xlu1 %11300 }
0x1159   :  { %v11303_v28 = vunpack.i.h.bf16 %v11301_v40  ;;  %v11302_v42 = vunpack.i.l.bf16 %v11301_v40 }
0x115b   :  { %v10911_v44 = vpack.c.bf16 %v11303_v28, %v11302_v42 }
0x115c   :  { %v5245_v41 = vpop.permute.xlu1 %5244 }
0x115d   :  { %10913 = vmatprep.subr.msk.bf16.mxu0 %vm12439_vm1, %v10911_v44  ;;  %10367 = vmatprep.mubr.msk.f32.mxu0 %vm682_vm0, %v5245_v41 }
0x115e   :  { %10916 = vmatpush3.bf16.xpose.msk.msra.mxu0 %vm12439_vm1, %v10911_v44 }
0x1161   :  { %v11306_v27 = vpop.permute.xlu0 %11305  ;;  %v5247_v63 = vpop.permute.xlu1 %5246 }
0x1162   :  { %v11308_v49 = vunpack.i.h.bf16 %v11306_v27  ;;  %v11307_v26 = vunpack.i.l.bf16 %v11306_v27 }
0x1164   :  { %v10917_v31 = vpack.c.bf16 %v11308_v49, %v11307_v26 }
0x1165   :  { %v5249_v18 = vpop.permute.xlu0 %5248  ;;  %v5251_v21 = vpop.permute.xlu1 %5250 }
0x1166   :  { %10919 = vmatprep.subr.msk.bf16.mxu0 %vm12439_vm1, %v10917_v31 }
0x1167   :  { %10922 = vmatpush3.bf16.xpose.msk.msra.mxu0 %vm12439_vm1, %v10917_v31 }
0x1169   :  { %v11311_v55 = vpop.permute.xlu0 %11310  ;;  %v11316_v58 = vpop.permute.xlu1 %11315 }
0x116a   :  { %v11313_v6 = vunpack.i.h.bf16 %v11311_v55  ;;  %v11312_v35 = vunpack.i.l.bf16 %v11311_v55  ;;  %v11318_v4 = vunpack.i.h.bf16 %v11316_v58  ;;  %v11317_v1 = vunpack.i.l.bf16 %v11316_v58 }
0x116c   :  { %v10947_v46 = vpack.c.bf16 %v11313_v6, %v11312_v35  ;;  %v10953_v13 = vpack.c.bf16 %v11318_v4, %v11317_v1 }
0x116d   :  { %v5713_v54 = vpop.permute.xlu0 %5712  ;;  %v5715_v32 = vpop.permute.xlu1 %5714 }
0x116e   :  { %10368 = vmatmul.mubr.msk.f32.vlgmr.msra.gmra.mrb[96].mxu0 %vm682_vm0, %v5247_v63  ;;  %10949 = vmatprep.subr.msk.bf16.mxu0 %vm12439_vm1, %v10947_v46 }
0x116f   :  { %10370 = vmatprep.mubr.msk.f32.mxu0 %vm682_vm0, %v5249_v18  ;;  %10952 = vmatpush3.bf16.xpose.msk.msra.mxu0 %vm12439_vm1, %v10947_v46 }
0x1170   :  { %10955 = vmatprep.subr.msk.bf16.mxu0 %vm12439_vm1, %v10953_v13 }
0x1171   :  { %v5717_v52 = vpop.permute.xlu0 %5716  ;;  %v5719_v24 = vpop.permute.xlu1 %5718 }
0x1172   :  { %10371 = vmatmul.mubr.msk.f32.gmra.mrb[98].mxu0 %vm682_vm0, %v5251_v21 }
0x1173   :  { %10423 = vmatprep.mubr.msk.f32.mxu0 %vm682_vm0, %v5713_v54 }
0x1177   :  { %10958 = vmatpush3.bf16.xpose.msk.msra.mxu0 %vm12439_vm1, %v10953_v13 }
0x117e   :  { %10424 = vmatmul.mubr.msk.f32.vlgmr.msra.gmra.mrb[100].mxu0 %vm682_vm0, %v5715_v32 }
0x117f   :  { %10426 = vmatprep.mubr.msk.f32.mxu0 %vm682_vm0, %v5717_v52 }
0x1182   :  { %10427 = vmatmul.mubr.msk.f32.gmra.mrb[102].mxu0 %vm682_vm0, %v5719_v24 }
0x11ac   :  { %v13678_v53 = vpop.f32.mrb[84].mxu1 }
0x11ad   :  { %v4888_v45 = vpop.f32.mrb[85].mxu1 }
0x11ae   :  { %v13680_v5 = vpop.f32.mrb[86].mxu1  ;;  %v4889_v59 = vadd.f32 %v4888_v45, %v13576_v47 }
0x11af   :  { %v4892_v23 = vpop.f32.mrb[87].mxu1 }
0x11b0   :  { %v4893_v57 = vadd.f32 %v4892_v23, %v13576_v47 }
0x11b2   :  { %v13684_v8 = vpack.c.bf16 %v4893_v57, %v4889_v59  ;;  %v13686_v12 = vpack.i.bf16 %v4893_v57, %v4889_v59 }
0x11b4   :  { %v13688_v33 = vpop.f32.mrb[88].mxu1  ;;  %v10329_v56 = vpop.f32.mrb[88].mxu0 }
0x11b5   :  { %v4898_v61 = vpop.f32.mrb[89].mxu1  ;;  %v4955_v40 = vpop.f32.mrb[89].mxu0  ;;  %v4964_v44 = vadd.f32 %v10329_v56, %v13594_v34 }
0x11b6   :  { %v13690_v28 = vpop.f32.mrb[90].mxu1  ;;  %v10330_v42 = vpop.f32.mrb[90].mxu0  ;;  %v4899_v49 = vadd.f32 %v4898_v61, %v13576_v47  ;;  %v4956_v26 = vadd.f32 %v4955_v40, %v13594_v34 }
0x11b7   :  { %v4967_v41 = vadd.f32 %v10330_v42, %v13594_v34  ;;  %v4902_v27 = vpop.f32.mrb[91].mxu1  ;;  %v4958_v63 = vpop.f32.mrb[91].mxu0 }
0x11b8   :  { %v4903_v31 = vadd.f32 %v4902_v27, %v13576_v47  ;;  %v4959_v18 = vadd.f32 %v4958_v63, %v13594_v34 }
0x11b9   :  { %v13698_v21 = vpack.i.bf16 %v4967_v41, %v4964_v44  ;;  %v13700_v55 = vpack.c.bf16 %v4967_v41, %v4964_v44 }
0x11ba   :  { %v13702_v58 = vpack.c.bf16 %v4903_v31, %v4899_v49  ;;  %v13704_v6 = vpack.i.bf16 %v4903_v31, %v4899_v49  ;;  %v13706_v35 = vpack.c.bf16 %v4959_v18, %v4956_v26  ;;  %v13708_v4 = vpack.i.bf16 %v4959_v18, %v4956_v26 }
0x11cb   :  { %v10341_v1 = vpop.f32.mrb[92].mxu0 }
0x11cc   :  { %v5084_v46 = vpop.f32.mrb[93].mxu0  ;;  %v5106_v13 = vsel %vm682_vm0, %v10341_v1, -inf }
0x11cd   :  { %5107 = vmax.xlane.f32.xlu1 %v5106_v13  ;;  %v5103_v47 = vsel %vm682_vm0, %v5084_v46, -inf }
0x11ce   :  { %5104 = vmax.xlane.f32.xlu0 %v5103_v47 }
0x11cf   :  { %v10344_v34 = vpop.f32.mrb[94].mxu0 }
0x11d0   :  { %v5094_v54 = vpop.f32.mrb[95].mxu0  ;;  %v5112_v52 = vsel %vm682_vm0, %v10344_v34, -inf }
0x11d1   :  { %v5109_v32 = vsel %vm682_vm0, %v5094_v54, -inf }
0x11d2   :  { %5110 = vmax.xlane.f32.xlu0 %v5109_v32 }
0x11d6   :  { %5113 = vmax.xlane.f32.xlu0 %v5112_v52 }
0x1241   :  { %v10369_v24 = vpop.f32.mrb[96].mxu0 }
0x1242   :  { %v5342_v45 = vpop.f32.mrb[97].mxu0  ;;  %v5364_v23 = vsel %vm682_vm0, %v10369_v24, -inf }
0x1243   :  { %5365 = vmax.xlane.f32.xlu0 %v5364_v23  ;;  %v5361_v59 = vsel %vm682_vm0, %v5342_v45, -inf }
0x1244   :  { %5362 = vmax.xlane.f32.xlu1 %v5361_v59 }
0x1245   :  { %v10372_v57 = vpop.f32.mrb[98].mxu0 }
0x1246   :  { %v5352_v56 = vpop.f32.mrb[99].mxu0  ;;  %v5370_v61 = vsel %vm682_vm0, %v10372_v57, -inf }
0x1247   :  { %5371 = vmax.xlane.f32.xlu0 %v5370_v61  ;;  %v5367_v40 = vsel %vm682_vm0, %v5352_v56, -inf }
0x1248   :  { %5368 = vmax.xlane.f32.xlu1 %v5367_v40 }
0x1251   :  { %v13718_v42 = vpop.f32.mrb[100].mxu0 }
0x1252   :  { %v13720_v44 = vpop.f32.mrb[101].mxu0 }
0x1255   :  { %v13722_v41 = vpop.f32.mrb[102].mxu0 }
0x1256   :  { %v13724_v27 = vpop.f32.mrb[103].mxu0 }
0x125a   :  { %v5108_v63 = vpop.xlane.xlu1 %5107 }
0x125b   :  { %v5116_v49 = vsub.f32 %v10341_v1, %v5108_v63  ;;  %v5105_v26 = vpop.xlane.xlu0 %5104 }
0x125c   :  { %v5115_v31 = vsub.f32 %v5084_v46, %v5105_v26 }
0x125d   :  { %v5121_v18 = vmul.f32 1.442695, %v5116_v49 }
0x125e   :  { %v5119_v13 = vmul.f32 1.442695, %v5115_v31 }
0x125f   :  { %11803 = vpow2.f32 %v5121_v18  ;;  %v5111_v47 = vpop.xlane.xlu0 %5110 }
0x1260   :  { %11805 = vpow2.f32 %v5119_v13  ;;  %v5117_v32 = vsub.f32 %v5094_v54, %v5111_v47 }
0x1262   :  { %v5123_v52 = vmul.f32 1.442695, %v5117_v32 }
0x1263   :  { %v5114_v23 = vpop.xlane.xlu0 %5113 }
0x1264   :  { %11807 = vpow2.f32 %v5123_v52  ;;  %v5118_v59 = vsub.f32 %v10344_v34, %v5114_v23 }
0x1266   :  { %v5125_v61 = vmul.f32 1.442695, %v5118_v59 }
0x1268   :  { %11809 = vpow2.f32 %v5125_v61 }
0x1269   :  { %v11804_v40 = vpop.eup %11803 }
0x126a   :  { %v11806_v29 = vpop.eup %11805  ;;  %v5130_v2 = vsel %vm682_vm0, %v11804_v40, 0.0 }
0x126b   :  { %5131 = vadd.xlane.f32.xlu0 %v5130_v2  ;;  %v5127_v1 = vsel %vm682_vm0, %v11806_v29, 0.0 }
0x126c   :  { %5128 = vadd.xlane.f32.xlu1 %v5127_v1 }
0x126e   :  { %v11808_v46 = vpop.eup %11807 }
0x126f   :  { %v5133_v63 = vsel %vm682_vm0, %v11808_v46, 0.0 }
0x1270   :  { %5134 = vadd.xlane.f32.xlu1 %v5133_v63 }
0x1272   :  { %v11810_v49 = vpop.eup %11809 }
0x1273   :  { %v5136_v54 = vsel %vm682_vm0, %v11810_v49, 0.0 }
0x1274   :  { %5137 = vadd.xlane.f32.xlu0 %v5136_v54 }
0x12d0   :  { %v5366_v26 = vpop.xlane.xlu0 %5365 }
0x12d1   :  { %v5374_v34 = vsub.f32 %v10369_v24, %v5366_v26  ;;  %v5363_v31 = vpop.xlane.xlu1 %5362 }
0x12d2   :  { %v5373_v18 = vsub.f32 %v5342_v45, %v5363_v31 }
0x12d3   :  { %v5379_v13 = vmul.f32 1.442695, %v5374_v34 }
0x12d4   :  { %v5377_v47 = vmul.f32 1.442695, %v5373_v18  ;;  %v5372_v32 = vpop.xlane.xlu0 %5371 }
0x12d5   :  { %11811 = vpow2.f32 %v5379_v13  ;;  %v5376_v2 = vsub.f32 %v10372_v57, %v5372_v32  ;;  %v5369_v52 = vpop.xlane.xlu1 %5368 }
0x12d6   :  { %11813 = vpow2.f32 %v5377_v47  ;;  %v5375_v23 = vsub.f32 %v5352_v56, %v5369_v52 }
0x12d7   :  { %v5383_v59 = vmul.f32 1.442695, %v5376_v2 }
0x12d8   :  { %v5381_v61 = vmul.f32 1.442695, %v5375_v23 }
0x12d9   :  { %11815 = vpow2.f32 %v5383_v59 }
0x12da   :  { %11817 = vpow2.f32 %v5381_v61 }
0x12df   :  { %v13730_v1 = vpop.eup %11811 }
0x12e0   :  { %v13732_v63 = vpop.eup %11813  ;;  %v5388_v24 = vsel %vm682_vm0, %v13730_v1, 0.0 }
0x12e1   :  { %5389 = vadd.xlane.f32.xlu0 %v5388_v24  ;;  %v5385_v45 = vsel %vm682_vm0, %v13732_v63, 0.0 }
0x12e2   :  { %5386 = vadd.xlane.f32.xlu1 %v5385_v45 }
0x12e3   :  { %v13738_v57 = vpop.eup %11815 }
0x12e4   :  { %v13740_v54 = vpop.eup %11817  ;;  %v5394_v56 = vsel %vm682_vm0, %v13738_v57, 0.0 }
0x12e5   :  { %5395 = vadd.xlane.f32.xlu0 %v5394_v56  ;;  %v5391_v26 = vsel %vm682_vm0, %v13740_v54, 0.0 }
0x12e6   :  { %5392 = vadd.xlane.f32.xlu1 %v5391_v26 }
0x12f7   :  { %11320 = vrot.lane.b32.xlu1 %v13618_v15, %s12095_s19 }
0x12f8   :  { %v5132_v34 = vpop.xlane.xlu0 %5131 }
0x12f9   :  { %11819 = vrcp.f32 %v5132_v34  ;;  %v5129_v31 = vpop.xlane.xlu1 %5128 }
0x12fa   :  { %11821 = vrcp.f32 %v5129_v31 }
0x12fb   :  { %11325 = vrot.lane.b32.xlu0 %v13614_v43, %s12095_s19  ;;  %11330 = vrot.lane.b32.xlu1 %v13590_v19, %s12096_s5 }
0x12fd   :  { %v5135_v18 = vpop.xlane.xlu1 %5134 }
0x12fe   :  { %11823 = vrcp.f32 %v5135_v18 }
0x12ff   :  { %6083 = vrot.lane.b32.xlu0 %v13581_v30, %s12096_s5  ;;  %11335 = vrot.lane.b32.xlu1 %v13616_v14, %s12096_s5 }
0x1301   :  { %v5138_v13 = vpop.xlane.xlu0 %5137 }
0x1302   :  { %11825 = vrcp.f32 %v5138_v13 }
0x1303   :  { %v11820_v47 = vpop.eup %11819  ;;  %6087 = vrot.lane.b32.xlu0 %v13628_v20, %s12096_s5  ;;  %6085 = vrot.lane.b32.xlu1 %v13602_v17, %s12096_s5  ;;  %v5829_v17 = vsel %vm682_vm0, %v13720_v44, -inf  ;;  %v5838_v20 = vsel %vm682_vm0, %v13722_v41, -inf }
0x1304   :  { %v11822_v32 = vpop.eup %11821  ;;  %v5144_v19 = vmul.f32 %v11820_v47, %v11804_v40 }
0x1305   :  { %v5143_v2 = vmul.f32 %v11822_v32, %v11806_v29  ;;  %v5835_v29 = vsel %vm682_vm0, %v13724_v27, -inf }
0x1307   :  { %10353 = vmatprep.mubr.msk.f32.mxu1 %vm682_vm0, %v5143_v2  ;;  %6089 = vrot.lane.b32.xlu1 %v13630_v37, %s12096_s5  ;;  %v5832_v37 = vsel %vm682_vm0, %v13718_v42, -inf }
0x1308   :  { %v11824_v30 = vpop.eup %11823  ;;  %10354 = vmatmul.mubr.msk.f32.vlgmr.msra.gmra.mrb[92].mxu1 %vm682_vm0, %v5144_v19 }
0x1309   :  { %v5145_v14 = vmul.f32 %v11824_v30, %v11808_v46 }
0x130b   :  { %10356 = vmatprep.mubr.msk.f32.mxu1 %vm682_vm0, %v5145_v14 }
0x130c   :  { %v11826_v52 = vpop.eup %11825 }
0x130d   :  { %v5146_v23 = vmul.f32 %v11826_v52, %v11810_v49 }
0x130f   :  { %10357 = vmatmul.mubr.msk.f32.gmra.mrb[94].mxu1 %vm682_vm0, %v5146_v23 }
0x1322   :  { %5830 = vmax.xlane.f32.xlu0 %v5829_v17 }
0x1326   :  { %5836 = vmax.xlane.f32.xlu0 %v5835_v29 }
0x132a   :  { %5839 = vmax.xlane.f32.xlu0 %v5838_v20 }
0x132b   :  { %5833 = vmax.xlane.f32.xlu1 %v5832_v37 }
0x136e   :  { %v5390_v40 = vpop.xlane.xlu0 %5389 }
0x136f   :  { %v5387_v46 = vpop.xlane.xlu1 %5386 }
0x1370   :  { %11827 = vrcp.f32 %v5387_v46 }
0x1371   :  { %11829 = vrcp.f32 %v5390_v40 }
0x1372   :  { %v5396_v49 = vpop.xlane.xlu0 %5395 }
0x1373   :  { %v5393_v59 = vpop.xlane.xlu1 %5392 }
0x1374   :  { %11831 = vrcp.f32 %v5393_v59 }
0x1375   :  { %11833 = vrcp.f32 %v5396_v49 }
0x1376   :  { %v11326_v61 = vpop.permute.xlu0 %11325 }
0x1377   :  { %v11321_v24 = vpop.permute.xlu1 %11320  ;;  %v11328_v45 = vunpack.i.h.bf16 %v11326_v61  ;;  %v11327_v56 = vunpack.i.l.bf16 %v11326_v61 }
0x1378   :  { %v11323_v26 = vunpack.i.h.bf16 %v11321_v24  ;;  %v11322_v34 = vunpack.i.l.bf16 %v11321_v24 }
0x1379   :  { %v10927_v30 = vpack.c.bf16 %v11328_v45, %v11327_v56  ;;  %v4901_v45 = vadd.f32 %v13690_v28, %v13563_v25 }
0x137a   :  { %v11828_v31 = vpop.eup %11827  ;;  %v6084_v18 = vpop.permute.xlu0 %6083  ;;  %v10923_v13 = vpack.c.bf16 %v11323_v26, %v11322_v34 }
0x137b   :  { %10465 = vmatprep.mubr.msk.f32.mxu0 %vm682_vm0, %v6084_v18  ;;  %v11331_v47 = vpop.permute.xlu1 %11330  ;;  %v5401_v32 = vmul.f32 %v11828_v31, %v13732_v63  ;;  %v11830_v52 = vpop.eup %11829 }
0x137c   :  { %v11333_v2 = vunpack.i.h.bf16 %v11331_v47  ;;  %v11332_v19 = vunpack.i.l.bf16 %v11331_v47  ;;  %10924 = vmatprep.subr.bf16.mxu1 %v10923_v13  ;;  %v5402_v63 = vmul.f32 %v11830_v52, %v13730_v1 }
0x137d   :  { %10926 = vmatpush3.bf16.msra.mxu1 %v10923_v13  ;;  %10381 = vmatprep.mubr.msk.f32.mxu1 %vm682_vm0, %v5401_v32 }
0x137e   :  { %v10975_v14 = vpack.c.bf16 %v11333_v2, %v11332_v19  ;;  %10928 = vmatprep.subr.bf16.mxu1 %v10927_v30  ;;  %v11832_v17 = vpop.eup %11831  ;;  %v6088_v59 = vpop.permute.xlu0 %6087 }
0x137f   :  { %v11336_v23 = vpop.permute.xlu1 %11335  ;;  %v11834_v40 = vpop.eup %11833  ;;  %v5403_v46 = vmul.f32 %v11832_v17, %v13740_v54  ;;  %v4887_v54 = vadd.f32 %v13678_v53, %v13563_v25  ;;  %v4891_v53 = vadd.f32 %v13680_v5, %v13563_v25  ;;  %v4983_v17 = vld [vmem:[#allocation7 + $0x28] sm:$0xff] }
0x1380   :  { %v11338_v29 = vunpack.i.h.bf16 %v11336_v23  ;;  %v11337_v20 = vunpack.i.l.bf16 %v11336_v23  ;;  %10977 = vmatprep.subr.msk.bf16.mxu0 %vm12439_vm1, %v10975_v14  ;;  %v5404_v49 = vmul.f32 %v11834_v40, %v13738_v57  ;;  %v4982_v23 = vld [vmem:[#allocation7 + $0x20] sm:$0xff] }
0x1381   :  { %10930 = vmatpush3.bf16.msra.mxu1 %v10927_v30  ;;  %10980 = vmatpush3.bf16.xpose.msk.msra.mxu0 %vm12439_vm1, %v10975_v14  ;;  %v13804_v57 = vmul.f32 0.17677669, %v4887_v54  ;;  %v13816_v24 = vmul.f32 0.17677669, %v4891_v53  ;;  %v4978_v40 = vld [vmem:[#allocation7] sm:$0xff] }
0x1382   :  { %v10981_v37 = vpack.c.bf16 %v11338_v29, %v11337_v20  ;;  %v13850_v29 = vpack.c.bf16 %v4983_v17, %v4982_v23  ;;  %v4984_v20 = vld [vmem:[#allocation7 + $0x30] sm:$0xff] }
0x1383   :  { %v6086_v1 = vpop.permute.xlu1 %6085 }
0x1384   :  { %10382 = vmatmul.mubr.msk.f32.vlgmr.msra.gmra.mrb[96].mxu1 %vm682_vm0, %v5402_v63  ;;  %10983 = vmatprep.subr.msk.bf16.mxu0 %vm12439_vm1, %v10981_v37  ;;  %v4985_v63 = vld [vmem:[#allocation7 + $0x38] sm:$0xff] }
0x1385   :  { %10384 = vmatprep.mubr.msk.f32.mxu1 %vm682_vm0, %v5403_v46  ;;  %10932 = vmatprep.subr.bf16.mxu1 %v13850_v29  ;;  %v4979_v46 = vld [vmem:[#allocation7 + $0x8] sm:$0xff] }
0x1386   :  { %10934 = vmatpush3.bf16.msra.mxu1 %v13850_v29 }
0x1387   :  { %v6090_v61 = vpop.permute.xlu1 %6089 }
0x1388   :  { %10385 = vmatmul.mubr.msk.f32.gmra.mrb[98].mxu1 %vm682_vm0, %v5404_v49  ;;  %v13860_v49 = vpack.c.bf16 %v4979_v46, %v4978_v40 }
0x1389   :  { %10986 = vmatpush3.bf16.xpose.msk.msra.mxu0 %vm12439_vm1, %v10981_v37  ;;  %v13854_v37 = vpack.c.bf16 %v4985_v63, %v4984_v20 }
0x138a   :  { %11005 = vmatprep.subr.msk.bf16.mxu0 %vm12439_vm1, %v13684_v8 }
0x138b   :  { %10936 = vmatprep.subr.bf16.mxu1 %v13854_v37 }
0x138c   :  { %10938 = vmatpush3.bf16.msra.mxu1 %v13854_v37 }
0x138d   :  { %10940 = vmatprep.subr.bf16.mxu1 %v13860_v49 }
0x1390   :  { %10466 = vmatmul.mubr.msk.f32.vlgmr.msra.gmra.mrb[104].mxu0 %vm682_vm0, %v6086_v1 }
0x1391   :  { %10468 = vmatprep.mubr.msk.f32.mxu0 %vm682_vm0, %v6088_v59  ;;  %11008 = vmatpush3.bf16.xpose.msk.msra.mxu0 %vm12439_vm1, %v13684_v8  ;;  %v4897_v8 = vadd.f32 %v13688_v33, %v13563_v25 }
0x1392   :  { %11011 = vmatprep.subr.msk.bf16.mxu0 %vm12439_vm1, %v13702_v58 }
0x1393   :  { %v13820_v56 = vmul.f32 0.17677669, %v4897_v8 }
0x1394   :  { %10469 = vmatmul.mubr.msk.f32.gmra.mrb[106].mxu0 %vm682_vm0, %v6090_v61 }
0x1395   :  { %10507 = vmatprep.mubr.msk.f32.mxu0 %vm682_vm0, %v13804_v57 }
0x1399   :  { %11014 = vmatpush3.bf16.xpose.msk.msra.mxu0 %vm12439_vm1, %v13702_v58  ;;  %v13826_v58 = vmul.f32 0.17677669, %v4901_v45 }
0x13a0   :  { %10508 = vmatmul.mubr.msk.f32.vlgmr.msra.gmra.mrb[108].mxu0 %vm682_vm0, %v13816_v24 }
0x13a1   :  { %10510 = vmatprep.mubr.msk.f32.mxu0 %vm682_vm0, %v13820_v56 }
0x13a4   :  { %10511 = vmatmul.mubr.msk.f32.gmra.mrb[110].mxu0 %vm682_vm0, %v13826_v58 }
0x13af   :  { %v5831_v5 = vpop.xlane.xlu0 %5830 }
0x13b0   :  { %v5841_v33 = vsub.f32 %v13720_v44, %v5831_v5  ;;  %v4980_v5 = vld [vmem:[#allocation7 + $0x10] sm:$0xff] }
0x13b2   :  { %v5845_v26 = vmul.f32 1.442695, %v5841_v33  ;;  %v4981_v33 = vld [vmem:[#allocation7 + $0x18] sm:$0xff] }
0x13b3   :  { %v5837_v34 = vpop.xlane.xlu0 %5836 }
0x13b4   :  { %11835 = vpow2.f32 %v5845_v26  ;;  %v5843_v25 = vsub.f32 %v13724_v27, %v5837_v34 }
0x13b6   :  { %v5849_v28 = vmul.f32 1.442695, %v5843_v25 }
0x13b7   :  { %v5840_v31 = vpop.xlane.xlu0 %5839 }
0x13b8   :  { %11837 = vpow2.f32 %v5849_v28  ;;  %v5844_v18 = vsub.f32 %v13722_v41, %v5840_v31  ;;  %v5834_v13 = vpop.xlane.xlu1 %5833  ;;  %v13879_v28 = vpack.c.bf16 %v4981_v33, %v4980_v5 }
0x13b9   :  { %v5842_v47 = vsub.f32 %v13718_v42, %v5834_v13 }
0x13ba   :  { %v5851_v32 = vmul.f32 1.442695, %v5844_v18 }
0x13bb   :  { %v5847_v2 = vmul.f32 1.442695, %v5842_v47 }
0x13bd   :  { %11839 = vpow2.f32 %v5847_v2 }
0x13be   :  { %v13834_v19 = vpop.eup %11835  ;;  %11841 = vpow2.f32 %v5851_v32 }
0x13bf   :  { %v5853_v44 = vsel %vm682_vm0, %v13834_v19, 0.0 }
0x13c0   :  { %5854 = vadd.xlane.f32.xlu1 %v5853_v44 }
0x13c2   :  { %v13838_v30 = vpop.eup %11837 }
0x13c3   :  { %v5859_v27 = vsel %vm682_vm0, %v13838_v30, 0.0 }
0x13c4   :  { %5860 = vadd.xlane.f32.xlu1 %v5859_v27 }
0x13c7   :  { %v13842_v41 = vpop.eup %11839 }
0x13c8   :  { %v5856_v42 = vsel %vm682_vm0, %v13842_v41, 0.0  ;;  %v13846_v14 = vpop.eup %11841 }
0x13c9   :  { %5857 = vadd.xlane.f32.xlu0 %v5856_v42  ;;  %v5862_v52 = vsel %vm682_vm0, %v13846_v14, 0.0 }
0x13cd   :  { %5863 = vadd.xlane.f32.xlu0 %v5862_v52 }
0x13d5   :  { %11340 = vrot.lane.b32.xlu1 %v13618_v15, %s12092_s10 }
0x13d9   :  { %11350 = vrot.lane.b32.xlu1 %v13686_v12, %s12095_s19 }
0x13db   :  { %v10355_v1 = vpop.f32.mrb[92].mxu1 }
0x13dc   :  { %v5225_v54 = vpop.f32.mrb[93].mxu1 }
0x13dd   :  { %11355 = vrot.lane.b32.xlu1 %v13704_v6, %s12095_s19 }
0x13e1   :  { %6706 = vrot.lane.b32.xlu1 %v13816_v24, %s12095_s19 }
0x13e2   :  { %v13869_v59 = vpop.f32.mrb[94].mxu1 }
0x13e3   :  { %v5235_v61 = vpop.f32.mrb[95].mxu1  ;;  %11345 = vrot.lane.b32.xlu0 %v13614_v43, %s12092_s10 }
0x13e5   :  { %6710 = vrot.lane.b32.xlu1 %v13826_v58, %s12095_s19 }
0x13e7   :  { %6704 = vrot.lane.b32.xlu0 %v13804_v57, %s12095_s19 }
0x13eb   :  { %6708 = vrot.lane.b32.xlu0 %v13820_v56, %s12095_s19 }
0x144d   :  { %v5855_v53 = vpop.xlane.xlu1 %5854 }
0x144e   :  { %11843 = vrcp.f32 %v5855_v53 }
0x1451   :  { %v5861_v8 = vpop.xlane.xlu1 %5860 }
0x1455   :  { %v11341_v45 = vpop.permute.xlu1 %11340 }
0x1456   :  { %v5858_v26 = vpop.xlane.xlu0 %5857  ;;  %v11343_v18 = vunpack.i.h.bf16 %v11341_v45  ;;  %v11342_v13 = vunpack.i.l.bf16 %v11341_v45 }
0x1457   :  { %v10383_v34 = vpop.f32.mrb[96].mxu1  ;;  %11845 = vrcp.f32 %v5858_v26 }
0x1458   :  { %v5499_v25 = vpop.f32.mrb[97].mxu1  ;;  %11847 = vrcp.f32 %v5861_v8  ;;  %v10959_v23 = vpack.c.bf16 %v11343_v18, %v11342_v13  ;;  %v11844_v45 = vpop.eup %11843 }
0x1459   :  { %v11351_v31 = vpop.permute.xlu1 %11350  ;;  %10395 = vmatprep.mubr.msk.f32.mxu1 %vm682_vm0, %v5499_v25 }
0x145a   :  { %v11353_v47 = vunpack.i.h.bf16 %v11351_v31  ;;  %v11352_v32 = vunpack.i.l.bf16 %v11351_v31  ;;  %v5864_v2 = vpop.xlane.xlu0 %5863  ;;  %10396 = vmatmul.mubr.msk.f32.vlgmr.msra.gmra.mrb[100].mxu1 %vm682_vm0, %v10383_v34  ;;  %v5869_v31 = vmul.f32 %v11844_v45, %v13834_v19 }
0x145b   :  { %10942 = vmatpush3.bf16.msra.mxu1 %v13860_v49  ;;  %v10386_v44 = vpop.f32.mrb[98].mxu1  ;;  %11849 = vrcp.f32 %v5864_v2 }
0x145c   :  { %v11023_v27 = vpack.c.bf16 %v11353_v47, %v11352_v32  ;;  %v5509_v42 = vpop.f32.mrb[99].mxu1  ;;  %10944 = vmatprep.subr.bf16.mxu1 %v13879_v28 }
0x145d   :  { %v11356_v52 = vpop.permute.xlu1 %11355  ;;  %10398 = vmatprep.mubr.msk.f32.mxu1 %vm682_vm0, %v5509_v42 }
0x145e   :  { %v11358_v17 = vunpack.i.h.bf16 %v11356_v52  ;;  %v11357_v20 = vunpack.i.l.bf16 %v11356_v52  ;;  %v11346_v63 = vpop.permute.xlu0 %11345  ;;  %10399 = vmatmul.mubr.msk.f32.gmra.mrb[102].mxu1 %vm682_vm0, %v10386_v44  ;;  %11025 = vmatprep.subr.msk.bf16.mxu0 %vm12439_vm1, %v11023_v27 }
0x145f   :  { %v11348_v40 = vunpack.i.h.bf16 %v11346_v63  ;;  %v11347_v46 = vunpack.i.l.bf16 %v11346_v63  ;;  %10946 = vmatpush3.bf16.msra.mxu1 %v13879_v28  ;;  %10409 = vmatprep.mubr.msk.f32.mxu1 %vm682_vm0, %v5225_v54 }
0x1460   :  { %v11029_v53 = vpack.c.bf16 %v11358_v17, %v11357_v20  ;;  %10960 = vmatprep.subr.bf16.mxu1 %v10959_v23  ;;  %11028 = vmatpush3.bf16.xpose.msk.msra.mxu0 %vm12439_vm1, %v11023_v27  ;;  %v4987_v17 = vld [vmem:[#allocation7 + $0x48] sm:$0xff]  ;;  %v4988_v20 = vld [vmem:[#allocation7 + $0x50] sm:$0xff] }
0x1461   :  { %v10963_v8 = vpack.c.bf16 %v11348_v40, %v11347_v46  ;;  %v11846_v34 = vpop.eup %11845  ;;  %v4989_v40 = vld [vmem:[#allocation7 + $0x58] sm:$0xff] }
0x1462   :  { %v6705_v5 = vpop.permute.xlu0 %6704  ;;  %10410 = vmatmul.mubr.msk.f32.vlgmr.msra.gmra.mrb[100].mxu1 %vm682_vm0, %v10355_v1  ;;  %11031 = vmatprep.subr.msk.bf16.mxu0 %vm12439_vm1, %v11029_v53  ;;  %v11848_v1 = vpop.eup %11847  ;;  %v5870_v18 = vmul.f32 %v11846_v34, %v13842_v41  ;;  %v13927_v46 = vpack.c.bf16 %v4989_v40, %v4988_v20 }
0x1463   :  { %10962 = vmatpush3.bf16.msra.mxu1 %v10959_v23  ;;  %10412 = vmatprep.mubr.msk.f32.mxu1 %vm682_vm0, %v5235_v61  ;;  %v10467_v33 = vpop.f32.mrb[104].mxu0  ;;  %v5871_v19 = vmul.f32 %v11848_v1, %v13838_v30  ;;  %v4986_v23 = vld [vmem:[#allocation7 + $0x40] sm:$0xff] }
0x1464   :  { %10964 = vmatprep.subr.bf16.mxu1 %v10963_v8  ;;  %10535 = vmatprep.mubr.msk.f32.mxu0 %vm682_vm0, %v6705_v5  ;;  %v6181_v54 = vpop.f32.mrb[105].mxu0  ;;  %v6203_v26 = vsel %vm682_vm0, %v10467_v33, -inf  ;;  %v13925_v63 = vpack.c.bf16 %v4987_v17, %v4986_v23 }
0x1465   :  { %6204 = vmax.xlane.f32.xlu1 %v6203_v26  ;;  %v6200_v25 = vsel %vm682_vm0, %v6181_v54, -inf  ;;  %v11850_v47 = vpop.eup %11849 }
0x1466   :  { %6201 = vmax.xlane.f32.xlu0 %v6200_v25  ;;  %10413 = vmatmul.mubr.msk.f32.gmra.mrb[102].mxu1 %vm682_vm0, %v13869_v59  ;;  %v6707_v59 = vpop.permute.xlu1 %6706  ;;  %v5872_v2 = vmul.f32 %v11850_v47, %v13846_v14  ;;  %v6709_v41 = vpop.permute.xlu0 %6708 }
0x1467   :  { %10966 = vmatpush3.bf16.msra.mxu1 %v10963_v8  ;;  %10437 = vmatprep.mubr.msk.f32.mxu1 %vm682_vm0, %v5869_v31  ;;  %v10470_v61 = vpop.f32.mrb[106].mxu0 }
0x1468   :  { %11034 = vmatpush3.bf16.xpose.msk.msra.mxu0 %vm12439_vm1, %v11029_v53  ;;  %v6191_v13 = vpop.f32.mrb[107].mxu0  ;;  %v6209_v44 = vsel %vm682_vm0, %v10470_v61, -inf  ;;  %10968 = vmatprep.subr.bf16.mxu1 %v13925_v63 }
0x1469   :  { %v6206_v32 = vsel %vm682_vm0, %v6191_v13, -inf }
0x146a   :  { %6207 = vmax.xlane.f32.xlu0 %v6206_v32  ;;  %10438 = vmatmul.mubr.msk.f32.vlgmr.msra.gmra.mrb[104].mxu1 %vm682_vm0, %v5870_v18  ;;  %v6711_v27 = vpop.permute.xlu1 %6710 }
0x146b   :  { %10440 = vmatprep.mubr.msk.f32.mxu1 %vm682_vm0, %v5871_v19  ;;  %10970 = vmatpush3.bf16.msra.mxu1 %v13925_v63 }
0x146c   :  { %10972 = vmatprep.subr.bf16.mxu1 %v13927_v46 }
0x146e   :  { %6210 = vmax.xlane.f32.xlu0 %v6209_v44  ;;  %10441 = vmatmul.mubr.msk.f32.gmra.mrb[106].mxu1 %vm682_vm0, %v5872_v2 }
0x146f   :  { %10536 = vmatmul.mubr.msk.f32.vlgmr.msra.gmra.mrb[112].mxu0 %vm682_vm0, %v6707_v59  ;;  %10974 = vmatpush3.bf16.msra.mxu1 %v13927_v46 }
0x1470   :  { %10538 = vmatprep.mubr.msk.f32.mxu0 %vm682_vm0, %v6709_v41 }
0x1473   :  { %10539 = vmatmul.mubr.msk.f32.gmra.mrb[114].mxu0 %vm682_vm0, %v6711_v27  ;;  %v13917_v30 = vpop.f32.mrb[108].mxu0 }
0x1474   :  { %v13919_v42 = vpop.f32.mrb[109].mxu0 }
0x1477   :  { %v13921_v52 = vpop.f32.mrb[110].mxu0 }
0x1478   :  { %v13923_v14 = vpop.f32.mrb[111].mxu0 }
0x14f2   :  { %v6205_v53 = vpop.xlane.xlu1 %6204 }
0x14f3   :  { %v6213_v8 = vsub.f32 %v10467_v33, %v6205_v53  ;;  %v6202_v45 = vpop.xlane.xlu0 %6201  ;;  %v6563_v53 = vsel %vm682_vm0, %v13919_v42, -inf }
0x14f4   :  { %v6212_v5 = vsub.f32 %v6181_v54, %v6202_v45  ;;  %v6569_v45 = vsel %vm682_vm0, %v13923_v14, -inf }
0x14f5   :  { %v6218_v26 = vmul.f32 1.442695, %v6213_v8  ;;  %v6566_v8 = vsel %vm682_vm0, %v13917_v30, -inf }
0x14f6   :  { %v6216_v34 = vmul.f32 1.442695, %v6212_v5 }
0x14f7   :  { %11851 = vpow2.f32 %v6218_v26  ;;  %v6208_v25 = vpop.xlane.xlu0 %6207  ;;  %v6572_v26 = vsel %vm682_vm0, %v13921_v52, -inf }
0x14f8   :  { %11853 = vpow2.f32 %v6216_v34  ;;  %v6214_v31 = vsub.f32 %v6191_v13, %v6208_v25 }
0x14fa   :  { %v6220_v1 = vmul.f32 1.442695, %v6214_v31 }
0x14fb   :  { %v6211_v18 = vpop.xlane.xlu0 %6210 }
0x14fc   :  { %11855 = vpow2.f32 %v6220_v1  ;;  %v6215_v47 = vsub.f32 %v10470_v61, %v6211_v18 }
0x14fe   :  { %v6222_v32 = vmul.f32 1.442695, %v6215_v47 }
0x1500   :  { %11857 = vpow2.f32 %v6222_v32 }
0x1501   :  { %v13933_v19 = vpop.eup %11851 }
0x1502   :  { %v11854_v59 = vpop.eup %11853  ;;  %v6227_v33 = vsel %vm682_vm0, %v13933_v19, 0.0 }
0x1503   :  { %6228 = vadd.xlane.f32.xlu0 %v6227_v33  ;;  %v6224_v54 = vsel %vm682_vm0, %v11854_v59, 0.0 }
0x1504   :  { %6225 = vadd.xlane.f32.xlu1 %v6224_v54 }
0x1506   :  { %v13938_v2 = vpop.eup %11855 }
0x1507   :  { %v6230_v13 = vsel %vm682_vm0, %v13938_v2, 0.0 }
0x1508   :  { %6231 = vadd.xlane.f32.xlu1 %v6230_v13 }
0x150a   :  { %v13942_v44 = vpop.eup %11857 }
0x150b   :  { %v6233_v61 = vsel %vm682_vm0, %v13942_v44, 0.0 }
0x150c   :  { %6234 = vadd.xlane.f32.xlu0 %v6233_v61 }
0x1519   :  { %11360 = vrot.lane.b32.xlu1 %v13618_v15, %s12096_s5 }
0x151d   :  { %11370 = vrot.lane.b32.xlu1 %v13686_v12, %s12092_s10 }
0x1521   :  { %11375 = vrot.lane.b32.xlu1 %v13704_v6, %s12092_s10 }
0x1522   :  { %11365 = vrot.lane.b32.xlu0 %v13614_v43, %s12096_s5 }
0x1525   :  { %7174 = vrot.lane.b32.xlu1 %v13816_v24, %s12092_s10 }
0x1526   :  { %7172 = vrot.lane.b32.xlu0 %v13804_v57, %s12092_s10 }
0x1529   :  { %7178 = vrot.lane.b32.xlu1 %v13826_v58, %s12092_s10 }
0x152a   :  { %7176 = vrot.lane.b32.xlu0 %v13820_v56, %s12092_s10 }
0x153d   :  { %v10439_v15 = vpop.f32.mrb[104].mxu1 }
0x153e   :  { %v5963_v41 = vpop.f32.mrb[105].mxu1 }
0x153f   :  { %10451 = vmatprep.mubr.msk.f32.mxu1 %vm682_vm0, %v5963_v41 }
0x1540   :  { %10452 = vmatmul.mubr.msk.f32.vlgmr.msra.gmra.mrb[100].mxu1 %vm682_vm0, %v10439_v15 }
0x1541   :  { %v10442_v27 = vpop.f32.mrb[106].mxu1 }
0x1542   :  { %v13964_v43 = vpop.f32.mrb[112].mxu0  ;;  %v5973_v23 = vpop.f32.mrb[107].mxu1 }
0x1543   :  { %v13966_v17 = vpop.f32.mrb[113].mxu0  ;;  %10454 = vmatprep.mubr.msk.f32.mxu1 %vm682_vm0, %v5973_v23  ;;  %v6824_v25 = vsel %vm682_vm0, %v13964_v43, -inf }
0x1544   :  { %10455 = vmatmul.mubr.msk.f32.gmra.mrb[102].mxu1 %vm682_vm0, %v10442_v27  ;;  %v6821_v5 = vsel %vm682_vm0, %v13966_v17, -inf }
0x1546   :  { %v13970_v20 = vpop.f32.mrb[114].mxu0 }
0x1547   :  { %v13972_v40 = vpop.f32.mrb[115].mxu0  ;;  %v6830_v31 = vsel %vm682_vm0, %v13970_v20, -inf }
0x1548   :  { %v6827_v34 = vsel %vm682_vm0, %v13972_v40, -inf }
0x1549   :  { %6564 = vmax.xlane.f32.xlu0 %v6563_v53  ;;  %v4990_v53 = vld [vmem:[#allocation7 + $0x60] sm:$0xff] }
0x154d   :  { %6567 = vmax.xlane.f32.xlu1 %v6566_v8  ;;  %6570 = vmax.xlane.f32.xlu0 %v6569_v45  ;;  %v4991_v8 = vld [vmem:[#allocation7 + $0x68] sm:$0xff] }
0x1551   :  { %6822 = vmax.xlane.f32.xlu1 %v6821_v5  ;;  %6573 = vmax.xlane.f32.xlu0 %v6572_v26 }
0x1555   :  { %6828 = vmax.xlane.f32.xlu1 %v6827_v34  ;;  %6825 = vmax.xlane.f32.xlu0 %v6824_v25 }
0x1559   :  { %6831 = vmax.xlane.f32.xlu0 %v6830_v31 }
0x1590   :  { %v6229_v18 = vpop.xlane.xlu0 %6228 }
0x1591   :  { %v6226_v1 = vpop.xlane.xlu1 %6225 }
0x1592   :  { %11859 = vrcp.f32 %v6226_v1  ;;  %v13991_v1 = vpack.c.bf16 %v4991_v8, %v4990_v53 }
0x1593   :  { %11861 = vrcp.f32 %v6229_v18 }
0x1595   :  { %v6232_v47 = vpop.xlane.xlu1 %6231 }
0x1596   :  { %11863 = vrcp.f32 %v6232_v47 }
0x1599   :  { %v11361_v32 = vpop.permute.xlu1 %11360  ;;  %v6235_v33 = vpop.xlane.xlu0 %6234 }
0x159a   :  { %v11363_v54 = vunpack.i.h.bf16 %v11361_v32  ;;  %v11362_v13 = vunpack.i.l.bf16 %v11361_v32  ;;  %11865 = vrcp.f32 %v6235_v33  ;;  %v4992_v33 = vld [vmem:[#allocation7 + $0x70] sm:$0xff] }
0x159c   :  { %v11860_v61 = vpop.eup %11859  ;;  %v10987_v15 = vpack.c.bf16 %v11363_v54, %v11362_v13  ;;  %v4993_v54 = vld [vmem:[#allocation7 + $0x78] sm:$0xff] }
0x159d   :  { %v11371_v41 = vpop.permute.xlu1 %11370  ;;  %v11366_v27 = vpop.permute.xlu0 %11365  ;;  %v6240_v23 = vmul.f32 %v11860_v61, %v11854_v59 }
0x159e   :  { %v11373_v45 = vunpack.i.h.bf16 %v11371_v41  ;;  %v11372_v5 = vunpack.i.l.bf16 %v11371_v41  ;;  %v11368_v26 = vunpack.i.h.bf16 %v11366_v27  ;;  %v11367_v34 = vunpack.i.l.bf16 %v11366_v27  ;;  %10988 = vmatprep.subr.bf16.mxu1 %v10987_v15  ;;  %v11862_v18 = vpop.eup %11861 }
0x159f   :  { %10990 = vmatpush3.bf16.msra.mxu1 %v10987_v15  ;;  %10479 = vmatprep.mubr.msk.f32.mxu1 %vm682_vm0, %v6240_v23  ;;  %v6241_v15 = vmul.f32 %v11862_v18, %v13933_v19  ;;  %v14000_v27 = vpack.c.bf16 %v4993_v54, %v4992_v33 }
0x15a0   :  { %v11059_v25 = vpack.c.bf16 %v11373_v45, %v11372_v5  ;;  %v10991_v31 = vpack.c.bf16 %v11368_v26, %v11367_v34  ;;  %v11864_v59 = vpop.eup %11863 }
0x15a1   :  { %v11376_v47 = vpop.permute.xlu1 %11375  ;;  %v7173_v32 = vpop.permute.xlu0 %7172  ;;  %v6242_v53 = vmul.f32 %v11864_v59, %v13938_v2 }
0x15a2   :  { %v11378_v13 = vunpack.i.h.bf16 %v11376_v47  ;;  %v11377_v61 = vunpack.i.l.bf16 %v11376_v47  ;;  %10992 = vmatprep.subr.bf16.mxu1 %v10991_v31  ;;  %11061 = vmatprep.subr.msk.bf16.mxu0 %vm12439_vm1, %v11059_v25 }
0x15a3   :  { %10591 = vmatprep.mubr.msk.f32.mxu0 %vm682_vm0, %v7173_v32  ;;  %10994 = vmatpush3.bf16.msra.mxu1 %v10991_v31 }
0x15a4   :  { %v11065_v41 = vpack.c.bf16 %v11378_v13, %v11377_v61  ;;  %11064 = vmatpush3.bf16.xpose.msk.msra.mxu0 %vm12439_vm1, %v11059_v25  ;;  %10996 = vmatprep.subr.bf16.mxu1 %v13991_v1  ;;  %v11866_v23 = vpop.eup %11865 }
0x15a5   :  { %v6243_v19 = vmul.f32 %v11866_v23, %v13942_v44  ;;  %v7175_v2 = vpop.permute.xlu1 %7174  ;;  %v7177_v8 = vpop.permute.xlu0 %7176 }
0x15a6   :  { %10480 = vmatmul.mubr.msk.f32.vlgmr.msra.gmra.mrb[108].mxu1 %vm682_vm0, %v6241_v15  ;;  %11067 = vmatprep.subr.msk.bf16.mxu0 %vm12439_vm1, %v11065_v41 }
0x15a7   :  { %10482 = vmatprep.mubr.msk.f32.mxu1 %vm682_vm0, %v6242_v53  ;;  %10998 = vmatpush3.bf16.msra.mxu1 %v13991_v1 }
0x15a8   :  { %11000 = vmatprep.subr.bf16.mxu1 %v14000_v27 }
0x15a9   :  { %v7179_v45 = vpop.permute.xlu1 %7178 }
0x15aa   :  { %10483 = vmatmul.mubr.msk.f32.gmra.mrb[110].mxu1 %vm682_vm0, %v6243_v19 }
0x15ab   :  { %11002 = vmatpush3.bf16.msra.mxu1 %v14000_v27 }
0x15ac   :  { %11070 = vmatpush3.bf16.xpose.msk.msra.mxu0 %vm12439_vm1, %v11065_v41  ;;  %11016 = vmatprep.subr.bf16.mxu1 %v13706_v35 }
0x15b3   :  { %10592 = vmatmul.mubr.msk.f32.vlgmr.msra.gmra.mrb[116].mxu0 %vm682_vm0, %v7175_v2 }
0x15b4   :  { %10594 = vmatprep.mubr.msk.f32.mxu0 %vm682_vm0, %v7177_v8 }
0x15b7   :  { %10595 = vmatmul.mubr.msk.f32.gmra.mrb[118].mxu0 %vm682_vm0, %v7179_v45 }
0x15d6   :  { %v6565_v44 = vpop.xlane.xlu0 %6564 }
0x15d7   :  { %v6575_v5 = vsub.f32 %v13919_v42, %v6565_v44 }
0x15d9   :  { %v6579_v26 = vmul.f32 1.442695, %v6575_v5 }
0x15da   :  { %v6568_v34 = vpop.xlane.xlu1 %6567  ;;  %v6571_v25 = vpop.xlane.xlu0 %6570 }
0x15db   :  { %11867 = vpow2.f32 %v6579_v26  ;;  %v6576_v31 = vsub.f32 %v13917_v30, %v6568_v34  ;;  %v6577_v18 = vsub.f32 %v13923_v14, %v6571_v25 }
0x15dd   :  { %v6581_v47 = vmul.f32 1.442695, %v6576_v31  ;;  %v6583_v32 = vmul.f32 1.442695, %v6577_v18 }
0x15de   :  { %v6823_v33 = vpop.xlane.xlu1 %6822  ;;  %v6574_v54 = vpop.xlane.xlu0 %6573 }
0x15df   :  { %11869 = vpow2.f32 %v6581_v47  ;;  %v6833_v59 = vsub.f32 %v13966_v17, %v6823_v33  ;;  %v6578_v13 = vsub.f32 %v13921_v52, %v6574_v54 }
0x15e0   :  { %11871 = vpow2.f32 %v6583_v32 }
0x15e1   :  { %v6837_v61 = vmul.f32 1.442695, %v6833_v59  ;;  %v6585_v42 = vmul.f32 1.442695, %v6578_v13 }
0x15e2   :  { %v6829_v15 = vpop.xlane.xlu1 %6828  ;;  %v6826_v41 = vpop.xlane.xlu0 %6825 }
0x15e3   :  { %11873 = vpow2.f32 %v6837_v61  ;;  %v6835_v23 = vsub.f32 %v13972_v40, %v6829_v15  ;;  %v6834_v30 = vsub.f32 %v13964_v43, %v6826_v41 }
0x15e4   :  { %11875 = vpow2.f32 %v6585_v42 }
0x15e5   :  { %v11868_v14 = vpop.eup %11867  ;;  %v6841_v53 = vmul.f32 1.442695, %v6835_v23  ;;  %v6839_v19 = vmul.f32 1.442695, %v6834_v30 }
0x15e6   :  { %v6832_v2 = vpop.xlane.xlu0 %6831  ;;  %v6587_v8 = vsel %vm682_vm0, %v11868_v14, 0.0 }
0x15e7   :  { %11877 = vpow2.f32 %v6841_v53  ;;  %v6836_v52 = vsub.f32 %v13970_v20, %v6832_v2  ;;  %6588 = vadd.xlane.f32.xlu1 %v6587_v8 }
0x15e8   :  { %11879 = vpow2.f32 %v6839_v19 }
0x15e9   :  { %v11870_v17 = vpop.eup %11869  ;;  %v6843_v45 = vmul.f32 1.442695, %v6836_v52 }
0x15ea   :  { %v11872_v44 = vpop.eup %11871  ;;  %v6590_v5 = vsel %vm682_vm0, %v11870_v17, 0.0 }
0x15eb   :  { %11881 = vpow2.f32 %v6843_v45  ;;  %6591 = vadd.xlane.f32.xlu0 %v6590_v5  ;;  %v6593_v43 = vsel %vm682_vm0, %v11872_v44, 0.0 }
0x15ec   :  { %6594 = vadd.xlane.f32.xlu1 %v6593_v43 }
0x15ed   :  { %v14029_v40 = vpop.eup %11873 }
0x15ee   :  { %v14031_v26 = vpop.eup %11875  ;;  %v6845_v34 = vsel %vm682_vm0, %v14029_v40, 0.0 }
0x15ef   :  { %v6596_v20 = vsel %vm682_vm0, %v14031_v26, 0.0 }
0x15f0   :  { %6846 = vadd.xlane.f32.xlu1 %v6845_v34  ;;  %6597 = vadd.xlane.f32.xlu0 %v6596_v20 }
0x15f1   :  { %v14037_v25 = vpop.eup %11877 }
0x15f2   :  { %v14039_v31 = vpop.eup %11879  ;;  %v6851_v18 = vsel %vm682_vm0, %v14037_v25, 0.0 }
0x15f3   :  { %v6848_v47 = vsel %vm682_vm0, %v14039_v31, 0.0 }
0x15f4   :  { %6852 = vadd.xlane.f32.xlu1 %v6851_v18  ;;  %6849 = vadd.xlane.f32.xlu0 %v6848_v47 }
0x15f5   :  { %v14045_v32 = vpop.eup %11881 }
0x15f6   :  { %v6854_v33 = vsel %vm682_vm0, %v14045_v32, 0.0 }
0x15f8   :  { %6855 = vadd.xlane.f32.xlu0 %v6854_v33 }
0x1605   :  { %11380 = vrot.lane.b32.xlu1 %v13708_v4, %s12095_s19 }
0x1609   :  { %11390 = vrot.lane.b32.xlu1 %v13686_v12, %s12096_s5 }
0x160d   :  { %11395 = vrot.lane.b32.xlu1 %v13704_v6, %s12096_s5 }
0x160e   :  { %11385 = vrot.lane.b32.xlu0 %v13698_v21, %s12095_s19 }
0x1611   :  { %7545 = vrot.lane.b32.xlu1 %v13816_v24, %s12096_s5 }
0x1612   :  { %7543 = vrot.lane.b32.xlu0 %v13804_v57, %s12096_s5 }
0x1615   :  { %7549 = vrot.lane.b32.xlu1 %v13826_v58, %s12096_s5 }
0x1616   :  { %7547 = vrot.lane.b32.xlu0 %v13820_v56, %s12096_s5 }
0x1674   :  { %v6589_v54 = vpop.xlane.xlu1 %6588 }
0x1675   :  { %11883 = vrcp.f32 %v6589_v54 }
0x1678   :  { %v6592_v12 = vpop.xlane.xlu0 %6591 }
0x1679   :  { %v6595_v59 = vpop.xlane.xlu1 %6594  ;;  %11885 = vrcp.f32 %v6592_v12  ;;  %v10481_v6 = vpop.f32.mrb[108].mxu1 }
0x167a   :  { %11887 = vrcp.f32 %v6595_v59  ;;  %v6334_v13 = vpop.f32.mrb[109].mxu1 }
0x167b   :  { %10493 = vmatprep.mubr.msk.f32.mxu1 %vm682_vm0, %v6334_v13 }
0x167c   :  { %10494 = vmatmul.mubr.msk.f32.vlgmr.msra.gmra.mrb[100].mxu1 %vm682_vm0, %v10481_v6 }
0x167d   :  { %v6847_v24 = vpop.xlane.xlu1 %6846  ;;  %v6598_v57 = vpop.xlane.xlu0 %6597  ;;  %11018 = vmatpush3.bf16.msra.mxu1 %v13706_v35 }
0x167e   :  { %11889 = vrcp.f32 %v6847_v24  ;;  %v10484_v58 = vpop.f32.mrb[110].mxu1  ;;  %11020 = vmatprep.subr.bf16.mxu1 %v13700_v55 }
0x167f   :  { %v11884_v56 = vpop.eup %11883  ;;  %11891 = vrcp.f32 %v6598_v57  ;;  %v6344_v61 = vpop.f32.mrb[111].mxu1 }
0x1680   :  { %10496 = vmatprep.mubr.msk.f32.mxu1 %vm682_vm0, %v6344_v61  ;;  %v6603_v42 = vmul.f32 %v11884_v56, %v11868_v14 }
0x1681   :  { %v6853_v15 = vpop.xlane.xlu1 %6852  ;;  %v6850_v41 = vpop.xlane.xlu0 %6849  ;;  %10497 = vmatmul.mubr.msk.f32.gmra.mrb[102].mxu1 %vm682_vm0, %v10484_v58 }
0x1682   :  { %11022 = vmatpush3.bf16.msra.mxu1 %v13700_v55  ;;  %10521 = vmatprep.mubr.msk.f32.mxu1 %vm682_vm0, %v6603_v42  ;;  %11893 = vrcp.f32 %v6850_v41 }
0x1683   :  { %v11886_v23 = vpop.eup %11885  ;;  %11895 = vrcp.f32 %v6853_v15 }
0x1684   :  { %v11888_v35 = vpop.eup %11887  ;;  %v6604_v30 = vmul.f32 %v11886_v23, %v11870_v17 }
0x1685   :  { %v11381_v53 = vpop.permute.xlu1 %11380  ;;  %v6856_v19 = vpop.xlane.xlu0 %6855  ;;  %v6605_v2 = vmul.f32 %v11888_v35, %v11872_v44 }
0x1686   :  { %v11383_v8 = vunpack.i.h.bf16 %v11381_v53  ;;  %v11382_v52 = vunpack.i.l.bf16 %v11381_v53  ;;  %v14073_v45 = vpop.f32.mrb[116].mxu0  ;;  %10522 = vmatmul.mubr.msk.f32.vlgmr.msra.gmra.mrb[112].mxu1 %vm682_vm0, %v6604_v30  ;;  %11897 = vrcp.f32 %v6856_v19 }
0x1687   :  { %v14076_v14 = vpop.f32.mrb[117].mxu0  ;;  %v7292_v55 = vsel %vm682_vm0, %v14073_v45, -inf  ;;  %10524 = vmatprep.mubr.msk.f32.mxu1 %vm682_vm0, %v6605_v2 }
0x1688   :  { %v11890_v5 = vpop.eup %11889  ;;  %v11035_v17 = vpack.c.bf16 %v11383_v8, %v11382_v52  ;;  %7293 = vmax.xlane.f32.xlu1 %v7292_v55  ;;  %v7289_v44 = vsel %vm682_vm0, %v14076_v14, -inf }
0x1689   :  { %v11892_v43 = vpop.eup %11891  ;;  %v11391_v34 = vpop.permute.xlu1 %11390  ;;  %7290 = vmax.xlane.f32.xlu0 %v7289_v44  ;;  %v6861_v18 = vmul.f32 %v11890_v5, %v14029_v40 }
0x168a   :  { %v11386_v20 = vpop.permute.xlu0 %11385  ;;  %v11393_v47 = vunpack.i.h.bf16 %v11391_v34  ;;  %v11392_v33 = vunpack.i.l.bf16 %v11391_v34  ;;  %11036 = vmatprep.subr.bf16.mxu1 %v11035_v17  ;;  %v10596_v59 = vpop.f32.mrb[118].mxu0  ;;  %v6606_v6 = vmul.f32 %v11892_v43, %v14031_v26 }
0x168b   :  { %v11388_v54 = vunpack.i.h.bf16 %v11386_v20  ;;  %v11387_v12 = vunpack.i.l.bf16 %v11386_v20  ;;  %11038 = vmatpush3.bf16.msra.mxu1 %v11035_v17  ;;  %v7280_v13 = vpop.f32.mrb[119].mxu0  ;;  %v7298_v23 = vsel %vm682_vm0, %v10596_v59, -inf }
0x168c   :  { %v11087_v24 = vpack.c.bf16 %v11393_v47, %v11392_v33  ;;  %v7295_v58 = vsel %vm682_vm0, %v7280_v13, -inf  ;;  %10525 = vmatmul.mubr.msk.f32.gmra.mrb[114].mxu1 %vm682_vm0, %v6606_v6  ;;  %v11894_v40 = vpop.eup %11893 }
0x168d   :  { %v11039_v57 = vpack.c.bf16 %v11388_v54, %v11387_v12  ;;  %v11396_v56 = vpop.permute.xlu1 %11395  ;;  %7296 = vmax.xlane.f32.xlu0 %v7295_v58  ;;  %10549 = vmatprep.mubr.msk.f32.mxu1 %vm682_vm0, %v6861_v18  ;;  %v11896_v41 = vpop.eup %11895  ;;  %v6862_v35 = vmul.f32 %v11894_v40, %v14039_v31 }
0x168e   :  { %v7544_v61 = vpop.permute.xlu0 %7543  ;;  %v11398_v42 = vunpack.i.h.bf16 %v11396_v56  ;;  %v11397_v15 = vunpack.i.l.bf16 %v11396_v56  ;;  %11089 = vmatprep.subr.msk.bf16.mxu0 %vm12439_vm1, %v11087_v24  ;;  %v6863_v53 = vmul.f32 %v11896_v41, %v14037_v25 }
0x168f   :  { %11040 = vmatprep.subr.bf16.mxu1 %v11039_v57  ;;  %10633 = vmatprep.mubr.msk.f32.mxu0 %vm682_vm0, %v7544_v61 }
0x1690   :  { %v11093_v26 = vpack.c.bf16 %v11398_v42, %v11397_v15  ;;  %11042 = vmatpush3.bf16.msra.mxu1 %v11039_v57  ;;  %11092 = vmatpush3.bf16.xpose.msk.msra.mxu0 %vm12439_vm1, %v11087_v24  ;;  %v11898_v30 = vpop.eup %11897 }
0x1691   :  { %7299 = vmax.xlane.f32.xlu0 %v7298_v23  ;;  %11044 = vmatprep.subr.bf16.mxu1 %v13850_v29  ;;  %v6864_v19 = vmul.f32 %v11898_v30, %v14045_v32  ;;  %v7546_v25 = vpop.permute.xlu1 %7545 }
0x1692   :  { %11095 = vmatprep.subr.msk.bf16.mxu0 %vm12439_vm1, %v11093_v26  ;;  %v7548_v31 = vpop.permute.xlu0 %7547 }
0x1693   :  { %10550 = vmatmul.mubr.msk.f32.vlgmr.msra.gmra.mrb[116].mxu1 %vm682_vm0, %v6862_v35 }
0x1694   :  { %10552 = vmatprep.mubr.msk.f32.mxu1 %vm682_vm0, %v6863_v53  ;;  %11046 = vmatpush3.bf16.msra.mxu1 %v13850_v29 }
0x1695   :  { %11048 = vmatprep.subr.bf16.mxu1 %v13854_v37  ;;  %v7550_v29 = vpop.permute.xlu1 %7549 }
0x1697   :  { %10553 = vmatmul.mubr.msk.f32.gmra.mrb[118].mxu1 %vm682_vm0, %v6864_v19 }
0x1698   :  { %11098 = vmatpush3.bf16.xpose.msk.msra.mxu0 %vm12439_vm1, %v11093_v26  ;;  %11050 = vmatpush3.bf16.msra.mxu1 %v13854_v37 }
0x1699   :  { %11052 = vmatprep.subr.bf16.mxu1 %v13860_v49 }
0x169f   :  { %10634 = vmatmul.mubr.msk.f32.vlgmr.msra.gmra.mrb[120].mxu0 %vm682_vm0, %v7546_v25 }
0x16a0   :  { %10636 = vmatprep.mubr.msk.f32.mxu0 %vm682_vm0, %v7548_v31 }
0x16a3   :  { %10637 = vmatmul.mubr.msk.f32.gmra.mrb[122].mxu0 %vm682_vm0, %v7550_v29 }
0x16a4   :  { %8290 = vmatprep.mubr.bf16.mxu0 %v12094_v0 }
0x1715   :  { %v7294_v32 = vpop.xlane.xlu1 %7293 }
0x1716   :  { %v7302_v2 = vsub.f32 %v14073_v45, %v7294_v32  ;;  %v7291_v48 = vpop.xlane.xlu0 %7290 }
0x1717   :  { %v7301_v8 = vsub.f32 %v14076_v14, %v7291_v48 }
0x1718   :  { %v7307_v37 = vmul.f32 1.442695, %v7302_v2 }
0x1719   :  { %v7305_v52 = vmul.f32 1.442695, %v7301_v8 }
0x171a   :  { %11899 = vpow2.f32 %v7307_v37  ;;  %v7297_v55 = vpop.xlane.xlu0 %7296 }
0x171b   :  { %11901 = vpow2.f32 %v7305_v52  ;;  %v7303_v5 = vsub.f32 %v7280_v13, %v7297_v55 }
0x171d   :  { %v7309_v17 = vmul.f32 1.442695, %v7303_v5 }
0x171e   :  { %v7300_v44 = vpop.xlane.xlu0 %7299 }
0x171f   :  { %11903 = vpow2.f32 %v7309_v17  ;;  %v7304_v43 = vsub.f32 %v10596_v59, %v7300_v44 }
0x1721   :  { %v7311_v34 = vmul.f32 1.442695, %v7304_v43 }
0x1723   :  { %11905 = vpow2.f32 %v7311_v34 }
0x1724   :  { %v14115_v20 = vpop.eup %11899 }
0x1725   :  { %v11902_v18 = vpop.eup %11901  ;;  %v7316_v45 = vsel %vm682_vm0, %v14115_v20, 0.0 }
0x1726   :  { %7317 = vadd.xlane.f32.xlu0 %v7316_v45  ;;  %v7313_v14 = vsel %vm682_vm0, %v11902_v18, 0.0 }
0x1727   :  { %7314 = vadd.xlane.f32.xlu1 %v7313_v14 }
0x1729   :  { %v14120_v47 = vpop.eup %11903 }
0x172a   :  { %v7319_v33 = vsel %vm682_vm0, %v14120_v47, 0.0 }
0x172b   :  { %7320 = vadd.xlane.f32.xlu1 %v7319_v33 }
0x172d   :  { %v14124_v54 = vpop.eup %11905 }
0x172e   :  { %v7322_v12 = vsel %vm682_vm0, %v14124_v54, 0.0 }
0x172f   :  { %7323 = vadd.xlane.f32.xlu0 %v7322_v12 }
0x173c   :  { %11400 = vrot.lane.b32.xlu1 %v13708_v4, %s12092_s10 }
0x1745   :  { %11405 = vrot.lane.b32.xlu0 %v13698_v21, %s12092_s10 }
0x174f   :  { %v14132_v59 = vpop.f32.mrb[100].mxu1 }
0x1750   :  { %v14134_v6 = vpop.f32.mrb[101].mxu1 }
0x1754   :  { %v14136_v13 = vpop.f32.mrb[102].mxu1 }
0x1755   :  { %v14138_v24 = vpop.f32.mrb[103].mxu1 }
0x1759   :  { %v10523_v57 = vpop.f32.mrb[112].mxu1 }
0x175a   :  { %v6685_v58 = vpop.f32.mrb[113].mxu1 }
0x175f   :  { %v10526_v56 = vpop.f32.mrb[114].mxu1 }
0x1760   :  { %v6695_v61 = vpop.f32.mrb[115].mxu1 }
0x1766   :  { %v10551_v40 = vpop.f32.mrb[116].mxu1 }
0x1767   :  { %v6959_v42 = vpop.f32.mrb[117].mxu1 }
0x1768   :  { %10563 = vmatprep.mubr.msk.f32.mxu1 %vm682_vm0, %v6959_v42 }
0x1769   :  { %10564 = vmatmul.mubr.msk.f32.vlgmr.msra.gmra.mrb[120].mxu1 %vm682_vm0, %v10551_v40 }
0x176a   :  { %v10554_v15 = vpop.f32.mrb[118].mxu1  ;;  %11054 = vmatpush3.bf16.msra.mxu1 %v13860_v49 }
0x176b   :  { %v6969_v41 = vpop.f32.mrb[119].mxu1  ;;  %11056 = vmatprep.subr.bf16.mxu1 %v13879_v28 }
0x176c   :  { %10566 = vmatprep.mubr.msk.f32.mxu1 %vm682_vm0, %v6969_v41 }
0x176d   :  { %10567 = vmatmul.mubr.msk.f32.gmra.mrb[122].mxu1 %vm682_vm0, %v10554_v15 }
0x176e   :  { %11058 = vmatpush3.bf16.msra.mxu1 %v13879_v28  ;;  %10577 = vmatprep.mubr.msk.f32.mxu1 %vm682_vm0, %v6685_v58 }
0x1771   :  { %10578 = vmatmul.mubr.msk.f32.vlgmr.msra.gmra.mrb[120].mxu1 %vm682_vm0, %v10523_v57 }
0x1772   :  { %10580 = vmatprep.mubr.msk.f32.mxu1 %vm682_vm0, %v6695_v61  ;;  %v10635_v26 = vpop.f32.mrb[120].mxu0 }
0x1773   :  { %v7641_v23 = vpop.f32.mrb[121].mxu0  ;;  %v7663_v35 = vsel %vm682_vm0, %v10635_v26, -inf }
0x1774   :  { %7664 = vmax.xlane.f32.xlu0 %v7663_v35  ;;  %v7660_v49 = vsel %vm682_vm0, %v7641_v23, -inf }
0x1775   :  { %7661 = vmax.xlane.f32.xlu1 %v7660_v49  ;;  %10581 = vmatmul.mubr.msk.f32.gmra.mrb[122].mxu1 %vm682_vm0, %v10526_v56 }
0x1776   :  { %v10638_v30 = vpop.f32.mrb[122].mxu0 }
0x1777   :  { %v7651_v53 = vpop.f32.mrb[123].mxu0  ;;  %v7669_v28 = vsel %vm682_vm0, %v10638_v30, -inf }
0x1778   :  { %7670 = vmax.xlane.f32.xlu0 %v7669_v28  ;;  %v7666_v19 = vsel %vm682_vm0, %v7651_v53, -inf }
0x1779   :  { %7667 = vmax.xlane.f32.xlu1 %v7666_v19 }
0x17b3   :  { %v7318_v31 = vpop.xlane.xlu0 %7317 }
0x17b4   :  { %v7315_v25 = vpop.xlane.xlu1 %7314 }
0x17b5   :  { %11907 = vrcp.f32 %v7315_v25 }
0x17b6   :  { %11909 = vrcp.f32 %v7318_v31 }
0x17b8   :  { %v7321_v29 = vpop.xlane.xlu1 %7320 }
0x17b9   :  { %11911 = vrcp.f32 %v7321_v29 }
0x17bc   :  { %v11401_v32 = vpop.permute.xlu1 %11400  ;;  %v7324_v2 = vpop.xlane.xlu0 %7323 }
0x17bd   :  { %v11403_v48 = vunpack.i.h.bf16 %v11401_v32  ;;  %v11402_v8 = vunpack.i.l.bf16 %v11401_v32  ;;  %11913 = vrcp.f32 %v7324_v2 }
0x17bf   :  { %v11908_v37 = vpop.eup %11907  ;;  %v11071_v52 = vpack.c.bf16 %v11403_v48, %v11402_v8 }
0x17c0   :  { %v11406_v55 = vpop.permute.xlu0 %11405  ;;  %v7329_v5 = vmul.f32 %v11908_v37, %v11902_v18  ;;  %v11910_v34 = vpop.eup %11909 }
0x17c1   :  { %v11408_v17 = vunpack.i.h.bf16 %v11406_v55  ;;  %v11407_v44 = vunpack.i.l.bf16 %v11406_v55  ;;  %11072 = vmatprep.subr.bf16.mxu1 %v11071_v52  ;;  %v7330_v14 = vmul.f32 %v11910_v34, %v14115_v20 }
0x17c2   :  { %11074 = vmatpush3.bf16.msra.mxu1 %v11071_v52  ;;  %10605 = vmatprep.mubr.msk.f32.mxu1 %vm682_vm0, %v7329_v5 }
0x17c3   :  { %v11075_v43 = vpack.c.bf16 %v11408_v17, %v11407_v44  ;;  %v11912_v45 = vpop.eup %11911 }
0x17c4   :  { %v7331_v12 = vmul.f32 %v11912_v45, %v14120_v47 }
0x17c5   :  { %11076 = vmatprep.subr.bf16.mxu1 %v11075_v43 }
0x17c6   :  { %11078 = vmatpush3.bf16.msra.mxu1 %v11075_v43 }
0x17c7   :  { %11080 = vmatprep.subr.bf16.mxu1 %v13925_v63  ;;  %v11914_v33 = vpop.eup %11913 }
0x17c8   :  { %v7332_v18 = vmul.f32 %v11914_v33, %v14124_v54 }
0x17c9   :  { %10606 = vmatmul.mubr.msk.f32.vlgmr.msra.gmra.mrb[124].mxu1 %vm682_vm0, %v7330_v14 }
0x17ca   :  { %10608 = vmatprep.mubr.msk.f32.mxu1 %vm682_vm0, %v7331_v12  ;;  %11082 = vmatpush3.bf16.msra.mxu1 %v13925_v63 }
0x17cb   :  { %11084 = vmatprep.subr.bf16.mxu1 %v13927_v46 }
0x17cd   :  { %10609 = vmatmul.mubr.msk.f32.gmra.mrb[126].mxu1 %vm682_vm0, %v7332_v18 }
0x17ce   :  { %11086 = vmatpush3.bf16.msra.mxu1 %v13927_v46 }
0x1801   :  { %v7665_v20 = vpop.xlane.xlu0 %7664 }
0x1802   :  { %v7673_v57 = vsub.f32 %v10635_v26, %v7665_v20  ;;  %v7662_v58 = vpop.xlane.xlu1 %7661 }
0x1803   :  { %v7672_v56 = vsub.f32 %v7641_v23, %v7662_v58 }
0x1804   :  { %v7678_v61 = vmul.f32 1.442695, %v7673_v57 }
0x1805   :  { %v7676_v47 = vmul.f32 1.442695, %v7672_v56  ;;  %v7671_v40 = vpop.xlane.xlu0 %7670 }
0x1806   :  { %11915 = vpow2.f32 %v7678_v61  ;;  %v7675_v42 = vsub.f32 %v10638_v30, %v7671_v40  ;;  %v7668_v15 = vpop.xlane.xlu1 %7667 }
0x1807   :  { %11917 = vpow2.f32 %v7676_v47  ;;  %v7674_v63 = vsub.f32 %v7651_v53, %v7668_v15  ;;  %v14177_v53 = vld [vmem:[%s14539_s14] sm:$0xff] }
0x1808   :  { %v7682_v41 = vmul.f32 1.442695, %v7675_v42  ;;  %v14181_v25 = vrot.slane %v14177_v53, %v12317_v51 }
0x1809   :  { %v7680_v54 = vmul.f32 1.442695, %v7674_v63 }
0x180a   :  { %11919 = vpow2.f32 %v7682_v41  ;;  %v7919_v31 = vadd.f32 %v14132_v59, %v14181_v25  ;;  %v7918_v29 = vadd.f32 %v14181_v25, %v14134_v6  ;;  %v7920_v2 = vadd.f32 %v14181_v25, %v14138_v24 }
0x180b   :  { %11921 = vpow2.f32 %v7680_v54 }
0x180c   :  { %v14193_v32 = vadd.f32 %v7918_v29, %v13524_v10  ;;  %v14203_v59 = vadd.f32 %v7920_v2, %v13537_v7 }
0x1810   :  { %v11916_v35 = vpop.eup %11915 }
0x1811   :  { %v11918_v49 = vpop.eup %11917  ;;  %v7687_v46 = vsel %vm682_vm0, %v11916_v35, 0.0 }
0x1812   :  { %7688 = vadd.xlane.f32.xlu0 %v7687_v46  ;;  %v7684_v26 = vsel %vm682_vm0, %v11918_v49, 0.0 }
0x1813   :  { %7685 = vadd.xlane.f32.xlu1 %v7684_v26 }
0x1814   :  { %v11920_v23 = vpop.eup %11919 }
0x1815   :  { %v11922_v28 = vpop.eup %11921  ;;  %v7693_v19 = vsel %vm682_vm0, %v11920_v23, 0.0 }
0x1816   :  { %7694 = vadd.xlane.f32.xlu0 %v7693_v19  ;;  %v7690_v30 = vsel %vm682_vm0, %v11922_v28, 0.0 }
0x1817   :  { %7691 = vadd.xlane.f32.xlu1 %v7690_v30 }
0x1828   :  { %11410 = vrot.lane.b32.xlu1 %v13708_v4, %s12096_s5  ;;  %v14188_v4 = vadd.f32 %v7919_v31, %v13527_v9 }
0x182c   :  { %11415 = vrot.lane.b32.xlu0 %v13698_v21, %s12096_s5  ;;  %v7921_v21 = vadd.f32 %v14136_v13, %v14181_v25 }
0x182e   :  { %v14200_v51 = vadd.f32 %v7921_v21, %v13540_v3 }
0x184b   :  { %7936 = vadd.xlane.f32.xlu0 %v14188_v4 }
0x184c   :  { %7934 = vadd.xlane.f32.xlu1 %v14193_v32 }
0x184f   :  { %7940 = vadd.xlane.f32.xlu0 %v14200_v51 }
0x1850   :  { %7938 = vadd.xlane.f32.xlu1 %v14203_v59 }
0x189c   :  { %v10607_v9 = vpop.f32.mrb[124].mxu1 }
0x189d   :  { %v7423_v10 = vpop.f32.mrb[125].mxu1 }
0x189e   :  { %10619 = vmatprep.mubr.msk.f32.mxu1 %vm682_vm0, %v7423_v10  ;;  %v11563_v10 = vld [vmem:[%s14537_s12] ss:$16 sps:$4 sm:$0xff]  }
0x189f   :  { %v7689_v6 = vpop.xlane.xlu0 %7688  ;;  %10620 = vmatmul.mubr.msk.f32.vlgmr.msra.gmra.mrb[120].mxu1 %vm682_vm0, %v10607_v9 }
0x18a0   :  { %v7686_v13 = vpop.xlane.xlu1 %7685  ;;  %v10610_v24 = vpop.f32.mrb[126].mxu1 }
0x18a1   :  { %11923 = vrcp.f32 %v7686_v13  ;;  %v7433_v48 = vpop.f32.mrb[127].mxu1  ;;  %v11571_v13 = vld [vmem:[%s14537_s12 + $0x24] ss:$16 sps:$4 sm:$0xff]  }
0x18a2   :  { %10622 = vmatprep.mubr.msk.f32.mxu1 %vm682_vm0, %v7433_v48  ;;  %11925 = vrcp.f32 %v7689_v6  ;;  %v11566_v6 = vld [vmem:[%s14537_s12 + $0x8] ss:$16 sps:$4 sm:$0xff]   ;;  %v11569_v48 = vld [vmem:[%s14537_s12 + $0x20] ss:$16 sps:$4 sm:$0xff]  }
0x18a3   :  { %v7695_v3 = vpop.xlane.xlu0 %7694  ;;  %10623 = vmatmul.mubr.msk.f32.gmra.mrb[122].mxu1 %vm682_vm0, %v10610_v24  ;;  %v11574_v24 = vld [vmem:[%s14537_s12 + $0x2c] ss:$16 sps:$4 sm:$0xff]  }
0x18a4   :  { %v7692_v7 = vpop.xlane.xlu1 %7691 }
0x18a5   :  { %11927 = vrcp.f32 %v7692_v7  ;;  %v11577_v7 = vld [vmem:[%s14537_s12 + $0x44] ss:$16 sps:$4 sm:$0xff]  }
0x18a6   :  { %11929 = vrcp.f32 %v7695_v3  ;;  %v11572_v3 = vld [vmem:[%s14537_s12 + $0x28] ss:$16 sps:$4 sm:$0xff]  }
0x18a7   :  { %v11416_v8 = vpop.permute.xlu0 %11415 }
0x18a8   :  { %v11411_v37 = vpop.permute.xlu1 %11410  ;;  %v11418_v52 = vunpack.i.h.bf16 %v11416_v8  ;;  %v11417_v55 = vunpack.i.l.bf16 %v11416_v8  ;;  %v11580_v8 = vld [vmem:[%s14537_s12 + $0x4c] ss:$16 sps:$4 sm:$0xff]  }
0x18a9   :  { %v11413_v5 = vunpack.i.h.bf16 %v11411_v37  ;;  %v11412_v17 = vunpack.i.l.bf16 %v11411_v37  ;;  %v11575_v37 = vld [vmem:[%s14537_s12 + $0x40] ss:$16 sps:$4 sm:$0xff]  }
0x18aa   :  { %v11103_v45 = vpack.c.bf16 %v11418_v52, %v11417_v55  ;;  %v11578_v52 = vld [vmem:[%s14537_s12 + $0x48] ss:$16 sps:$4 sm:$0xff]   ;;  %v11583_v55 = vld [vmem:[%s14537_s12 + $0x64] ss:$16 sps:$4 sm:$0xff]  }
0x18ab   :  { %v11924_v44 = vpop.eup %11923  ;;  %v11099_v43 = vpack.c.bf16 %v11413_v5, %v11412_v17  ;;  %v11586_v5 = vld [vmem:[%s14537_s12 + $0x6c] ss:$16 sps:$4 sm:$0xff]   ;;  %v11581_v17 = vld [vmem:[%s14537_s12 + $0x60] ss:$16 sps:$4 sm:$0xff]  }
0x18ac   :  { %v7700_v34 = vmul.f32 %v11924_v44, %v11918_v49  ;;  %v11926_v14 = vpop.eup %11925  ;;  %v11584_v44 = vld [vmem:[%s14537_s12 + $0x68] ss:$16 sps:$4 sm:$0xff]  }
0x18ad   :  { %11100 = vmatprep.subr.bf16.mxu1 %v11099_v43  ;;  %v7701_v12 = vmul.f32 %v11926_v14, %v11916_v35  ;;  %v11590_v14 = vld [vmem:[%s14537_s12 + $0x88] ss:$16 sps:$4 sm:$0xff]  }
0x18ae   :  { %11102 = vmatpush3.bf16.msra.mxu1 %v11099_v43  ;;  %10647 = vmatprep.mubr.msk.f32.mxu1 %vm682_vm0, %v7700_v34  ;;  %v11589_v43 = vld [vmem:[%s14537_s12 + $0x84] ss:$16 sps:$4 sm:$0xff]   ;;  %v11592_v34 = vld [vmem:[%s14537_s12 + $0x8c] ss:$16 sps:$4 sm:$0xff]  }
0x18af   :  { %11104 = vmatprep.subr.bf16.mxu1 %v11103_v45  ;;  %v11928_v33 = vpop.eup %11927 }
0x18b0   :  { %v11930_v18 = vpop.eup %11929  ;;  %v7702_v20 = vmul.f32 %v11928_v33, %v11922_v28  ;;  %v11595_v33 = vld [vmem:[%s14537_s12 + $0xa4] ss:$16 sps:$4 sm:$0xff]  }
0x18b1   :  { %v7703_v57 = vmul.f32 %v11930_v18, %v11920_v23  ;;  %v11593_v18 = vld [vmem:[%s14537_s12 + $0xa0] ss:$16 sps:$4 sm:$0xff]  }
0x18b2   :  { %11106 = vmatpush3.bf16.msra.mxu1 %v11103_v45  ;;  %v11587_v45 = vld [vmem:[%s14537_s12 + $0x80] ss:$16 sps:$4 sm:$0xff]  }
0x18b3   :  { %11108 = vmatprep.subr.bf16.mxu1 %v13991_v1 }
0x18b5   :  { %10648 = vmatmul.mubr.msk.f32.vlgmr.msra.gmra.mrb[128].mxu1 %vm682_vm0, %v7701_v12  ;;  %v11598_v12 = vld [vmem:[%s14537_s12 + $0xac] ss:$16 sps:$4 sm:$0xff]  }
0x18b6   :  { %10650 = vmatprep.mubr.msk.f32.mxu1 %vm682_vm0, %v7702_v20  ;;  %11110 = vmatpush3.bf16.msra.mxu1 %v13991_v1  ;;  %v11596_v20 = vld [vmem:[%s14537_s12 + $0xa8] ss:$16 sps:$4 sm:$0xff]  }
0x18b7   :  { %11112 = vmatprep.subr.bf16.mxu1 %v14000_v27 }
0x18b9   :  { %10651 = vmatmul.mubr.msk.f32.gmra.mrb[130].mxu1 %vm682_vm0, %v7703_v57  ;;  %v11601_v57 = vld [vmem:[%s14537_s12 + $0xc4] ss:$16 sps:$4 sm:$0xff]  }
0x18ba   :  { %11114 = vmatpush3.bf16.msra.mxu1 %v14000_v27 }
0x18d8   :  { %v7937_v1 = vpop.xlane.xlu0 %7936 }
0x18d9   :  { %v7935_v40 = vpop.xlane.xlu1 %7934  ;;  %v7951_v41 = vmul.f32 0.0078125, %v7937_v1  ;;  %v11607_v1 = vld [vmem:[%s14537_s12 + $0xe4] ss:$16 sps:$4 sm:$0xff]  }
0x18da   :  { %v7950_v35 = vmul.f32 0.0078125, %v7935_v40  ;;  %v11608_v40 = vld [vmem:[%s14537_s12 + $0xe8] ss:$16 sps:$4 sm:$0xff]  }
0x18db   :  { %v14237_v31 = vsub.f32 %v14188_v4, %v7951_v41 }
0x18dc   :  { %v7941_v49 = vpop.xlane.xlu0 %7940 }
0x18dd   :  { %v7939_v23 = vpop.xlane.xlu1 %7938  ;;  %v7967_v4 = vmul.f32 %v14237_v31, %v14237_v31 }
0x18de   :  { %v7952_v21 = vmul.f32 0.0078125, %v7939_v23 }
0x1988   :  { %v10649_v58 = vpop.f32.mrb[128].mxu1 }
0x1989   :  { %v7794_v56 = vpop.f32.mrb[129].mxu1 }
0x198a   :  { %10661 = vmatprep.mubr.msk.f32.mxu1 %vm682_vm0, %v7794_v56  ;;  %v11599_v56 = vld [vmem:[%s14537_s12 + $0xc0] ss:$16 sps:$4 sm:$0xff]  }
0x198b   :  { %10662 = vmatmul.mubr.msk.f32.vlgmr.msra.gmra.mrb[120].mxu1 %vm682_vm0, %v10649_v58  ;;  %v11604_v58 = vld [vmem:[%s14537_s12 + $0xcc] ss:$16 sps:$4 sm:$0xff]  }
0x198c   :  { %v10652_v61 = vpop.f32.mrb[130].mxu1 }
0x198d   :  { %v7804_v47 = vpop.f32.mrb[131].mxu1 }
0x198e   :  { %10664 = vmatprep.mubr.msk.f32.mxu1 %vm682_vm0, %v7804_v47  ;;  %v11605_v47 = vld [vmem:[%s14537_s12 + $0xe0] ss:$16 sps:$4 sm:$0xff]  }
0x198f   :  { %10665 = vmatmul.mubr.msk.f32.gmra.mrb[122].mxu1 %vm682_vm0, %v10652_v61  ;;  %v11602_v61 = vld [vmem:[%s14537_s12 + $0xc8] ss:$16 sps:$4 sm:$0xff]  }
0x1990   :  { %8363 = vmatprep.mubr.bf16.mxu1 %v12094_v0 }
0x1a5e   :  { %v10663_v42 = vpop.f32.mrb[120].mxu1 }
0x1a5f   :  { %v7923_v15 = vadd.f32 %v10663_v42, %v14181_v25  ;;  %v7891_v27 = vpop.f32.mrb[121].mxu1  ;;  %v11610_v42 = vld [vmem:[%s14537_s12 + $0xec] ss:$16 sps:$4 sm:$0xff]  }
0x1a60   :  { %v7922_v63 = vadd.f32 %v14181_v25, %v7891_v27 }
0x1a61   :  { %v14227_v54 = vadd.f32 %v7923_v15, %v13553_v16  ;;  %v7953_v16 = vmul.f32 0.0078125, %v7941_v49 }
0x1a62   :  { %v14230_v46 = vadd.f32 %v7922_v63, %v13550_v62  ;;  %v10666_v26 = vpop.f32.mrb[122].mxu1  ;;  %v14243_v62 = vsub.f32 %v14193_v32, %v7950_v35 }
0x1a63   :  { %v7925_v28 = vadd.f32 %v10666_v26, %v14181_v25  ;;  %7944 = vadd.xlane.f32.xlu0 %v14227_v54  ;;  %v7901_v19 = vpop.f32.mrb[123].mxu1 }
0x1a64   :  { %v7924_v30 = vadd.f32 %v14181_v25, %v7901_v19  ;;  %7942 = vadd.xlane.f32.xlu1 %v14230_v46  ;;  %v14251_v25 = vsub.f32 %v14200_v51, %v7953_v16  ;;  %v7966_v32 = vmul.f32 %v14243_v62, %v14243_v62  ;;  %v11565_v51 = vld [vmem:[%s14537_s12 + $0x4] ss:$16 sps:$4 sm:$0xff]  }
0x1a65   :  { %v14240_v29 = vadd.f32 %v7925_v28, %v13573_v38  ;;  %v14256_v38 = vsub.f32 %v14203_v59, %v7952_v21  ;;  %v11568_v59 = vld [vmem:[%s14537_s12 + $0xc] ss:$16 sps:$4 sm:$0xff]   ;;  %8258 = vmatprep.subr.bf16.mxu0 %v11565_v51 }
0x1a66   :  { %v14246_v2 = vadd.f32 %v7924_v30, %v13570_v11  ;;  %v7969_v11 = vmul.f32 %v14251_v25, %v14251_v25  ;;  %8331 = vmatprep.subr.bf16.mxu1 %v11568_v59  ;;  %8259 = vmatpush1.bf16.msra.mxu0 %v11563_v10 }
0x1a67   :  { %7948 = vadd.xlane.f32.xlu0 %v14240_v29  ;;  %v7968_v9 = vmul.f32 %v14256_v38, %v14256_v38  ;;  %8332 = vmatpush1.bf16.msra.mxu1 %v11566_v6 }
0x1a68   :  { %7946 = vadd.xlane.f32.xlu1 %v14246_v2  ;;  %8260 = vmatprep.subr.bf16.mxu0 %v11571_v13 }
0x1a69   :  { %8333 = vmatprep.subr.bf16.mxu1 %v11574_v24 }
0x1a6a   :  { %8261 = vmatpush1.bf16.msra.mxu0 %v11569_v48 }
0x1a6b   :  { %7976 = vadd.xlane.f32.xlu0 %v7967_v4  ;;  %8334 = vmatpush1.bf16.msra.mxu1 %v11572_v3  ;;  %v14382_v3 = vrot.slane %v14177_v53, %v12334_v60 }
0x1a6c   :  { %7974 = vadd.xlane.f32.xlu1 %v7966_v32  ;;  %8262 = vmatprep.subr.bf16.mxu0 %v11577_v7 }
0x1a6d   :  { %8335 = vmatprep.subr.bf16.mxu1 %v11580_v8 }
0x1a6e   :  { %8263 = vmatpush1.bf16.msra.mxu0 %v11575_v37 }
0x1a6f   :  { %7980 = vadd.xlane.f32.xlu0 %v7969_v11  ;;  %8336 = vmatpush1.bf16.msra.mxu1 %v11578_v52  ;;  %v14388_v52 = vrot.slane %v14177_v53, %v3726_v36 }
0x1a70   :  { %7978 = vadd.xlane.f32.xlu1 %v7968_v9  ;;  %8264 = vmatprep.subr.bf16.mxu0 %v11583_v55 }
0x1a71   :  { %8337 = vmatprep.subr.bf16.mxu1 %v11586_v5 }
0x1a72   :  { %8265 = vmatpush1.bf16.msra.mxu0 %v11581_v17 }
0x1a73   :  { %8338 = vmatpush1.bf16.msra.mxu1 %v11584_v44  ;;  %8266 = vmatprep.subr.bf16.mxu0 %v11589_v43 }
0x1a74   :  { %8339 = vmatprep.subr.bf16.mxu1 %v11592_v34 }
0x1a76   :  { %8267 = vmatpush1.bf16.msra.mxu0 %v11587_v45 }
0x1a77   :  { %8340 = vmatpush1.bf16.msra.mxu1 %v11590_v14  ;;  %8268 = vmatprep.subr.bf16.mxu0 %v11595_v33 }
0x1a78   :  { %8341 = vmatprep.subr.bf16.mxu1 %v11598_v12  ;;  %v11611_v12 = vld [vmem:[#allocation9 + $0x40] sm:$0xff]  }
0x1a7a   :  { %8269 = vmatpush1.bf16.msra.mxu0 %v11593_v18  ;;  %v11612_v18 = vld [vmem:[#allocation9 + $0xc0] sm:$0xff]  }
0x1a7b   :  { %8342 = vmatpush1.bf16.msra.mxu1 %v11596_v20  ;;  %8270 = vmatprep.subr.bf16.mxu0 %v11601_v57  ;;  %v11613_v20 = vld [vmem:[#allocation9] sm:$0xff]  }
0x1a7c   :  { %8343 = vmatprep.subr.bf16.mxu1 %v11604_v58  ;;  %v11614_v57 = vld [vmem:[#allocation9 + $0x80] sm:$0xff]   ;;  %v11615_v58 = vld [vmem:[#allocation9 + $0x48] sm:$0xff]  }
0x1a7e   :  { %8271 = vmatpush1.bf16.msra.mxu0 %v11599_v56  ;;  %v11616_v56 = vld [vmem:[#allocation9 + $0xc8] sm:$0xff]  }
0x1a7f   :  { %8344 = vmatpush1.bf16.msra.mxu1 %v11602_v61  ;;  %8272 = vmatprep.subr.bf16.mxu0 %v11607_v1  ;;  %v11617_v61 = vld [vmem:[#allocation9 + $0x8] sm:$0xff]   ;;  %v11619_v1 = vld [vmem:[#allocation9 + $0x50] sm:$0xff]  }
0x1a80   :  { %8345 = vmatprep.subr.bf16.mxu1 %v11610_v42  ;;  %v11621_v42 = vld [vmem:[#allocation9 + $0x10] sm:$0xff]  }
0x1a82   :  { %8273 = vmatpush1.bf16.msra.mxu0 %v11605_v47  ;;  %v11618_v47 = vld [vmem:[#allocation9 + $0x88] sm:$0xff]  }
0x1a83   :  { %8346 = vmatpush1.bf16.msra.mxu1 %v11608_v40  ;;  %9867 = vmatprep.subr.bf16.mxu0 %v11611_v12  ;;  %v11620_v40 = vld [vmem:[#allocation9 + $0xd0] sm:$0xff]  }
0x1a84   :  { %9907 = vmatprep.subr.bf16.mxu1 %v11612_v18 }
0x1af0   :  { %v7945_v15 = vpop.xlane.xlu0 %7944 }
0x1af1   :  { %v7955_v27 = vmul.f32 0.0078125, %v7945_v15  ;;  %v7943_v63 = vpop.xlane.xlu1 %7942  ;;  %v11622_v15 = vld [vmem:[#allocation9 + $0x90] sm:$0xff]  }
0x1af2   :  { %v7954_v41 = vmul.f32 0.0078125, %v7943_v63  ;;  %v11624_v63 = vld [vmem:[#allocation9 + $0xd8] sm:$0xff]  }
0x1af3   :  { %v14361_v35 = vsub.f32 %v14227_v54, %v7955_v27  ;;  %v11623_v27 = vld [vmem:[#allocation9 + $0x58] sm:$0xff]  }
0x1af4   :  { %v14364_v49 = vsub.f32 %v14230_v46, %v7954_v41  ;;  %v7949_v26 = vpop.xlane.xlu0 %7948  ;;  %v11625_v41 = vld [vmem:[#allocation9 + $0x18] sm:$0xff]  }
0x1af5   :  { %v7957_v23 = vmul.f32 0.0078125, %v7949_v26  ;;  %v7947_v28 = vpop.xlane.xlu1 %7946  ;;  %v7971_v19 = vmul.f32 %v14361_v35, %v14361_v35  ;;  %v11626_v26 = vld [vmem:[#allocation9 + $0x98] sm:$0xff]  }
0x1af6   :  { %v7956_v30 = vmul.f32 0.0078125, %v7947_v28  ;;  %v7970_v16 = vmul.f32 %v14364_v49, %v14364_v49  ;;  %v11628_v28 = vld [vmem:[#allocation9 + $0xe0] sm:$0xff]  }
0x1af7   :  { %v14371_v21 = vsub.f32 %v14240_v29, %v7957_v23  ;;  %7984 = vadd.xlane.f32.xlu0 %v7971_v19  ;;  %v11627_v23 = vld [vmem:[#allocation9 + $0x60] sm:$0xff]  }
0x1af8   :  { %v14374_v54 = vsub.f32 %v14246_v2, %v7956_v30  ;;  %v7977_v4 = vpop.xlane.xlu0 %7976  ;;  %7982 = vadd.xlane.f32.xlu1 %v7970_v16  ;;  %v11629_v19 = vld [vmem:[#allocation9 + $0x20] sm:$0xff]   ;;  %v11631_v16 = vld [vmem:[#allocation9 + $0x68] sm:$0xff]  }
0x1af9   :  { %v7991_v46 = vmul.f32 0.0078125, %v7977_v4  ;;  %v7975_v32 = vpop.xlane.xlu1 %7974  ;;  %v7973_v11 = vmul.f32 %v14371_v21, %v14371_v21  ;;  %v11630_v30 = vld [vmem:[#allocation9 + $0xa0] sm:$0xff]   ;;  %v11632_v4 = vld [vmem:[#allocation9 + $0xe8] sm:$0xff]  }
0x1afa   :  { %v7990_v9 = vmul.f32 0.0078125, %v7975_v32  ;;  %v7972_v51 = vmul.f32 %v14374_v54, %v14374_v54  ;;  %v11634_v32 = vld [vmem:[#allocation9 + $0xa8] sm:$0xff]  }
0x1afb   :  { %v7999_v59 = vadd.f32 1e-05, %v7991_v46  ;;  %7988 = vadd.xlane.f32.xlu0 %v7973_v11  ;;  %v11633_v46 = vld [vmem:[#allocation9 + $0x28] sm:$0xff]   ;;  %v11635_v11 = vld [vmem:[#allocation9 + $0x70] sm:$0xff]  }
0x1afc   :  { %v7998_v10 = vadd.f32 1e-05, %v7990_v9  ;;  %v7981_v29 = vpop.xlane.xlu0 %7980  ;;  %7986 = vadd.xlane.f32.xlu1 %v7972_v51  ;;  %v11636_v9 = vld [vmem:[#allocation9 + $0xf0] sm:$0xff]  }
0x1afd   :  { %11931 = vrsqrt.f32 %v7999_v59  ;;  %v7993_v6 = vmul.f32 0.0078125, %v7981_v29  ;;  %v7979_v2 = vpop.xlane.xlu1 %7978  ;;  %v11637_v51 = vld [vmem:[#allocation9 + $0x30] sm:$0xff]   ;;  %v11640_v29 = vld [vmem:[#allocation9 + $0xf8] sm:$0xff]  }
0x1afe   :  { %11933 = vrsqrt.f32 %v7998_v10  ;;  %v7992_v13 = vmul.f32 0.0078125, %v7979_v2  ;;  %v11638_v59 = vld [vmem:[#allocation9 + $0xb0] sm:$0xff]   ;;  %v11639_v10 = vld [vmem:[#allocation9 + $0x78] sm:$0xff]  }
0x1aff   :  { %v8001_v24 = vadd.f32 1e-05, %v7993_v6  ;;  %v11641_v6 = vld [vmem:[#allocation9 + $0x38] sm:$0xff]  }
0x1b00   :  { %v8000_v48 = vadd.f32 1e-05, %v7992_v13  ;;  %v11642_v2 = vld [vmem:[#allocation9 + $0xb8] sm:$0xff]  }
0x1b01   :  { %11935 = vrsqrt.f32 %v8001_v24 }
0x1b02   :  { %11937 = vrsqrt.f32 %v8000_v48 }
0x1b07   :  { %v11932_v7 = vpop.eup %11931 }
0x1b08   :  { %v11934_v8 = vpop.eup %11933  ;;  %v8015_v37 = vmul.f32 %v11932_v7, %v14237_v31 }
0x1b09   :  { %v8014_v55 = vmul.f32 %v11934_v8, %v14243_v62 }
0x1b0a   :  { %v8027_v5 = vmul.f32 %v14382_v3, %v8015_v37 }
0x1b0b   :  { %v11936_v17 = vpop.eup %11935  ;;  %v8026_v44 = vmul.f32 %v14382_v3, %v8014_v55 }
0x1b0c   :  { %v11938_v43 = vpop.eup %11937  ;;  %v14394_v60 = vadd.f32 %v14388_v52, %v8027_v5  ;;  %v8017_v34 = vmul.f32 %v11936_v17, %v14251_v25 }
0x1b0d   :  { %v14398_v31 = vadd.f32 %v14388_v52, %v8026_v44  ;;  %v8016_v45 = vmul.f32 %v11938_v43, %v14256_v38 }
0x1b0e   :  { %v8029_v14 = vmul.f32 %v14382_v3, %v8017_v34 }
0x1b0f   :  { %v8046_v36 = vpack.c.bf16 %v14394_v60, %v14398_v31  ;;  %v8028_v62 = vmul.f32 %v14382_v3, %v8016_v45 }
0x1b10   :  { %v8041_v33 = vadd.f32 %v14388_v52, %v8029_v14 }
0x1b11   :  { %8291 = vmatmul.mubr.bf16.vlgmr.msra.gmra.mrb[124].mxu0 %v8046_v36  ;;  %8364 = vmatmul.mubr.bf16.vlgmr.msra.gmra.mrb[132].mxu1 %v8046_v36  ;;  %v14408_v25 = vadd.f32 %v14388_v52, %v8028_v62 }
0x1b12   :  { %8300 = vmatprep.mubr.bf16.mxu0 %v12094_v0  ;;  %8373 = vmatprep.mubr.bf16.mxu1 %v12094_v0 }
0x1b13   :  { %v8047_v38 = vpack.c.bf16 %v8041_v33, %v14408_v25  ;;  %9868 = vmatpush3.bf16.msra.mxu0 %v11613_v20  ;;  %9908 = vmatpush3.bf16.msra.mxu1 %v11614_v57 }
0x1b14   :  { %9869 = vmatprep.subr.bf16.mxu0 %v11615_v58  ;;  %9909 = vmatprep.subr.bf16.mxu1 %v11616_v56 }
0x1b17   :  { %9870 = vmatpush3.bf16.msra.mxu0 %v11617_v61  ;;  %9910 = vmatpush3.bf16.msra.mxu1 %v11618_v47 }
0x1b18   :  { %9871 = vmatprep.subr.bf16.mxu0 %v11619_v1  ;;  %9911 = vmatprep.subr.bf16.mxu1 %v11620_v40  ;;  %v4655_v1 = vld [vmem:[%s14539_s14 + $0x18] sm:$0xff] }
0x1b19   :  { %8301 = vmatmul.mubr.bf16.gmra.mrb[128].mxu0 %v8047_v38  ;;  %8374 = vmatmul.mubr.bf16.gmra.mrb[136].mxu1 %v8047_v38 }
0x1b1a   :  { %8310 = vmatprep.mubr.bf16.mxu0 %v12094_v0  ;;  %8383 = vmatprep.mubr.bf16.mxu1 %v12094_v0 }
0x1b1b   :  { %9872 = vmatpush3.bf16.msra.mxu0 %v11621_v42  ;;  %9912 = vmatpush3.bf16.msra.mxu1 %v11622_v15  ;;  %v14457_v15 = vrot.slane %v4655_v1, %v13235_v39 }
0x1b1c   :  { %9873 = vmatprep.subr.bf16.mxu0 %v11623_v27  ;;  %9913 = vmatprep.subr.bf16.mxu1 %v11624_v63 }
0x1b1f   :  { %9874 = vmatpush3.bf16.msra.mxu0 %v11625_v41  ;;  %9914 = vmatpush3.bf16.msra.mxu1 %v11626_v26 }
0x1b20   :  { %9875 = vmatprep.subr.bf16.mxu0 %v11627_v23  ;;  %9915 = vmatprep.subr.bf16.mxu1 %v11628_v28 }
0x1b23   :  { %9876 = vmatpush3.bf16.msra.mxu0 %v11629_v19  ;;  %9916 = vmatpush3.bf16.msra.mxu1 %v11630_v30 }
0x1b24   :  { %9877 = vmatprep.subr.bf16.mxu0 %v11631_v16  ;;  %9917 = vmatprep.subr.bf16.mxu1 %v11632_v4 }
0x1b27   :  { %9878 = vmatpush3.bf16.msra.mxu0 %v11633_v46  ;;  %9918 = vmatpush3.bf16.msra.mxu1 %v11634_v32 }
0x1b28   :  { %9879 = vmatprep.subr.bf16.mxu0 %v11635_v11  ;;  %9919 = vmatprep.subr.bf16.mxu1 %v11636_v9 }
0x1b2b   :  { %9880 = vmatpush3.bf16.msra.mxu0 %v11637_v51  ;;  %9920 = vmatpush3.bf16.msra.mxu1 %v11638_v59 }
0x1b2c   :  { %9881 = vmatprep.subr.bf16.mxu0 %v11639_v10  ;;  %9921 = vmatprep.subr.bf16.mxu1 %v11640_v29 }
0x1b2f   :  { %9882 = vmatpush3.bf16.msra.mxu0 %v11641_v6  ;;  %9922 = vmatpush3.bf16.msra.mxu1 %v11642_v2 }
0x1b84   :  { %v7985_v13 = vpop.xlane.xlu0 %7984 }
0x1b85   :  { %v7995_v24 = vmul.f32 0.0078125, %v7985_v13  ;;  %v7983_v48 = vpop.xlane.xlu1 %7982 }
0x1b86   :  { %v7994_v7 = vmul.f32 0.0078125, %v7983_v48 }
0x1b87   :  { %v8003_v8 = vadd.f32 1e-05, %v7995_v24 }
0x1b88   :  { %v8002_v37 = vadd.f32 1e-05, %v7994_v7  ;;  %v7989_v55 = vpop.xlane.xlu0 %7988 }
0x1b89   :  { %11939 = vrsqrt.f32 %v8003_v8  ;;  %v7997_v5 = vmul.f32 0.0078125, %v7989_v55  ;;  %v7987_v17 = vpop.xlane.xlu1 %7986 }
0x1b8a   :  { %11941 = vrsqrt.f32 %v8002_v37  ;;  %v7996_v44 = vmul.f32 0.0078125, %v7987_v17 }
0x1b8b   :  { %v8005_v43 = vadd.f32 1e-05, %v7997_v5 }
0x1b8c   :  { %v8004_v34 = vadd.f32 1e-05, %v7996_v44 }
0x1b8d   :  { %11943 = vrsqrt.f32 %v8005_v43 }
0x1b8e   :  { %11945 = vrsqrt.f32 %v8004_v34 }
0x1b93   :  { %v11940_v45 = vpop.eup %11939 }
0x1b94   :  { %v11942_v36 = vpop.eup %11941  ;;  %v8019_v62 = vmul.f32 %v11940_v45, %v14361_v35 }
0x1b95   :  { %v8018_v14 = vmul.f32 %v11942_v36, %v14364_v49 }
0x1b96   :  { %v8031_v33 = vmul.f32 %v14382_v3, %v8019_v62 }
0x1b97   :  { %v11944_v38 = vpop.eup %11943  ;;  %v8030_v12 = vmul.f32 %v14382_v3, %v8018_v14 }
0x1b98   :  { %v11946_v18 = vpop.eup %11945  ;;  %v14419_v20 = vadd.f32 %v14388_v52, %v8031_v33  ;;  %v8021_v57 = vmul.f32 %v11944_v38, %v14371_v21 }
0x1b99   :  { %v14423_v58 = vadd.f32 %v14388_v52, %v8030_v12  ;;  %v8020_v56 = vmul.f32 %v11946_v18, %v14374_v54 }
0x1b9a   :  { %v8033_v61 = vmul.f32 %v14382_v3, %v8021_v57 }
0x1b9b   :  { %v8048_v35 = vpack.c.bf16 %v14419_v20, %v14423_v58  ;;  %v8032_v49 = vmul.f32 %v14382_v3, %v8020_v56  ;;  %v14442_v3 = vrot.slane %v14177_v53, %v13235_v39 }
0x1b9c   :  { %v8045_v47 = vadd.f32 %v14388_v52, %v8033_v61 }
0x1b9d   :  { %8311 = vmatmul.mubr.bf16.gmra.mrb[132].mxu0 %v8048_v35  ;;  %8384 = vmatmul.mubr.bf16.gmra.mrb[140].mxu1 %v8048_v35  ;;  %v14433_v21 = vadd.f32 %v14388_v52, %v8032_v49  ;;  %v11965_v52 = vld [vmem:[%s14539_s14 + $0x8] sm:$0xff] }
0x1b9e   :  { %8320 = vmatprep.mubr.bf16.mxu0 %v12094_v0  ;;  %8393 = vmatprep.mubr.bf16.mxu1 %v12094_v0  ;;  %v11964_v0 = vld [vmem:[%s14539_s14 + $0x10] sm:$0xff]  ;;  %v14454_v42 = vrot.slane %v11965_v52, %v13235_v39 }
0x1b9f   :  { %v8049_v54 = vpack.c.bf16 %v8045_v47, %v14433_v21  ;;  %v14448_v40 = vrot.slane %v11964_v0, %v13235_v39 }
0x1ba5   :  { %8321 = vmatmul.mubr.bf16.gmra.mrb[136].mxu0 %v8049_v54  ;;  %8394 = vmatmul.mubr.bf16.gmra.mrb[144].mxu1 %v8049_v54 }
0x1be4   :  { %v8292_v27 = vpop.f32.mrb[124].mxu0  ;;  %v8365_v63 = vpop.f32.mrb[132].mxu1 }
0x1be5   :  { %v8293_v41 = vadd.f32 %v8292_v27, %v14442_v3  ;;  %v8366_v26 = vadd.f32 %v8365_v63, %v14448_v40  ;;  %v8294_v23 = vpop.f32.mrb[125].mxu0  ;;  %v8367_v28 = vpop.f32.mrb[133].mxu1 }
0x1be6   :  { %v8295_v19 = vadd.f32 %v8294_v23, %v14454_v42  ;;  %v8368_v30 = vadd.f32 %v8367_v28, %v14457_v15  ;;  %v8296_v16 = vpop.f32.mrb[126].mxu0  ;;  %v8369_v4 = vpop.f32.mrb[134].mxu1 }
0x1be7   :  { %v8297_v46 = vadd.f32 %v8296_v16, %v14442_v3  ;;  %v8370_v32 = vadd.f32 %v8369_v4, %v14448_v40  ;;  %v8298_v39 = vpop.f32.mrb[127].mxu0  ;;  %v8371_v11 = vpop.f32.mrb[135].mxu1  ;;  %v8404_v59 = vmax.f32 %v8293_v41, 0.0  ;;  %v8406_v10 = vmax.f32 %v8366_v26, 0.0 }
0x1be8   :  { %v8299_v9 = vadd.f32 %v8298_v39, %v14454_v42  ;;  %v8372_v51 = vadd.f32 %v8371_v11, %v14457_v15  ;;  %v8405_v2 = vmax.f32 %v8295_v19, 0.0  ;;  %v8407_v13 = vmax.f32 %v8368_v30, 0.0 }
0x1be9   :  { %v8408_v29 = vmax.f32 %v8297_v46, 0.0  ;;  %v8410_v6 = vmax.f32 %v8370_v32, 0.0 }
0x1bea   :  { %v8409_v24 = vmax.f32 %v8299_v9, 0.0  ;;  %v8411_v48 = vmax.f32 %v8372_v51, 0.0 }
0x1beb   :  { %v8436_v7 = vpack.c.bf16 %v8408_v29, %v8404_v59  ;;  %v8438_v8 = vpack.c.bf16 %v8410_v6, %v8406_v10 }
0x1bec   :  { %v8437_v37 = vpack.c.bf16 %v8409_v24, %v8405_v2  ;;  %v8439_v55 = vpack.c.bf16 %v8411_v48, %v8407_v13  ;;  %v8302_v5 = vpop.f32.mrb[128].mxu0  ;;  %v8375_v17 = vpop.f32.mrb[136].mxu1 }
0x1bed   :  { %v8303_v44 = vadd.f32 %v8302_v5, %v14442_v3  ;;  %v8376_v43 = vadd.f32 %v8375_v17, %v14448_v40  ;;  %v8304_v34 = vpop.f32.mrb[129].mxu0  ;;  %v8377_v45 = vpop.f32.mrb[137].mxu1 }
0x1bee   :  { %v8305_v36 = vadd.f32 %v8304_v34, %v14454_v42  ;;  %v8378_v62 = vadd.f32 %v8377_v45, %v14457_v15  ;;  %v8306_v14 = vpop.f32.mrb[130].mxu0  ;;  %v8379_v33 = vpop.f32.mrb[138].mxu1  ;;  %8744 = vmatprep.mubr.bf16.mxu0 %v8437_v37  ;;  %8807 = vmatprep.mubr.bf16.mxu1 %v8439_v55 }
0x1bef   :  { %v8307_v38 = vadd.f32 %v8306_v14, %v14442_v3  ;;  %v8380_v12 = vadd.f32 %v8379_v33, %v14448_v40  ;;  %v8308_v18 = vpop.f32.mrb[131].mxu0  ;;  %v8381_v57 = vpop.f32.mrb[139].mxu1  ;;  %8745 = vmatmul.mubr.bf16.vlgmr.msra.gmra.mrb[140].mxu0 %v8436_v7  ;;  %8808 = vmatmul.mubr.bf16.vlgmr.msra.gmra.mrb[148].mxu1 %v8438_v8  ;;  %v8412_v49 = vmax.f32 %v8303_v44, 0.0  ;;  %v8414_v61 = vmax.f32 %v8376_v43, 0.0 }
0x1bf0   :  { %v8309_v56 = vadd.f32 %v8308_v18, %v14454_v42  ;;  %v8382_v35 = vadd.f32 %v8381_v57, %v14457_v15  ;;  %v8413_v1 = vmax.f32 %v8305_v36, 0.0  ;;  %v8415_v0 = vmax.f32 %v8378_v62, 0.0 }
0x1bf1   :  { %v8416_v47 = vmax.f32 %v8307_v38, 0.0  ;;  %v8418_v54 = vmax.f32 %v8380_v12, 0.0 }
0x1bf2   :  { %v8417_v52 = vmax.f32 %v8309_v56, 0.0  ;;  %v8419_v27 = vmax.f32 %v8382_v35, 0.0 }
0x1bf3   :  { %v8440_v63 = vpack.c.bf16 %v8416_v47, %v8412_v49  ;;  %v8442_v41 = vpack.c.bf16 %v8418_v54, %v8414_v61 }
0x1bf4   :  { %v8441_v26 = vpack.c.bf16 %v8417_v52, %v8413_v1  ;;  %v8443_v23 = vpack.c.bf16 %v8419_v27, %v8415_v0 }
0x1bf6   :  { %8752 = vmatprep.mubr.bf16.mxu0 %v8441_v26  ;;  %8815 = vmatprep.mubr.bf16.mxu1 %v8443_v23 }
0x1bf7   :  { %8753 = vmatmul.mubr.bf16.gmra.mrb[144].mxu0 %v8440_v63  ;;  %8816 = vmatmul.mubr.bf16.gmra.mrb[152].mxu1 %v8442_v41 }
0x1c70   :  { %v8312_v28 = vpop.f32.mrb[132].mxu0  ;;  %v8385_v19 = vpop.f32.mrb[140].mxu1 }
0x1c71   :  { %v8313_v30 = vadd.f32 %v8312_v28, %v14442_v3  ;;  %v8386_v16 = vadd.f32 %v8385_v19, %v14448_v40  ;;  %v8314_v4 = vpop.f32.mrb[133].mxu0  ;;  %v8387_v46 = vpop.f32.mrb[141].mxu1 }
0x1c72   :  { %v8315_v32 = vadd.f32 %v8314_v4, %v14454_v42  ;;  %v8388_v39 = vadd.f32 %v8387_v46, %v14457_v15  ;;  %v8316_v11 = vpop.f32.mrb[134].mxu0  ;;  %v8389_v9 = vpop.f32.mrb[142].mxu1 }
0x1c73   :  { %v8317_v51 = vadd.f32 %v8316_v11, %v14442_v3  ;;  %v8390_v59 = vadd.f32 %v8389_v9, %v14448_v40  ;;  %v8318_v10 = vpop.f32.mrb[135].mxu0  ;;  %v8391_v29 = vpop.f32.mrb[143].mxu1  ;;  %v8420_v13 = vmax.f32 %v8313_v30, 0.0  ;;  %v8422_v24 = vmax.f32 %v8386_v16, 0.0 }
0x1c74   :  { %v8319_v6 = vadd.f32 %v8318_v10, %v14454_v42  ;;  %v8392_v2 = vadd.f32 %v8391_v29, %v14457_v15  ;;  %v8421_v8 = vmax.f32 %v8315_v32, 0.0  ;;  %v8423_v37 = vmax.f32 %v8388_v39, 0.0 }
0x1c75   :  { %v8424_v48 = vmax.f32 %v8317_v51, 0.0  ;;  %v8426_v7 = vmax.f32 %v8390_v59, 0.0 }
0x1c76   :  { %v8425_v55 = vmax.f32 %v8319_v6, 0.0  ;;  %v8427_v5 = vmax.f32 %v8392_v2, 0.0 }
0x1c77   :  { %v8444_v17 = vpack.c.bf16 %v8424_v48, %v8420_v13  ;;  %v8446_v44 = vpack.c.bf16 %v8426_v7, %v8422_v24 }
0x1c78   :  { %v8445_v43 = vpack.c.bf16 %v8425_v55, %v8421_v8  ;;  %v8447_v34 = vpack.c.bf16 %v8427_v5, %v8423_v37  ;;  %v8322_v45 = vpop.f32.mrb[136].mxu0  ;;  %v8395_v36 = vpop.f32.mrb[144].mxu1 }
0x1c79   :  { %v8323_v62 = vadd.f32 %v8322_v45, %v14442_v3  ;;  %v8396_v14 = vadd.f32 %v8395_v36, %v14448_v40  ;;  %v8324_v33 = vpop.f32.mrb[137].mxu0  ;;  %v8397_v38 = vpop.f32.mrb[145].mxu1 }
0x1c7a   :  { %v8325_v12 = vadd.f32 %v8324_v33, %v14454_v42  ;;  %v8398_v18 = vadd.f32 %v8397_v38, %v14457_v15  ;;  %v8326_v57 = vpop.f32.mrb[138].mxu0  ;;  %v8399_v56 = vpop.f32.mrb[146].mxu1  ;;  %8759 = vmatprep.mubr.bf16.mxu0 %v8445_v43  ;;  %8822 = vmatprep.mubr.bf16.mxu1 %v8447_v34 }
0x1c7b   :  { %v8327_v35 = vadd.f32 %v8326_v57, %v14442_v3  ;;  %v8400_v49 = vadd.f32 %v8399_v56, %v14448_v40  ;;  %v8328_v61 = vpop.f32.mrb[139].mxu0  ;;  %v8401_v47 = vpop.f32.mrb[147].mxu1  ;;  %8760 = vmatmul.mubr.bf16.gmra.mrb[148].mxu0 %v8444_v17  ;;  %8823 = vmatmul.mubr.bf16.gmra.mrb[156].mxu1 %v8446_v44  ;;  %v8428_v0 = vmax.f32 %v8323_v62, 0.0  ;;  %v8430_v52 = vmax.f32 %v8396_v14, 0.0 }
0x1c7c   :  { %v8329_v54 = vadd.f32 %v8328_v61, %v14454_v42  ;;  %v8402_v1 = vadd.f32 %v8401_v47, %v14457_v15  ;;  %v8429_v41 = vmax.f32 %v8325_v12, 0.0  ;;  %v8431_v26 = vmax.f32 %v8398_v18, 0.0 }
0x1c7d   :  { %v8432_v27 = vmax.f32 %v8327_v35, 0.0  ;;  %v8434_v63 = vmax.f32 %v8400_v49, 0.0  ;;  %v8519_v15 = vrot.slane %v14177_v53, %v4208_v22 }
0x1c7e   :  { %v8433_v23 = vmax.f32 %v8329_v54, 0.0  ;;  %v8435_v28 = vmax.f32 %v8402_v1, 0.0 }
0x1c7f   :  { %v8448_v19 = vpack.c.bf16 %v8432_v27, %v8428_v0  ;;  %v8450_v3 = vpack.c.bf16 %v8434_v63, %v8430_v52 }
0x1c80   :  { %v8449_v30 = vpack.c.bf16 %v8433_v23, %v8429_v41  ;;  %v8451_v40 = vpack.c.bf16 %v8435_v28, %v8431_v26 }
0x1c82   :  { %8767 = vmatprep.mubr.bf16.mxu0 %v8449_v30  ;;  %8830 = vmatprep.mubr.bf16.mxu1 %v8451_v40 }
0x1c83   :  { %8768 = vmatmul.mubr.bf16.gmra.mrb[152].mxu0 %v8448_v19  ;;  %8831 = vmatmul.mubr.bf16.gmra.mrb[160].mxu1 %v8450_v3 }
0x1cc2   :  { %v9883_v16 = vpop.f32.mrb[140].mxu0  ;;  %v9923_v42 = vpop.f32.mrb[148].mxu1 }
0x1cc3   :  { %v9884_v4 = vpop.f32.mrb[141].mxu0  ;;  %v9924_v46 = vpop.f32.mrb[149].mxu1 }
0x1cc4   :  { %v9885_v32 = vadd.f32 %v9884_v4, %v9883_v16  ;;  %v9925_v39 = vadd.f32 %v9924_v46, %v9923_v42  ;;  %v9886_v11 = vpop.f32.mrb[142].mxu0  ;;  %v9926_v9 = vpop.f32.mrb[150].mxu1 }
0x1cc5   :  { %v9887_v51 = vpop.f32.mrb[143].mxu0  ;;  %v9927_v59 = vpop.f32.mrb[151].mxu1 }
0x1cc6   :  { %v8747_v10 = vadd.f32 %v9885_v32, %v8519_v15  ;;  %v9888_v29 = vadd.f32 %v9887_v51, %v9886_v11  ;;  %v9928_v6 = vadd.f32 %v9927_v59, %v9926_v9 }
0x1cc8   :  { %v8810_v2 = vadd.f32 %v9925_v39, %v8747_v10  ;;  %v8750_v13 = vadd.f32 %v9888_v29, %v8519_v15 }
0x1cca   :  { %v8813_v24 = vadd.f32 %v9928_v6, %v8750_v13  ;;  %v9889_v48 = vpop.f32.mrb[144].mxu0  ;;  %v9929_v7 = vpop.f32.mrb[152].mxu1  ;;  %v8838_v8 = vadd.f32 %v8810_v2, %v14398_v31 }
0x1ccb   :  { %v9890_v37 = vpop.f32.mrb[145].mxu0  ;;  %v9930_v22 = vpop.f32.mrb[153].mxu1 }
0x1ccc   :  { %v9891_v53 = vadd.f32 %v9890_v37, %v9889_v48  ;;  %v9931_v55 = vadd.f32 %v9930_v22, %v9929_v7  ;;  %v9892_v5 = vpop.f32.mrb[146].mxu0  ;;  %v9932_v17 = vpop.f32.mrb[154].mxu1  ;;  %8844 = vadd.xlane.f32.xlu1 %v8838_v8  ;;  %v8839_v44 = vadd.f32 %v8813_v24, %v14394_v60 }
0x1ccd   :  { %v9893_v43 = vpop.f32.mrb[147].mxu0  ;;  %v9933_v34 = vpop.f32.mrb[155].mxu1 }
0x1cce   :  { %v8755_v45 = vadd.f32 %v9891_v53, %v8519_v15  ;;  %8846 = vadd.xlane.f32.xlu0 %v8839_v44 }
0x1cd0   :  { %v8818_v36 = vadd.f32 %v9931_v55, %v8755_v45 }
0x1cd2   :  { %v8840_v62 = vadd.f32 %v8818_v36, %v14408_v25 }
0x1cd4   :  { %8848 = vadd.xlane.f32.xlu1 %v8840_v62 }
0x1d4e   :  { %v9895_v14 = vpop.f32.mrb[148].mxu0  ;;  %v9935_v33 = vpop.f32.mrb[156].mxu1 }
0x1d4f   :  { %v9896_v31 = vpop.f32.mrb[149].mxu0  ;;  %v9936_v38 = vpop.f32.mrb[157].mxu1 }
0x1d50   :  { %v9897_v12 = vadd.f32 %v9896_v31, %v9895_v14  ;;  %v9937_v18 = vadd.f32 %v9936_v38, %v9935_v33  ;;  %v9898_v57 = vpop.f32.mrb[150].mxu0  ;;  %v9938_v56 = vpop.f32.mrb[158].mxu1  ;;  %v11966_v33 = vld [vmem:[%s14539_s14] sm:$0xff]  ;;  %v14547_v31 = vsub.s32 6, %v12314_v50 }
0x1d51   :  { %v9899_v35 = vpop.f32.mrb[151].mxu0  ;;  %v9939_v49 = vpop.f32.mrb[159].mxu1 }
0x1d52   :  { %v8762_v61 = vadd.f32 %v9897_v12, %v8519_v15  ;;  %v9900_v60 = vadd.f32 %v9899_v35, %v9898_v57  ;;  %v9940_v47 = vadd.f32 %v9939_v49, %v9938_v56  ;;  %v8913_v38 = vrot.slane %v11966_v33, %v14547_v31 }
0x1d54   :  { %v8825_v54 = vadd.f32 %v9937_v18, %v8762_v61  ;;  %v8765_v1 = vadd.f32 %v9900_v60, %v8519_v15  ;;  %v14548_v18 = vsub.s32 7, %v12314_v50 }
0x1d56   :  { %v8828_v0 = vadd.f32 %v9940_v47, %v8765_v1  ;;  %v9901_v52 = vpop.f32.mrb[152].mxu0  ;;  %v9941_v27 = vpop.f32.mrb[160].mxu1  ;;  %v8841_v25 = vadd.f32 %v8825_v54, %v14423_v58  ;;  %v8923_v57 = vrot.slane %v11966_v33, %v14548_v18 }
0x1d57   :  { %v9902_v63 = vpop.f32.mrb[153].mxu0  ;;  %v9942_v41 = vpop.f32.mrb[161].mxu1 }
0x1d58   :  { %v9903_v26 = vadd.f32 %v9902_v63, %v9901_v52  ;;  %v9943_v23 = vadd.f32 %v9942_v41, %v9941_v27  ;;  %v9944_v28 = vpop.f32.mrb[162].mxu1  ;;  %8850 = vadd.xlane.f32.xlu0 %v8841_v25  ;;  %v9904_v19 = vpop.f32.mrb[154].mxu0  ;;  %v8842_v3 = vadd.f32 %v8828_v0, %v14419_v20 }
0x1d59   :  { %v9945_v30 = vpop.f32.mrb[163].mxu1  ;;  %v8845_v40 = vpop.xlane.xlu1 %8844 }
0x1d5a   :  { %v8770_v16 = vadd.f32 %v9903_v26, %v8519_v15  ;;  %v8856_v42 = vmul.f32 0.0078125, %v8845_v40  ;;  %v9905_v4 = vpop.f32.mrb[155].mxu0  ;;  %8852 = vadd.xlane.f32.xlu1 %v8842_v3 }
0x1d5b   :  { %v8847_v46 = vpop.xlane.xlu0 %8846 }
0x1d5c   :  { %v8833_v32 = vadd.f32 %v9943_v23, %v8770_v16  ;;  %v8862_v39 = vsub.f32 %v8838_v8, %v8856_v42  ;;  %v8857_v11 = vmul.f32 0.0078125, %v8847_v46 }
0x1d5e   :  { %v8863_v58 = vsub.f32 %v8839_v44, %v8857_v11  ;;  %v8868_v9 = vmul.f32 %v8862_v39, %v8862_v39  ;;  %v8843_v51 = vadd.f32 %v8833_v32, %v14433_v21 }
0x1d60   :  { %8874 = vadd.xlane.f32.xlu1 %v8868_v9  ;;  %8854 = vadd.xlane.f32.xlu0 %v8843_v51  ;;  %v8869_v29 = vmul.f32 %v8863_v58, %v8863_v58 }
0x1d61   :  { %v8849_v59 = vpop.xlane.xlu1 %8848 }
0x1d62   :  { %v8858_v10 = vmul.f32 0.0078125, %v8849_v59 }
0x1d64   :  { %v8864_v20 = vsub.f32 %v8840_v62, %v8858_v10  ;;  %8876 = vadd.xlane.f32.xlu0 %v8869_v29 }
0x1d66   :  { %v8870_v6 = vmul.f32 %v8864_v20, %v8864_v20 }
0x1d68   :  { %8878 = vadd.xlane.f32.xlu1 %v8870_v6 }
0x1de5   :  { %v8851_v15 = vpop.xlane.xlu0 %8850 }
0x1de6   :  { %v8859_v2 = vmul.f32 0.0078125, %v8851_v15 }
0x1de7   :  { %v8853_v13 = vpop.xlane.xlu1 %8852 }
0x1de8   :  { %v8865_v24 = vsub.f32 %v8841_v25, %v8859_v2  ;;  %v8860_v48 = vmul.f32 0.0078125, %v8853_v13 }
0x1dea   :  { %v8866_v7 = vsub.f32 %v8842_v3, %v8860_v48  ;;  %v8871_v8 = vmul.f32 %v8865_v24, %v8865_v24 }
0x1dec   :  { %8880 = vadd.xlane.f32.xlu0 %v8871_v8  ;;  %v8872_v37 = vmul.f32 %v8866_v7, %v8866_v7 }
0x1ded   :  { %v8875_v22 = vpop.xlane.xlu1 %8874  ;;  %v8855_v21 = vpop.xlane.xlu0 %8854 }
0x1dee   :  { %v8886_v53 = vmul.f32 0.0078125, %v8875_v22  ;;  %v8861_v55 = vmul.f32 0.0078125, %v8855_v21  ;;  %8882 = vadd.xlane.f32.xlu1 %v8872_v37 }
0x1df0   :  { %v8892_v5 = vadd.f32 1e-05, %v8886_v53  ;;  %v8867_v17 = vsub.f32 %v8843_v51, %v8861_v55 }
0x1df1   :  { %v8877_v44 = vpop.xlane.xlu0 %8876 }
0x1df2   :  { %11947 = vrsqrt.f32 %v8892_v5  ;;  %v8887_v43 = vmul.f32 0.0078125, %v8877_v44  ;;  %v8873_v34 = vmul.f32 %v8867_v17, %v8867_v17 }
0x1df4   :  { %v8893_v45 = vadd.f32 1e-05, %v8887_v43  ;;  %8884 = vadd.xlane.f32.xlu0 %v8873_v34 }
0x1df5   :  { %v8879_v36 = vpop.xlane.xlu1 %8878 }
0x1df6   :  { %11949 = vrsqrt.f32 %v8893_v45  ;;  %v8888_v62 = vmul.f32 0.0078125, %v8879_v36 }
0x1df8   :  { %v8894_v14 = vadd.f32 1e-05, %v8888_v62 }
0x1dfa   :  { %11951 = vrsqrt.f32 %v8894_v14 }
0x1dfc   :  { %v11948_v12 = vpop.eup %11947 }
0x1dfd   :  { %v8904_v56 = vmul.f32 %v11948_v12, %v8862_v39 }
0x1dff   :  { %v8914_v35 = vmul.f32 %v8913_v38, %v8904_v56 }
0x1e00   :  { %v11950_v49 = vpop.eup %11949 }
0x1e01   :  { %v8924_v61 = vadd.f32 %v8923_v57, %v8914_v35  ;;  %v8905_v60 = vmul.f32 %v11950_v49, %v8863_v58 }
0x1e03   :  { %8930 = vst [vmem:[%s14549_s27] sm:$0xff] %v8924_v61  ;;  %v8915_v47 = vmul.f32 %v8913_v38, %v8905_v60 }
0x1e04   :  { %v11952_v54 = vpop.eup %11951 }
0x1e05   :  { %v8925_v1 = vadd.f32 %v8923_v57, %v8915_v47  ;;  %v8906_v0 = vmul.f32 %v11952_v54, %v8864_v20 }
0x1e07   :  { %8931 = vst [vmem:[%s14549_s27 + $0x8] sm:$0xff] %v8925_v1  ;;  %v8916_v52 = vmul.f32 %v8913_v38, %v8906_v0 }
0x1e09   :  { %v8926_v50 = vadd.f32 %v8923_v57, %v8916_v52 }
0x1e0b   :  { %8932 = vst [vmem:[%s14549_s27 + $0x10] sm:$0xff] %v8926_v50 }
0x1e79   :  { %v8881_v27 = vpop.xlane.xlu0 %8880 }
0x1e7a   :  { %v8889_v25 = vmul.f32 0.0078125, %v8881_v27 }
0x1e7b   :  { %v8883_v63 = vpop.xlane.xlu1 %8882 }
0x1e7c   :  { %v8895_v41 = vadd.f32 1e-05, %v8889_v25  ;;  %v8890_v26 = vmul.f32 0.0078125, %v8883_v63 }
0x1e7e   :  { %11953 = vrsqrt.f32 %v8895_v41  ;;  %v8896_v23 = vadd.f32 1e-05, %v8890_v26 }
0x1e80   :  { %11955 = vrsqrt.f32 %v8896_v23 }
0x1e81   :  { %v8885_v28 = vpop.xlane.xlu0 %8884 }
0x1e82   :  { %v8891_v19 = vmul.f32 0.0078125, %v8885_v28 }
0x1e84   :  { %v8897_v3 = vadd.f32 1e-05, %v8891_v19 }
0x1e86   :  { %11957 = vrsqrt.f32 %v8897_v3 }
0x1e88   :  { %v11954_v30 = vpop.eup %11953 }
0x1e89   :  { %v8907_v40 = vmul.f32 %v11954_v30, %v8865_v24 }
0x1e8a   :  { %v11956_v16 = vpop.eup %11955 }
0x1e8b   :  { %v8917_v42 = vmul.f32 %v8913_v38, %v8907_v40  ;;  %v8908_v4 = vmul.f32 %v11956_v16, %v8866_v7 }
0x1e8d   :  { %v8927_v46 = vadd.f32 %v8923_v57, %v8917_v42  ;;  %v8918_v32 = vmul.f32 %v8913_v38, %v8908_v4 }
0x1e8f   :  { %9376 = vst [vmem:[%s14549_s27 + $0x18] sm:$0xff] %v8927_v46  ;;  %v8928_v39 = vadd.f32 %v8923_v57, %v8918_v32 }
0x1e90   :  { %v11958_v11 = vpop.eup %11957 }
0x1e91   :  { %9377 = vst [vmem:[%s14549_s27 + $0x20] sm:$0xff] %v8928_v39  ;;  %v8909_v58 = vmul.f32 %v11958_v11, %v8867_v17 }
0x1e93   :  { %v8919_v9 = vmul.f32 %v8913_v38, %v8909_v58 }
0x1e95   :  { %v8929_v51 = vadd.f32 %v8923_v57, %v8919_v9 }
0x1e97   :  { %9378 = vst [vmem:[%s14549_s27 + $0x28] sm:$0xff] %v8929_v51 }
0x1e98   :  { %8941 = vsyncpa [#allocation3], 1 }
0x1e99   :  { %8942 = vsyncpa [#allocation5], 1 }
0x1e9a   :  { %8943 = vsyncpa [#allocation8], 1 }

</bundles_post_ra>
